<compile_context>
chip_gen: v7x
topology: tpu7x:2x2x1
jax: 0.10.0
libtpu: 0.0.40
codegen_flags: <defaults>
</compile_context>

<pallas_src>
import functools
import math

import jax
import jax.numpy as jnp
from jax import lax
from jax.experimental import pallas as pl
from jax.experimental.pallas import tpu as pltpu


def _round_up(x, m):
    return (x + m - 1) // m * m


def _pick_tile(dim, preferred):
    """Largest tile <= preferred that divides dim (dim itself if small/unaligned)."""
    if dim <= preferred or dim % 128 != 0:
        return dim
    t = (preferred // 128) * 128
    while dim % t != 0:
        t -= 128
    return t


# ---------------------------------------------------------------------------
# Generation-aware VMEM / tiling configuration
# (v5e/v6e: 128 MiB physical VMEM -> ~96 MiB budget; v7x: 64 MiB -> 48 MiB)
# ---------------------------------------------------------------------------
def _tpu_vmem_capacity():
    try:
        return int(pltpu.get_tpu_info().vmem_capacity_bytes)
    except Exception:
        return 64 * 1024 * 1024          # conservative (v7x-sized) fallback


_VMEM_CAP = _tpu_vmem_capacity()
_BIG_VMEM = _VMEM_CAP >= 100 * 1024 * 1024
_VMEM_LIMIT = min(100 * 1024 * 1024, (_VMEM_CAP * 3) // 4)
_TK_DEFAULT = 1024 if _BIG_VMEM else 512
_W_BUFFERS = 3 if _BIG_VMEM else 2


def _weight_spec(block_shape, index_map, ksteps):
    """Weight BlockSpec; deeper pipelining when VMEM allows and K is deep."""
    if _W_BUFFERS > 2 and ksteps >= _W_BUFFERS:
        return pl.BlockSpec(block_shape, index_map,
                            pipeline_mode=pl.Buffered(_W_BUFFERS))
    return pl.BlockSpec(block_shape, index_map)


# ---------------------------------------------------------------------------
# Tiled matmul + bias (+ReLU): bf16 MXU inputs, f32 accumulation
# ---------------------------------------------------------------------------
def _matmul_bias_kernel(x_ref, w_ref, b_ref, o_ref, acc_ref, *, relu):
    k = pl.program_id(2)

    @pl.when(k == 0)
    def _():
        acc_ref[...] = jnp.zeros_like(acc_ref)

    acc_ref[...] += jnp.dot(x_ref[...], w_ref[...],
                            preferred_element_type=jnp.float32)

    @pl.when(k == pl.num_programs(2) - 1)
    def _():
        acc = acc_ref[...] + b_ref[...]
        if relu:
            acc = jnp.maximum(acc, 0.0)
        o_ref[...] = acc.astype(o_ref.dtype)


def matmul_bias(x, w, b, relu=False, out_dtype=jnp.bfloat16, tn=512):
    """x:[M,K] @ w:[K,N] + b (optional ReLU). Weights are pre-cast bf16."""
    M, K = x.shape
    K2, N = w.shape
    assert K == K2
    if x.dtype != jnp.bfloat16:
        x = x.astype(jnp.bfloat16)
    if w.dtype != jnp.bfloat16:          # no-op for prepped weights
        w = w.astype(jnp.bfloat16)
    if b.ndim == 1:
        b = b.reshape(1, N)
    b = b.astype(jnp.float32)

    tn = _pick_tile(N, tn)
    tk = _pick_tile(K, _TK_DEFAULT)
    # Skinny-M (weight-bandwidth-bound) regime: one block covers all of M so
    # every weight tile streams from HBM exactly once. Tile M only if large.
    Mp = _round_up(M, 16)
    if Mp > 1024:
        Mp = _round_up(M, 256)
        tm = 256
    else:
        tm = Mp
    if Mp != M:
        x = jnp.pad(x, ((0, Mp - M), (0, 0)))

    ksteps = K // tk
    out = pl.pallas_call(
        functools.partial(_matmul_bias_kernel, relu=relu),
        out_shape=jax.ShapeDtypeStruct((Mp, N), out_dtype),
        grid_spec=pltpu.PrefetchScalarGridSpec(
            num_scalar_prefetch=0,
            grid=(Mp // tm, N // tn, ksteps),
            in_specs=[
                pl.BlockSpec((tm, tk), lambda i, j, k: (i, k)),
                _weight_spec((tk, tn), lambda i, j, k: (k, j), ksteps),
                pl.BlockSpec((1, tn), lambda i, j, k: (0, j)),
            ],
            out_specs=pl.BlockSpec((tm, tn), lambda i, j, k: (i, j)),
            scratch_shapes=[pltpu.VMEM((tm, tn), jnp.float32)],
        ),
        compiler_params=pltpu.CompilerParams(
            dimension_semantics=("parallel", "parallel", "arbitrary"),
            vmem_limit_bytes=_VMEM_LIMIT,
        ),
    )(x, w, b)
    return out[:M] if Mp != M else out


# ---------------------------------------------------------------------------
# Matmul + bias + residual + LayerNorm fused into the K-loop finalize
# ---------------------------------------------------------------------------
def _matmul_res_ln_kernel(x_ref, w_ref, b_ref, r_ref, g_ref, bb_ref, o_ref,
                          acc_ref, *, eps):
    k = pl.program_id(1)

    @pl.when(k == 0)
    def _():
        acc_ref[...] = jnp.zeros_like(acc_ref)

    acc_ref[...] += jnp.dot(x_ref[...], w_ref[...],
                            preferred_element_type=jnp.float32)

    @pl.when(k == pl.num_programs(1) - 1)
    def _():
        y = acc_ref[...] + b_ref[...] + r_ref[...].astype(jnp.float32)
        mean = jnp.mean(y, axis=-1, keepdims=True)
        yc = y - mean
        var = jnp.mean(yc * yc, axis=-1, keepdims=True)
        o_ref[...] = (yc * lax.rsqrt(var + eps) * g_ref[...]
                      + bb_ref[...]).astype(o_ref.dtype)


def matmul_bias_res_ln(x, w, b, residual, gamma, beta, eps=1e-5,
                       out_dtype=jnp.bfloat16):
    """LayerNorm(residual + x @ w + b): the residual add and LN run in the
    matmul finalize, saving two HBM passes over the [M, H] activation."""
    M, K = x.shape
    K2, N = w.shape
    assert K == K2 and residual.shape == (M, N)
    if x.dtype != jnp.bfloat16:
        x = x.astype(jnp.bfloat16)
    if w.dtype != jnp.bfloat16:
        w = w.astype(jnp.bfloat16)
    if b.ndim == 1:
        b = b.reshape(1, N)

    tk = _pick_tile(K, _TK_DEFAULT)
    Mp = _round_up(M, 16)
    tm = _pick_tile(Mp, 256)            # keep >=2 row blocks at prod M (megacore)
    if Mp != M:
        x = jnp.pad(x, ((0, Mp - M), (0, 0)))
        residual = jnp.pad(residual, ((0, Mp - M), (0, 0)))

    ksteps = K // tk
    out = pl.pallas_call(
        functools.partial(_matmul_res_ln_kernel, eps=eps),
        out_shape=jax.ShapeDtypeStruct((Mp, N), out_dtype),
        grid_spec=pltpu.PrefetchScalarGridSpec(
            num_scalar_prefetch=0,
            grid=(Mp // tm, ksteps),
            in_specs=[
                pl.BlockSpec((tm, tk), lambda i, k: (i, k)),
                _weight_spec((tk, N), lambda i, k: (k, 0), ksteps),
                pl.BlockSpec((1, N), lambda i, k: (0, 0)),
                pl.BlockSpec((tm, N), lambda i, k: (i, 0)),
                pl.BlockSpec((1, N), lambda i, k: (0, 0)),
                pl.BlockSpec((1, N), lambda i, k: (0, 0)),
            ],
            out_specs=pl.BlockSpec((tm, N), lambda i, k: (i, 0)),
            scratch_shapes=[pltpu.VMEM((tm, N), jnp.float32)],
        ),
        compiler_params=pltpu.CompilerParams(
            dimension_semantics=("parallel", "arbitrary"),
            vmem_limit_bytes=_VMEM_LIMIT,
        ),
    )(x, w, b.astype(jnp.float32), residual, gamma, beta)
    return out[:M] if Mp != M else out


# ---------------------------------------------------------------------------
# Plain LayerNorm (used once at the top of the transformer stack)
# ---------------------------------------------------------------------------
def _layernorm_kernel(x_ref, g_ref, b_ref, o_ref, *, eps):
    x = x_ref[...].astype(jnp.float32)
    mean = jnp.mean(x, axis=-1, keepdims=True)
    xc = x - mean
    var = jnp.mean(xc * xc, axis=-1, keepdims=True)
    o_ref[...] = (xc * lax.rsqrt(var + eps) * g_ref[...]
                  + b_ref[...]).astype(o_ref.dtype)


def layer_norm(x, gamma, beta, eps=1e-5, out_dtype=jnp.bfloat16):
    M, H = x.shape
    Mp = _round_up(M, 16)
    tm = _pick_tile(Mp, 512)
    if Mp != M:
        x = jnp.pad(x, ((0, Mp - M), (0, 0)))
    out = pl.pallas_call(
        functools.partial(_layernorm_kernel, eps=eps),
        out_shape=jax.ShapeDtypeStruct((Mp, H), out_dtype),
        grid_spec=pltpu.PrefetchScalarGridSpec(
            num_scalar_prefetch=0,
            grid=(Mp // tm,),
            in_specs=[pl.BlockSpec((tm, H), lambda i: (i, 0)),
                      pl.BlockSpec((1, H), lambda i: (0, 0)),
                      pl.BlockSpec((1, H), lambda i: (0, 0))],
            out_specs=pl.BlockSpec((tm, H), lambda i: (i, 0)),
        ),
        compiler_params=pltpu.CompilerParams(
            dimension_semantics=("parallel",),
            vmem_limit_bytes=_VMEM_LIMIT,
        ),
    )(x, gamma, beta)
    return out[:M] if Mp != M else out


# ---------------------------------------------------------------------------
# QKV projection that writes per-head lane-dense slabs: [B, 3*nh, Tp, dh]
# (weights pre-laid-out as [3*nh, H, dh] at prep time; x stays resident in
#  VMEM across all 3*nh grid steps, each weight slab streams exactly once)
# ---------------------------------------------------------------------------
def _qkv_heads_kernel(x_ref, w_ref, b_ref, o_ref):
    B, Tp, K = x_ref.shape
    dh = w_ref.shape[-1]
    x = x_ref[...].reshape(B * Tp, K)
    y = jnp.dot(x, w_ref[0], preferred_element_type=jnp.float32) + b_ref[0]
    o_ref[...] = y.reshape(B, 1, Tp, dh).astype(o_ref.dtype)


def qkv_heads_project(x, w_heads, b_heads):
    """x: [B, Tp, H]; w_heads: [3*nh, H, dh]; b_heads: [3*nh, 1, dh] (f32).
    Returns [B, 3*nh, Tp, dh] bf16 (Q heads, K heads, V heads)."""
    B, Tp, H = x.shape
    S, H2, dh = w_heads.shape
    assert H == H2
    if x.dtype != jnp.bfloat16:
        x = x.astype(jnp.bfloat16)
    # TODO(synk): for very large B the resident [B, Tp, H] block should be
    # tiled over batch as well (fine at B<=8 on v7x's 64 MiB VMEM).
    return pl.pallas_call(
        _qkv_heads_kernel,
        out_shape=jax.ShapeDtypeStruct((B, S, Tp, dh), jnp.bfloat16),
        grid_spec=pltpu.PrefetchScalarGridSpec(
            num_scalar_prefetch=0,
            grid=(S,),
            in_specs=[
                pl.BlockSpec((B, Tp, H), lambda s: (0, 0, 0)),   # resident
                pl.BlockSpec((1, H, dh), lambda s: (s, 0, 0)),
                pl.BlockSpec((1, 1, dh), lambda s: (s, 0, 0)),
            ],
            out_specs=pl.BlockSpec((B, 1, Tp, dh), lambda s: (0, s, 0, 0)),
        ),
        compiler_params=pltpu.CompilerParams(
            dimension_semantics=("parallel",),
            vmem_limit_bytes=_VMEM_LIMIT,
        ),
    )(x, w_heads, b_heads)


# ---------------------------------------------------------------------------
# Attention core: grid over (batch, head); lane-dense full-dim q/k/v blocks;
# head-averaged attention accumulated in a f32 VMEM scratch, stored as bf16.
# ---------------------------------------------------------------------------
def _attn_kernel(q_ref, k_ref, v_ref, o_ref, p_ref, acc_ref, *, nh, t_real, t_pad):
    h = pl.program_id(1)

    @pl.when(h == 0)
    def _():
        acc_ref[...] = jnp.zeros_like(acc_ref)

    q = q_ref[0, 0]                       # [Tp, dh]  (softmax scale folded in Wq)
    k = k_ref[0, 0]
    v = v_ref[0, 0]
    s = lax.dot_general(q, k, (((1,), (1,)), ((), ())),
                        preferred_element_type=jnp.float32)      # [Tp, Tp]
    if t_pad > t_real:                    # mask padded key tokens
        key_idx = lax.broadcasted_iota(jnp.int32, s.shape, 1)
        s = jnp.where(key_idx < t_real, s, -jnp.inf)
    s = s - jnp.max(s, axis=-1, keepdims=True)
    e = jnp.exp(s)
    # approx reciprocal (EUP): returned attention rows sum to 1 only to ~1e-3.
    p = e * pl.reciprocal(jnp.sum(e, axis=-1, keepdims=True), approx=True)
    acc_ref[...] += p
    ctx = jnp.dot(p.astype(v.dtype), v, preferred_element_type=jnp.float32)
    o_ref[0, 0] = ctx.astype(o_ref.dtype)

    @pl.when(h == nh - 1)
    def _():
        p_ref[0] = (acc_ref[...] * (1.0 / nh)).astype(p_ref.dtype)


def attention_core(qkv_heads, nh, t_real):
    """qkv_heads: [B, 3*nh, Tp, dh] bf16.
    Returns (ctx [B, nh, Tp, dh] bf16, head-averaged attn [B, Tp, Tp] bf16)."""
    B, S, Tp, dh = qkv_heads.shape
    assert S == 3 * nh
    # TODO(synk): if production T grows past ~1k, tile the query axis instead of
    # whole-Tp slabs to stay within v7x's 64 MiB VMEM.
    return pl.pallas_call(
        functools.partial(_attn_kernel, nh=nh, t_real=t_real, t_pad=Tp),
        out_shape=(jax.ShapeDtypeStruct((B, nh, Tp, dh), jnp.bfloat16),
                   jax.ShapeDtypeStruct((B, Tp, Tp), jnp.bfloat16)),
        grid_spec=pltpu.PrefetchScalarGridSpec(
            num_scalar_prefetch=0,
            grid=(B, nh),
            in_specs=[
                pl.BlockSpec((1, 1, Tp, dh), lambda b, h: (b, h, 0, 0)),
                pl.BlockSpec((1, 1, Tp, dh), lambda b, h: (b, nh + h, 0, 0)),
                pl.BlockSpec((1, 1, Tp, dh), lambda b, h: (b, 2 * nh + h, 0, 0)),
            ],
            out_specs=(
                pl.BlockSpec((1, 1, Tp, dh), lambda b, h: (b, h, 0, 0)),
                pl.BlockSpec((1, Tp, Tp), lambda b, h: (b, 0, 0)),
            ),
            scratch_shapes=[pltpu.VMEM((Tp, Tp), jnp.float32)],
        ),
        compiler_params=pltpu.CompilerParams(
            dimension_semantics=("parallel", "arbitrary"),
            vmem_limit_bytes=_VMEM_LIMIT,
        ),
    )(qkv_heads, qkv_heads, qkv_heads)


# ---------------------------------------------------------------------------
# Output projection contracted over heads in their native [B, nh, Tp, dh]
# layout, with residual add + LayerNorm fused into the finalize.
# ---------------------------------------------------------------------------
def _attn_out_kernel(x_ref, w_ref, b_ref, r_ref, g_ref, bb_ref, o_ref, acc_ref,
                     *, eps):
    h = pl.program_id(1)

    @pl.when(h == 0)
    def _():
        acc_ref[...] = jnp.zeros_like(acc_ref)

    acc_ref[...] += jnp.dot(x_ref[0, 0], w_ref[0],
                            preferred_element_type=jnp.float32)

    @pl.when(h == pl.num_programs(1) - 1)
    def _():
        y = acc_ref[...] + b_ref[...] + r_ref[0].astype(jnp.float32)
        mean = jnp.mean(y, axis=-1, keepdims=True)
        yc = y - mean
        var = jnp.mean(yc * yc, axis=-1, keepdims=True)
        o_ref[0] = (yc * lax.rsqrt(var + eps) * g_ref[...]
                    + bb_ref[...]).astype(o_ref.dtype)


def attn_out_res_ln(ctx_heads, wo_heads, bo, residual, gamma, beta, eps=1e-5):
    """LayerNorm(residual + concat_heads(ctx) @ Wo + bo) with the contraction
    running directly over the [B, nh, Tp, dh] head layout (no transpose)."""
    B, nh, Tp, dh = ctx_heads.shape
    H = wo_heads.shape[-1]
    return pl.pallas_call(
        functools.partial(_attn_out_kernel, eps=eps),
        out_shape=jax.ShapeDtypeStruct((B, Tp, H), jnp.bfloat16),
        grid_spec=pltpu.PrefetchScalarGridSpec(
            num_scalar_prefetch=0,
            grid=(B, nh),
            in_specs=[
                pl.BlockSpec((1, 1, Tp, dh), lambda b, h: (b, h, 0, 0)),
                pl.BlockSpec((1, dh, H), lambda b, h: (h, 0, 0)),
                pl.BlockSpec((1, H), lambda b, h: (0, 0)),
                pl.BlockSpec((1, Tp, H), lambda b, h: (b, 0, 0)),
                pl.BlockSpec((1, H), lambda b, h: (0, 0)),
                pl.BlockSpec((1, H), lambda b, h: (0, 0)),
            ],
            out_specs=pl.BlockSpec((1, Tp, H), lambda b, h: (b, 0, 0)),
            scratch_shapes=[pltpu.VMEM((Tp, H), jnp.float32)],
        ),
        compiler_params=pltpu.CompilerParams(
            dimension_semantics=("parallel", "arbitrary"),
            vmem_limit_bytes=_VMEM_LIMIT,
        ),
    )(ctx_heads, wo_heads, bo, residual, gamma, beta)


# ---------------------------------------------------------------------------
# Final per-label logits: output[b,l] = sum_h emb[b,l,h] * W[l,h] + bias[l]
# (equivalent to (output_linear(emb) * eye(L)).sum(-1) of the reference)
# ---------------------------------------------------------------------------
def _label_logits_kernel(e_ref, w_ref, b_ref, o_ref):
    e = e_ref[...].astype(jnp.float32)            # [1, L, H]
    w = w_ref[...]                                # [L, H] f32
    o_ref[0] = (jnp.sum(e * w[None], axis=-1) + b_ref[...]).astype(o_ref.dtype)


def label_logits(label_emb, out_w_lh, out_b):
    """label_emb: [B, L, H]; out_w_lh: [L, H] f32; out_b: [1, L] f32 -> [B, L]."""
    B, L, H = label_emb.shape
    out = pl.pallas_call(
        _label_logits_kernel,
        out_shape=jax.ShapeDtypeStruct((B, 1, L), jnp.float32),
        grid_spec=pltpu.PrefetchScalarGridSpec(
            num_scalar_prefetch=0,
            grid=(B,),
            in_specs=[
                pl.BlockSpec((1, L, H), lambda b: (b, 0, 0)),
                pl.BlockSpec((L, H), lambda b: (0, 0)),
                pl.BlockSpec((1, L), lambda b: (0, 0)),
            ],
            out_specs=pl.BlockSpec((1, 1, L), lambda b: (b, 0, 0)),
        ),
        compiler_params=pltpu.CompilerParams(
            dimension_semantics=("parallel",),
            vmem_limit_bytes=_VMEM_LIMIT,
        ),
    )(label_emb, out_w_lh, out_b)
    return out.reshape(B, L)


# ---------------------------------------------------------------------------
# Model composition (glue in plain JAX, compute in kernels above)
# ---------------------------------------------------------------------------
def self_attn_layer(x, lp, heads, t_real):
    """Post-norm TransformerEncoderLayer (d_ff = d_model, ReLU, eval dropout).
    x: [B, Tp, H] (token axis padded to a multiple of 128)."""
    B, Tp, H = x.shape
    qkv = qkv_heads_project(x, lp["wqkv"], lp["bqkv"])       # [B, 3nh, Tp, dh]
    ctx, attn = attention_core(qkv, heads, t_real)           # [B, nh, Tp, dh]
    src = attn_out_res_ln(ctx, lp["wo"], lp["bo"], x,
                          lp["ln1_g"], lp["ln1_b"])          # LN(x + attn_out)
    src2 = src.reshape(B * Tp, H)
    ff = matmul_bias(src2, lp["w1"], lp["b1"], relu=True)
    out = matmul_bias_res_ln(ff, lp["w2"], lp["b2"], src2,
                             lp["ln2_g"], lp["ln2_b"])       # LN(src + ff)
    return out.reshape(B, Tp, H), attn


@functools.partial(jax.jit, static_argnames=("heads",))
def ctran_forward(images, prepped, heads):
    """Mirror of CTranModel.forward with backbone_model='test'
    (BasicConv2d 3->hidden, k=3), use_lmt=False, pos_emb=False, eval-mode BN/dropout."""
    B, C, S, _ = images.shape
    L, H = prepped["label_emb"].shape
    Ho = Wo = S - 2
    P = Ho * Wo

    # ---- backbone: Conv2d(bias=False) -> BatchNorm(eval, eps=1e-3) -> ReLU,
    # implemented as one matmul; im2col built in NHWC order (one image transpose).
    img = images.transpose(0, 2, 3, 1)                         # [B, S, S, C]
    cols = [img[:, ki:ki + Ho, kj:kj + Wo, :]
            for ki in range(3) for kj in range(3)]
    xcol = jnp.concatenate(cols, axis=-1).reshape(B * P, 9 * C)
    feat = matmul_bias(xcol, prepped["conv_w"], prepped["conv_b"], relu=True)
    features = feat.reshape(B, P, H)     # == features.view(B,H,-1).permute(0,2,1)

    init_label = jnp.broadcast_to(prepped["label_emb"][None], (B, L, H))
    # TODO(synk): use_lmt / known_label_lt state embeddings and the pos_emb
    # positionalencoding2d path are not exercised (use_lmt=False, pos_emb=False).
    embeddings = jnp.concatenate([features, init_label], axis=1)   # [B, T, H]
    T = P + L
    Tp = _round_up(T, 128)               # lane-align tokens; padded keys masked
    if Tp != T:
        embeddings = jnp.pad(embeddings, ((0, 0), (0, Tp - T), (0, 0)))

    x = layer_norm(embeddings.reshape(B * Tp, H),
                   prepped["ln_g"], prepped["ln_b"]).reshape(B, Tp, H)

    attns = []
    for lp in prepped["layers"]:
        x, attn = self_attn_layer(x, lp, heads, T)
        attns.append(attn[:, :T, :T])    # head-averaged attention (bf16)

    label_embeddings = x[:, T - L:T, :]                            # [B, L, H]
    output = label_logits(label_embeddings, prepped["out_w"], prepped["out_b"])
    return output, None, attns


# ---------------------------------------------------------------------------
# One-time parameter preprocessing (outside the per-forward path)
# ---------------------------------------------------------------------------
def prepare_params(params, heads):
    """bf16 casts, BN fold, per-head QKV weight layout ([3*nh, H, dh]) with the
    softmax scale folded into Wq, Wo as [nh, dh, H], biases/LN params as [1, N]."""
    H = params["ln_g"].shape[0]
    L = params["label_emb"].shape[0]
    C = params["conv_w"].shape[1]
    dh = H // heads
    scale = 1.0 / math.sqrt(dh)

    bn_scale = params["bn_g"] / jnp.sqrt(params["bn_var"] + 1e-3)
    bn_shift = params["bn_b"] - params["bn_mean"] * bn_scale
    # im2col column order is (ki, kj, c); BN scale folded into the weight.
    conv_w = params["conv_w"].transpose(2, 3, 1, 0).reshape(9 * C, H) * bn_scale[None, :]

    def heads_w(w):
        return w.reshape(H, heads, dh).transpose(1, 0, 2)       # [nh, H, dh]

    def heads_b(b):
        return b.reshape(heads, 1, dh)

    prepped = {
        "conv_w": conv_w.astype(jnp.bfloat16),
        "conv_b": bn_shift.astype(jnp.float32).reshape(1, H),
        "label_emb": params["label_emb"].astype(jnp.bfloat16),
        "ln_g": params["ln_g"].astype(jnp.float32).reshape(1, H),
        "ln_b": params["ln_b"].astype(jnp.float32).reshape(1, H),
        "out_w": params["out_w"].T.astype(jnp.float32),          # [L, H]
        "out_b": params["out_b"].astype(jnp.float32).reshape(1, L),
        "layers": [],
    }
    for p in params["layers"]:
        wqkv = jnp.concatenate([heads_w(p["wq"] * scale),
                                heads_w(p["wk"]),
                                heads_w(p["wv"])], axis=0)       # [3nh, H, dh]
        bqkv = jnp.concatenate([heads_b(p["bq"] * scale),
                                heads_b(p["bk"]),
                                heads_b(p["bv"])], axis=0)       # [3nh, 1, dh]
        prepped["layers"].append({
            "wqkv": wqkv.astype(jnp.bfloat16),
            "bqkv": bqkv.astype(jnp.float32),
            "wo": p["wo"].reshape(heads, dh, H).astype(jnp.bfloat16),
            "bo": p["bo"].astype(jnp.float32).reshape(1, H),
            "w1": p["w1"].astype(jnp.bfloat16),
            "b1": p["b1"].astype(jnp.float32).reshape(1, H),
            "w2": p["w2"].astype(jnp.bfloat16),
            "b2": p["b2"].astype(jnp.float32).reshape(1, H),
            "ln1_g": p["ln1_g"].astype(jnp.float32).reshape(1, H),
            "ln1_b": p["ln1_b"].astype(jnp.float32).reshape(1, H),
            "ln2_g": p["ln2_g"].astype(jnp.float32).reshape(1, H),
            "ln2_b": p["ln2_b"].astype(jnp.float32).reshape(1, H),
        })
    return prepped


# ---------------------------------------------------------------------------
# Deterministic synthetic parameters (shapes follow CTranModel.__init__)
# ---------------------------------------------------------------------------
def init_params(key, hidden, num_labels, layers, in_ch=3):
    keys = iter(jax.random.split(key, 8 + 12 * layers))

    def nrm(shape, s=0.02):
        return jax.random.normal(next(keys), shape, jnp.float32) * s

    params = {
        "conv_w": nrm((hidden, in_ch, 3, 3), 0.1),
        "bn_g": jnp.ones((hidden,), jnp.float32),
        "bn_b": jnp.zeros((hidden,), jnp.float32),
        "bn_mean": jnp.zeros((hidden,), jnp.float32),
        "bn_var": jnp.ones((hidden,), jnp.float32),
        "label_emb": nrm((num_labels, hidden)),
        "ln_g": jnp.ones((hidden,), jnp.float32),
        "ln_b": jnp.zeros((hidden,), jnp.float32),
        "out_w": nrm((hidden, num_labels)),
        "out_b": jnp.zeros((num_labels,), jnp.float32),
        "layers": [],
    }
    for _ in range(layers):
        params["layers"].append({
            "wq": nrm((hidden, hidden)), "bq": jnp.zeros((hidden,), jnp.float32),
            "wk": nrm((hidden, hidden)), "bk": jnp.zeros((hidden,), jnp.float32),
            "wv": nrm((hidden, hidden)), "bv": jnp.zeros((hidden,), jnp.float32),
            "wo": nrm((hidden, hidden)), "bo": jnp.zeros((hidden,), jnp.float32),
            "ln1_g": jnp.ones((hidden,), jnp.float32),
            "ln1_b": jnp.zeros((hidden,), jnp.float32),
            "w1": nrm((hidden, hidden)), "b1": jnp.zeros((hidden,), jnp.float32),
            "w2": nrm((hidden, hidden)), "b2": jnp.zeros((hidden,), jnp.float32),
            "ln2_g": jnp.ones((hidden,), jnp.float32),
            "ln2_b": jnp.zeros((hidden,), jnp.float32),
        })
    return params


if __name__ == "__main__":
    B, C, S = 2, 3, 10           # images [2, 3, 10, 10] -> 8x8 = 64 feature tokens
    hidden, num_labels = 32, 8   # small 'test' backbone width (stands in for 1024)
    heads, layers = 4, 3

    key = jax.random.PRNGKey(0)
    k_img, k_par = jax.random.split(key)
    images = jax.random.normal(k_img, (B, C, S, S), jnp.float32)
    raw_params = init_params(k_par, hidden, num_labels, layers, in_ch=C)
    params = prepare_params(raw_params, heads)   # one-time weight preprocessing

    output, _, attns = ctran_forward(images, params, heads)
    jax.block_until_ready((output, attns))

    T = (S - 2) ** 2 + num_labels
    assert output.shape == (B, num_labels)
    assert len(attns) == layers and attns[0].shape == (B, T, T)
    assert bool(jnp.all(jnp.isfinite(output)))
    print("KERNEL_OK")
</pallas_src>

<mosaic_0001>
module attributes {stable_mosaic.version = 11 : i64} {
  func.func @_matmul_bias_kernel(%arg0: i32, %arg1: i32, %arg2: i32, %arg3: memref<128x27xbf16, #tpu.memory_space<vmem>>, %arg4: memref<27x32xbf16, #tpu.memory_space<vmem>>, %arg5: memref<1x32xf32, #tpu.memory_space<vmem>>, %arg6: memref<128x32xbf16, #tpu.memory_space<vmem>>, %arg7: memref<128x32xf32, #tpu.memory_space<vmem>>) attributes {dimension_semantics = [#tpu.dimension_semantics<parallel>, #tpu.dimension_semantics<parallel>, #tpu.dimension_semantics<arbitrary>], iteration_bounds = array<i64: 1, 1, 1>, scalar_prefetch = 0 : i64, scratch_operands = 1 : i64, tpu.core_type = #tpu.core_type<tc>, window_params = [{transform_indices = @transform_0, window_bounds = array<i64: 128, 27>}, {transform_indices = @transform_1, window_bounds = array<i64: 27, 32>}, {transform_indices = @transform_2, window_bounds = array<i64: 1, 32>}, {transform_indices = @transform_3, window_bounds = array<i64: 128, 32>}]} {
    %c0_i32 = arith.constant 0 : i32
    %0 = arith.cmpi eq, %arg2, %c0_i32 : i32
    %1 = arith.extui %0 : i1 to i32
    %c0_i32_0 = arith.constant 0 : i32
    %2 = arith.cmpi ne, %1, %c0_i32_0 : i32
    scf.if %2 {
      %cst_10 = arith.constant 0.000000e+00 : f32
      %12 = vector.broadcast %cst_10 : f32 to vector<128x32xf32>
      %c0_11 = arith.constant 0 : index
      %c0_12 = arith.constant 0 : index
      %13 = vector.load %arg7[%c0_11, %c0_12] : memref<128x32xf32, #tpu.memory_space<vmem>>, vector<128x32xf32>
      tpu.vector_store %arg7[%c0_11, %c0_12], %12 {strides = array<i32>} : memref<128x32xf32, #tpu.memory_space<vmem>>, vector<128x32xf32>,
    } else {
    }
    %c0 = arith.constant 0 : index
    %c0_1 = arith.constant 0 : index
    %3 = vector.load %arg7[%c0, %c0_1] : memref<128x32xf32, #tpu.memory_space<vmem>>, vector<128x32xf32>
    %c0_2 = arith.constant 0 : index
    %c0_3 = arith.constant 0 : index
    %4 = vector.load %arg3[%c0_2, %c0_3] : memref<128x27xbf16, #tpu.memory_space<vmem>>, vector<128x27xbf16>
    %c0_4 = arith.constant 0 : index
    %c0_5 = arith.constant 0 : index
    %5 = vector.load %arg4[%c0_4, %c0_5] : memref<27x32xbf16, #tpu.memory_space<vmem>>, vector<27x32xbf16>
    %cst = arith.constant dense<0.000000e+00> : vector<128x32xf32>
    %6 = tpu.matmul %4, %5, %cst {dimension_numbers = #tpu.dot_dimension_numbers<[1], [0], [0], [1], [0, 0, 1, 1], [], []>} : vector<128x27xbf16>, vector<27x32xbf16>, vector<128x32xf32> -> vector<128x32xf32>
    %7 = arith.addf %3, %6 : vector<128x32xf32>
    %c0_6 = arith.constant 0 : index
    %c0_7 = arith.constant 0 : index
    %8 = vector.load %arg7[%c0_6, %c0_7] : memref<128x32xf32, #tpu.memory_space<vmem>>, vector<128x32xf32>
    tpu.vector_store %arg7[%c0_6, %c0_7], %7 {strides = array<i32>} : memref<128x32xf32, #tpu.memory_space<vmem>>, vector<128x32xf32>,
    %c0_i32_8 = arith.constant 0 : i32
    %9 = arith.cmpi eq, %arg2, %c0_i32_8 : i32
    %10 = arith.extui %9 : i1 to i32
    %c0_i32_9 = arith.constant 0 : i32
    %11 = arith.cmpi ne, %10, %c0_i32_9 : i32
    scf.if %11 {
      %c0_10 = arith.constant 0 : index
      %c0_11 = arith.constant 0 : index
      %12 = vector.load %arg7[%c0_10, %c0_11] : memref<128x32xf32, #tpu.memory_space<vmem>>, vector<128x32xf32>
      %c0_12 = arith.constant 0 : index
      %c0_13 = arith.constant 0 : index
      %13 = vector.load %arg5[%c0_12, %c0_13] : memref<1x32xf32, #tpu.memory_space<vmem>>, vector<1x32xf32>
      %14 = vector.broadcast %13 : vector<1x32xf32> to vector<128x32xf32>
      %15 = arith.addf %12, %14 : vector<128x32xf32>
      %cst_14 = arith.constant 0.000000e+00 : f32
      %16 = vector.broadcast %cst_14 : f32 to vector<128x32xf32>
      %17 = arith.maximumf %15, %16 : vector<128x32xf32>
      %18 = arith.truncf %17 : vector<128x32xf32> to vector<128x32xbf16>
      %c0_15 = arith.constant 0 : index
      %c0_16 = arith.constant 0 : index
      %19 = vector.load %arg6[%c0_15, %c0_16] : memref<128x32xbf16, #tpu.memory_space<vmem>>, vector<128x32xbf16>
      tpu.vector_store %arg6[%c0_15, %c0_16], %18 {strides = array<i32>} : memref<128x32xbf16, #tpu.memory_space<vmem>>, vector<128x32xbf16>,
    } else {
    }
    return
  }
  func.func @transform_0(%arg0: i32, %arg1: i32, %arg2: i32) -> (i32, i32) {
    %c0_i32 = arith.constant 0 : i32
    return %arg0, %arg2 : i32, i32
  }
  func.func @transform_1(%arg0: i32, %arg1: i32, %arg2: i32) -> (i32, i32) {
    %c0_i32 = arith.constant 0 : i32
    return %arg2, %arg1 : i32, i32
  }
  func.func @transform_2(%arg0: i32, %arg1: i32, %arg2: i32) -> (i32, i32) {
    %c0_i32 = arith.constant 0 : i32
    %c0_i32_0 = arith.constant 0 : i32
    return %c0_i32, %arg1 : i32, i32
  }
  func.func @transform_3(%arg0: i32, %arg1: i32, %arg2: i32) -> (i32, i32) {
    %c0_i32 = arith.constant 0 : i32
    return %arg0, %arg1 : i32, i32
  }
}

module attributes {stable_mosaic.version = 11 : i64} {
  func.func @_layernorm_kernel(%arg0: i32, %arg1: memref<256x32xbf16, #tpu.memory_space<vmem>>, %arg2: memref<1x32xf32, #tpu.memory_space<vmem>>, %arg3: memref<1x32xf32, #tpu.memory_space<vmem>>, %arg4: memref<256x32xbf16, #tpu.memory_space<vmem>>) attributes {dimension_semantics = [#tpu.dimension_semantics<parallel>], iteration_bounds = array<i64: 1>, scalar_prefetch = 0 : i64, scratch_operands = 0 : i64, tpu.core_type = #tpu.core_type<tc>, window_params = [{transform_indices = @transform_0, window_bounds = array<i64: 256, 32>}, {pipeline_mode = #tpu.pipeline_mode<synchronous>, transform_indices = @transform_1, window_bounds = array<i64: 1, 32>}, {pipeline_mode = #tpu.pipeline_mode<synchronous>, transform_indices = @transform_2, window_bounds = array<i64: 1, 32>}, {transform_indices = @transform_3, window_bounds = array<i64: 256, 32>}]} {
    %c0 = arith.constant 0 : index
    %c0_0 = arith.constant 0 : index
    %0 = vector.load %arg1[%c0, %c0_0] : memref<256x32xbf16, #tpu.memory_space<vmem>>, vector<256x32xbf16>
    %1 = arith.extf %0 : vector<256x32xbf16> to vector<256x32xf32>
    %cst = arith.constant dense<0.000000e+00> : vector<256xf32>
    %2 = vector.multi_reduction <add>, %1, %cst [1] : vector<256x32xf32> to vector<256xf32>
    %3 = vector.shape_cast %2 : vector<256xf32> to vector<256x1xf32>
    %cst_1 = arith.constant 3.200000e+01 : f32
    %4 = vector.broadcast %cst_1 : f32 to vector<256x1xf32>
    %5 = arith.divf %3, %4 : vector<256x1xf32>
    %6 = vector.broadcast %5 : vector<256x1xf32> to vector<256x32xf32>
    %7 = arith.subf %1, %6 : vector<256x32xf32>
    %8 = arith.mulf %7, %7 : vector<256x32xf32>
    %cst_2 = arith.constant dense<0.000000e+00> : vector<256xf32>
    %9 = vector.multi_reduction <add>, %8, %cst_2 [1] : vector<256x32xf32> to vector<256xf32>
    %10 = vector.shape_cast %9 : vector<256xf32> to vector<256x1xf32>
    %cst_3 = arith.constant 3.200000e+01 : f32
    %11 = vector.broadcast %cst_3 : f32 to vector<256x1xf32>
    %12 = arith.divf %10, %11 : vector<256x1xf32>
    %cst_4 = arith.constant 9.99999974E-6 : f32
    %13 = vector.broadcast %cst_4 : f32 to vector<256x1xf32>
    %14 = arith.addf %12, %13 : vector<256x1xf32>
    %15 = math.rsqrt %14 : vector<256x1xf32>
    %16 = vector.broadcast %15 : vector<256x1xf32> to vector<256x32xf32>
    %17 = arith.mulf %7, %16 : vector<256x32xf32>
    %c0_5 = arith.constant 0 : index
    %c0_6 = arith.constant 0 : index
    %18 = vector.load %arg2[%c0_5, %c0_6] : memref<1x32xf32, #tpu.memory_space<vmem>>, vector<1x32xf32>
    %19 = vector.broadcast %18 : vector<1x32xf32> to vector<256x32xf32>
    %20 = arith.mulf %17, %19 : vector<256x32xf32>
    %c0_7 = arith.constant 0 : index
    %c0_8 = arith.constant 0 : index
    %21 = vector.load %arg3[%c0_7, %c0_8] : memref<1x32xf32, #tpu.memory_space<vmem>>, vector<1x32xf32>
    %22 = vector.broadcast %21 : vector<1x32xf32> to vector<256x32xf32>
    %23 = arith.addf %20, %22 : vector<256x32xf32>
    %24 = arith.truncf %23 : vector<256x32xf32> to vector<256x32xbf16>
    %c0_9 = arith.constant 0 : index
    %c0_10 = arith.constant 0 : index
    %25 = vector.load %arg4[%c0_9, %c0_10] : memref<256x32xbf16, #tpu.memory_space<vmem>>, vector<256x32xbf16>
    tpu.vector_store %arg4[%c0_9, %c0_10], %24 {strides = array<i32>} : memref<256x32xbf16, #tpu.memory_space<vmem>>, vector<256x32xbf16>,
    return
  }
  func.func @transform_0(%arg0: i32) -> (i32, i32) {
    %c0_i32 = arith.constant 0 : i32
    %c0_i32_0 = arith.constant 0 : i32
    return %arg0, %c0_i32 : i32, i32
  }
  func.func @transform_1(%arg0: i32) -> (i32, i32) {
    %c0_i32 = arith.constant 0 : i32
    %c0_i32_0 = arith.constant 0 : i32
    %c0_i32_1 = arith.constant 0 : i32
    return %c0_i32, %c0_i32_0 : i32, i32
  }
  func.func @transform_2(%arg0: i32) -> (i32, i32) {
    %c0_i32 = arith.constant 0 : i32
    %c0_i32_0 = arith.constant 0 : i32
    %c0_i32_1 = arith.constant 0 : i32
    return %c0_i32, %c0_i32_0 : i32, i32
  }
  func.func @transform_3(%arg0: i32) -> (i32, i32) {
    %c0_i32 = arith.constant 0 : i32
    %c0_i32_0 = arith.constant 0 : i32
    return %arg0, %c0_i32 : i32, i32
  }
}

module attributes {stable_mosaic.version = 11 : i64} {
  func.func @_attn_kernel(%arg0: i32, %arg1: i32, %arg2: memref<1x1x128x8xbf16, #tpu.memory_space<vmem>>, %arg3: memref<1x1x128x8xbf16, #tpu.memory_space<vmem>>, %arg4: memref<1x1x128x8xbf16, #tpu.memory_space<vmem>>, %arg5: memref<1x1x128x8xbf16, #tpu.memory_space<vmem>>, %arg6: memref<1x128x128xbf16, #tpu.memory_space<vmem>>, %arg7: memref<128x128xf32, #tpu.memory_space<vmem>>) attributes {dimension_semantics = [#tpu.dimension_semantics<parallel>, #tpu.dimension_semantics<arbitrary>], iteration_bounds = array<i64: 2, 4>, scalar_prefetch = 0 : i64, scratch_operands = 1 : i64, tpu.core_type = #tpu.core_type<tc>, window_params = [{transform_indices = @transform_0, window_bounds = array<i64: 1, 1, 128, 8>}, {transform_indices = @transform_1, window_bounds = array<i64: 1, 1, 128, 8>}, {transform_indices = @transform_2, window_bounds = array<i64: 1, 1, 128, 8>}, {transform_indices = @transform_3, window_bounds = array<i64: 1, 1, 128, 8>}, {transform_indices = @transform_4, window_bounds = array<i64: 1, 128, 128>}]} {
    %c0_i32 = arith.constant 0 : i32
    %0 = arith.cmpi eq, %arg1, %c0_i32 : i32
    %1 = arith.extui %0 : i1 to i32
    %c0_i32_0 = arith.constant 0 : i32
    %2 = arith.cmpi ne, %1, %c0_i32_0 : i32
    scf.if %2 {
      %cst_25 = arith.constant 0.000000e+00 : f32
      %37 = vector.broadcast %cst_25 : f32 to vector<128x128xf32>
      %c0_26 = arith.constant 0 : index
      %c0_27 = arith.constant 0 : index
      %38 = vector.load %arg7[%c0_26, %c0_27] : memref<128x128xf32, #tpu.memory_space<vmem>>, vector<128x128xf32>
      tpu.vector_store %arg7[%c0_26, %c0_27], %37 {strides = array<i32>} : memref<128x128xf32, #tpu.memory_space<vmem>>, vector<128x128xf32>,
    } else {
    }
    %c0 = arith.constant 0 : index
    %c0_1 = arith.constant 0 : index
    %c0_2 = arith.constant 0 : index
    %c0_3 = arith.constant 0 : index
    %3 = vector.load %arg2[%c0, %c0_1, %c0_2, %c0_3] : memref<1x1x128x8xbf16, #tpu.memory_space<vmem>>, vector<1x1x128x8xbf16>
    %4 = vector.shape_cast %3 : vector<1x1x128x8xbf16> to vector<128x8xbf16>
    %c0_4 = arith.constant 0 : index
    %c0_5 = arith.constant 0 : index
    %c0_6 = arith.constant 0 : index
    %c0_7 = arith.constant 0 : index
    %5 = vector.load %arg3[%c0_4, %c0_5, %c0_6, %c0_7] : memref<1x1x128x8xbf16, #tpu.memory_space<vmem>>, vector<1x1x128x8xbf16>
    %6 = vector.shape_cast %5 : vector<1x1x128x8xbf16> to vector<128x8xbf16>
    %c0_8 = arith.constant 0 : index
    %c0_9 = arith.constant 0 : index
    %c0_10 = arith.constant 0 : index
    %c0_11 = arith.constant 0 : index
    %7 = vector.load %arg4[%c0_8, %c0_9, %c0_10, %c0_11] : memref<1x1x128x8xbf16, #tpu.memory_space<vmem>>, vector<1x1x128x8xbf16>
    %8 = vector.shape_cast %7 : vector<1x1x128x8xbf16> to vector<128x8xbf16>
    %cst = arith.constant dense<0.000000e+00> : vector<128x128xf32>
    %9 = tpu.matmul %4, %6, %cst {dimension_numbers = #tpu.dot_dimension_numbers<[1], [1], [0], [0], [0, 0, 1, 0], [], []>} : vector<128x8xbf16>, vector<128x8xbf16>, vector<128x128xf32> -> vector<128x128xf32>
    %10 = tpu.iota {dimensions = array<i32: 1>} : vector<128x128xi32>
    %c72_i32 = arith.constant 72 : i32
    %11 = vector.broadcast %c72_i32 : i32 to vector<128x128xi32>
    %12 = arith.cmpi slt, %10, %11 : vector<128x128xi32>
    %cst_12 = arith.constant 0xFF800000 : f32
    %13 = vector.broadcast %cst_12 : f32 to vector<128x128xf32>
    %14 = arith.select %12, %9, %13 : vector<128x128xi1>, vector<128x128xf32>
    %cst_13 = arith.constant dense<0xFF800000> : vector<128xf32>
    %15 = vector.multi_reduction <maximumf>, %14, %cst_13 [1] : vector<128x128xf32> to vector<128xf32>
    %16 = vector.shape_cast %15 : vector<128xf32> to vector<128x1xf32>
    %17 = vector.broadcast %16 : vector<128x1xf32> to vector<128x128xf32>
    %18 = arith.subf %14, %17 : vector<128x128xf32>
    %19 = math.exp %18 : vector<128x128xf32>
    %cst_14 = arith.constant dense<0.000000e+00> : vector<128xf32>
    %20 = vector.multi_reduction <add>, %19, %cst_14 [1] : vector<128x128xf32> to vector<128xf32>
    %21 = vector.shape_cast %20 : vector<128xf32> to vector<128x1xf32>
    %22 = tpu.reciprocal %21 {approx = true} : vector<128x1xf32> -> vector<128x1xf32>
    %23 = vector.broadcast %22 : vector<128x1xf32> to vector<128x128xf32>
    %24 = arith.mulf %19, %23 : vector<128x128xf32>
    %c0_15 = arith.constant 0 : index
    %c0_16 = arith.constant 0 : index
    %25 = vector.load %arg7[%c0_15, %c0_16] : memref<128x128xf32, #tpu.memory_space<vmem>>, vector<128x128xf32>
    %26 = arith.addf %25, %24 : vector<128x128xf32>
    %c0_17 = arith.constant 0 : index
    %c0_18 = arith.constant 0 : index
    %27 = vector.load %arg7[%c0_17, %c0_18] : memref<128x128xf32, #tpu.memory_space<vmem>>, vector<128x128xf32>
    tpu.vector_store %arg7[%c0_17, %c0_18], %26 {strides = array<i32>} : memref<128x128xf32, #tpu.memory_space<vmem>>, vector<128x128xf32>,
    %28 = arith.truncf %24 : vector<128x128xf32> to vector<128x128xbf16>
    %cst_19 = arith.constant dense<0.000000e+00> : vector<128x8xf32>
    %29 = tpu.matmul %28, %8, %cst_19 {dimension_numbers = #tpu.dot_dimension_numbers<[1], [0], [0], [1], [0, 0, 1, 1], [], []>} : vector<128x128xbf16>, vector<128x8xbf16>, vector<128x8xf32> -> vector<128x8xf32>
    %30 = arith.truncf %29 : vector<128x8xf32> to vector<128x8xbf16>
    %c0_20 = arith.constant 0 : index
    %c0_21 = arith.constant 0 : index
    %c0_22 = arith.constant 0 : index
    %c0_23 = arith.constant 0 : index
    %31 = vector.load %arg5[%c0_20, %c0_21, %c0_22, %c0_23] : memref<1x1x128x8xbf16, #tpu.memory_space<vmem>>, vector<1x1x128x8xbf16>
    %32 = vector.shape_cast %31 : vector<1x1x128x8xbf16> to vector<128x8xbf16>
    %33 = vector.shape_cast %30 : vector<128x8xbf16> to vector<1x1x128x8xbf16>
    tpu.vector_store %arg5[%c0_20, %c0_21, %c0_22, %c0_23], %33 {strides = array<i32>} : memref<1x1x128x8xbf16, #tpu.memory_space<vmem>>, vector<1x1x128x8xbf16>,
    %c3_i32 = arith.constant 3 : i32
    %34 = arith.cmpi eq, %arg1, %c3_i32 : i32
    %35 = arith.extui %34 : i1 to i32
    %c0_i32_24 = arith.constant 0 : i32
    %36 = arith.cmpi ne, %35, %c0_i32_24 : i32
    scf.if %36 {
      %c0_25 = arith.constant 0 : index
      %c0_26 = arith.constant 0 : index
      %37 = vector.load %arg7[%c0_25, %c0_26] : memref<128x128xf32, #tpu.memory_space<vmem>>, vector<128x128xf32>
      %cst_27 = arith.constant 2.500000e-01 : f32
      %38 = vector.broadcast %cst_27 : f32 to vector<128x128xf32>
      %39 = arith.mulf %37, %38 : vector<128x128xf32>
      %40 = arith.truncf %39 : vector<128x128xf32> to vector<128x128xbf16>
      %c0_28 = arith.constant 0 : index
      %c0_29 = arith.constant 0 : index
      %c0_30 = arith.constant 0 : index
      %41 = vector.load %arg6[%c0_28, %c0_29, %c0_30] : memref<1x128x128xbf16, #tpu.memory_space<vmem>>, vector<1x128x128xbf16>
      %42 = vector.shape_cast %41 : vector<1x128x128xbf16> to vector<128x128xbf16>
      %43 = vector.shape_cast %40 : vector<128x128xbf16> to vector<1x128x128xbf16>
      tpu.vector_store %arg6[%c0_28, %c0_29, %c0_30], %43 {strides = array<i32>} : memref<1x128x128xbf16, #tpu.memory_space<vmem>>, vector<1x128x128xbf16>,
    } else {
    }
    return
  }
  func.func @transform_0(%arg0: i32, %arg1: i32) -> (i32, i32, i32, i32) {
    %c0_i32 = arith.constant 0 : i32
    %c0_i32_0 = arith.constant 0 : i32
    %c0_i32_1 = arith.constant 0 : i32
    return %arg0, %arg1, %c0_i32, %c0_i32_0 : i32, i32, i32, i32
  }
  func.func @transform_1(%arg0: i32, %arg1: i32) -> (i32, i32, i32, i32) {
    %c4_i32 = arith.constant 4 : i32
    %0 = arith.addi %c4_i32, %arg1 : i32
    %c0_i32 = arith.constant 0 : i32
    %c0_i32_0 = arith.constant 0 : i32
    %c0_i32_1 = arith.constant 0 : i32
    return %arg0, %0, %c0_i32, %c0_i32_0 : i32, i32, i32, i32
  }
  func.func @transform_2(%arg0: i32, %arg1: i32) -> (i32, i32, i32, i32) {
    %c8_i32 = arith.constant 8 : i32
    %0 = arith.addi %c8_i32, %arg1 : i32
    %c0_i32 = arith.constant 0 : i32
    %c0_i32_0 = arith.constant 0 : i32
    %c0_i32_1 = arith.constant 0 : i32
    return %arg0, %0, %c0_i32, %c0_i32_0 : i32, i32, i32, i32
  }
  func.func @transform_3(%arg0: i32, %arg1: i32) -> (i32, i32, i32, i32) {
    %c0_i32 = arith.constant 0 : i32
    %c0_i32_0 = arith.constant 0 : i32
    %c0_i32_1 = arith.constant 0 : i32
    return %arg0, %arg1, %c0_i32, %c0_i32_0 : i32, i32, i32, i32
  }
  func.func @transform_4(%arg0: i32, %arg1: i32) -> (i32, i32, i32) {
    %c0_i32 = arith.constant 0 : i32
    %c0_i32_0 = arith.constant 0 : i32
    %c0_i32_1 = arith.constant 0 : i32
    return %arg0, %c0_i32, %c0_i32_0 : i32, i32, i32
  }
}

module attributes {stable_mosaic.version = 11 : i64} {
  func.func @_qkv_heads_kernel(%arg0: i32, %arg1: memref<2x128x32xbf16, #tpu.memory_space<vmem>>, %arg2: memref<1x32x8xbf16, #tpu.memory_space<vmem>>, %arg3: memref<1x1x8xf32, #tpu.memory_space<vmem>>, %arg4: memref<2x1x128x8xbf16, #tpu.memory_space<vmem>>) attributes {dimension_semantics = [#tpu.dimension_semantics<parallel>], iteration_bounds = array<i64: 12>, scalar_prefetch = 0 : i64, scratch_operands = 0 : i64, tpu.core_type = #tpu.core_type<tc>, window_params = [{pipeline_mode = #tpu.pipeline_mode<synchronous>, transform_indices = @transform_0, window_bounds = array<i64: 2, 128, 32>}, {transform_indices = @transform_1, window_bounds = array<i64: 1, 32, 8>}, {transform_indices = @transform_2, window_bounds = array<i64: 1, 1, 8>}, {transform_indices = @transform_3, window_bounds = array<i64: 2, 1, 128, 8>}]} {
    %c0 = arith.constant 0 : index
    %c0_0 = arith.constant 0 : index
    %c0_1 = arith.constant 0 : index
    %0 = vector.load %arg1[%c0, %c0_0, %c0_1] : memref<2x128x32xbf16, #tpu.memory_space<vmem>>, vector<2x128x32xbf16>
    %1 = vector.shape_cast %0 : vector<2x128x32xbf16> to vector<256x32xbf16>
    %c0_2 = arith.constant 0 : index
    %c0_3 = arith.constant 0 : index
    %c0_4 = arith.constant 0 : index
    %2 = vector.load %arg2[%c0_2, %c0_3, %c0_4] : memref<1x32x8xbf16, #tpu.memory_space<vmem>>, vector<1x32x8xbf16>
    %3 = vector.shape_cast %2 : vector<1x32x8xbf16> to vector<32x8xbf16>
    %cst = arith.constant dense<0.000000e+00> : vector<256x8xf32>
    %4 = tpu.matmul %1, %3, %cst {dimension_numbers = #tpu.dot_dimension_numbers<[1], [0], [0], [1], [0, 0, 1, 1], [], []>} : vector<256x32xbf16>, vector<32x8xbf16>, vector<256x8xf32> -> vector<256x8xf32>
    %c0_5 = arith.constant 0 : index
    %c0_6 = arith.constant 0 : index
    %c0_7 = arith.constant 0 : index
    %5 = vector.load %arg3[%c0_5, %c0_6, %c0_7] : memref<1x1x8xf32, #tpu.memory_space<vmem>>, vector<1x1x8xf32>
    %6 = vector.shape_cast %5 : vector<1x1x8xf32> to vector<1x8xf32>
    %7 = vector.broadcast %6 : vector<1x8xf32> to vector<256x8xf32>
    %8 = arith.addf %4, %7 : vector<256x8xf32>
    %9 = vector.shape_cast %8 : vector<256x8xf32> to vector<2x1x128x8xf32>
    %10 = arith.truncf %9 : vector<2x1x128x8xf32> to vector<2x1x128x8xbf16>
    %c0_8 = arith.constant 0 : index
    %c0_9 = arith.constant 0 : index
    %c0_10 = arith.constant 0 : index
    %c0_11 = arith.constant 0 : index
    %11 = vector.load %arg4[%c0_8, %c0_9, %c0_10, %c0_11] : memref<2x1x128x8xbf16, #tpu.memory_space<vmem>>, vector<2x1x128x8xbf16>
    tpu.vector_store %arg4[%c0_8, %c0_9, %c0_10, %c0_11], %10 {strides = array<i32>} : memref<2x1x128x8xbf16, #tpu.memory_space<vmem>>, vector<2x1x128x8xbf16>,
    return
  }
  func.func @transform_0(%arg0: i32) -> (i32, i32, i32) {
    %c0_i32 = arith.constant 0 : i32
    %c0_i32_0 = arith.constant 0 : i32
    %c0_i32_1 = arith.constant 0 : i32
    %c0_i32_2 = arith.constant 0 : i32
    return %c0_i32, %c0_i32_0, %c0_i32_1 : i32, i32, i32
  }
  func.func @transform_1(%arg0: i32) -> (i32, i32, i32) {
    %c0_i32 = arith.constant 0 : i32
    %c0_i32_0 = arith.constant 0 : i32
    %c0_i32_1 = arith.constant 0 : i32
    return %arg0, %c0_i32, %c0_i32_0 : i32, i32, i32
  }
  func.func @transform_2(%arg0: i32) -> (i32, i32, i32) {
    %c0_i32 = arith.constant 0 : i32
    %c0_i32_0 = arith.constant 0 : i32
    %c0_i32_1 = arith.constant 0 : i32
    return %arg0, %c0_i32, %c0_i32_0 : i32, i32, i32
  }
  func.func @transform_3(%arg0: i32) -> (i32, i32, i32, i32) {
    %c0_i32 = arith.constant 0 : i32
    %c0_i32_0 = arith.constant 0 : i32
    %c0_i32_1 = arith.constant 0 : i32
    %c0_i32_2 = arith.constant 0 : i32
    return %c0_i32, %arg0, %c0_i32_0, %c0_i32_1 : i32, i32, i32, i32
  }
}

module attributes {stable_mosaic.version = 11 : i64} {
  func.func @_matmul_bias_kernel(%arg0: i32, %arg1: i32, %arg2: i32, %arg3: memref<256x32xbf16, #tpu.memory_space<vmem>>, %arg4: memref<32x32xbf16, #tpu.memory_space<vmem>>, %arg5: memref<1x32xf32, #tpu.memory_space<vmem>>, %arg6: memref<256x32xbf16, #tpu.memory_space<vmem>>, %arg7: memref<256x32xf32, #tpu.memory_space<vmem>>) attributes {dimension_semantics = [#tpu.dimension_semantics<parallel>, #tpu.dimension_semantics<parallel>, #tpu.dimension_semantics<arbitrary>], iteration_bounds = array<i64: 1, 1, 1>, scalar_prefetch = 0 : i64, scratch_operands = 1 : i64, tpu.core_type = #tpu.core_type<tc>, window_params = [{transform_indices = @transform_0, window_bounds = array<i64: 256, 32>}, {transform_indices = @transform_1, window_bounds = array<i64: 32, 32>}, {transform_indices = @transform_2, window_bounds = array<i64: 1, 32>}, {transform_indices = @transform_3, window_bounds = array<i64: 256, 32>}]} {
    %c0_i32 = arith.constant 0 : i32
    %0 = arith.cmpi eq, %arg2, %c0_i32 : i32
    %1 = arith.extui %0 : i1 to i32
    %c0_i32_0 = arith.constant 0 : i32
    %2 = arith.cmpi ne, %1, %c0_i32_0 : i32
    scf.if %2 {
      %cst_10 = arith.constant 0.000000e+00 : f32
      %12 = vector.broadcast %cst_10 : f32 to vector<256x32xf32>
      %c0_11 = arith.constant 0 : index
      %c0_12 = arith.constant 0 : index
      %13 = vector.load %arg7[%c0_11, %c0_12] : memref<256x32xf32, #tpu.memory_space<vmem>>, vector<256x32xf32>
      tpu.vector_store %arg7[%c0_11, %c0_12], %12 {strides = array<i32>} : memref<256x32xf32, #tpu.memory_space<vmem>>, vector<256x32xf32>,
    } else {
    }
    %c0 = arith.constant 0 : index
    %c0_1 = arith.constant 0 : index
    %3 = vector.load %arg7[%c0, %c0_1] : memref<256x32xf32, #tpu.memory_space<vmem>>, vector<256x32xf32>
    %c0_2 = arith.constant 0 : index
    %c0_3 = arith.constant 0 : index
    %4 = vector.load %arg3[%c0_2, %c0_3] : memref<256x32xbf16, #tpu.memory_space<vmem>>, vector<256x32xbf16>
    %c0_4 = arith.constant 0 : index
    %c0_5 = arith.constant 0 : index
    %5 = vector.load %arg4[%c0_4, %c0_5] : memref<32x32xbf16, #tpu.memory_space<vmem>>, vector<32x32xbf16>
    %cst = arith.constant dense<0.000000e+00> : vector<256x32xf32>
    %6 = tpu.matmul %4, %5, %cst {dimension_numbers = #tpu.dot_dimension_numbers<[1], [0], [0], [1], [0, 0, 1, 1], [], []>} : vector<256x32xbf16>, vector<32x32xbf16>, vector<256x32xf32> -> vector<256x32xf32>
    %7 = arith.addf %3, %6 : vector<256x32xf32>
    %c0_6 = arith.constant 0 : index
    %c0_7 = arith.constant 0 : index
    %8 = vector.load %arg7[%c0_6, %c0_7] : memref<256x32xf32, #tpu.memory_space<vmem>>, vector<256x32xf32>
    tpu.vector_store %arg7[%c0_6, %c0_7], %7 {strides = array<i32>} : memref<256x32xf32, #tpu.memory_space<vmem>>, vector<256x32xf32>,
    %c0_i32_8 = arith.constant 0 : i32
    %9 = arith.cmpi eq, %arg2, %c0_i32_8 : i32
    %10 = arith.extui %9 : i1 to i32
    %c0_i32_9 = arith.constant 0 : i32
    %11 = arith.cmpi ne, %10, %c0_i32_9 : i32
    scf.if %11 {
      %c0_10 = arith.constant 0 : index
      %c0_11 = arith.constant 0 : index
      %12 = vector.load %arg7[%c0_10, %c0_11] : memref<256x32xf32, #tpu.memory_space<vmem>>, vector<256x32xf32>
      %c0_12 = arith.constant 0 : index
      %c0_13 = arith.constant 0 : index
      %13 = vector.load %arg5[%c0_12, %c0_13] : memref<1x32xf32, #tpu.memory_space<vmem>>, vector<1x32xf32>
      %14 = vector.broadcast %13 : vector<1x32xf32> to vector<256x32xf32>
      %15 = arith.addf %12, %14 : vector<256x32xf32>
      %cst_14 = arith.constant 0.000000e+00 : f32
      %16 = vector.broadcast %cst_14 : f32 to vector<256x32xf32>
      %17 = arith.maximumf %15, %16 : vector<256x32xf32>
      %18 = arith.truncf %17 : vector<256x32xf32> to vector<256x32xbf16>
      %c0_15 = arith.constant 0 : index
      %c0_16 = arith.constant 0 : index
      %19 = vector.load %arg6[%c0_15, %c0_16] : memref<256x32xbf16, #tpu.memory_space<vmem>>, vector<256x32xbf16>
      tpu.vector_store %arg6[%c0_15, %c0_16], %18 {strides = array<i32>} : memref<256x32xbf16, #tpu.memory_space<vmem>>, vector<256x32xbf16>,
    } else {
    }
    return
  }
  func.func @transform_0(%arg0: i32, %arg1: i32, %arg2: i32) -> (i32, i32) {
    %c0_i32 = arith.constant 0 : i32
    return %arg0, %arg2 : i32, i32
  }
  func.func @transform_1(%arg0: i32, %arg1: i32, %arg2: i32) -> (i32, i32) {
    %c0_i32 = arith.constant 0 : i32
    return %arg2, %arg1 : i32, i32
  }
  func.func @transform_2(%arg0: i32, %arg1: i32, %arg2: i32) -> (i32, i32) {
    %c0_i32 = arith.constant 0 : i32
    %c0_i32_0 = arith.constant 0 : i32
    return %c0_i32, %arg1 : i32, i32
  }
  func.func @transform_3(%arg0: i32, %arg1: i32, %arg2: i32) -> (i32, i32) {
    %c0_i32 = arith.constant 0 : i32
    return %arg0, %arg1 : i32, i32
  }
}

module attributes {stable_mosaic.version = 11 : i64} {
  func.func @_matmul_res_ln_kernel(%arg0: i32, %arg1: i32, %arg2: memref<256x32xbf16, #tpu.memory_space<vmem>>, %arg3: memref<32x32xbf16, #tpu.memory_space<vmem>>, %arg4: memref<1x32xf32, #tpu.memory_space<vmem>>, %arg5: memref<256x32xbf16, #tpu.memory_space<vmem>>, %arg6: memref<1x32xf32, #tpu.memory_space<vmem>>, %arg7: memref<1x32xf32, #tpu.memory_space<vmem>>, %arg8: memref<256x32xbf16, #tpu.memory_space<vmem>>, %arg9: memref<256x32xf32, #tpu.memory_space<vmem>>) attributes {dimension_semantics = [#tpu.dimension_semantics<parallel>, #tpu.dimension_semantics<arbitrary>], iteration_bounds = array<i64: 1, 1>, scalar_prefetch = 0 : i64, scratch_operands = 1 : i64, tpu.core_type = #tpu.core_type<tc>, window_params = [{transform_indices = @transform_0, window_bounds = array<i64: 256, 32>}, {transform_indices = @transform_1, window_bounds = array<i64: 32, 32>}, {pipeline_mode = #tpu.pipeline_mode<synchronous>, transform_indices = @transform_2, window_bounds = array<i64: 1, 32>}, {transform_indices = @transform_3, window_bounds = array<i64: 256, 32>}, {pipeline_mode = #tpu.pipeline_mode<synchronous>, transform_indices = @transform_4, window_bounds = array<i64: 1, 32>}, {pipeline_mode = #tpu.pipeline_mode<synchronous>, transform_indices = @transform_5, window_bounds = array<i64: 1, 32>}, {transform_indices = @transform_6, window_bounds = array<i64: 256, 32>}]} {
    %c0_i32 = arith.constant 0 : i32
    %0 = arith.cmpi eq, %arg1, %c0_i32 : i32
    %1 = arith.extui %0 : i1 to i32
    %c0_i32_0 = arith.constant 0 : i32
    %2 = arith.cmpi ne, %1, %c0_i32_0 : i32
    scf.if %2 {
      %cst_10 = arith.constant 0.000000e+00 : f32
      %12 = vector.broadcast %cst_10 : f32 to vector<256x32xf32>
      %c0_11 = arith.constant 0 : index
      %c0_12 = arith.constant 0 : index
      %13 = vector.load %arg9[%c0_11, %c0_12] : memref<256x32xf32, #tpu.memory_space<vmem>>, vector<256x32xf32>
      tpu.vector_store %arg9[%c0_11, %c0_12], %12 {strides = array<i32>} : memref<256x32xf32, #tpu.memory_space<vmem>>, vector<256x32xf32>,
    } else {
    }
    %c0 = arith.constant 0 : index
    %c0_1 = arith.constant 0 : index
    %3 = vector.load %arg9[%c0, %c0_1] : memref<256x32xf32, #tpu.memory_space<vmem>>, vector<256x32xf32>
    %c0_2 = arith.constant 0 : index
    %c0_3 = arith.constant 0 : index
    %4 = vector.load %arg2[%c0_2, %c0_3] : memref<256x32xbf16, #tpu.memory_space<vmem>>, vector<256x32xbf16>
    %c0_4 = arith.constant 0 : index
    %c0_5 = arith.constant 0 : index
    %5 = vector.load %arg3[%c0_4, %c0_5] : memref<32x32xbf16, #tpu.memory_space<vmem>>, vector<32x32xbf16>
    %cst = arith.constant dense<0.000000e+00> : vector<256x32xf32>
    %6 = tpu.matmul %4, %5, %cst {dimension_numbers = #tpu.dot_dimension_numbers<[1], [0], [0], [1], [0, 0, 1, 1], [], []>} : vector<256x32xbf16>, vector<32x32xbf16>, vector<256x32xf32> -> vector<256x32xf32>
    %7 = arith.addf %3, %6 : vector<256x32xf32>
    %c0_6 = arith.constant 0 : index
    %c0_7 = arith.constant 0 : index
    %8 = vector.load %arg9[%c0_6, %c0_7] : memref<256x32xf32, #tpu.memory_space<vmem>>, vector<256x32xf32>
    tpu.vector_store %arg9[%c0_6, %c0_7], %7 {strides = array<i32>} : memref<256x32xf32, #tpu.memory_space<vmem>>, vector<256x32xf32>,
    %c0_i32_8 = arith.constant 0 : i32
    %9 = arith.cmpi eq, %arg1, %c0_i32_8 : i32
    %10 = arith.extui %9 : i1 to i32
    %c0_i32_9 = arith.constant 0 : i32
    %11 = arith.cmpi ne, %10, %c0_i32_9 : i32
    scf.if %11 {
      %c0_10 = arith.constant 0 : index
      %c0_11 = arith.constant 0 : index
      %12 = vector.load %arg9[%c0_10, %c0_11] : memref<256x32xf32, #tpu.memory_space<vmem>>, vector<256x32xf32>
      %c0_12 = arith.constant 0 : index
      %c0_13 = arith.constant 0 : index
      %13 = vector.load %arg4[%c0_12, %c0_13] : memref<1x32xf32, #tpu.memory_space<vmem>>, vector<1x32xf32>
      %14 = vector.broadcast %13 : vector<1x32xf32> to vector<256x32xf32>
      %15 = arith.addf %12, %14 : vector<256x32xf32>
      %c0_14 = arith.constant 0 : index
      %c0_15 = arith.constant 0 : index
      %16 = vector.load %arg5[%c0_14, %c0_15] : memref<256x32xbf16, #tpu.memory_space<vmem>>, vector<256x32xbf16>
      %17 = arith.extf %16 : vector<256x32xbf16> to vector<256x32xf32>
      %18 = arith.addf %15, %17 : vector<256x32xf32>
      %cst_16 = arith.constant dense<0.000000e+00> : vector<256xf32>
      %19 = vector.multi_reduction <add>, %18, %cst_16 [1] : vector<256x32xf32> to vector<256xf32>
      %20 = vector.shape_cast %19 : vector<256xf32> to vector<256x1xf32>
      %cst_17 = arith.constant 3.200000e+01 : f32
      %21 = vector.broadcast %cst_17 : f32 to vector<256x1xf32>
      %22 = arith.divf %20, %21 : vector<256x1xf32>
      %23 = vector.broadcast %22 : vector<256x1xf32> to vector<256x32xf32>
      %24 = arith.subf %18, %23 : vector<256x32xf32>
      %25 = arith.mulf %24, %24 : vector<256x32xf32>
      %cst_18 = arith.constant dense<0.000000e+00> : vector<256xf32>
      %26 = vector.multi_reduction <add>, %25, %cst_18 [1] : vector<256x32xf32> to vector<256xf32>
      %27 = vector.shape_cast %26 : vector<256xf32> to vector<256x1xf32>
      %cst_19 = arith.constant 3.200000e+01 : f32
      %28 = vector.broadcast %cst_19 : f32 to vector<256x1xf32>
      %29 = arith.divf %27, %28 : vector<256x1xf32>
      %cst_20 = arith.constant 9.99999974E-6 : f32
      %30 = vector.broadcast %cst_20 : f32 to vector<256x1xf32>
      %31 = arith.addf %29, %30 : vector<256x1xf32>
      %32 = math.rsqrt %31 : vector<256x1xf32>
      %33 = vector.broadcast %32 : vector<256x1xf32> to vector<256x32xf32>
      %34 = arith.mulf %24, %33 : vector<256x32xf32>
      %c0_21 = arith.constant 0 : index
      %c0_22 = arith.constant 0 : index
      %35 = vector.load %arg6[%c0_21, %c0_22] : memref<1x32xf32, #tpu.memory_space<vmem>>, vector<1x32xf32>
      %36 = vector.broadcast %35 : vector<1x32xf32> to vector<256x32xf32>
      %37 = arith.mulf %34, %36 : vector<256x32xf32>
      %c0_23 = arith.constant 0 : index
      %c0_24 = arith.constant 0 : index
      %38 = vector.load %arg7[%c0_23, %c0_24] : memref<1x32xf32, #tpu.memory_space<vmem>>, vector<1x32xf32>
      %39 = vector.broadcast %38 : vector<1x32xf32> to vector<256x32xf32>
      %40 = arith.addf %37, %39 : vector<256x32xf32>
      %41 = arith.truncf %40 : vector<256x32xf32> to vector<256x32xbf16>
      %c0_25 = arith.constant 0 : index
      %c0_26 = arith.constant 0 : index
      %42 = vector.load %arg8[%c0_25, %c0_26] : memref<256x32xbf16, #tpu.memory_space<vmem>>, vector<256x32xbf16>
      tpu.vector_store %arg8[%c0_25, %c0_26], %41 {strides = array<i32>} : memref<256x32xbf16, #tpu.memory_space<vmem>>, vector<256x32xbf16>,
    } else {
    }
    return
  }
  func.func @transform_0(%arg0: i32, %arg1: i32) -> (i32, i32) {
    %c0_i32 = arith.constant 0 : i32
    return %arg0, %arg1 : i32, i32
  }
  func.func @transform_1(%arg0: i32, %arg1: i32) -> (i32, i32) {
    %c0_i32 = arith.constant 0 : i32
    %c0_i32_0 = arith.constant 0 : i32
    return %arg1, %c0_i32 : i32, i32
  }
  func.func @transform_2(%arg0: i32, %arg1: i32) -> (i32, i32) {
    %c0_i32 = arith.constant 0 : i32
    %c0_i32_0 = arith.constant 0 : i32
    %c0_i32_1 = arith.constant 0 : i32
    return %c0_i32, %c0_i32_0 : i32, i32
  }
  func.func @transform_3(%arg0: i32, %arg1: i32) -> (i32, i32) {
    %c0_i32 = arith.constant 0 : i32
    %c0_i32_0 = arith.constant 0 : i32
    return %arg0, %c0_i32 : i32, i32
  }
  func.func @transform_4(%arg0: i32, %arg1: i32) -> (i32, i32) {
    %c0_i32 = arith.constant 0 : i32
    %c0_i32_0 = arith.constant 0 : i32
    %c0_i32_1 = arith.constant 0 : i32
    return %c0_i32, %c0_i32_0 : i32, i32
  }
  func.func @transform_5(%arg0: i32, %arg1: i32) -> (i32, i32) {
    %c0_i32 = arith.constant 0 : i32
    %c0_i32_0 = arith.constant 0 : i32
    %c0_i32_1 = arith.constant 0 : i32
    return %c0_i32, %c0_i32_0 : i32, i32
  }
  func.func @transform_6(%arg0: i32, %arg1: i32) -> (i32, i32) {
    %c0_i32 = arith.constant 0 : i32
    %c0_i32_0 = arith.constant 0 : i32
    return %arg0, %c0_i32 : i32, i32
  }
}

module attributes {stable_mosaic.version = 11 : i64} {
  func.func @_attn_out_kernel(%arg0: i32, %arg1: i32, %arg2: memref<1x1x128x8xbf16, #tpu.memory_space<vmem>>, %arg3: memref<1x8x32xbf16, #tpu.memory_space<vmem>>, %arg4: memref<1x32xf32, #tpu.memory_space<vmem>>, %arg5: memref<1x128x32xbf16, #tpu.memory_space<vmem>>, %arg6: memref<1x32xf32, #tpu.memory_space<vmem>>, %arg7: memref<1x32xf32, #tpu.memory_space<vmem>>, %arg8: memref<1x128x32xbf16, #tpu.memory_space<vmem>>, %arg9: memref<128x32xf32, #tpu.memory_space<vmem>>) attributes {dimension_semantics = [#tpu.dimension_semantics<parallel>, #tpu.dimension_semantics<arbitrary>], iteration_bounds = array<i64: 2, 4>, scalar_prefetch = 0 : i64, scratch_operands = 1 : i64, tpu.core_type = #tpu.core_type<tc>, window_params = [{transform_indices = @transform_0, window_bounds = array<i64: 1, 1, 128, 8>}, {transform_indices = @transform_1, window_bounds = array<i64: 1, 8, 32>}, {pipeline_mode = #tpu.pipeline_mode<synchronous>, transform_indices = @transform_2, window_bounds = array<i64: 1, 32>}, {transform_indices = @transform_3, window_bounds = array<i64: 1, 128, 32>}, {pipeline_mode = #tpu.pipeline_mode<synchronous>, transform_indices = @transform_4, window_bounds = array<i64: 1, 32>}, {pipeline_mode = #tpu.pipeline_mode<synchronous>, transform_indices = @transform_5, window_bounds = array<i64: 1, 32>}, {transform_indices = @transform_6, window_bounds = array<i64: 1, 128, 32>}]} {
    %c0_i32 = arith.constant 0 : i32
    %0 = arith.cmpi eq, %arg1, %c0_i32 : i32
    %1 = arith.extui %0 : i1 to i32
    %c0_i32_0 = arith.constant 0 : i32
    %2 = arith.cmpi ne, %1, %c0_i32_0 : i32
    scf.if %2 {
      %cst_12 = arith.constant 0.000000e+00 : f32
      %14 = vector.broadcast %cst_12 : f32 to vector<128x32xf32>
      %c0_13 = arith.constant 0 : index
      %c0_14 = arith.constant 0 : index
      %15 = vector.load %arg9[%c0_13, %c0_14] : memref<128x32xf32, #tpu.memory_space<vmem>>, vector<128x32xf32>
      tpu.vector_store %arg9[%c0_13, %c0_14], %14 {strides = array<i32>} : memref<128x32xf32, #tpu.memory_space<vmem>>, vector<128x32xf32>,
    } else {
    }
    %c0 = arith.constant 0 : index
    %c0_1 = arith.constant 0 : index
    %3 = vector.load %arg9[%c0, %c0_1] : memref<128x32xf32, #tpu.memory_space<vmem>>, vector<128x32xf32>
    %c0_2 = arith.constant 0 : index
    %c0_3 = arith.constant 0 : index
    %c0_4 = arith.constant 0 : index
    %c0_5 = arith.constant 0 : index
    %4 = vector.load %arg2[%c0_2, %c0_3, %c0_4, %c0_5] : memref<1x1x128x8xbf16, #tpu.memory_space<vmem>>, vector<1x1x128x8xbf16>
    %5 = vector.shape_cast %4 : vector<1x1x128x8xbf16> to vector<128x8xbf16>
    %c0_6 = arith.constant 0 : index
    %c0_7 = arith.constant 0 : index
    %c0_8 = arith.constant 0 : index
    %6 = vector.load %arg3[%c0_6, %c0_7, %c0_8] : memref<1x8x32xbf16, #tpu.memory_space<vmem>>, vector<1x8x32xbf16>
    %7 = vector.shape_cast %6 : vector<1x8x32xbf16> to vector<8x32xbf16>
    %cst = arith.constant dense<0.000000e+00> : vector<128x32xf32>
    %8 = tpu.matmul %5, %7, %cst {dimension_numbers = #tpu.dot_dimension_numbers<[1], [0], [0], [1], [0, 0, 1, 1], [], []>} : vector<128x8xbf16>, vector<8x32xbf16>, vector<128x32xf32> -> vector<128x32xf32>
    %9 = arith.addf %3, %8 : vector<128x32xf32>
    %c0_9 = arith.constant 0 : index
    %c0_10 = arith.constant 0 : index
    %10 = vector.load %arg9[%c0_9, %c0_10] : memref<128x32xf32, #tpu.memory_space<vmem>>, vector<128x32xf32>
    tpu.vector_store %arg9[%c0_9, %c0_10], %9 {strides = array<i32>} : memref<128x32xf32, #tpu.memory_space<vmem>>, vector<128x32xf32>,
    %c3_i32 = arith.constant 3 : i32
    %11 = arith.cmpi eq, %arg1, %c3_i32 : i32
    %12 = arith.extui %11 : i1 to i32
    %c0_i32_11 = arith.constant 0 : i32
    %13 = arith.cmpi ne, %12, %c0_i32_11 : i32
    scf.if %13 {
      %c0_12 = arith.constant 0 : index
      %c0_13 = arith.constant 0 : index
      %14 = vector.load %arg9[%c0_12, %c0_13] : memref<128x32xf32, #tpu.memory_space<vmem>>, vector<128x32xf32>
      %c0_14 = arith.constant 0 : index
      %c0_15 = arith.constant 0 : index
      %15 = vector.load %arg4[%c0_14, %c0_15] : memref<1x32xf32, #tpu.memory_space<vmem>>, vector<1x32xf32>
      %16 = vector.broadcast %15 : vector<1x32xf32> to vector<128x32xf32>
      %17 = arith.addf %14, %16 : vector<128x32xf32>
      %c0_16 = arith.constant 0 : index
      %c0_17 = arith.constant 0 : index
      %c0_18 = arith.constant 0 : index
      %18 = vector.load %arg5[%c0_16, %c0_17, %c0_18] : memref<1x128x32xbf16, #tpu.memory_space<vmem>>, vector<1x128x32xbf16>
      %19 = vector.shape_cast %18 : vector<1x128x32xbf16> to vector<128x32xbf16>
      %20 = arith.extf %19 : vector<128x32xbf16> to vector<128x32xf32>
      %21 = arith.addf %17, %20 : vector<128x32xf32>
      %cst_19 = arith.constant dense<0.000000e+00> : vector<128xf32>
      %22 = vector.multi_reduction <add>, %21, %cst_19 [1] : vector<128x32xf32> to vector<128xf32>
      %23 = vector.shape_cast %22 : vector<128xf32> to vector<128x1xf32>
      %cst_20 = arith.constant 3.200000e+01 : f32
      %24 = vector.broadcast %cst_20 : f32 to vector<128x1xf32>
      %25 = arith.divf %23, %24 : vector<128x1xf32>
      %26 = vector.broadcast %25 : vector<128x1xf32> to vector<128x32xf32>
      %27 = arith.subf %21, %26 : vector<128x32xf32>
      %28 = arith.mulf %27, %27 : vector<128x32xf32>
      %cst_21 = arith.constant dense<0.000000e+00> : vector<128xf32>
      %29 = vector.multi_reduction <add>, %28, %cst_21 [1] : vector<128x32xf32> to vector<128xf32>
      %30 = vector.shape_cast %29 : vector<128xf32> to vector<128x1xf32>
      %cst_22 = arith.constant 3.200000e+01 : f32
      %31 = vector.broadcast %cst_22 : f32 to vector<128x1xf32>
      %32 = arith.divf %30, %31 : vector<128x1xf32>
      %cst_23 = arith.constant 9.99999974E-6 : f32
      %33 = vector.broadcast %cst_23 : f32 to vector<128x1xf32>
      %34 = arith.addf %32, %33 : vector<128x1xf32>
      %35 = math.rsqrt %34 : vector<128x1xf32>
      %36 = vector.broadcast %35 : vector<128x1xf32> to vector<128x32xf32>
      %37 = arith.mulf %27, %36 : vector<128x32xf32>
      %c0_24 = arith.constant 0 : index
      %c0_25 = arith.constant 0 : index
      %38 = vector.load %arg6[%c0_24, %c0_25] : memref<1x32xf32, #tpu.memory_space<vmem>>, vector<1x32xf32>
      %39 = vector.broadcast %38 : vector<1x32xf32> to vector<128x32xf32>
      %40 = arith.mulf %37, %39 : vector<128x32xf32>
      %c0_26 = arith.constant 0 : index
      %c0_27 = arith.constant 0 : index
      %41 = vector.load %arg7[%c0_26, %c0_27] : memref<1x32xf32, #tpu.memory_space<vmem>>, vector<1x32xf32>
      %42 = vector.broadcast %41 : vector<1x32xf32> to vector<128x32xf32>
      %43 = arith.addf %40, %42 : vector<128x32xf32>
      %44 = arith.truncf %43 : vector<128x32xf32> to vector<128x32xbf16>
      %c0_28 = arith.constant 0 : index
      %c0_29 = arith.constant 0 : index
      %c0_30 = arith.constant 0 : index
      %45 = vector.load %arg8[%c0_28, %c0_29, %c0_30] : memref<1x128x32xbf16, #tpu.memory_space<vmem>>, vector<1x128x32xbf16>
      %46 = vector.shape_cast %45 : vector<1x128x32xbf16> to vector<128x32xbf16>
      %47 = vector.shape_cast %44 : vector<128x32xbf16> to vector<1x128x32xbf16>
      tpu.vector_store %arg8[%c0_28, %c0_29, %c0_30], %47 {strides = array<i32>} : memref<1x128x32xbf16, #tpu.memory_space<vmem>>, vector<1x128x32xbf16>,
    } else {
    }
    return
  }
  func.func @transform_0(%arg0: i32, %arg1: i32) -> (i32, i32, i32, i32) {
    %c0_i32 = arith.constant 0 : i32
    %c0_i32_0 = arith.constant 0 : i32
    %c0_i32_1 = arith.constant 0 : i32
    return %arg0, %arg1, %c0_i32, %c0_i32_0 : i32, i32, i32, i32
  }
  func.func @transform_1(%arg0: i32, %arg1: i32) -> (i32, i32, i32) {
    %c0_i32 = arith.constant 0 : i32
    %c0_i32_0 = arith.constant 0 : i32
    %c0_i32_1 = arith.constant 0 : i32
    return %arg1, %c0_i32, %c0_i32_0 : i32, i32, i32
  }
  func.func @transform_2(%arg0: i32, %arg1: i32) -> (i32, i32) {
    %c0_i32 = arith.constant 0 : i32
    %c0_i32_0 = arith.constant 0 : i32
    %c0_i32_1 = arith.constant 0 : i32
    return %c0_i32, %c0_i32_0 : i32, i32
  }
  func.func @transform_3(%arg0: i32, %arg1: i32) -> (i32, i32, i32) {
    %c0_i32 = arith.constant 0 : i32
    %c0_i32_0 = arith.constant 0 : i32
    %c0_i32_1 = arith.constant 0 : i32
    return %arg0, %c0_i32, %c0_i32_0 : i32, i32, i32
  }
  func.func @transform_4(%arg0: i32, %arg1: i32) -> (i32, i32) {
    %c0_i32 = arith.constant 0 : i32
    %c0_i32_0 = arith.constant 0 : i32
    %c0_i32_1 = arith.constant 0 : i32
    return %c0_i32, %c0_i32_0 : i32, i32
  }
  func.func @transform_5(%arg0: i32, %arg1: i32) -> (i32, i32) {
    %c0_i32 = arith.constant 0 : i32
    %c0_i32_0 = arith.constant 0 : i32
    %c0_i32_1 = arith.constant 0 : i32
    return %c0_i32, %c0_i32_0 : i32, i32
  }
  func.func @transform_6(%arg0: i32, %arg1: i32) -> (i32, i32, i32) {
    %c0_i32 = arith.constant 0 : i32
    %c0_i32_0 = arith.constant 0 : i32
    %c0_i32_1 = arith.constant 0 : i32
    return %arg0, %c0_i32, %c0_i32_0 : i32, i32, i32
  }
}

module attributes {stable_mosaic.version = 11 : i64} {
  func.func @_label_logits_kernel(%arg0: i32, %arg1: memref<1x8x32xbf16, #tpu.memory_space<vmem>>, %arg2: memref<8x32xf32, #tpu.memory_space<vmem>>, %arg3: memref<1x8xf32, #tpu.memory_space<vmem>>, %arg4: memref<1x1x8xf32, #tpu.memory_space<vmem>>) attributes {dimension_semantics = [#tpu.dimension_semantics<parallel>], iteration_bounds = array<i64: 2>, scalar_prefetch = 0 : i64, scratch_operands = 0 : i64, tpu.core_type = #tpu.core_type<tc>, window_params = [{transform_indices = @transform_0, window_bounds = array<i64: 1, 8, 32>}, {pipeline_mode = #tpu.pipeline_mode<synchronous>, transform_indices = @transform_1, window_bounds = array<i64: 8, 32>}, {pipeline_mode = #tpu.pipeline_mode<synchronous>, transform_indices = @transform_2, window_bounds = array<i64: 1, 8>}, {transform_indices = @transform_3, window_bounds = array<i64: 1, 1, 8>}]} {
    %c0 = arith.constant 0 : index
    %c0_0 = arith.constant 0 : index
    %c0_1 = arith.constant 0 : index
    %0 = vector.load %arg1[%c0, %c0_0, %c0_1] : memref<1x8x32xbf16, #tpu.memory_space<vmem>>, vector<1x8x32xbf16>
    %1 = arith.extf %0 : vector<1x8x32xbf16> to vector<1x8x32xf32>
    %c0_2 = arith.constant 0 : index
    %c0_3 = arith.constant 0 : index
    %2 = vector.load %arg2[%c0_2, %c0_3] : memref<8x32xf32, #tpu.memory_space<vmem>>, vector<8x32xf32>
    %3 = vector.shape_cast %2 : vector<8x32xf32> to vector<1x8x32xf32>
    %4 = arith.mulf %1, %3 : vector<1x8x32xf32>
    %cst = arith.constant dense<0.000000e+00> : vector<1x8xf32>
    %5 = vector.multi_reduction <add>, %4, %cst [2] : vector<1x8x32xf32> to vector<1x8xf32>
    %c0_4 = arith.constant 0 : index
    %c0_5 = arith.constant 0 : index
    %6 = vector.load %arg3[%c0_4, %c0_5] : memref<1x8xf32, #tpu.memory_space<vmem>>, vector<1x8xf32>
    %7 = arith.addf %5, %6 : vector<1x8xf32>
    %c0_6 = arith.constant 0 : index
    %c0_7 = arith.constant 0 : index
    %c0_8 = arith.constant 0 : index
    %8 = vector.load %arg4[%c0_6, %c0_7, %c0_8] : memref<1x1x8xf32, #tpu.memory_space<vmem>>, vector<1x1x8xf32>
    %9 = vector.shape_cast %8 : vector<1x1x8xf32> to vector<1x8xf32>
    %10 = vector.shape_cast %7 : vector<1x8xf32> to vector<1x1x8xf32>
    tpu.vector_store %arg4[%c0_6, %c0_7, %c0_8], %10 {strides = array<i32>} : memref<1x1x8xf32, #tpu.memory_space<vmem>>, vector<1x1x8xf32>,
    return
  }
  func.func @transform_0(%arg0: i32) -> (i32, i32, i32) {
    %c0_i32 = arith.constant 0 : i32
    %c0_i32_0 = arith.constant 0 : i32
    %c0_i32_1 = arith.constant 0 : i32
    return %arg0, %c0_i32, %c0_i32_0 : i32, i32, i32
  }
  func.func @transform_1(%arg0: i32) -> (i32, i32) {
    %c0_i32 = arith.constant 0 : i32
    %c0_i32_0 = arith.constant 0 : i32
    %c0_i32_1 = arith.constant 0 : i32
    return %c0_i32, %c0_i32_0 : i32, i32
  }
  func.func @transform_2(%arg0: i32) -> (i32, i32) {
    %c0_i32 = arith.constant 0 : i32
    %c0_i32_0 = arith.constant 0 : i32
    %c0_i32_1 = arith.constant 0 : i32
    return %c0_i32, %c0_i32_0 : i32, i32
  }
  func.func @transform_3(%arg0: i32) -> (i32, i32, i32) {
    %c0_i32 = arith.constant 0 : i32
    %c0_i32_0 = arith.constant 0 : i32
    %c0_i32_1 = arith.constant 0 : i32
    return %arg0, %c0_i32, %c0_i32_0 : i32, i32, i32
  }
}

</mosaic_0001>

<bundles_post_ra>
// kernel: ctran_forward.18
= control target key start
LH: loop header
LB: loop body
LE: loop exit
PB: predicated region body
PF: predicated region fallthrough
CT: control target
= control target key end

     0   :  { %vm148_vm0 = vcmask 1044480   ;;  %vm149_vm1 = vcmask 1045504   ;;  %vm123_vm2 = vcmask 220160   ;;  %v525_v1 = vmov 65535   ;;  %s702_s1 = inlined_call_operand.vmem [shape: bf16[27,32], index: 1, kind: input, shape index: {}]   ;;  %s703_s0 = inlined_call_operand.vmem [shape: bf16[128,27], index: 0, kind: input, shape index: {}]   ;;  %s704_s2 = inlined_call_operand.vmem [shape: f32[1,32], index: 2, kind: input, shape index: {}]   ;;  %s705_s3 = inlined_call_operand.vmem [shape: bf16[128,32], index: 3, kind: output, shape index: {}]  }
   0x1   :  { %v515_v0 = vld [vmem:[%s702_s1] sm:$0xff]   ;;  %v150_v2 = vsel %vm148_vm0, 4294967295, %v525_v1  ;;  %v516_v3 = vld [vmem:[%s702_s1 + $0x8] sm:$0x3f]   ;;  %vm19_vm3 = vcmask 261120   ;;  %v526_v10 = vmov 0.0  }
   0x2   :  { %489 = vmatprep.subr.bf16.mxu0 %v515_v0  ;;  %509 = vmatprep.subr.bf16.mxu1 %v515_v0  ;;  %v151_v4 = vsel %vm149_vm1, %v150_v2, 0  ;;  %v517_v5 = vld [vmem:[%s703_s0] sm:$0xff]   ;;  %v519_v8 = vld [vmem:[%s703_s0 + $0x8] sm:$0xff]   ;;  %22 = vst.msk [vmem:[#allocation2 + $0x10] sm:$0xff] %vm19_vm3, %v526_v10  ;;  %20 = vst.msk [vmem:[#allocation2] sm:$0xff] %vm19_vm3, %v526_v10  ;;  %vm407_vm4 = vcmask 257024  }
   0x3   :  { %490 = vmatpush3.bf16.msra.mxu0 %v515_v0  ;;  %511 = vmatpush3.bf16.msra.mxu1 %v515_v0  ;;  %v153_v6 = vand.u32 %v516_v3, %v151_v4  ;;  %v518_v7 = vld [vmem:[%s703_s0 + $0x20] sm:$0xff]   ;;  %v520_v9 = vld [vmem:[%s703_s0 + $0x28] sm:$0xff]   ;;  %21 = vst.msk [vmem:[#allocation2 + $0x8] sm:$0xff] %vm19_vm3, %v526_v10  ;;  %23 = vst.msk [vmem:[#allocation2 + $0x18] sm:$0xff] %vm19_vm3, %v526_v10 }
   0x4   :  { %493 = vmatprep.mubr.msk.bf16.mxu0 %vm123_vm2, %v517_v5  ;;  %24 = vst.msk [vmem:[#allocation2 + $0x20] sm:$0xff] %vm19_vm3, %v526_v10  ;;  %25 = vst.msk [vmem:[#allocation2 + $0x28] sm:$0xff] %vm19_vm3, %v526_v10  ;;  %501 = vmatprep.mubr.msk.bf16.mxu1 %vm123_vm2, %v518_v7  ;;  %v521_v11 = vld [vmem:[%s703_s0 + $0x10] sm:$0xff]   ;;  %v523_v13 = vld [vmem:[%s703_s0 + $0x18] sm:$0xff]  }
   0x5   :  { %491 = vmatprep.subr.bf16.mxu0 %v153_v6  ;;  %510 = vmatprep.subr.bf16.mxu1 %v153_v6  ;;  %26 = vst.msk [vmem:[#allocation2 + $0x30] sm:$0xff] %vm19_vm3, %v526_v10  ;;  %27 = vst.msk [vmem:[#allocation2 + $0x38] sm:$0xff] %vm19_vm3, %v526_v10  ;;  %v522_v12 = vld [vmem:[%s703_s0 + $0x30] sm:$0xff]   ;;  %v524_v14 = vld [vmem:[%s703_s0 + $0x38] sm:$0xff]  }
   0x6   :  { %28 = vst.msk [vmem:[#allocation2 + $0x40] sm:$0xff] %vm19_vm3, %v526_v10  ;;  %29 = vst.msk [vmem:[#allocation2 + $0x48] sm:$0xff] %vm19_vm3, %v526_v10  ;;  %v612_v43 = vld [vmem:[%s704_s2] ss:$0 sm:$0xff] }
   0x7   :  { %30 = vst.msk [vmem:[#allocation2 + $0x50] sm:$0xff] %vm19_vm3, %v526_v10  ;;  %31 = vst.msk [vmem:[#allocation2 + $0x58] sm:$0xff] %vm19_vm3, %v526_v10  ;;  %492 = vmatpush3.bf16.msra.mxu0 %v153_v6  ;;  %512 = vmatpush3.bf16.msra.mxu1 %v153_v6 }
   0x8   :  { %32 = vst.msk [vmem:[#allocation2 + $0x60] sm:$0xff] %vm19_vm3, %v526_v10  ;;  %33 = vst.msk [vmem:[#allocation2 + $0x68] sm:$0xff] %vm19_vm3, %v526_v10 }
   0x9   :  { %34 = vst.msk [vmem:[#allocation2 + $0x70] sm:$0xff] %vm19_vm3, %v526_v10  ;;  %35 = vst.msk [vmem:[#allocation2 + $0x78] sm:$0xff] %vm19_vm3, %v526_v10  ;;  %v38_v15 = vld [vmem:[#allocation2 + $0x10] sm:$0xff]  ;;  %v36_v17 = vld [vmem:[#allocation2] sm:$0xff] }
   0xa   :  { %494 = vmatmul.mubr.msk.bf16.vlgmr.msra.gmra.mrb[0].mxu0 %vm123_vm2, %v519_v8  ;;  %502 = vmatmul.mubr.msk.bf16.vlgmr.msra.gmra.mrb[0].mxu1 %vm123_vm2, %v520_v9  ;;  %v39_v21 = vld [vmem:[#allocation2 + $0x18] sm:$0xff]  ;;  %v37_v27 = vld [vmem:[#allocation2 + $0x8] sm:$0xff] }
   0xb   :  { %497 = vmatprep.mubr.msk.bf16.mxu0 %vm123_vm2, %v521_v11  ;;  %505 = vmatprep.mubr.msk.bf16.mxu1 %vm123_vm2, %v522_v12  ;;  %v40_v41 = vld [vmem:[#allocation2 + $0x20] sm:$0xff]  ;;  %v41_v52 = vld [vmem:[#allocation2 + $0x28] sm:$0xff] }
   0xc   :  { %v42_v39 = vld [vmem:[#allocation2 + $0x30] sm:$0xff]  ;;  %v43_v46 = vld [vmem:[#allocation2 + $0x38] sm:$0xff] }
   0xd   :  { %v44_v18 = vld [vmem:[#allocation2 + $0x40] sm:$0xff]  ;;  %v45_v28 = vld [vmem:[#allocation2 + $0x48] sm:$0xff] }
   0xe   :  { %v46_v16 = vld [vmem:[#allocation2 + $0x50] sm:$0xff]  ;;  %v47_v22 = vld [vmem:[#allocation2 + $0x58] sm:$0xff] }
   0xf   :  { %v48_v42 = vld [vmem:[#allocation2 + $0x60] sm:$0xff]  ;;  %v49_v53 = vld [vmem:[#allocation2 + $0x68] sm:$0xff] }
  0x10   :  { %v50_v40 = vld [vmem:[#allocation2 + $0x70] sm:$0xff]  ;;  %v51_v47 = vld [vmem:[#allocation2 + $0x78] sm:$0xff] }
  0x12   :  { %498 = vmatmul.mubr.msk.bf16.gmra.mrb[4].mxu0 %vm123_vm2, %v523_v13  ;;  %506 = vmatmul.mubr.msk.bf16.gmra.mrb[4].mxu1 %vm123_vm2, %v524_v14 }
  0xdd   :  { %v495_v19 = vpop.f32.mrb[0].mxu0  ;;  %v503_v20 = vpop.f32.mrb[0].mxu1 }
  0xde   :  { %v254_v23 = vadd.f32 %v495_v19, %v38_v15  ;;  %v262_v24 = vadd.f32 %v503_v20, %v46_v16  ;;  %v189_v25 = vpop.f32.mrb[1].mxu0  ;;  %v221_v26 = vpop.f32.mrb[1].mxu1 }
  0xdf   :  { %v252_v29 = vadd.f32 %v189_v25, %v36_v17  ;;  %v260_v30 = vadd.f32 %v221_v26, %v44_v18  ;;  %v496_v31 = vpop.f32.mrb[2].mxu0  ;;  %v504_v32 = vpop.f32.mrb[2].mxu1 }
  0xe0   :  { %271 = vst.msk [vmem:[#allocation2 + $0x10] sm:$0xff] %vm19_vm3, %v254_v23  ;;  %279 = vst.msk [vmem:[#allocation2 + $0x50] sm:$0xff] %vm19_vm3, %v262_v24  ;;  %v255_v33 = vadd.f32 %v496_v31, %v39_v21  ;;  %v263_v34 = vadd.f32 %v504_v32, %v47_v22  ;;  %v192_v35 = vpop.f32.mrb[3].mxu0  ;;  %v224_v36 = vpop.f32.mrb[3].mxu1 }
  0xe1   :  { %269 = vst.msk [vmem:[#allocation2] sm:$0xff] %vm19_vm3, %v252_v29  ;;  %277 = vst.msk [vmem:[#allocation2 + $0x40] sm:$0xff] %vm19_vm3, %v260_v30  ;;  %v253_v37 = vadd.f32 %v192_v35, %v37_v27  ;;  %v261_v38 = vadd.f32 %v224_v36, %v45_v28 }
  0xe2   :  { %272 = vst.msk [vmem:[#allocation2 + $0x18] sm:$0xff] %vm19_vm3, %v255_v33  ;;  %280 = vst.msk [vmem:[#allocation2 + $0x58] sm:$0xff] %vm19_vm3, %v263_v34 }
  0xe3   :  { %270 = vst.msk [vmem:[#allocation2 + $0x8] sm:$0xff] %vm19_vm3, %v253_v37  ;;  %278 = vst.msk [vmem:[#allocation2 + $0x48] sm:$0xff] %vm19_vm3, %v261_v38 }
  0xe5   :  { %v499_v44 = vpop.f32.mrb[4].mxu0  ;;  %v507_v45 = vpop.f32.mrb[4].mxu1 }
  0xe6   :  { %v258_v48 = vadd.f32 %v499_v44, %v42_v39  ;;  %v266_v49 = vadd.f32 %v507_v45, %v50_v40  ;;  %v205_v50 = vpop.f32.mrb[5].mxu0  ;;  %v237_v51 = vpop.f32.mrb[5].mxu1 }
  0xe7   :  { %v290_v54 = vld [vmem:[#allocation2 + $0x10] sm:$0xff]  ;;  %v256_v56 = vadd.f32 %v205_v50, %v40_v41  ;;  %v264_v57 = vadd.f32 %v237_v51, %v48_v42  ;;  %v500_v58 = vpop.f32.mrb[6].mxu0  ;;  %v508_v59 = vpop.f32.mrb[6].mxu1 }
  0xe8   :  { %v298_v55 = vld [vmem:[#allocation2 + $0x50] sm:$0xff]  ;;  %v313_v60 = vadd.f32 %v612_v43, %v290_v54  ;;  %v288_v62 = vld [vmem:[#allocation2] sm:$0xff]  ;;  %275 = vst.msk [vmem:[#allocation2 + $0x30] sm:$0xff] %vm19_vm3, %v258_v48  ;;  %283 = vst.msk [vmem:[#allocation2 + $0x70] sm:$0xff] %vm19_vm3, %v266_v49  ;;  %v259_v0 = vadd.f32 %v500_v58, %v43_v46  ;;  %v267_v1 = vadd.f32 %v508_v59, %v51_v47  ;;  %v208_v2 = vpop.f32.mrb[7].mxu0  ;;  %v240_v3 = vpop.f32.mrb[7].mxu1 }
  0xe9   :  { %v321_v61 = vadd.f32 %v612_v43, %v298_v55  ;;  %v296_v63 = vld [vmem:[#allocation2 + $0x40] sm:$0xff]  ;;  %v311_v4 = vadd.f32 %v612_v43, %v288_v62  ;;  %v291_v6 = vld [vmem:[#allocation2 + $0x18] sm:$0xff]  ;;  %273 = vst.msk [vmem:[#allocation2 + $0x20] sm:$0xff] %vm19_vm3, %v256_v56  ;;  %281 = vst.msk [vmem:[#allocation2 + $0x60] sm:$0xff] %vm19_vm3, %v264_v57  ;;  %v257_v8 = vadd.f32 %v208_v2, %v41_v52 }
  0xea   :  { %v319_v5 = vadd.f32 %v612_v43, %v296_v63  ;;  %v299_v7 = vld [vmem:[#allocation2 + $0x58] sm:$0xff]  ;;  %v265_v9 = vadd.f32 %v240_v3, %v49_v53  ;;  %v329_v10 = vmax.f32 %v313_v60, 0.0  ;;  %v314_v12 = vadd.f32 %v612_v43, %v291_v6  ;;  %v289_v14 = vld [vmem:[#allocation2 + $0x8] sm:$0xff]  ;;  %276 = vst.msk [vmem:[#allocation2 + $0x38] sm:$0xff] %vm19_vm3, %v259_v0  ;;  %284 = vst.msk [vmem:[#allocation2 + $0x78] sm:$0xff] %vm19_vm3, %v267_v1 }
  0xeb   :  { %v337_v11 = vmax.f32 %v321_v61, 0.0  ;;  %v322_v13 = vadd.f32 %v612_v43, %v299_v7  ;;  %v297_v15 = vld [vmem:[#allocation2 + $0x48] sm:$0xff]  ;;  %v327_v16 = vmax.f32 %v311_v4, 0.0  ;;  %v312_v18 = vadd.f32 %v612_v43, %v289_v14  ;;  %274 = vst.msk [vmem:[#allocation2 + $0x28] sm:$0xff] %vm19_vm3, %v257_v8 }
  0xec   :  { %v335_v17 = vmax.f32 %v319_v5, 0.0  ;;  %v320_v19 = vadd.f32 %v612_v43, %v297_v15  ;;  %282 = vst.msk [vmem:[#allocation2 + $0x68] sm:$0xff] %vm19_vm3, %v265_v9  ;;  %v465_v20 = vpack.c.bf16 %v329_v10, %v329_v10  ;;  %v330_v22 = vmax.f32 %v314_v12, 0.0 }
  0xed   :  { %v473_v21 = vpack.c.bf16 %v337_v11, %v337_v11  ;;  %v338_v23 = vmax.f32 %v322_v13, 0.0  ;;  %v463_v24 = vpack.c.bf16 %v327_v16, %v327_v16  ;;  %v328_v26 = vmax.f32 %v312_v18, 0.0 }
  0xee   :  { %v471_v25 = vpack.c.bf16 %v335_v17, %v335_v17  ;;  %v336_v27 = vmax.f32 %v320_v19, 0.0  ;;  %410 = vst.msk [vmem:[%s705_s3 + $0x8] sm:$0xf] %vm407_vm4, %v465_v20  ;;  %v466_v28 = vpack.c.bf16 %v330_v22, %v330_v22 }
  0xef   :  { %418 = vst.msk [vmem:[%s705_s3 + $0x28] sm:$0xf] %vm407_vm4, %v473_v21  ;;  %v474_v29 = vpack.c.bf16 %v338_v23, %v338_v23  ;;  %408 = vst.msk [vmem:[%s705_s3] sm:$0xf] %vm407_vm4, %v463_v24  ;;  %v464_v30 = vpack.c.bf16 %v328_v26, %v328_v26  ;;  %v294_v32 = vld [vmem:[#allocation2 + $0x30] sm:$0xff] }
  0xf0   :  { %416 = vst.msk [vmem:[%s705_s3 + $0x20] sm:$0xf] %vm407_vm4, %v471_v25  ;;  %v472_v31 = vpack.c.bf16 %v336_v27, %v336_v27  ;;  %v302_v33 = vld [vmem:[#allocation2 + $0x70] sm:$0xff]  ;;  %411 = vst.msk [vmem:[%s705_s3 + $0xc] sm:$0xf] %vm407_vm4, %v466_v28  ;;  %v317_v34 = vadd.f32 %v612_v43, %v294_v32  ;;  %v292_v36 = vld [vmem:[#allocation2 + $0x20] sm:$0xff] }
  0xf1   :  { %419 = vst.msk [vmem:[%s705_s3 + $0x2c] sm:$0xf] %vm407_vm4, %v474_v29  ;;  %v325_v35 = vadd.f32 %v612_v43, %v302_v33  ;;  %v300_v37 = vld [vmem:[#allocation2 + $0x60] sm:$0xff]  ;;  %409 = vst.msk [vmem:[%s705_s3 + $0x4] sm:$0xf] %vm407_vm4, %v464_v30  ;;  %v315_v38 = vadd.f32 %v612_v43, %v292_v36  ;;  %v295_v40 = vld [vmem:[#allocation2 + $0x38] sm:$0xff] }
  0xf2   :  { %417 = vst.msk [vmem:[%s705_s3 + $0x24] sm:$0xf] %vm407_vm4, %v472_v31  ;;  %v323_v39 = vadd.f32 %v612_v43, %v300_v37  ;;  %v303_v41 = vld [vmem:[#allocation2 + $0x78] sm:$0xff]  ;;  %v333_v42 = vmax.f32 %v317_v34, 0.0  ;;  %v318_v45 = vadd.f32 %v612_v43, %v295_v40  ;;  %v293_v47 = vld [vmem:[#allocation2 + $0x28] sm:$0xff] }
  0xf3   :  { %v341_v44 = vmax.f32 %v325_v35, 0.0  ;;  %v326_v46 = vadd.f32 %v612_v43, %v303_v41  ;;  %v301_v48 = vld [vmem:[#allocation2 + $0x68] sm:$0xff]  ;;  %v331_v49 = vmax.f32 %v315_v38, 0.0  ;;  %v316_v51 = vadd.f32 %v612_v43, %v293_v47 }
  0xf4   :  { %v339_v50 = vmax.f32 %v323_v39, 0.0  ;;  %v324_v52 = vadd.f32 %v612_v43, %v301_v48  ;;  %v469_v53 = vpack.c.bf16 %v333_v42, %v333_v42  ;;  %v334_v55 = vmax.f32 %v318_v45, 0.0 }
  0xf5   :  { %v477_v54 = vpack.c.bf16 %v341_v44, %v341_v44  ;;  %v342_v56 = vmax.f32 %v326_v46, 0.0  ;;  %v467_v57 = vpack.c.bf16 %v331_v49, %v331_v49  ;;  %v332_v59 = vmax.f32 %v316_v51, 0.0 }
  0xf6   :  { %v475_v58 = vpack.c.bf16 %v339_v50, %v339_v50  ;;  %v340_v60 = vmax.f32 %v324_v52, 0.0  ;;  %414 = vst.msk [vmem:[%s705_s3 + $0x18] sm:$0xf] %vm407_vm4, %v469_v53  ;;  %v470_v61 = vpack.c.bf16 %v334_v55, %v334_v55 }
  0xf7   :  { %422 = vst.msk [vmem:[%s705_s3 + $0x38] sm:$0xf] %vm407_vm4, %v477_v54  ;;  %v478_v43 = vpack.c.bf16 %v342_v56, %v342_v56  ;;  %412 = vst.msk [vmem:[%s705_s3 + $0x10] sm:$0xf] %vm407_vm4, %v467_v57  ;;  %v468_v62 = vpack.c.bf16 %v332_v59, %v332_v59 }
  0xf8   :  { %420 = vst.msk [vmem:[%s705_s3 + $0x30] sm:$0xf] %vm407_vm4, %v475_v58  ;;  %v476_v63 = vpack.c.bf16 %v340_v60, %v340_v60  ;;  %415 = vst.msk [vmem:[%s705_s3 + $0x1c] sm:$0xf] %vm407_vm4, %v470_v61 }
  0xf9   :  { %423 = vst.msk [vmem:[%s705_s3 + $0x3c] sm:$0xf] %vm407_vm4, %v478_v43  ;;  %413 = vst.msk [vmem:[%s705_s3 + $0x14] sm:$0xf] %vm407_vm4, %v468_v62 }
  0xfa   :  { %421 = vst.msk [vmem:[%s705_s3 + $0x34] sm:$0xf] %vm407_vm4, %v476_v63 }

// kernel: ctran_forward.19
= control target key start
LH: loop header
LB: loop body
LE: loop exit
PB: predicated region body
PF: predicated region fallthrough
CT: control target
= control target key end

     0   :  { %vm78_vm0 = vcmask 261120   ;;  %vm702_vm1 = vcmask 257024   ;;  %s1634_s0 = inlined_call_operand.vmem [shape: bf16[256,32], index: 0, kind: input, shape index: {}]   ;;  %s1635_s1 = inlined_call_operand.vmem [shape: f32[1,32], index: 1, kind: input, shape index: {}]   ;;  %s1636_s2 = inlined_call_operand.vmem [shape: f32[1,32], index: 2, kind: input, shape index: {}]   ;;  %s1637_s3 = inlined_call_operand.vmem [shape: bf16[256,32], index: 3, kind: output, shape index: {}]  }
   0x1   :  { %v971_v0 = vld [vmem:[%s1634_s0] sm:$0xff]   ;;  %v976_v1 = vld [vmem:[%s1634_s0 + $0x8] sm:$0xff]   ;;  %v985_v6 = vld [vmem:[%s1634_s0 + $0x10] sm:$0xff]  }
   0x2   :  { %v807_v2 = vunpack.c.l.bf16 %v971_v0  ;;  %v811_v3 = vunpack.c.l.bf16 %v976_v1  ;;  %v808_v4 = vunpack.c.h.bf16 %v971_v0  ;;  %v812_v5 = vunpack.c.h.bf16 %v976_v1  ;;  %v1004_v13 = vld [vmem:[%s1634_s0 + $0x18] sm:$0xff]   ;;  %v1017_v18 = vld [vmem:[%s1634_s0 + $0x20] sm:$0xff]   ;;  %v1030_v23 = vld [vmem:[%s1634_s0 + $0x28] sm:$0xff]  }
   0x3   :  { %v815_v11 = vunpack.c.l.bf16 %v985_v6  ;;  %v816_v12 = vunpack.c.h.bf16 %v985_v6  ;;  %v819_v16 = vunpack.c.l.bf16 %v1004_v13  ;;  %v820_v17 = vunpack.c.h.bf16 %v1004_v13  ;;  %v1043_v28 = vld [vmem:[%s1634_s0 + $0x30] sm:$0xff]   ;;  %v1056_v33 = vld [vmem:[%s1634_s0 + $0x38] sm:$0xff]   ;;  %v1069_v38 = vld [vmem:[%s1634_s0 + $0x40] sm:$0xff]  }
   0x4   :  { %v79_v7 = vsel %vm78_vm0, %v807_v2, 0.0  ;;  %v85_v8 = vsel %vm78_vm0, %v811_v3, 0.0  ;;  %v82_v9 = vsel %vm78_vm0, %v808_v4, 0.0  ;;  %v88_v10 = vsel %vm78_vm0, %v812_v5, 0.0  ;;  %v1082_v43 = vld [vmem:[%s1634_s0 + $0x48] sm:$0xff]   ;;  %v1095_v48 = vld [vmem:[%s1634_s0 + $0x50] sm:$0xff]  }
   0x5   :  { %80 = vadd.xlane.f32.xlu0 %v79_v7  ;;  %86 = vadd.xlane.f32.xlu1 %v85_v8  ;;  %v91_v14 = vsel %vm78_vm0, %v815_v11, 0.0  ;;  %v94_v15 = vsel %vm78_vm0, %v816_v12, 0.0  ;;  %v97_v19 = vsel %vm78_vm0, %v819_v16, 0.0  ;;  %v100_v20 = vsel %vm78_vm0, %v820_v17, 0.0  ;;  %v1108_v53 = vld [vmem:[%s1634_s0 + $0x58] sm:$0xff]   ;;  %v1121_v58 = vld [vmem:[%s1634_s0 + $0x60] sm:$0xff]  }
   0x6   :  { %v823_v21 = vunpack.c.l.bf16 %v1017_v18  ;;  %v824_v22 = vunpack.c.h.bf16 %v1017_v18  ;;  %v827_v26 = vunpack.c.l.bf16 %v1030_v23  ;;  %v828_v27 = vunpack.c.h.bf16 %v1030_v23  ;;  %v1134_v63 = vld [vmem:[%s1634_s0 + $0x68] sm:$0xff]  }
   0x7   :  { %v831_v31 = vunpack.c.l.bf16 %v1043_v28  ;;  %v832_v32 = vunpack.c.h.bf16 %v1043_v28  ;;  %v835_v36 = vunpack.c.l.bf16 %v1056_v33  ;;  %v836_v37 = vunpack.c.h.bf16 %v1056_v33 }
   0x8   :  { %v103_v24 = vsel %vm78_vm0, %v823_v21, 0.0  ;;  %v106_v25 = vsel %vm78_vm0, %v824_v22, 0.0  ;;  %v109_v29 = vsel %vm78_vm0, %v827_v26, 0.0  ;;  %v112_v30 = vsel %vm78_vm0, %v828_v27, 0.0 }
   0x9   :  { %83 = vadd.xlane.f32.xlu0 %v82_v9  ;;  %89 = vadd.xlane.f32.xlu1 %v88_v10  ;;  %v115_v34 = vsel %vm78_vm0, %v831_v31, 0.0  ;;  %v118_v35 = vsel %vm78_vm0, %v832_v32, 0.0  ;;  %v121_v39 = vsel %vm78_vm0, %v835_v36, 0.0  ;;  %v124_v40 = vsel %vm78_vm0, %v836_v37, 0.0 }
   0xa   :  { %v839_v41 = vunpack.c.l.bf16 %v1069_v38  ;;  %v840_v42 = vunpack.c.h.bf16 %v1069_v38  ;;  %v843_v46 = vunpack.c.l.bf16 %v1082_v43  ;;  %v844_v47 = vunpack.c.h.bf16 %v1082_v43 }
   0xb   :  { %v847_v51 = vunpack.c.l.bf16 %v1095_v48  ;;  %v848_v52 = vunpack.c.h.bf16 %v1095_v48  ;;  %v851_v56 = vunpack.c.l.bf16 %v1108_v53  ;;  %v852_v57 = vunpack.c.h.bf16 %v1108_v53 }
   0xc   :  { %v127_v44 = vsel %vm78_vm0, %v839_v41, 0.0  ;;  %v130_v45 = vsel %vm78_vm0, %v840_v42, 0.0  ;;  %v133_v49 = vsel %vm78_vm0, %v843_v46, 0.0  ;;  %v136_v50 = vsel %vm78_vm0, %v844_v47, 0.0 }
   0xd   :  { %92 = vadd.xlane.f32.xlu0 %v91_v14  ;;  %95 = vadd.xlane.f32.xlu1 %v94_v15  ;;  %v139_v54 = vsel %vm78_vm0, %v847_v51, 0.0  ;;  %v142_v55 = vsel %vm78_vm0, %v848_v52, 0.0  ;;  %v145_v59 = vsel %vm78_vm0, %v851_v56, 0.0  ;;  %v148_v60 = vsel %vm78_vm0, %v852_v57, 0.0  ;;  %v1147_v14 = vld [vmem:[%s1634_s0 + $0x70] sm:$0xff]  }
   0xe   :  { %v855_v61 = vunpack.c.l.bf16 %v1121_v58  ;;  %v856_v62 = vunpack.c.h.bf16 %v1121_v58  ;;  %v859_v9 = vunpack.c.l.bf16 %v1134_v63  ;;  %v860_v10 = vunpack.c.h.bf16 %v1134_v63 }
  0x10   :  { %v151_v7 = vsel %vm78_vm0, %v855_v61, 0.0  ;;  %v154_v8 = vsel %vm78_vm0, %v856_v62, 0.0  ;;  %v157_v15 = vsel %vm78_vm0, %v859_v9, 0.0 }
  0x11   :  { %98 = vadd.xlane.f32.xlu0 %v97_v19  ;;  %101 = vadd.xlane.f32.xlu1 %v100_v20  ;;  %v160_v19 = vsel %vm78_vm0, %v860_v10, 0.0  ;;  %v863_v20 = vunpack.c.l.bf16 %v1147_v14 }
  0x15   :  { %104 = vadd.xlane.f32.xlu0 %v103_v24  ;;  %107 = vadd.xlane.f32.xlu1 %v106_v25  ;;  %v864_v24 = vunpack.c.h.bf16 %v1147_v14  ;;  %v1160_v25 = vld [vmem:[%s1634_s0 + $0x78] sm:$0xff]  }
  0x19   :  { %110 = vadd.xlane.f32.xlu0 %v109_v29  ;;  %113 = vadd.xlane.f32.xlu1 %v112_v30  ;;  %v163_v29 = vsel %vm78_vm0, %v863_v20, 0.0  ;;  %v166_v30 = vsel %vm78_vm0, %v864_v24, 0.0 }
  0x1d   :  { %116 = vadd.xlane.f32.xlu0 %v115_v34  ;;  %119 = vadd.xlane.f32.xlu1 %v118_v35  ;;  %v867_v34 = vunpack.c.l.bf16 %v1160_v25  ;;  %v868_v35 = vunpack.c.h.bf16 %v1160_v25 }
  0x21   :  { %122 = vadd.xlane.f32.xlu0 %v121_v39  ;;  %125 = vadd.xlane.f32.xlu1 %v124_v40  ;;  %v169_v39 = vsel %vm78_vm0, %v867_v34, 0.0  ;;  %v172_v40 = vsel %vm78_vm0, %v868_v35, 0.0 }
  0x25   :  { %128 = vadd.xlane.f32.xlu0 %v127_v44  ;;  %131 = vadd.xlane.f32.xlu1 %v130_v45 }
  0x29   :  { %134 = vadd.xlane.f32.xlu0 %v133_v49  ;;  %137 = vadd.xlane.f32.xlu1 %v136_v50 }
  0x2d   :  { %140 = vadd.xlane.f32.xlu0 %v139_v54  ;;  %143 = vadd.xlane.f32.xlu1 %v142_v55 }
  0x31   :  { %146 = vadd.xlane.f32.xlu0 %v145_v59  ;;  %149 = vadd.xlane.f32.xlu1 %v148_v60 }
  0x35   :  { %152 = vadd.xlane.f32.xlu0 %v151_v7  ;;  %155 = vadd.xlane.f32.xlu1 %v154_v8 }
  0x39   :  { %158 = vadd.xlane.f32.xlu0 %v157_v15  ;;  %161 = vadd.xlane.f32.xlu1 %v160_v19 }
  0x3d   :  { %164 = vadd.xlane.f32.xlu0 %v163_v29  ;;  %167 = vadd.xlane.f32.xlu1 %v166_v30 }
  0x41   :  { %170 = vadd.xlane.f32.xlu0 %v169_v39  ;;  %173 = vadd.xlane.f32.xlu1 %v172_v40 }
  0x92   :  { %v81_v44 = vpop.xlane.xlu0 %80  ;;  %v87_v45 = vpop.xlane.xlu1 %86 }
  0x93   :  { %v176_v49 = vmul.f32 0.03125, %v81_v44  ;;  %v178_v50 = vmul.f32 0.03125, %v87_v45 }
  0x95   :  { %v1178_v54 = vsub.f32 %v807_v2, %v176_v49  ;;  %v1182_v55 = vsub.f32 %v811_v3, %v178_v50 }
  0x96   :  { %v84_v59 = vpop.xlane.xlu0 %83  ;;  %v90_v60 = vpop.xlane.xlu1 %89 }
  0x97   :  { %v177_v7 = vmul.f32 0.03125, %v84_v59  ;;  %v179_v8 = vmul.f32 0.03125, %v90_v60  ;;  %v240_v15 = vmul.f32 %v1178_v54, %v1178_v54  ;;  %v242_v19 = vmul.f32 %v1182_v55, %v1182_v55 }
  0x99   :  { %v1190_v29 = vsub.f32 %v808_v4, %v177_v7  ;;  %v1194_v2 = vsub.f32 %v812_v5, %v179_v8  ;;  %v272_v3 = vsel %vm78_vm0, %v240_v15, 0.0  ;;  %v278_v40 = vsel %vm78_vm0, %v242_v19, 0.0 }
  0x9a   :  { %273 = vadd.xlane.f32.xlu0 %v272_v3  ;;  %v93_v30 = vpop.xlane.xlu0 %92  ;;  %v96_v39 = vpop.xlane.xlu1 %95 }
  0x9b   :  { %v180_v44 = vmul.f32 0.03125, %v93_v30  ;;  %v181_v45 = vmul.f32 0.03125, %v96_v39  ;;  %v241_v49 = vmul.f32 %v1190_v29, %v1190_v29  ;;  %v243_v0 = vmul.f32 %v1194_v2, %v1194_v2 }
  0x9d   :  { %v1204_v1 = vsub.f32 %v815_v11, %v180_v44  ;;  %v1208_v4 = vsub.f32 %v816_v12, %v181_v45  ;;  %v275_v5 = vsel %vm78_vm0, %v241_v49, 0.0  ;;  %v281_v60 = vsel %vm78_vm0, %v243_v0, 0.0 }
  0x9e   :  { %279 = vadd.xlane.f32.xlu0 %v278_v40  ;;  %276 = vadd.xlane.f32.xlu1 %v275_v5  ;;  %v99_v50 = vpop.xlane.xlu0 %98  ;;  %v102_v59 = vpop.xlane.xlu1 %101 }
  0x9f   :  { %v182_v7 = vmul.f32 0.03125, %v99_v50  ;;  %v183_v8 = vmul.f32 0.03125, %v102_v59  ;;  %v244_v15 = vmul.f32 %v1204_v1, %v1204_v1  ;;  %v245_v11 = vmul.f32 %v1208_v4, %v1208_v4 }
  0xa1   :  { %v1218_v6 = vsub.f32 %v819_v16, %v182_v7  ;;  %v1222_v12 = vsub.f32 %v820_v17, %v183_v8  ;;  %v284_v19 = vsel %vm78_vm0, %v244_v15, 0.0  ;;  %v287_v39 = vsel %vm78_vm0, %v245_v11, 0.0 }
  0xa2   :  { %282 = vadd.xlane.f32.xlu1 %v281_v60  ;;  %285 = vadd.xlane.f32.xlu0 %v284_v19  ;;  %v105_v3 = vpop.xlane.xlu0 %104  ;;  %v108_v30 = vpop.xlane.xlu1 %107 }
  0xa3   :  { %v184_v40 = vmul.f32 0.03125, %v105_v3  ;;  %v185_v44 = vmul.f32 0.03125, %v108_v30  ;;  %v246_v45 = vmul.f32 %v1218_v6, %v1218_v6  ;;  %v247_v16 = vmul.f32 %v1222_v12, %v1222_v12 }
  0xa5   :  { %v1232_v13 = vsub.f32 %v823_v21, %v184_v40  ;;  %v1236_v17 = vsub.f32 %v824_v22, %v185_v44  ;;  %v290_v49 = vsel %vm78_vm0, %v246_v45, 0.0  ;;  %v293_v50 = vsel %vm78_vm0, %v247_v16, 0.0 }
  0xa6   :  { %288 = vadd.xlane.f32.xlu1 %v287_v39  ;;  %291 = vadd.xlane.f32.xlu0 %v290_v49  ;;  %v111_v0 = vpop.xlane.xlu0 %110  ;;  %v114_v5 = vpop.xlane.xlu1 %113 }
  0xa7   :  { %v186_v59 = vmul.f32 0.03125, %v111_v0  ;;  %v187_v60 = vmul.f32 0.03125, %v114_v5  ;;  %v248_v7 = vmul.f32 %v1232_v13, %v1232_v13  ;;  %v249_v21 = vmul.f32 %v1236_v17, %v1236_v17 }
  0xa9   :  { %v1246_v18 = vsub.f32 %v827_v26, %v186_v59  ;;  %v1250_v22 = vsub.f32 %v828_v27, %v187_v60  ;;  %v296_v8 = vsel %vm78_vm0, %v248_v7, 0.0  ;;  %v299_v19 = vsel %vm78_vm0, %v249_v21, 0.0 }
  0xaa   :  { %294 = vadd.xlane.f32.xlu1 %v293_v50  ;;  %297 = vadd.xlane.f32.xlu0 %v296_v8  ;;  %v117_v15 = vpop.xlane.xlu0 %116  ;;  %v120_v11 = vpop.xlane.xlu1 %119 }
  0xab   :  { %v188_v3 = vmul.f32 0.03125, %v117_v15  ;;  %v189_v30 = vmul.f32 0.03125, %v120_v11  ;;  %v250_v39 = vmul.f32 %v1246_v18, %v1246_v18  ;;  %v251_v26 = vmul.f32 %v1250_v22, %v1250_v22 }
  0xad   :  { %v1260_v23 = vsub.f32 %v831_v31, %v188_v3  ;;  %v1264_v27 = vsub.f32 %v832_v32, %v189_v30  ;;  %v302_v40 = vsel %vm78_vm0, %v250_v39, 0.0  ;;  %v305_v16 = vsel %vm78_vm0, %v251_v26, 0.0 }
  0xae   :  { %300 = vadd.xlane.f32.xlu1 %v299_v19  ;;  %303 = vadd.xlane.f32.xlu0 %v302_v40  ;;  %v123_v44 = vpop.xlane.xlu0 %122  ;;  %v126_v45 = vpop.xlane.xlu1 %125 }
  0xaf   :  { %v190_v49 = vmul.f32 0.03125, %v123_v44  ;;  %v191_v0 = vmul.f32 0.03125, %v126_v45  ;;  %v252_v5 = vmul.f32 %v1260_v23, %v1260_v23  ;;  %v253_v31 = vmul.f32 %v1264_v27, %v1264_v27 }
  0xb1   :  { %v1274_v28 = vsub.f32 %v835_v36, %v190_v49  ;;  %v1278_v32 = vsub.f32 %v836_v37, %v191_v0  ;;  %v308_v50 = vsel %vm78_vm0, %v252_v5, 0.0  ;;  %v311_v7 = vsel %vm78_vm0, %v253_v31, 0.0 }
  0xb2   :  { %306 = vadd.xlane.f32.xlu1 %v305_v16  ;;  %309 = vadd.xlane.f32.xlu0 %v308_v50  ;;  %v129_v59 = vpop.xlane.xlu0 %128  ;;  %v132_v60 = vpop.xlane.xlu1 %131 }
  0xb3   :  { %v192_v21 = vmul.f32 0.03125, %v129_v59  ;;  %v193_v8 = vmul.f32 0.03125, %v132_v60  ;;  %v254_v15 = vmul.f32 %v1274_v28, %v1274_v28  ;;  %v255_v36 = vmul.f32 %v1278_v32, %v1278_v32 }
  0xb5   :  { %v1288_v33 = vsub.f32 %v839_v41, %v192_v21  ;;  %v1292_v37 = vsub.f32 %v840_v42, %v193_v8  ;;  %v314_v11 = vsel %vm78_vm0, %v254_v15, 0.0  ;;  %v317_v30 = vsel %vm78_vm0, %v255_v36, 0.0 }
  0xb6   :  { %312 = vadd.xlane.f32.xlu1 %v311_v7  ;;  %315 = vadd.xlane.f32.xlu0 %v314_v11  ;;  %v135_v19 = vpop.xlane.xlu0 %134  ;;  %v138_v3 = vpop.xlane.xlu1 %137 }
  0xb7   :  { %v194_v39 = vmul.f32 0.03125, %v135_v19  ;;  %v195_v26 = vmul.f32 0.03125, %v138_v3  ;;  %v256_v40 = vmul.f32 %v1288_v33, %v1288_v33  ;;  %v257_v41 = vmul.f32 %v1292_v37, %v1292_v37 }
  0xb9   :  { %v1302_v38 = vsub.f32 %v843_v46, %v194_v39  ;;  %v1306_v42 = vsub.f32 %v844_v47, %v195_v26  ;;  %v320_v44 = vsel %vm78_vm0, %v256_v40, 0.0  ;;  %v323_v49 = vsel %vm78_vm0, %v257_v41, 0.0 }
  0xba   :  { %318 = vadd.xlane.f32.xlu1 %v317_v30  ;;  %321 = vadd.xlane.f32.xlu0 %v320_v44  ;;  %v141_v45 = vpop.xlane.xlu0 %140  ;;  %v144_v16 = vpop.xlane.xlu1 %143 }
  0xbb   :  { %v196_v0 = vmul.f32 0.03125, %v141_v45  ;;  %v197_v5 = vmul.f32 0.03125, %v144_v16  ;;  %v258_v31 = vmul.f32 %v1302_v38, %v1302_v38  ;;  %v259_v46 = vmul.f32 %v1306_v42, %v1306_v42 }
  0xbd   :  { %v1316_v43 = vsub.f32 %v847_v51, %v196_v0  ;;  %v1320_v47 = vsub.f32 %v848_v52, %v197_v5  ;;  %v326_v50 = vsel %vm78_vm0, %v258_v31, 0.0  ;;  %v329_v7 = vsel %vm78_vm0, %v259_v46, 0.0 }
  0xbe   :  { %324 = vadd.xlane.f32.xlu1 %v323_v49  ;;  %327 = vadd.xlane.f32.xlu0 %v326_v50  ;;  %v147_v59 = vpop.xlane.xlu0 %146  ;;  %v150_v60 = vpop.xlane.xlu1 %149 }
  0xbf   :  { %v198_v21 = vmul.f32 0.03125, %v147_v59  ;;  %v199_v8 = vmul.f32 0.03125, %v150_v60  ;;  %v260_v15 = vmul.f32 %v1316_v43, %v1316_v43  ;;  %v261_v51 = vmul.f32 %v1320_v47, %v1320_v47 }
  0xc1   :  { %v1330_v48 = vsub.f32 %v851_v56, %v198_v21  ;;  %v1334_v52 = vsub.f32 %v852_v57, %v199_v8  ;;  %v332_v36 = vsel %vm78_vm0, %v260_v15, 0.0  ;;  %v335_v3 = vsel %vm78_vm0, %v261_v51, 0.0 }
  0xc2   :  { %330 = vadd.xlane.f32.xlu1 %v329_v7  ;;  %333 = vadd.xlane.f32.xlu0 %v332_v36  ;;  %v153_v11 = vpop.xlane.xlu0 %152  ;;  %v156_v19 = vpop.xlane.xlu1 %155 }
  0xc3   :  { %v200_v30 = vmul.f32 0.03125, %v153_v11  ;;  %v201_v39 = vmul.f32 0.03125, %v156_v19  ;;  %v262_v26 = vmul.f32 %v1330_v48, %v1330_v48  ;;  %v263_v56 = vmul.f32 %v1334_v52, %v1334_v52 }
  0xc5   :  { %v1344_v53 = vsub.f32 %v855_v61, %v200_v30  ;;  %v1348_v57 = vsub.f32 %v856_v62, %v201_v39  ;;  %v338_v40 = vsel %vm78_vm0, %v262_v26, 0.0  ;;  %v341_v45 = vsel %vm78_vm0, %v263_v56, 0.0 }
  0xc6   :  { %336 = vadd.xlane.f32.xlu1 %v335_v3  ;;  %339 = vadd.xlane.f32.xlu0 %v338_v40  ;;  %v159_v41 = vpop.xlane.xlu0 %158  ;;  %v162_v44 = vpop.xlane.xlu1 %161 }
  0xc7   :  { %v202_v16 = vmul.f32 0.03125, %v159_v41  ;;  %v203_v49 = vmul.f32 0.03125, %v162_v44  ;;  %v264_v0 = vmul.f32 %v1344_v53, %v1344_v53  ;;  %v265_v61 = vmul.f32 %v1348_v57, %v1348_v57 }
  0xc9   :  { %v1358_v58 = vsub.f32 %v859_v9, %v202_v16  ;;  %v1362_v62 = vsub.f32 %v860_v10, %v203_v49  ;;  %v344_v5 = vsel %vm78_vm0, %v264_v0, 0.0  ;;  %v347_v50 = vsel %vm78_vm0, %v265_v61, 0.0 }
  0xca   :  { %342 = vadd.xlane.f32.xlu1 %v341_v45  ;;  %345 = vadd.xlane.f32.xlu0 %v344_v5  ;;  %v165_v31 = vpop.xlane.xlu0 %164  ;;  %v168_v46 = vpop.xlane.xlu1 %167 }
  0xcb   :  { %v204_v59 = vmul.f32 0.03125, %v165_v31  ;;  %v205_v60 = vmul.f32 0.03125, %v168_v46  ;;  %v266_v7 = vmul.f32 %v1358_v58, %v1358_v58  ;;  %v267_v9 = vmul.f32 %v1362_v62, %v1362_v62 }
  0xcd   :  { %v1372_v63 = vsub.f32 %v863_v20, %v204_v59  ;;  %v1376_v10 = vsub.f32 %v864_v24, %v205_v60  ;;  %v350_v21 = vsel %vm78_vm0, %v266_v7, 0.0  ;;  %v353_v51 = vsel %vm78_vm0, %v267_v9, 0.0 }
  0xce   :  { %348 = vadd.xlane.f32.xlu1 %v347_v50  ;;  %351 = vadd.xlane.f32.xlu0 %v350_v21  ;;  %v171_v8 = vpop.xlane.xlu0 %170  ;;  %v174_v15 = vpop.xlane.xlu1 %173 }
  0xcf   :  { %v206_v36 = vmul.f32 0.03125, %v171_v8  ;;  %v207_v11 = vmul.f32 0.03125, %v174_v15  ;;  %v268_v19 = vmul.f32 %v1372_v63, %v1372_v63  ;;  %v269_v20 = vmul.f32 %v1376_v10, %v1376_v10  ;;  %v1403_v15 = vld [vmem:[%s1635_s1] ss:$0 sm:$0xff] }
  0xd1   :  { %v1386_v14 = vsub.f32 %v867_v34, %v206_v36  ;;  %v1390_v24 = vsub.f32 %v868_v35, %v207_v11  ;;  %v356_v3 = vsel %vm78_vm0, %v268_v19, 0.0  ;;  %v359_v30 = vsel %vm78_vm0, %v269_v20, 0.0 }
  0xd2   :  { %354 = vadd.xlane.f32.xlu1 %v353_v51  ;;  %357 = vadd.xlane.f32.xlu0 %v356_v3  ;;  %v1409_v3 = vld [vmem:[%s1636_s2] ss:$0 sm:$0xff] }
  0xd3   :  { %v270_v39 = vmul.f32 %v1386_v14, %v1386_v14  ;;  %v271_v26 = vmul.f32 %v1390_v24, %v1390_v24 }
  0xd5   :  { %v362_v56 = vsel %vm78_vm0, %v270_v39, 0.0  ;;  %v365_v25 = vsel %vm78_vm0, %v271_v26, 0.0 }
  0xd6   :  { %360 = vadd.xlane.f32.xlu1 %v359_v30  ;;  %363 = vadd.xlane.f32.xlu0 %v362_v56 }
  0xda   :  { %366 = vadd.xlane.f32.xlu1 %v365_v25 }
 0x127   :  { %v274_v34 = vpop.xlane.xlu0 %273 }
 0x128   :  { %v368_v35 = vmul.f32 0.03125, %v274_v34 }
 0x12a   :  { %v400_v40 = vadd.f32 1e-05, %v368_v35 }
 0x12b   :  { %v277_v41 = vpop.xlane.xlu1 %276  ;;  %v280_v44 = vpop.xlane.xlu0 %279 }
 0x12c   :  { %884 = vrsqrt.f32 %v400_v40  ;;  %v369_v45 = vmul.f32 0.03125, %v277_v41  ;;  %v370_v16 = vmul.f32 0.03125, %v280_v44 }
 0x12e   :  { %v401_v49 = vadd.f32 1e-05, %v369_v45  ;;  %v402_v0 = vadd.f32 1e-05, %v370_v16 }
 0x12f   :  { %v283_v61 = vpop.xlane.xlu1 %282  ;;  %v286_v5 = vpop.xlane.xlu0 %285 }
 0x130   :  { %886 = vrsqrt.f32 %v401_v49  ;;  %v371_v31 = vmul.f32 0.03125, %v283_v61  ;;  %v372_v46 = vmul.f32 0.03125, %v286_v5 }
 0x131   :  { %888 = vrsqrt.f32 %v402_v0 }
 0x132   :  { %v403_v50 = vadd.f32 1e-05, %v371_v31  ;;  %v404_v59 = vadd.f32 1e-05, %v372_v46 }
 0x133   :  { %v289_v60 = vpop.xlane.xlu1 %288  ;;  %v292_v7 = vpop.xlane.xlu0 %291 }
 0x134   :  { %890 = vrsqrt.f32 %v403_v50  ;;  %v373_v9 = vmul.f32 0.03125, %v289_v60  ;;  %v374_v21 = vmul.f32 0.03125, %v292_v7 }
 0x135   :  { %892 = vrsqrt.f32 %v404_v59 }
 0x136   :  { %v885_v8 = vpop.eup %884  ;;  %v405_v51 = vadd.f32 1e-05, %v373_v9  ;;  %v406_v36 = vadd.f32 1e-05, %v374_v21 }
 0x137   :  { %v464_v11 = vmul.f32 %v885_v8, %v1178_v54  ;;  %v295_v19 = vpop.xlane.xlu1 %294  ;;  %v298_v20 = vpop.xlane.xlu0 %297 }
 0x138   :  { %894 = vrsqrt.f32 %v405_v51  ;;  %v375_v30 = vmul.f32 0.03125, %v295_v19  ;;  %v376_v39 = vmul.f32 0.03125, %v298_v20 }
 0x139   :  { %v503_v26 = vmul.f32 %v1403_v15, %v464_v11  ;;  %896 = vrsqrt.f32 %v406_v36 }
 0x13a   :  { %v887_v56 = vpop.eup %886  ;;  %v407_v25 = vadd.f32 1e-05, %v375_v30  ;;  %v408_v34 = vadd.f32 1e-05, %v376_v39 }
 0x13b   :  { %v889_v35 = vpop.eup %888  ;;  %v542_v54 = vadd.f32 %v1409_v3, %v503_v26  ;;  %v465_v40 = vmul.f32 %v887_v56, %v1190_v29  ;;  %v301_v41 = vpop.xlane.xlu1 %300 }
 0x13c   :  { %v304_v44 = vpop.xlane.xlu0 %303  ;;  %v466_v45 = vmul.f32 %v889_v35, %v1182_v55  ;;  %898 = vrsqrt.f32 %v407_v25  ;;  %v377_v16 = vmul.f32 0.03125, %v301_v41 }
 0x13d   :  { %v378_v49 = vmul.f32 0.03125, %v304_v44  ;;  %v773_v0 = vpack.c.bf16 %v542_v54, %v542_v54  ;;  %v504_v61 = vmul.f32 %v1403_v15, %v465_v40  ;;  %900 = vrsqrt.f32 %v408_v34 }
 0x13e   :  { %v891_v5 = vpop.eup %890  ;;  %v505_v31 = vmul.f32 %v1403_v15, %v466_v45  ;;  %v409_v46 = vadd.f32 1e-05, %v377_v16 }
 0x13f   :  { %v410_v50 = vadd.f32 1e-05, %v378_v49  ;;  %v893_v59 = vpop.eup %892  ;;  %703 = vst.msk [vmem:[%s1637_s3] sm:$0xf] %vm702_vm1, %v773_v0  ;;  %v543_v55 = vadd.f32 %v1409_v3, %v504_v61  ;;  %v467_v29 = vmul.f32 %v891_v5, %v1194_v2  ;;  %v307_v60 = vpop.xlane.xlu1 %306 }
 0x140   :  { %v310_v7 = vpop.xlane.xlu0 %309  ;;  %v544_v9 = vadd.f32 %v1409_v3, %v505_v31  ;;  %v468_v21 = vmul.f32 %v893_v59, %v1204_v1  ;;  %902 = vrsqrt.f32 %v409_v46  ;;  %v379_v8 = vmul.f32 0.03125, %v307_v60 }
 0x141   :  { %v774_v51 = vpack.c.bf16 %v543_v55, %v543_v55  ;;  %v506_v36 = vmul.f32 %v1403_v15, %v467_v29  ;;  %904 = vrsqrt.f32 %v410_v50  ;;  %v380_v11 = vmul.f32 0.03125, %v310_v7 }
 0x142   :  { %v895_v19 = vpop.eup %894  ;;  %v775_v20 = vpack.c.bf16 %v544_v9, %v544_v9  ;;  %v507_v30 = vmul.f32 %v1403_v15, %v468_v21  ;;  %v411_v39 = vadd.f32 1e-05, %v379_v8 }
 0x143   :  { %v897_v26 = vpop.eup %896  ;;  %704 = vst.msk [vmem:[%s1637_s3 + $0x4] sm:$0xf] %vm702_vm1, %v774_v51  ;;  %v545_v2 = vadd.f32 %v1409_v3, %v506_v36  ;;  %v469_v1 = vmul.f32 %v895_v19, %v1208_v4  ;;  %v412_v56 = vadd.f32 1e-05, %v380_v11  ;;  %v313_v25 = vpop.xlane.xlu1 %312 }
 0x144   :  { %v316_v34 = vpop.xlane.xlu0 %315  ;;  %705 = vst.msk [vmem:[%s1637_s3 + $0x8] sm:$0xf] %vm702_vm1, %v775_v20  ;;  %v546_v35 = vadd.f32 %v1409_v3, %v507_v30  ;;  %v470_v54 = vmul.f32 %v897_v26, %v1218_v6  ;;  %906 = vrsqrt.f32 %v411_v39  ;;  %v381_v40 = vmul.f32 0.03125, %v313_v25 }
 0x145   :  { %v776_v41 = vpack.c.bf16 %v545_v2, %v545_v2  ;;  %v508_v44 = vmul.f32 %v1403_v15, %v469_v1  ;;  %908 = vrsqrt.f32 %v412_v56  ;;  %v382_v45 = vmul.f32 0.03125, %v316_v34 }
 0x146   :  { %v899_v4 = vpop.eup %898  ;;  %v777_v16 = vpack.c.bf16 %v546_v35, %v546_v35  ;;  %v509_v49 = vmul.f32 %v1403_v15, %v470_v54  ;;  %v413_v0 = vadd.f32 1e-05, %v381_v40 }
 0x147   :  { %v901_v61 = vpop.eup %900  ;;  %706 = vst.msk [vmem:[%s1637_s3 + $0xc] sm:$0xf] %vm702_vm1, %v776_v41  ;;  %v547_v6 = vadd.f32 %v1409_v3, %v508_v44  ;;  %v471_v5 = vmul.f32 %v899_v4, %v1222_v12  ;;  %v414_v31 = vadd.f32 1e-05, %v382_v45  ;;  %v319_v46 = vpop.xlane.xlu1 %318 }
 0x148   :  { %v322_v50 = vpop.xlane.xlu0 %321  ;;  %707 = vst.msk [vmem:[%s1637_s3 + $0x10] sm:$0xf] %vm702_vm1, %v777_v16  ;;  %v548_v59 = vadd.f32 %v1409_v3, %v509_v49  ;;  %v472_v55 = vmul.f32 %v901_v61, %v1232_v13  ;;  %910 = vrsqrt.f32 %v413_v0  ;;  %v383_v29 = vmul.f32 0.03125, %v319_v46 }
 0x149   :  { %v778_v60 = vpack.c.bf16 %v547_v6, %v547_v6  ;;  %v510_v7 = vmul.f32 %v1403_v15, %v471_v5  ;;  %912 = vrsqrt.f32 %v414_v31  ;;  %v384_v9 = vmul.f32 0.03125, %v322_v50 }
 0x14a   :  { %v903_v12 = vpop.eup %902  ;;  %v779_v21 = vpack.c.bf16 %v548_v59, %v548_v59  ;;  %v511_v8 = vmul.f32 %v1403_v15, %v472_v55  ;;  %v415_v51 = vadd.f32 1e-05, %v383_v29 }
 0x14b   :  { %v905_v36 = vpop.eup %904  ;;  %708 = vst.msk [vmem:[%s1637_s3 + $0x14] sm:$0xf] %vm702_vm1, %v778_v60  ;;  %v549_v13 = vadd.f32 %v1409_v3, %v510_v7  ;;  %v473_v11 = vmul.f32 %v903_v12, %v1236_v17  ;;  %v416_v19 = vadd.f32 1e-05, %v384_v9  ;;  %v325_v20 = vpop.xlane.xlu1 %324 }
 0x14c   :  { %v328_v30 = vpop.xlane.xlu0 %327  ;;  %709 = vst.msk [vmem:[%s1637_s3 + $0x18] sm:$0xf] %vm702_vm1, %v779_v21  ;;  %v550_v39 = vadd.f32 %v1409_v3, %v511_v8  ;;  %v474_v26 = vmul.f32 %v905_v36, %v1246_v18  ;;  %914 = vrsqrt.f32 %v415_v51  ;;  %v385_v2 = vmul.f32 0.03125, %v325_v20 }
 0x14d   :  { %v780_v1 = vpack.c.bf16 %v549_v13, %v549_v13  ;;  %v512_v56 = vmul.f32 %v1403_v15, %v473_v11  ;;  %916 = vrsqrt.f32 %v416_v19  ;;  %v386_v25 = vmul.f32 0.03125, %v328_v30 }
 0x14e   :  { %v907_v17 = vpop.eup %906  ;;  %v781_v34 = vpack.c.bf16 %v550_v39, %v550_v39  ;;  %v513_v35 = vmul.f32 %v1403_v15, %v474_v26  ;;  %v417_v54 = vadd.f32 1e-05, %v385_v2 }
 0x14f   :  { %v909_v40 = vpop.eup %908  ;;  %710 = vst.msk [vmem:[%s1637_s3 + $0x1c] sm:$0xf] %vm702_vm1, %v780_v1  ;;  %v551_v18 = vadd.f32 %v1409_v3, %v512_v56  ;;  %v475_v41 = vmul.f32 %v907_v17, %v1250_v22  ;;  %v418_v44 = vadd.f32 1e-05, %v386_v25  ;;  %v331_v45 = vpop.xlane.xlu1 %330 }
 0x150   :  { %v334_v4 = vpop.xlane.xlu0 %333  ;;  %711 = vst.msk [vmem:[%s1637_s3 + $0x20] sm:$0xf] %vm702_vm1, %v781_v34  ;;  %v552_v16 = vadd.f32 %v1409_v3, %v513_v35  ;;  %v476_v49 = vmul.f32 %v909_v40, %v1260_v23  ;;  %918 = vrsqrt.f32 %v417_v54  ;;  %v387_v0 = vmul.f32 0.03125, %v331_v45 }
 0x151   :  { %v782_v61 = vpack.c.bf16 %v551_v18, %v551_v18  ;;  %v514_v6 = vmul.f32 %v1403_v15, %v475_v41  ;;  %920 = vrsqrt.f32 %v418_v44  ;;  %v388_v5 = vmul.f32 0.03125, %v334_v4 }
 0x152   :  { %v911_v22 = vpop.eup %910  ;;  %v783_v31 = vpack.c.bf16 %v552_v16, %v552_v16  ;;  %v515_v46 = vmul.f32 %v1403_v15, %v476_v49  ;;  %v419_v50 = vadd.f32 1e-05, %v387_v0 }
 0x153   :  { %v913_v59 = vpop.eup %912  ;;  %712 = vst.msk [vmem:[%s1637_s3 + $0x24] sm:$0xf] %vm702_vm1, %v782_v61  ;;  %v553_v23 = vadd.f32 %v1409_v3, %v514_v6  ;;  %v477_v55 = vmul.f32 %v911_v22, %v1264_v27  ;;  %v420_v29 = vadd.f32 1e-05, %v388_v5  ;;  %v337_v60 = vpop.xlane.xlu1 %336 }
 0x154   :  { %v340_v7 = vpop.xlane.xlu0 %339  ;;  %713 = vst.msk [vmem:[%s1637_s3 + $0x28] sm:$0xf] %vm702_vm1, %v783_v31  ;;  %v554_v9 = vadd.f32 %v1409_v3, %v515_v46  ;;  %v478_v12 = vmul.f32 %v913_v59, %v1274_v28  ;;  %922 = vrsqrt.f32 %v419_v50  ;;  %v389_v21 = vmul.f32 0.03125, %v337_v60 }
 0x155   :  { %v784_v8 = vpack.c.bf16 %v553_v23, %v553_v23  ;;  %v516_v51 = vmul.f32 %v1403_v15, %v477_v55  ;;  %924 = vrsqrt.f32 %v420_v29  ;;  %v390_v36 = vmul.f32 0.03125, %v340_v7 }
 0x156   :  { %v915_v27 = vpop.eup %914  ;;  %v785_v13 = vpack.c.bf16 %v554_v9, %v554_v9  ;;  %v517_v11 = vmul.f32 %v1403_v15, %v478_v12  ;;  %v421_v19 = vadd.f32 1e-05, %v389_v21 }
 0x157   :  { %v917_v20 = vpop.eup %916  ;;  %714 = vst.msk [vmem:[%s1637_s3 + $0x2c] sm:$0xf] %vm702_vm1, %v784_v8  ;;  %v555_v28 = vadd.f32 %v1409_v3, %v516_v51  ;;  %v479_v30 = vmul.f32 %v915_v27, %v1278_v32  ;;  %v422_v39 = vadd.f32 1e-05, %v390_v36  ;;  %v343_v26 = vpop.xlane.xlu1 %342 }
 0x158   :  { %v346_v2 = vpop.xlane.xlu0 %345  ;;  %715 = vst.msk [vmem:[%s1637_s3 + $0x30] sm:$0xf] %vm702_vm1, %v785_v13  ;;  %v556_v1 = vadd.f32 %v1409_v3, %v517_v11  ;;  %v480_v56 = vmul.f32 %v917_v20, %v1288_v33  ;;  %926 = vrsqrt.f32 %v421_v19  ;;  %v391_v25 = vmul.f32 0.03125, %v343_v26 }
 0x159   :  { %v786_v17 = vpack.c.bf16 %v555_v28, %v555_v28  ;;  %v518_v34 = vmul.f32 %v1403_v15, %v479_v30  ;;  %928 = vrsqrt.f32 %v422_v39  ;;  %v392_v35 = vmul.f32 0.03125, %v346_v2 }
 0x15a   :  { %v919_v32 = vpop.eup %918  ;;  %v787_v54 = vpack.c.bf16 %v556_v1, %v556_v1  ;;  %v519_v40 = vmul.f32 %v1403_v15, %v480_v56  ;;  %v423_v18 = vadd.f32 1e-05, %v391_v25 }
 0x15b   :  { %v921_v41 = vpop.eup %920  ;;  %716 = vst.msk [vmem:[%s1637_s3 + $0x34] sm:$0xf] %vm702_vm1, %v786_v17  ;;  %v557_v33 = vadd.f32 %v1409_v3, %v518_v34  ;;  %v481_v44 = vmul.f32 %v919_v32, %v1292_v37  ;;  %v424_v45 = vadd.f32 1e-05, %v392_v35  ;;  %v349_v4 = vpop.xlane.xlu1 %348 }
 0x15c   :  { %v352_v16 = vpop.xlane.xlu0 %351  ;;  %717 = vst.msk [vmem:[%s1637_s3 + $0x38] sm:$0xf] %vm702_vm1, %v787_v54  ;;  %v558_v49 = vadd.f32 %v1409_v3, %v519_v40  ;;  %v482_v0 = vmul.f32 %v921_v41, %v1302_v38  ;;  %930 = vrsqrt.f32 %v423_v18  ;;  %v393_v61 = vmul.f32 0.03125, %v349_v4 }
 0x15d   :  { %v788_v6 = vpack.c.bf16 %v557_v33, %v557_v33  ;;  %v520_v5 = vmul.f32 %v1403_v15, %v481_v44  ;;  %932 = vrsqrt.f32 %v424_v45  ;;  %v394_v22 = vmul.f32 0.03125, %v352_v16 }
 0x15e   :  { %v923_v37 = vpop.eup %922  ;;  %v789_v31 = vpack.c.bf16 %v558_v49, %v558_v49  ;;  %v521_v46 = vmul.f32 %v1403_v15, %v482_v0  ;;  %v425_v50 = vadd.f32 1e-05, %v393_v61 }
 0x15f   :  { %v925_v59 = vpop.eup %924  ;;  %718 = vst.msk [vmem:[%s1637_s3 + $0x3c] sm:$0xf] %vm702_vm1, %v788_v6  ;;  %v559_v38 = vadd.f32 %v1409_v3, %v520_v5  ;;  %v483_v23 = vmul.f32 %v923_v37, %v1306_v42  ;;  %v426_v55 = vadd.f32 1e-05, %v394_v22  ;;  %v355_v29 = vpop.xlane.xlu1 %354 }
 0x160   :  { %v358_v60 = vpop.xlane.xlu0 %357  ;;  %719 = vst.msk [vmem:[%s1637_s3 + $0x40] sm:$0xf] %vm702_vm1, %v789_v31  ;;  %v560_v7 = vadd.f32 %v1409_v3, %v521_v46  ;;  %v484_v9 = vmul.f32 %v925_v59, %v1316_v43  ;;  %934 = vrsqrt.f32 %v425_v50  ;;  %v395_v12 = vmul.f32 0.03125, %v355_v29 }
 0x161   :  { %v790_v21 = vpack.c.bf16 %v559_v38, %v559_v38  ;;  %v522_v8 = vmul.f32 %v1403_v15, %v483_v23  ;;  %936 = vrsqrt.f32 %v426_v55  ;;  %v396_v51 = vmul.f32 0.03125, %v358_v60 }
 0x162   :  { %v927_v42 = vpop.eup %926  ;;  %v791_v36 = vpack.c.bf16 %v560_v7, %v560_v7  ;;  %v523_v27 = vmul.f32 %v1403_v15, %v484_v9  ;;  %v427_v13 = vadd.f32 1e-05, %v395_v12 }
 0x163   :  { %v929_v11 = vpop.eup %928  ;;  %720 = vst.msk [vmem:[%s1637_s3 + $0x44] sm:$0xf] %vm702_vm1, %v790_v21  ;;  %v561_v43 = vadd.f32 %v1409_v3, %v522_v8  ;;  %v485_v19 = vmul.f32 %v927_v42, %v1320_v47  ;;  %v428_v20 = vadd.f32 1e-05, %v396_v51  ;;  %v361_v28 = vpop.xlane.xlu1 %360 }
 0x164   :  { %v364_v30 = vpop.xlane.xlu0 %363  ;;  %721 = vst.msk [vmem:[%s1637_s3 + $0x48] sm:$0xf] %vm702_vm1, %v791_v36  ;;  %v562_v39 = vadd.f32 %v1409_v3, %v523_v27  ;;  %v486_v26 = vmul.f32 %v929_v11, %v1330_v48  ;;  %938 = vrsqrt.f32 %v427_v13  ;;  %v397_v2 = vmul.f32 0.03125, %v361_v28 }
 0x165   :  { %v792_v1 = vpack.c.bf16 %v561_v43, %v561_v43  ;;  %v524_v56 = vmul.f32 %v1403_v15, %v485_v19  ;;  %940 = vrsqrt.f32 %v428_v20  ;;  %v398_v25 = vmul.f32 0.03125, %v364_v30 }
 0x166   :  { %v931_v47 = vpop.eup %930  ;;  %v793_v17 = vpack.c.bf16 %v562_v39, %v562_v39  ;;  %v525_v34 = vmul.f32 %v1403_v15, %v486_v26  ;;  %v429_v35 = vadd.f32 1e-05, %v397_v2 }
 0x167   :  { %v933_v32 = vpop.eup %932  ;;  %722 = vst.msk [vmem:[%s1637_s3 + $0x4c] sm:$0xf] %vm702_vm1, %v792_v1  ;;  %v563_v48 = vadd.f32 %v1409_v3, %v524_v56  ;;  %v487_v54 = vmul.f32 %v931_v47, %v1334_v52  ;;  %v430_v40 = vadd.f32 1e-05, %v398_v25  ;;  %v367_v18 = vpop.xlane.xlu1 %366 }
 0x168   :  { %723 = vst.msk [vmem:[%s1637_s3 + $0x50] sm:$0xf] %vm702_vm1, %v793_v17  ;;  %v564_v41 = vadd.f32 %v1409_v3, %v525_v34  ;;  %v488_v33 = vmul.f32 %v933_v32, %v1344_v53  ;;  %942 = vrsqrt.f32 %v429_v35  ;;  %v399_v44 = vmul.f32 0.03125, %v367_v18 }
 0x169   :  { %v794_v45 = vpack.c.bf16 %v563_v48, %v563_v48  ;;  %v526_v4 = vmul.f32 %v1403_v15, %v487_v54  ;;  %944 = vrsqrt.f32 %v430_v40 }
 0x16a   :  { %v935_v16 = vpop.eup %934  ;;  %v795_v49 = vpack.c.bf16 %v564_v41, %v564_v41  ;;  %v527_v52 = vmul.f32 %v1403_v15, %v488_v33  ;;  %v431_v0 = vadd.f32 1e-05, %v399_v44 }
 0x16b   :  { %v937_v61 = vpop.eup %936  ;;  %724 = vst.msk [vmem:[%s1637_s3 + $0x54] sm:$0xf] %vm702_vm1, %v794_v45  ;;  %v565_v6 = vadd.f32 %v1409_v3, %v526_v4  ;;  %v489_v53 = vmul.f32 %v935_v16, %v1348_v57 }
 0x16c   :  { %725 = vst.msk [vmem:[%s1637_s3 + $0x58] sm:$0xf] %vm702_vm1, %v795_v49  ;;  %v566_v5 = vadd.f32 %v1409_v3, %v527_v52  ;;  %v490_v22 = vmul.f32 %v937_v61, %v1358_v58  ;;  %946 = vrsqrt.f32 %v431_v0 }
 0x16d   :  { %v796_v37 = vpack.c.bf16 %v565_v6, %v565_v6  ;;  %v528_v31 = vmul.f32 %v1403_v15, %v489_v53 }
 0x16e   :  { %v939_v46 = vpop.eup %938  ;;  %v797_v50 = vpack.c.bf16 %v566_v5, %v566_v5  ;;  %v529_v59 = vmul.f32 %v1403_v15, %v490_v22 }
 0x16f   :  { %v941_v38 = vpop.eup %940  ;;  %726 = vst.msk [vmem:[%s1637_s3 + $0x5c] sm:$0xf] %vm702_vm1, %v796_v37  ;;  %v567_v57 = vadd.f32 %v1409_v3, %v528_v31  ;;  %v491_v23 = vmul.f32 %v939_v46, %v1362_v62 }
 0x170   :  { %727 = vst.msk [vmem:[%s1637_s3 + $0x60] sm:$0xf] %vm702_vm1, %v797_v50  ;;  %v568_v58 = vadd.f32 %v1409_v3, %v529_v59  ;;  %v492_v55 = vmul.f32 %v941_v38, %v1372_v63 }
 0x171   :  { %v798_v29 = vpack.c.bf16 %v567_v57, %v567_v57  ;;  %v530_v60 = vmul.f32 %v1403_v15, %v491_v23 }
 0x172   :  { %v943_v7 = vpop.eup %942  ;;  %v799_v9 = vpack.c.bf16 %v568_v58, %v568_v58  ;;  %v531_v12 = vmul.f32 %v1403_v15, %v492_v55 }
 0x173   :  { %v945_v21 = vpop.eup %944  ;;  %728 = vst.msk [vmem:[%s1637_s3 + $0x64] sm:$0xf] %vm702_vm1, %v798_v29  ;;  %v569_v62 = vadd.f32 %v1409_v3, %v530_v60  ;;  %v493_v8 = vmul.f32 %v943_v7, %v1376_v10 }
 0x174   :  { %729 = vst.msk [vmem:[%s1637_s3 + $0x68] sm:$0xf] %vm702_vm1, %v799_v9  ;;  %v570_v63 = vadd.f32 %v1409_v3, %v531_v12  ;;  %v494_v51 = vmul.f32 %v945_v21, %v1386_v14 }
 0x175   :  { %v800_v42 = vpack.c.bf16 %v569_v62, %v569_v62  ;;  %v532_v36 = vmul.f32 %v1403_v15, %v493_v8 }
 0x176   :  { %v947_v27 = vpop.eup %946  ;;  %v801_v13 = vpack.c.bf16 %v570_v63, %v570_v63  ;;  %v533_v11 = vmul.f32 %v1403_v15, %v494_v51 }
 0x177   :  { %730 = vst.msk [vmem:[%s1637_s3 + $0x6c] sm:$0xf] %vm702_vm1, %v800_v42  ;;  %v571_v10 = vadd.f32 %v1409_v3, %v532_v36  ;;  %v495_v43 = vmul.f32 %v947_v27, %v1390_v24 }
 0x178   :  { %731 = vst.msk [vmem:[%s1637_s3 + $0x70] sm:$0xf] %vm702_vm1, %v801_v13  ;;  %v572_v14 = vadd.f32 %v1409_v3, %v533_v11 }
 0x179   :  { %v802_v19 = vpack.c.bf16 %v571_v10, %v571_v10  ;;  %v534_v20 = vmul.f32 %v1403_v15, %v495_v43 }
 0x17a   :  { %v803_v28 = vpack.c.bf16 %v572_v14, %v572_v14 }
 0x17b   :  { %732 = vst.msk [vmem:[%s1637_s3 + $0x74] sm:$0xf] %vm702_vm1, %v802_v19  ;;  %v573_v30 = vadd.f32 %v1409_v3, %v534_v20 }
 0x17c   :  { %733 = vst.msk [vmem:[%s1637_s3 + $0x78] sm:$0xf] %vm702_vm1, %v803_v28 }
 0x17d   :  { %v804_v24 = vpack.c.bf16 %v573_v30, %v573_v30 }
 0x17f   :  { %734 = vst.msk [vmem:[%s1637_s3 + $0x7c] sm:$0xf] %vm702_vm1, %v804_v24 }

// kernel: ctran_forward.20
= control target key start
LH: loop header
LB: loop body
LE: loop exit
PB: predicated region body
PF: predicated region fallthrough
CT: control target
= control target key end

     0   :  { %s1176_s12 = smov 0   ;;  %s1178_s13 = smov 0   ;;  %s1414_s0 = inlined_call_operand.vmem [shape: bf16[2,128,32], index: 0, kind: input, shape index: {}]   ;;  %s1415_s1 = inlined_call_operand.vmem [shape: bf16[12,32,8], index: 1, kind: input, shape index: {}]   ;;  %s1416_s2 = inlined_call_operand.vmem [shape: f32[12,1,8], index: 2, kind: input, shape index: {}]   ;;  %s1417_s3 = inlined_call_operand.vmem [shape: bf16[2,12,128,8], index: 3, kind: output, shape index: {}]  }
   0x1   :  { %s1180_s14 = smov 0  }
   0x2 LB: > { %s1189_s15 = sadd.s32 4294967295, %s1154_s14   ;;  %s1191_s16 = sadd.s32 1, %s1154_s14   ;;  %s1154_s14 = sphi %s1180_s14, %s1421_s14   ;;  %s1150_s13 = sphi %s1178_s13, %s1420_s13   ;;  %s1146_s12 = sphi %s1176_s12, %s1419_s12  }
   0x3   : > { %s90_s17 = ssub.s32 %s1154_s14, %s1191_s16  ;;  %s93_s18 = sadd.s32 1, %s1150_s13 }
   0x4   : > { %p91_p0 = scmp.eq.s32.totalorder %s90_s17, 0  ;;  %p103_p1 = scmp.ne.s32.totalorder %s1150_s13, %s1146_s12 }
   0x5   : > { %p104_p2 = scmp.eq.s32.totalorder %s1189_s15, 11  ;;  %p922_p3 = scmp.ge.s32.totalorder %s1154_s14, 1 }
   0x6   : > { %s1199_s19 = scalar_select %p91_p0, %s1150_s13, %s93_s18  }
   0x7   : > { %p1201_p4 = por %p104_p2, %p103_p1  ;;  %p145_p5 = scmp.lt.s32.totalorder %s1154_s14, 13 }
   0x9   : > { %p146_p6 = pnand %p922_p3, %p145_p5 }
   0xa   : > { %p171_p7 = scmp.lt.s32.totalorder (!%p146_p6), %s1189_s15, 11  ;;  %v1116_v0 = vld [vmem:[%s1414_s0] sm:$0xff] (!%p146_p6)   ;;  %vm315_vm0 = vcmask (!%p146_p6), 261120   ;;  %v1118_v4 = vld [vmem:[%s1414_s0 + $0x8] sm:$0xff] (!%p146_p6)   ;;  %v1120_v6 = vld [vmem:[%s1414_s0 + $0x10] sm:$0xff] (!%p146_p6)   ;;  %s168_s18 = sand.u32 (!%p146_p6), 1, %s1146_s12  }
   0xb   : > { %149 = sbr.rel (%p146_p6) target bundleno = 284 (0x11c), region = 32  ;;  %v1117_v1 = vld [vmem:[%s1414_s0 + $0x40] sm:$0xff] (!%p146_p6)   ;;  %1054 = vmatprep.mubr.msk.bf16.mxu0 (!%p146_p6), %vm315_vm0, %v1116_v0  ;;  %v1119_v5 = vld [vmem:[%s1414_s0 + $0x48] sm:$0xff] (!%p146_p6)   ;;  %v1121_v7 = vld [vmem:[%s1414_s0 + $0x50] sm:$0xff] (!%p146_p6)   ;;  %s923_s21 = sshll.u32 (!%p146_p6), %s168_s18, 7  ;;  %vm653_vm1 = vcmask (!%p146_p6), 60416  }
   0xc   : > { %1070 = vmatprep.mubr.msk.bf16.mxu1 (!%p146_p6), %vm315_vm0, %v1117_v1  ;;  %v1122_v8 = vld [vmem:[%s1414_s0 + $0x18] sm:$0xff] (!%p146_p6)   ;;  %v1124_v10 = vld [vmem:[%s1414_s0 + $0x20] sm:$0xff] (!%p146_p6)   ;;  %v1126_v12 = vld [vmem:[%s1414_s0 + $0x28] sm:$0xff] (!%p146_p6)   ;;  %s1292_s12 = scalar_lea.vmem (!%p146_p6), [#allocation2], %s923_s21 }
   0xd   : > { %v1123_v9 = vld [vmem:[%s1414_s0 + $0x58] sm:$0xff] (!%p146_p6)   ;;  %v1125_v11 = vld [vmem:[%s1414_s0 + $0x60] sm:$0xff] (!%p146_p6)   ;;  %v1127_v13 = vld [vmem:[%s1414_s0 + $0x68] sm:$0xff] (!%p146_p6)  }
   0xe   : > { %v1128_v14 = vld [vmem:[%s1414_s0 + $0x30] sm:$0xff] (!%p146_p6)   ;;  %v1130_v16 = vld [vmem:[%s1414_s0 + $0x38] sm:$0xff] (!%p146_p6)  }
   0xf   : > { %v1129_v15 = vld [vmem:[%s1414_s0 + $0x70] sm:$0xff] (!%p146_p6)   ;;  %v1131_v17 = vld [vmem:[%s1414_s0 + $0x78] sm:$0xff] (!%p146_p6)  }
  0x12   : > { %s1213_s25 = scalar_select %p171_p7, %s1189_s15, 11 }
  0x14   : > { %s998_s26 = sshll.u32 %s1213_s25, 4  ;;  %s178_s17 = scalar_lea.vmem %s1416_s2, %s1213_s25 }
  0x15   : > { %s175_s29 = scalar_lea.vmem %s1415_s1, %s998_s26  ;;  %v1282_v18 = vld [vmem:[%s178_s17] ss:$0 sm:$0xff]  ;;  %s1031_s25 = sshll.u32 (%p1201_p4), %s1189_s15, 6 }
  0x16   : > { %v1114_v2 = vld [vmem:[%s175_s29] sm:$0xff]   ;;  %v1115_v3 = vld [vmem:[%s175_s29 + $0x8] sm:$0xff]   ;;  %s695_s24 = scalar_lea.vmem (%p1201_p4), %s1417_s3, %s1031_s25 }
  0x17   : > { %1050 = vmatprep.subr.bf16.mxu0 %v1114_v2  ;;  %1086 = vmatprep.subr.bf16.mxu1 %v1114_v2 }
  0x18   : > { %1051 = vmatpush3.bf16.msra.mxu0 %v1114_v2  ;;  %1088 = vmatpush3.bf16.msra.mxu1 %v1114_v2 }
  0x19   : > { %1052 = vmatprep.subr.bf16.mxu0 %v1115_v3  ;;  %1087 = vmatprep.subr.bf16.mxu1 %v1115_v3 }
  0x1c   : > { %1053 = vmatpush3.bf16.msra.mxu0 %v1115_v3  ;;  %1089 = vmatpush3.bf16.msra.mxu1 %v1115_v3 }
  0x1f   : > { %1055 = vmatmul.mubr.msk.bf16.vlgmr.msra.gmra.mrb[0].mxu0 %vm315_vm0, %v1118_v4  ;;  %1071 = vmatmul.mubr.msk.bf16.vlgmr.msra.gmra.mrb[0].mxu1 %vm315_vm0, %v1119_v5 }
  0x20   : > { %1058 = vmatprep.mubr.msk.bf16.mxu0 %vm315_vm0, %v1120_v6  ;;  %1074 = vmatprep.mubr.msk.bf16.mxu1 %vm315_vm0, %v1121_v7 }
  0x27   : > { %1059 = vmatmul.mubr.msk.bf16.gmra.mrb[4].mxu0 %vm315_vm0, %v1122_v8  ;;  %1075 = vmatmul.mubr.msk.bf16.gmra.mrb[4].mxu1 %vm315_vm0, %v1123_v9 }
  0x28   : > { %1062 = vmatprep.mubr.msk.bf16.mxu0 %vm315_vm0, %v1124_v10  ;;  %1078 = vmatprep.mubr.msk.bf16.mxu1 %vm315_vm0, %v1125_v11 }
  0x2f   : > { %1063 = vmatmul.mubr.msk.bf16.gmra.mrb[8].mxu0 %vm315_vm0, %v1126_v12  ;;  %1079 = vmatmul.mubr.msk.bf16.gmra.mrb[8].mxu1 %vm315_vm0, %v1127_v13 }
  0x30   : > { %1066 = vmatprep.mubr.msk.bf16.mxu0 %vm315_vm0, %v1128_v14  ;;  %1082 = vmatprep.mubr.msk.bf16.mxu1 %vm315_vm0, %v1129_v15 }
  0x37   : > { %1067 = vmatmul.mubr.msk.bf16.gmra.mrb[12].mxu0 %vm315_vm0, %v1130_v16  ;;  %1083 = vmatmul.mubr.msk.bf16.gmra.mrb[12].mxu1 %vm315_vm0, %v1131_v17 }
  0xf2   : > { %v1056_v19 = vpop.f32.mrb[0].mxu0  ;;  %v1072_v20 = vpop.f32.mrb[0].mxu1 }
  0xf3   : > { %v407_v21 = vadd.f32 %v1056_v19, %v1282_v18  ;;  %v471_v22 = vadd.f32 %v1072_v20, %v1282_v18  ;;  %v398_v23 = vpop.f32.mrb[1].mxu0  ;;  %v462_v24 = vpop.f32.mrb[1].mxu1 }
  0xf4   : > { %v399_v25 = vadd.f32 %v1282_v18, %v398_v23  ;;  %v463_v26 = vadd.f32 %v1282_v18, %v462_v24  ;;  %v1057_v27 = vpop.f32.mrb[2].mxu0  ;;  %v1073_v28 = vpop.f32.mrb[2].mxu1 }
  0xf5   : > { %v1001_v29 = vpack.c.bf16 %v407_v21, %v407_v21  ;;  %v1017_v30 = vpack.c.bf16 %v471_v22, %v471_v22  ;;  %v410_v31 = vadd.f32 %v1057_v27, %v1282_v18  ;;  %v474_v32 = vadd.f32 %v1073_v28, %v1282_v18  ;;  %v401_v33 = vpop.f32.mrb[3].mxu0  ;;  %v465_v34 = vpop.f32.mrb[3].mxu1 }
  0xf6   : > { %v999_v35 = vpack.c.bf16 %v399_v25, %v399_v25  ;;  %v1015_v36 = vpack.c.bf16 %v463_v26, %v463_v26  ;;  %v402_v37 = vadd.f32 %v1282_v18, %v401_v33  ;;  %v466_v38 = vadd.f32 %v1282_v18, %v465_v34 }
  0xf7   : > { %656 = vst.msk [vmem:[%s1292_s12 + $0x8] sm:$0xf] %vm653_vm1, %v1001_v29  ;;  %672 = vst.msk [vmem:[%s1292_s12 + $0x48] sm:$0xf] %vm653_vm1, %v1017_v30  ;;  %v1002_v39 = vpack.c.bf16 %v410_v31, %v410_v31  ;;  %v1018_v40 = vpack.c.bf16 %v474_v32, %v474_v32 }
  0xf8   : > { %654 = vst.msk [vmem:[%s1292_s12] sm:$0xf] %vm653_vm1, %v999_v35  ;;  %670 = vst.msk [vmem:[%s1292_s12 + $0x40] sm:$0xf] %vm653_vm1, %v1015_v36  ;;  %v1000_v41 = vpack.c.bf16 %v402_v37, %v402_v37  ;;  %v1016_v42 = vpack.c.bf16 %v466_v38, %v466_v38 }
  0xf9   : > { %657 = vst.msk [vmem:[%s1292_s12 + $0xc] sm:$0xf] %vm653_vm1, %v1002_v39  ;;  %673 = vst.msk [vmem:[%s1292_s12 + $0x4c] sm:$0xf] %vm653_vm1, %v1018_v40 }
  0xfa   : > { %655 = vst.msk [vmem:[%s1292_s12 + $0x4] sm:$0xf] %vm653_vm1, %v1000_v41  ;;  %671 = vst.msk [vmem:[%s1292_s12 + $0x44] sm:$0xf] %vm653_vm1, %v1016_v42  ;;  %v1060_v43 = vpop.f32.mrb[4].mxu0  ;;  %v1076_v44 = vpop.f32.mrb[4].mxu1 }
  0xfb   : > { %v423_v45 = vadd.f32 %v1060_v43, %v1282_v18  ;;  %v487_v46 = vadd.f32 %v1076_v44, %v1282_v18  ;;  %v414_v47 = vpop.f32.mrb[5].mxu0  ;;  %v478_v48 = vpop.f32.mrb[5].mxu1 }
  0xfc   : > { %v415_v49 = vadd.f32 %v1282_v18, %v414_v47  ;;  %v479_v50 = vadd.f32 %v1282_v18, %v478_v48  ;;  %v1061_v51 = vpop.f32.mrb[6].mxu0  ;;  %v1077_v52 = vpop.f32.mrb[6].mxu1 }
  0xfd   : > { %v1005_v53 = vpack.c.bf16 %v423_v45, %v423_v45  ;;  %v1021_v54 = vpack.c.bf16 %v487_v46, %v487_v46  ;;  %v426_v55 = vadd.f32 %v1061_v51, %v1282_v18  ;;  %v490_v56 = vadd.f32 %v1077_v52, %v1282_v18  ;;  %v417_v57 = vpop.f32.mrb[7].mxu0  ;;  %v481_v58 = vpop.f32.mrb[7].mxu1 }
  0xfe   : > { %v1003_v59 = vpack.c.bf16 %v415_v49, %v415_v49  ;;  %v1019_v60 = vpack.c.bf16 %v479_v50, %v479_v50  ;;  %v418_v61 = vadd.f32 %v1282_v18, %v417_v57  ;;  %v482_v62 = vadd.f32 %v1282_v18, %v481_v58 }
  0xff   : > { %660 = vst.msk [vmem:[%s1292_s12 + $0x18] sm:$0xf] %vm653_vm1, %v1005_v53  ;;  %676 = vst.msk [vmem:[%s1292_s12 + $0x58] sm:$0xf] %vm653_vm1, %v1021_v54  ;;  %v1006_v63 = vpack.c.bf16 %v426_v55, %v426_v55  ;;  %v1022_v0 = vpack.c.bf16 %v490_v56, %v490_v56 }
 0x100   : > { %658 = vst.msk [vmem:[%s1292_s12 + $0x10] sm:$0xf] %vm653_vm1, %v1003_v59  ;;  %674 = vst.msk [vmem:[%s1292_s12 + $0x50] sm:$0xf] %vm653_vm1, %v1019_v60  ;;  %v1004_v1 = vpack.c.bf16 %v418_v61, %v418_v61  ;;  %v1020_v2 = vpack.c.bf16 %v482_v62, %v482_v62  ;;  %v715_v52 = vld [vmem:[%s1292_s12 + $0x8] sm:$0xff] (%p1201_p4)  }
 0x101   : > { %661 = vst.msk [vmem:[%s1292_s12 + $0x1c] sm:$0xf] %vm653_vm1, %v1006_v63  ;;  %677 = vst.msk [vmem:[%s1292_s12 + $0x5c] sm:$0xf] %vm653_vm1, %v1022_v0  ;;  %v743_v59 = vld [vmem:[%s1292_s12 + $0x40] sm:$0xff] (%p1201_p4)   ;;  %v747_v60 = vld [vmem:[%s1292_s12 + $0x48] sm:$0xff] (%p1201_p4)  }
 0x102   : > { %659 = vst.msk [vmem:[%s1292_s12 + $0x14] sm:$0xf] %vm653_vm1, %v1004_v1  ;;  %675 = vst.msk [vmem:[%s1292_s12 + $0x54] sm:$0xf] %vm653_vm1, %v1020_v2  ;;  %v1064_v3 = vpop.f32.mrb[8].mxu0  ;;  %v1080_v4 = vpop.f32.mrb[8].mxu1 }
 0x103   : > { %v439_v5 = vadd.f32 %v1064_v3, %v1282_v18  ;;  %v503_v6 = vadd.f32 %v1080_v4, %v1282_v18  ;;  %v430_v7 = vpop.f32.mrb[9].mxu0  ;;  %v494_v8 = vpop.f32.mrb[9].mxu1  ;;  %716 = vst [vmem:[%s695_s24 + $0x8] sm:$0xff] (%p1201_p4), %v715_v52   ;;  %744 = vst [vmem:[%s695_s24 + $0x300] sm:$0xff] (%p1201_p4), %v743_v59  }
 0x104   : > { %v431_v9 = vadd.f32 %v1282_v18, %v430_v7  ;;  %v495_v10 = vadd.f32 %v1282_v18, %v494_v8  ;;  %v1065_v11 = vpop.f32.mrb[10].mxu0  ;;  %v1081_v12 = vpop.f32.mrb[10].mxu1  ;;  %748 = vst [vmem:[%s695_s24 + $0x308] sm:$0xff] (%p1201_p4), %v747_v60  }
 0x105   : > { %v1009_v13 = vpack.c.bf16 %v439_v5, %v439_v5  ;;  %v1025_v14 = vpack.c.bf16 %v503_v6, %v503_v6  ;;  %v442_v15 = vadd.f32 %v1065_v11, %v1282_v18  ;;  %v506_v16 = vadd.f32 %v1081_v12, %v1282_v18  ;;  %v433_v17 = vpop.f32.mrb[11].mxu0  ;;  %v497_v19 = vpop.f32.mrb[11].mxu1 }
 0x106   : > { %v1007_v20 = vpack.c.bf16 %v431_v9, %v431_v9  ;;  %v1023_v21 = vpack.c.bf16 %v495_v10, %v495_v10  ;;  %v434_v22 = vadd.f32 %v1282_v18, %v433_v17  ;;  %v498_v23 = vadd.f32 %v1282_v18, %v497_v19 }
 0x107   : > { %664 = vst.msk [vmem:[%s1292_s12 + $0x28] sm:$0xf] %vm653_vm1, %v1009_v13  ;;  %680 = vst.msk [vmem:[%s1292_s12 + $0x68] sm:$0xf] %vm653_vm1, %v1025_v14  ;;  %v1010_v24 = vpack.c.bf16 %v442_v15, %v442_v15  ;;  %v1026_v25 = vpack.c.bf16 %v506_v16, %v506_v16 }
 0x108   : > { %662 = vst.msk [vmem:[%s1292_s12 + $0x20] sm:$0xf] %vm653_vm1, %v1007_v20  ;;  %678 = vst.msk [vmem:[%s1292_s12 + $0x60] sm:$0xf] %vm653_vm1, %v1023_v21  ;;  %v1008_v26 = vpack.c.bf16 %v434_v22, %v434_v22  ;;  %v1024_v27 = vpack.c.bf16 %v498_v23, %v498_v23  ;;  %v723_v54 = vld [vmem:[%s1292_s12 + $0x18] sm:$0xff] (%p1201_p4)  }
 0x109   : > { %665 = vst.msk [vmem:[%s1292_s12 + $0x2c] sm:$0xf] %vm653_vm1, %v1010_v24  ;;  %681 = vst.msk [vmem:[%s1292_s12 + $0x6c] sm:$0xf] %vm653_vm1, %v1026_v25  ;;  %v719_v53 = vld [vmem:[%s1292_s12 + $0x10] sm:$0xff] (%p1201_p4)   ;;  %v755_v62 = vld [vmem:[%s1292_s12 + $0x58] sm:$0xff] (%p1201_p4)  }
 0x10a   : > { %663 = vst.msk [vmem:[%s1292_s12 + $0x24] sm:$0xf] %vm653_vm1, %v1008_v26  ;;  %679 = vst.msk [vmem:[%s1292_s12 + $0x64] sm:$0xf] %vm653_vm1, %v1024_v27  ;;  %v1068_v28 = vpop.f32.mrb[12].mxu0  ;;  %v1084_v29 = vpop.f32.mrb[12].mxu1 }
 0x10b   : > { %v455_v30 = vadd.f32 %v1068_v28, %v1282_v18  ;;  %v519_v31 = vadd.f32 %v1084_v29, %v1282_v18  ;;  %v446_v32 = vpop.f32.mrb[13].mxu0  ;;  %v510_v33 = vpop.f32.mrb[13].mxu1  ;;  %720 = vst [vmem:[%s695_s24 + $0x10] sm:$0xff] (%p1201_p4), %v719_v53   ;;  %724 = vst [vmem:[%s695_s24 + $0x18] sm:$0xff] (%p1201_p4), %v723_v54   ;;  %v751_v61 = vld [vmem:[%s1292_s12 + $0x50] sm:$0xff] (%p1201_p4)  }
 0x10c   : > { %v447_v34 = vadd.f32 %v1282_v18, %v446_v32  ;;  %v511_v35 = vadd.f32 %v1282_v18, %v510_v33  ;;  %v1069_v36 = vpop.f32.mrb[14].mxu0  ;;  %v1085_v37 = vpop.f32.mrb[14].mxu1  ;;  %692 = sbr.rel (!%p1201_p4) target bundleno = 284 (0x11c), region = 36  ;;  %752 = vst [vmem:[%s695_s24 + $0x310] sm:$0xff] (%p1201_p4), %v751_v61   ;;  %756 = vst [vmem:[%s695_s24 + $0x318] sm:$0xff] (%p1201_p4), %v755_v62  }
 0x10d   : > { %v1013_v38 = vpack.c.bf16 %v455_v30, %v455_v30  ;;  %v1029_v39 = vpack.c.bf16 %v519_v31, %v519_v31  ;;  %v458_v40 = vadd.f32 %v1069_v36, %v1282_v18  ;;  %v522_v41 = vadd.f32 %v1085_v37, %v1282_v18  ;;  %v449_v42 = vpop.f32.mrb[15].mxu0  ;;  %v513_v43 = vpop.f32.mrb[15].mxu1 }
 0x10e   : > { %v1011_v44 = vpack.c.bf16 %v447_v34, %v447_v34  ;;  %v1027_v45 = vpack.c.bf16 %v511_v35, %v511_v35  ;;  %v450_v46 = vadd.f32 %v1282_v18, %v449_v42  ;;  %v514_v47 = vadd.f32 %v1282_v18, %v513_v43  ;;  %v711_v18 = vld [vmem:[%s1292_s12] sm:$0xff] (%p1201_p4)  }
 0x10f   : > { %668 = vst.msk [vmem:[%s1292_s12 + $0x38] sm:$0xf] %vm653_vm1, %v1013_v38  ;;  %684 = vst.msk [vmem:[%s1292_s12 + $0x78] sm:$0xf] %vm653_vm1, %v1029_v39  ;;  %v1014_v48 = vpack.c.bf16 %v458_v40, %v458_v40  ;;  %v1030_v49 = vpack.c.bf16 %v522_v41, %v522_v41 }
 0x110   : > { %666 = vst.msk [vmem:[%s1292_s12 + $0x30] sm:$0xf] %vm653_vm1, %v1011_v44  ;;  %682 = vst.msk [vmem:[%s1292_s12 + $0x70] sm:$0xf] %vm653_vm1, %v1027_v45  ;;  %v1012_v50 = vpack.c.bf16 %v450_v46, %v450_v46  ;;  %v1028_v51 = vpack.c.bf16 %v514_v47, %v514_v47  ;;  %v731_v56 = vld [vmem:[%s1292_s12 + $0x28] sm:$0xff] (%p1201_p4)  }
 0x111   : > { %669 = vst.msk [vmem:[%s1292_s12 + $0x3c] sm:$0xf] %vm653_vm1, %v1014_v48  ;;  %685 = vst.msk [vmem:[%s1292_s12 + $0x7c] sm:$0xf] %vm653_vm1, %v1030_v49  ;;  %v727_v55 = vld [vmem:[%s1292_s12 + $0x20] sm:$0xff] (%p1201_p4)   ;;  %v763_v0 = vld [vmem:[%s1292_s12 + $0x68] sm:$0xff] (%p1201_p4)  }
 0x112   : > { %667 = vst.msk [vmem:[%s1292_s12 + $0x34] sm:$0xf] %vm653_vm1, %v1012_v50  ;;  %683 = vst.msk [vmem:[%s1292_s12 + $0x74] sm:$0xf] %vm653_vm1, %v1028_v51  ;;  %v759_v63 = vld [vmem:[%s1292_s12 + $0x60] sm:$0xff] (%p1201_p4)  }
 0x113   : > { %712 = vst [vmem:[%s695_s24] sm:$0xff] %v711_v18   ;;  %728 = vst [vmem:[%s695_s24 + $0x20] sm:$0xff] %v727_v55  }
 0x114   : > { %732 = vst [vmem:[%s695_s24 + $0x28] sm:$0xff] %v731_v56   ;;  %760 = vst [vmem:[%s695_s24 + $0x320] sm:$0xff] %v759_v63  }
 0x115   : > { %764 = vst [vmem:[%s695_s24 + $0x328] sm:$0xff] %v763_v0  }
 0x118   : > { %v739_v58 = vld [vmem:[%s1292_s12 + $0x38] sm:$0xff]  }
 0x119   : > { %v735_v57 = vld [vmem:[%s1292_s12 + $0x30] sm:$0xff]   ;;  %740 = vst [vmem:[%s695_s24 + $0x38] sm:$0xff] %v739_v58   ;;  %v771_v2 = vld [vmem:[%s1292_s12 + $0x78] sm:$0xff]  }
 0x11a   : > { %736 = vst [vmem:[%s695_s24 + $0x30] sm:$0xff] %v735_v57   ;;  %v767_v1 = vld [vmem:[%s1292_s12 + $0x70] sm:$0xff]   ;;  %772 = vst [vmem:[%s695_s24 + $0x338] sm:$0xff] %v771_v2  }
 0x11b   : > { %768 = vst [vmem:[%s695_s24 + $0x330] sm:$0xff] %v767_v1  }
 0x11c PF: > { %p10_p8 = scmp.ge.s32.totalorder %s1191_s16, 14   ;;  %s1419_s12 = smov %s1150_s13 }
 0x11d   : > { %s1420_s13 = smov %s1199_s19  ;;  %s1421_s14 = smov %s1191_s16 }
 0x11e   :  { %12 = sbr.rel (!%p10_p8) target bundleno = 2 (0x2), region = 106 }

// kernel: ctran_forward.21
= control target key start
LH: loop header
LB: loop body
LE: loop exit
PB: predicated region body
PF: predicated region fallthrough
CT: control target
= control target key end

     0   :  { %s1819_s15 = smov 0   ;;  %s1821_s16 = smov 0   ;;  %s2107_s0 = inlined_call_operand.vmem [shape: bf16[2,12,128,8], index: 0, kind: input, shape index: {}, may-alias: {0,1,2}]   ;;  %s2108_s1 = inlined_call_operand.vmem [shape: bf16[2,12,128,8], index: 1, kind: input, shape index: {}, may-alias: {0,1,2}]   ;;  %s2109_s2 = inlined_call_operand.vmem [shape: bf16[2,12,128,8], index: 2, kind: input, shape index: {}, may-alias: {0,1,2}]   ;;  %s2110_s3 = inlined_call_operand.vmem [shape: bf16[2,4,128,8], index: 3, kind: output, shape index: {0}]   ;;  %s2111_s4 = inlined_call_operand.vmem [shape: bf16[2,128,128], index: 4, kind: output, shape index: {1}]  }
   0x1   :  { %2112 = sst [smem:[#allocation3_spill]] %s2107_s0  ;;  %s1823_s17 = smov 0  }
   0x2   :  { %2113 = sst [smem:[#allocation4_spill]] %s2111_s4  ;;  %s1825_s18 = smov 0  }
   0x3   :  { %s1827_s19 = smov 0  }
   0x4 LB: > { %s24_s20 = sadd.s32 1, %s1783_s17  ;;  %s27_s21 = sadd.s32 1, %s1787_s18  ;;  %s1791_s19 = sphi %s1827_s19, %s15_s19   ;;  %s1787_s18 = sphi %s1825_s18, %s2119_s18   ;;  %s1783_s17 = sphi %s1823_s17, %s2118_s17   ;;  %s1779_s16 = sphi %s1821_s16, %s2117_s16   ;;  %s1775_s15 = sphi %s1819_s15, %s2116_s15  }
   0x5   : > { %p25_p0 = scmp.ge.s32.totalorder %s24_s20, 4  ;;  %p1359_p1 = scmp.ge.s32.totalorder %s1791_s19, 1 }
   0x6   : > { %p225_p2 = scmp.lt.s32.totalorder %s1791_s19, 9 }
   0x7   : > { %s2121_s20 = smov (%p25_p0, %s24_s20), 0  ;;  %s2123_s21 = smov (!%p25_p0, %s27_s21), %s1787_s18 }
   0x8   : > { %p226_p3 = pnand %p1359_p1, %p225_p2  ;;  %p29_p4 = scmp.ge.s32.totalorder %s2123_s21, 2 }
   0x9   : > { %p284_p5 = scmp.lt.s32.totalorder (!%p226_p3), %s1779_s16, 1  ;;  %p286_p6 = scmp.lt.s32.totalorder (!%p226_p3), %s1775_s15, 11 }
   0xa   : > { %s2125_s21 = smov (%p29_p4, %s2123_s21), 0  ;;  %229 = sbr.rel (%p226_p3) target bundleno = 878 (0x36e), region = 32 }
   0xb   : > { %s293_s22 = sadd.s32 (!%p226_p3), 4, %s1775_s15  ;;  %s304_s23 = sadd.s32 (!%p226_p3), 8, %s1775_s15 }
   0xc   : > { %p296_p7 = scmp.lt.s32.totalorder (!%p226_p3), %s293_s22, 11  ;;  %p307_p8 = scmp.lt.s32.totalorder (!%p226_p3), %s304_s23, 11 }
   0xd   : > { %s2114_s0 = sld [smem:[#allocation3_spill]] (!%p226_p3)  ;;  %s2115_s4 = sld [smem:[#allocation4_spill]] (!%p226_p3) }
   0xe   : > { %p317_p9 = scmp.lt.s32.totalorder (!%p226_p3), %s1775_s15, 3  ;;  %p1371_p10 = scmp.ne.s32.totalorder (!%p226_p3), %s1775_s15, 0 }
  0x11   : > { %s2127_s16 = smov (!%p284_p5, %s1779_s16), 1  ;;  %s2129_s22 = smov (!%p296_p7, %s293_s22), 11 }
  0x12   : > { %s287_s24 = scalar_select %p286_p6, %s1775_s15, 11 }
  0x13   : > { %s1623_s25 = smul.u32 192, %s2127_s16  ;;  %s1367_s29 = sshll.u32 %s2127_s16, 6  ;;  %v1793_v0 = vmov (!%p1371_p10), 0.0  }
  0x14   : > { %s1360_s26 = sshll.u32 %s287_s24, 4  ;;  %s1863_s9 = scalar_lea.vmem %s2115_s4, %s1367_s29  ;;  %334 = vst [vmem:[#allocation2] sm:$0xff] (!%p1371_p10), %v1793_v0  ;;  %335 = vst [vmem:[#allocation2 + $0x8] sm:$0xff] (!%p1371_p10), %v1793_v0 }
  0x15   : > { %s290_s27 = sadd.s32 %s1623_s25, %s1360_s26  ;;  %s2131_s23 = smov (!%p307_p8, %s304_s23), 11  ;;  %336 = vst [vmem:[#allocation2 + $0x10] sm:$0xff] (!%p1371_p10), %v1793_v0  ;;  %337 = vst [vmem:[#allocation2 + $0x18] sm:$0xff] (!%p1371_p10), %v1793_v0 }
  0x16   : > { %s1361_s28 = sshll.u32 %s290_s27, 2  ;;  %s1362_s10 = sshll.u32 %s2129_s22, 4  ;;  %338 = vst [vmem:[#allocation2 + $0x20] sm:$0xff] (!%p1371_p10), %v1793_v0  ;;  %339 = vst [vmem:[#allocation2 + $0x28] sm:$0xff] (!%p1371_p10), %v1793_v0 }
  0x17   : > { %s1858_s6 = scalar_lea.vmem %s2114_s0, %s1361_s28  ;;  %s300_s11 = sadd.s32 %s1623_s25, %s1362_s10  ;;  %340 = vst [vmem:[#allocation2 + $0x30] sm:$0xff] (!%p1371_p10), %v1793_v0  ;;  %341 = vst [vmem:[#allocation2 + $0x38] sm:$0xff] (!%p1371_p10), %v1793_v0 }
  0x18   : > { %s1364_s12 = sshll.u32 %s2131_s23, 4  ;;  %s1363_s13 = sshll.u32 %s300_s11, 2  ;;  %342 = vst [vmem:[#allocation2 + $0x40] sm:$0xff] (!%p1371_p10), %v1793_v0  ;;  %343 = vst [vmem:[#allocation2 + $0x48] sm:$0xff] (!%p1371_p10), %v1793_v0 }
  0x19   : > { %s311_s14 = sadd.s32 %s1623_s25, %s1364_s12  ;;  %s1869_s26 = scalar_lea.vmem %s2108_s1, %s1363_s13  ;;  %344 = vst [vmem:[#allocation2 + $0x50] sm:$0xff] (!%p1371_p10), %v1793_v0  ;;  %345 = vst [vmem:[#allocation2 + $0x58] sm:$0xff] (!%p1371_p10), %v1793_v0 }
  0x1a   : > { %s1365_s27 = sshll.u32 %s311_s14, 2  ;;  %346 = vst [vmem:[#allocation2 + $0x60] sm:$0xff] (!%p1371_p10), %v1793_v0  ;;  %347 = vst [vmem:[#allocation2 + $0x68] sm:$0xff] (!%p1371_p10), %v1793_v0 }
  0x1b   : > { %s1874_s5 = scalar_lea.vmem %s2109_s2, %s1365_s27  ;;  %333 = sbr.rel (%p1371_p10) target bundleno = 34 (0x22), region = 36  ;;  %348 = vst [vmem:[#allocation2 + $0x70] sm:$0xff] (!%p1371_p10), %v1793_v0  ;;  %349 = vst [vmem:[#allocation2 + $0x78] sm:$0xff] (!%p1371_p10), %v1793_v0 }
  0x1c   : > { %s318_s7 = scalar_select %p317_p9, %s1775_s15, 3 }
  0x1e   : > { %s1366_s8 = sshll.u32 %s318_s7, 4 }
  0x1f   : > { %s321_s0 = sadd.s32 %s1367_s29, %s1366_s8 }
  0x20   : > { %s1368_s22 = sshll.u32 %s321_s0, 2 }
  0x21   : > { %s1880_s23 = scalar_lea.vmem %s2110_s3, %s1368_s22 }
  0x22 PF: > { %v1665_v1 = vld [vmem:[%s1869_s26] sm:$0xff]   ;;  %vm478_vm0 = vcmask 64512   ;;  %v1666_v2 = vld [vmem:[%s1869_s26 + $0x8] sm:$0xff]   ;;  %v1667_v4 = vld [vmem:[%s1869_s26 + $0x10] sm:$0xff]   ;;  %v624_v25 = vlaneseq  ;;  %vm1052_vm2 = vcmask 60416   ;;  %p1420_p11 = scmp.ne.s32.totalorder %s1775_s15, 3 }
  0x23   : > { %1615 = vmatprep.subr.msk.bf16.mxu0 %vm478_vm0, %v1665_v1  ;;  %v504_v3 = vsel %vm478_vm0, %v1665_v1, 0  ;;  %v507_v5 = vsel %vm478_vm0, %v1666_v2, 0  ;;  %v1673_v6 = vld [vmem:[%s1858_s6] sm:$0xff]   ;;  %v510_v7 = vsel %vm478_vm0, %v1667_v4, 0  ;;  %v1668_v8 = vld [vmem:[%s1869_s26 + $0x18] sm:$0xff]   ;;  %v1670_v12 = vld [vmem:[%s1869_s26 + $0x28] sm:$0xff]  }
  0x24   : > { %1552 = vmatpush3.bf16.xpose.msra.mxu0 %v504_v3  ;;  %1567 = vmatprep.mubr.msk.bf16.mxu0 %vm478_vm0, %v1673_v6  ;;  %v513_v9 = vsel %vm478_vm0, %v1668_v8, 0  ;;  %v1669_v10 = vld [vmem:[%s1869_s26 + $0x20] sm:$0xff]   ;;  %v519_v13 = vsel %vm478_vm0, %v1670_v12, 0  ;;  %v1671_v14 = vld [vmem:[%s1869_s26 + $0x30] sm:$0xff]   ;;  %v1672_v16 = vld [vmem:[%s1869_s26 + $0x38] sm:$0xff]   ;;  %v625_v26 = vand.u32 127, %v624_v25 }
  0x25   : > { %1616 = vmatprep.subr.msk.bf16.mxu0 %vm478_vm0, %v1666_v2  ;;  %v516_v11 = vsel %vm478_vm0, %v1669_v10, 0  ;;  %v522_v15 = vsel %vm478_vm0, %v1671_v14, 0  ;;  %v525_v17 = vsel %vm478_vm0, %v1672_v16, 0  ;;  %v1674_v18 = vld [vmem:[%s1858_s6 + $0x8] sm:$0xff]   ;;  %v1675_v19 = vld [vmem:[%s1858_s6 + $0x10] sm:$0xff]   ;;  %v1676_v20 = vld [vmem:[%s1858_s6 + $0x18] sm:$0xff]  }
  0x26   : > { %v1677_v21 = vld [vmem:[%s1858_s6 + $0x20] sm:$0xff]   ;;  %v1678_v22 = vld [vmem:[%s1858_s6 + $0x28] sm:$0xff]   ;;  %v1679_v23 = vld [vmem:[%s1858_s6 + $0x30] sm:$0xff]   ;;  %vm626_vm1 = vcmp.lt.s32.totalorder %v625_v26, 72 }
  0x27   : > { %v1680_v24 = vld [vmem:[%s1858_s6 + $0x38] sm:$0xff]   ;;  %v1681_v59 = vld [vmem:[%s1874_s5] sm:$0xff]   ;;  %v1682_v60 = vld [vmem:[%s1874_s5 + $0x8] sm:$0xff]  }
  0x28   : > { %1583 = vmatprep.subr.bf16.mxu1 %v1681_v59  ;;  %v1683_v61 = vld [vmem:[%s1874_s5 + $0x10] sm:$0xff]  }
  0x29   : > { %1584 = vmatpush3.bf16.msra.mxu1 %v1681_v59  ;;  %v1685_v59 = vld [vmem:[%s1874_s5 + $0x20] sm:$0xff]  }
  0x2a   : > { %1585 = vmatprep.subr.bf16.mxu1 %v1682_v60 }
  0x2c   : > { %1554 = vmatpush3.bf16.xpose.msra.mxu0 %v507_v5 }
  0x2d   : > { %1617 = vmatprep.subr.msk.bf16.mxu0 %vm478_vm0, %v1667_v4  ;;  %1586 = vmatpush3.bf16.msra.mxu1 %v1682_v60 }
  0x2e   : > { %1587 = vmatprep.subr.bf16.mxu1 %v1683_v61 }
  0x31   : > { %1588 = vmatpush3.bf16.msra.mxu1 %v1683_v61  ;;  %v1686_v61 = vld [vmem:[%s1874_s5 + $0x28] sm:$0xff]  }
  0x34   : > { %1556 = vmatpush3.bf16.xpose.msra.mxu0 %v510_v7 }
  0x35   : > { %1618 = vmatprep.subr.msk.bf16.mxu0 %vm478_vm0, %v1668_v8 }
  0x3c   : > { %1558 = vmatpush3.bf16.xpose.msra.mxu0 %v513_v9 }
  0x3d   : > { %1619 = vmatprep.subr.msk.bf16.mxu0 %vm478_vm0, %v1669_v10 }
  0x44   : > { %1560 = vmatpush3.bf16.xpose.msra.mxu0 %v516_v11 }
  0x45   : > { %1620 = vmatprep.subr.msk.bf16.mxu0 %vm478_vm0, %v1670_v12 }
  0x4c   : > { %1562 = vmatpush3.bf16.xpose.msra.mxu0 %v519_v13 }
  0x4d   : > { %1621 = vmatprep.subr.msk.bf16.mxu0 %vm478_vm0, %v1671_v14 }
  0x54   : > { %1564 = vmatpush3.bf16.xpose.msra.mxu0 %v522_v15 }
  0x55   : > { %1622 = vmatprep.subr.msk.bf16.mxu0 %vm478_vm0, %v1672_v16 }
  0x5c   : > { %1566 = vmatpush3.bf16.xpose.msra.mxu0 %v525_v17 }
  0x63   : > { %1568 = vmatmul.mubr.msk.bf16.vlgmr.msra.gmra.mrb[0].mxu0 %vm478_vm0, %v1674_v18 }
  0x64   : > { %1571 = vmatprep.mubr.msk.bf16.mxu0 %vm478_vm0, %v1675_v19 }
  0x6b   : > { %1572 = vmatmul.mubr.msk.bf16.gmra.mrb[4].mxu0 %vm478_vm0, %v1676_v20 }
  0x6c   : > { %1575 = vmatprep.mubr.msk.bf16.mxu0 %vm478_vm0, %v1677_v21 }
  0x73   : > { %1576 = vmatmul.mubr.msk.bf16.gmra.mrb[8].mxu0 %vm478_vm0, %v1678_v22 }
  0x74   : > { %1579 = vmatprep.mubr.msk.bf16.mxu0 %vm478_vm0, %v1679_v23 }
  0x7b   : > { %1580 = vmatmul.mubr.msk.bf16.gmra.mrb[12].mxu0 %vm478_vm0, %v1680_v24 }
 0x136   : > { %v1569_v27 = vpop.f32.mrb[0].mxu0 }
 0x137   : > { %v561_v28 = vpop.f32.mrb[1].mxu0  ;;  %v629_v29 = vsel %vm626_vm1, %v1569_v27, -inf }
 0x138   : > { %647 = vmax.xlane.f32.xlu1 %v629_v29  ;;  %v1570_v30 = vpop.f32.mrb[2].mxu0  ;;  %v627_v31 = vsel %vm626_vm1, %v561_v28, -inf }
 0x139   : > { %643 = vmax.xlane.f32.xlu0 %v627_v31  ;;  %v564_v32 = vpop.f32.mrb[3].mxu0  ;;  %v630_v33 = vsel %vm626_vm1, %v1570_v30, -inf }
 0x13a   : > { %v628_v34 = vsel %vm626_vm1, %v564_v32, -inf }
 0x13c   : > { %649 = vmax.xlane.f32.xlu1 %v630_v33 }
 0x13d   : > { %645 = vmax.xlane.f32.xlu0 %v628_v34 }
 0x13e   : > { %v1573_v35 = vpop.f32.mrb[4].mxu0 }
 0x13f   : > { %v577_v36 = vpop.f32.mrb[5].mxu0  ;;  %v1930_v41 = vsel %vm626_vm1, %v1573_v35, -inf }
 0x140   : > { %v1574_v37 = vpop.f32.mrb[6].mxu0  ;;  %v631_v38 = vsel %vm626_vm1, %v577_v36, -inf }
 0x141   : > { %651 = vmax.xlane.f32.xlu0 %v631_v38  ;;  %v580_v39 = vpop.f32.mrb[7].mxu0  ;;  %v1934_v43 = vsel %vm626_vm1, %v1574_v37, -inf }
 0x142   : > { %v632_v40 = vsel %vm626_vm1, %v580_v39, -inf }
 0x143   : > { %653 = vmax.xlane.f32.xlu1 %v632_v40 }
 0x145   : > { %655 = vmax.xlane.f32.xlu0 %v1930_v41 }
 0x146   : > { %v1577_v42 = vpop.f32.mrb[8].mxu0 }
 0x147   : > { %657 = vmax.xlane.f32.xlu1 %v1934_v43  ;;  %v593_v44 = vpop.f32.mrb[9].mxu0  ;;  %v1946_v49 = vsel %vm626_vm1, %v1577_v42, -inf }
 0x148   : > { %v1578_v45 = vpop.f32.mrb[10].mxu0  ;;  %v1938_v46 = vsel %vm626_vm1, %v593_v44, -inf }
 0x149   : > { %659 = vmax.xlane.f32.xlu0 %v1938_v46  ;;  %v596_v47 = vpop.f32.mrb[11].mxu0  ;;  %v1950_v51 = vsel %vm626_vm1, %v1578_v45, -inf }
 0x14a   : > { %v1942_v48 = vsel %vm626_vm1, %v596_v47, -inf }
 0x14b   : > { %661 = vmax.xlane.f32.xlu1 %v1942_v48 }
 0x14d   : > { %663 = vmax.xlane.f32.xlu0 %v1946_v49 }
 0x14e   : > { %v1581_v50 = vpop.f32.mrb[12].mxu0 }
 0x14f   : > { %665 = vmax.xlane.f32.xlu1 %v1950_v51  ;;  %v609_v52 = vpop.f32.mrb[13].mxu0  ;;  %v1962_v57 = vsel %vm626_vm1, %v1581_v50, -inf }
 0x150   : > { %v1582_v53 = vpop.f32.mrb[14].mxu0  ;;  %v1954_v54 = vsel %vm626_vm1, %v609_v52, -inf }
 0x151   : > { %667 = vmax.xlane.f32.xlu0 %v1954_v54  ;;  %v612_v55 = vpop.f32.mrb[15].mxu0  ;;  %v1966_v58 = vsel %vm626_vm1, %v1582_v53, -inf }
 0x152   : > { %v1958_v56 = vsel %vm626_vm1, %v612_v55, -inf }
 0x153   : > { %669 = vmax.xlane.f32.xlu1 %v1958_v56 }
 0x155   : > { %671 = vmax.xlane.f32.xlu0 %v1962_v57 }
 0x157   : > { %673 = vmax.xlane.f32.xlu1 %v1966_v58 }
 0x1c5   : > { %v648_v62 = vpop.xlane.xlu1 %647 }
 0x1c6   : > { %v677_v63 = vsub.f32 %v629_v29, %v648_v62  ;;  %v644_v0 = vpop.xlane.xlu0 %643 }
 0x1c7   : > { %v675_v1 = vsub.f32 %v627_v31, %v644_v0  ;;  %v1687_v0 = vld [vmem:[%s1874_s5 + $0x30] sm:$0xff]  }
 0x1c8   : > { %v695_v4 = vmul.f32 1.442695, %v677_v63 }
 0x1c9   : > { %v691_v2 = vmul.f32 1.442695, %v675_v1  ;;  %v650_v3 = vpop.xlane.xlu1 %649 }
 0x1ca   : > { %v678_v5 = vsub.f32 %v630_v33, %v650_v3  ;;  %v646_v6 = vpop.xlane.xlu0 %645 }
 0x1cb   : > { %1689 = vpow2.f32 %v691_v2  ;;  %v676_v7 = vsub.f32 %v628_v34, %v646_v6  ;;  %v1688_v2 = vld [vmem:[%s1874_s5 + $0x38] sm:$0xff]  }
 0x1cc   : > { %1691 = vpow2.f32 %v695_v4  ;;  %v697_v9 = vmul.f32 1.442695, %v678_v5 }
 0x1cd   : > { %v693_v8 = vmul.f32 1.442695, %v676_v7 }
 0x1ce   : > { %v652_v10 = vpop.xlane.xlu0 %651 }
 0x1cf   : > { %1693 = vpow2.f32 %v693_v8  ;;  %v679_v11 = vsub.f32 %v631_v38, %v652_v10 }
 0x1d0   : > { %v654_v12 = vpop.xlane.xlu1 %653  ;;  %1695 = vpow2.f32 %v697_v9  ;;  %v787_v9 = vld [vmem:[#allocation2] sm:$0xff] }
 0x1d1   : > { %v699_v13 = vmul.f32 1.442695, %v679_v11  ;;  %v680_v14 = vsub.f32 %v632_v40, %v654_v12 }
 0x1d2   : > { %v656_v15 = vpop.xlane.xlu0 %655 }
 0x1d3   : > { %1697 = vpow2.f32 %v699_v13  ;;  %v701_v16 = vmul.f32 1.442695, %v680_v14  ;;  %v681_v17 = vsub.f32 %v1930_v41, %v656_v15  ;;  %v789_v15 = vld [vmem:[#allocation2 + $0x10] sm:$0xff] }
 0x1d4   : > { %v658_v18 = vpop.xlane.xlu1 %657 }
 0x1d5   : > { %v1973_v19 = vpop.eup %1689  ;;  %v703_v20 = vmul.f32 1.442695, %v681_v17  ;;  %v682_v21 = vsub.f32 %v1934_v43, %v658_v18  ;;  %1699 = vpow2.f32 %v701_v16 }
 0x1d6   : > { %v660_v22 = vpop.xlane.xlu0 %659  ;;  %723 = vadd.xlane.f32.xlu0 %v1973_v19  ;;  %v1978_v25 = vpop.eup %1691 }
 0x1d7   : > { %1701 = vpow2.f32 %v703_v20  ;;  %v705_v23 = vmul.f32 1.442695, %v682_v21  ;;  %v683_v24 = vsub.f32 %v1938_v46, %v660_v22  ;;  %v788_v20 = vld [vmem:[#allocation2 + $0x8] sm:$0xff] }
 0x1d8   : > { %v662_v26 = vpop.xlane.xlu1 %661 }
 0x1d9   : > { %v1980_v27 = vpop.eup %1693  ;;  %v707_v28 = vmul.f32 1.442695, %v683_v24  ;;  %v684_v29 = vsub.f32 %v1942_v48, %v662_v26  ;;  %1703 = vpow2.f32 %v705_v23 }
 0x1da   : > { %v664_v30 = vpop.xlane.xlu0 %663  ;;  %727 = vadd.xlane.f32.xlu0 %v1978_v25  ;;  %725 = vadd.xlane.f32.xlu1 %v1980_v27  ;;  %v1986_v33 = vpop.eup %1695 }
 0x1db   : > { %1705 = vpow2.f32 %v707_v28  ;;  %v709_v31 = vmul.f32 1.442695, %v684_v29  ;;  %v685_v32 = vsub.f32 %v1946_v49, %v664_v30  ;;  %v791_v28 = vld [vmem:[#allocation2 + $0x20] sm:$0xff] }
 0x1dc   : > { %v666_v34 = vpop.xlane.xlu1 %665 }
 0x1dd   : > { %v1988_v35 = vpop.eup %1697  ;;  %v711_v36 = vmul.f32 1.442695, %v685_v32  ;;  %v686_v37 = vsub.f32 %v1950_v51, %v666_v34  ;;  %1707 = vpow2.f32 %v709_v31  ;;  %v1684_v51 = vld [vmem:[%s1874_s5 + $0x18] sm:$0xff]  }
 0x1de   : > { %731 = vadd.xlane.f32.xlu0 %v1988_v35  ;;  %v668_v38 = vpop.xlane.xlu0 %667  ;;  %729 = vadd.xlane.f32.xlu1 %v1986_v33  ;;  %v790_v32 = vld [vmem:[#allocation2 + $0x18] sm:$0xff] }
 0x1df   : > { %1709 = vpow2.f32 %v711_v36  ;;  %v713_v39 = vmul.f32 1.442695, %v686_v37  ;;  %v687_v40 = vsub.f32 %v1954_v54, %v668_v38  ;;  %v1994_v41 = vpop.eup %1699  ;;  %1589 = vmatprep.subr.bf16.mxu1 %v1684_v51 }
 0x1e0   : > { %v670_v42 = vpop.xlane.xlu1 %669  ;;  %1590 = vmatpush3.bf16.msra.mxu1 %v1684_v51  ;;  %v795_v51 = vld [vmem:[#allocation2 + $0x40] sm:$0xff] }
 0x1e1   : > { %v1996_v43 = vpop.eup %1701  ;;  %v715_v44 = vmul.f32 1.442695, %v687_v40  ;;  %v688_v45 = vsub.f32 %v1958_v56, %v670_v42  ;;  %1711 = vpow2.f32 %v713_v39  ;;  %1591 = vmatprep.subr.bf16.mxu1 %v1685_v59  ;;  %v793_v39 = vld [vmem:[#allocation2 + $0x30] sm:$0xff] }
 0x1e2   : > { %735 = vadd.xlane.f32.xlu0 %v1996_v43  ;;  %v672_v46 = vpop.xlane.xlu0 %671  ;;  %733 = vadd.xlane.f32.xlu1 %v1994_v41 }
 0x1e3   : > { %1713 = vpow2.f32 %v715_v44  ;;  %v717_v47 = vmul.f32 1.442695, %v688_v45  ;;  %v689_v48 = vsub.f32 %v1962_v57, %v672_v46  ;;  %v2002_v49 = vpop.eup %1703  ;;  %v792_v45 = vld [vmem:[#allocation2 + $0x28] sm:$0xff] }
 0x1e4   : > { %v674_v50 = vpop.xlane.xlu1 %673  ;;  %1592 = vmatpush3.bf16.msra.mxu1 %v1685_v59  ;;  %v794_v59 = vld [vmem:[#allocation2 + $0x38] sm:$0xff] }
 0x1e5   : > { %v2005_v52 = vpop.eup %1705  ;;  %v719_v53 = vmul.f32 1.442695, %v689_v48  ;;  %v690_v54 = vsub.f32 %v1966_v58, %v674_v50  ;;  %1715 = vpow2.f32 %v717_v47  ;;  %1593 = vmatprep.subr.bf16.mxu1 %v1686_v61 }
 0x1e6   : > { %739 = vadd.xlane.f32.xlu0 %v2005_v52  ;;  %737 = vadd.xlane.f32.xlu1 %v2002_v49 }
 0x1e7   : > { %1717 = vpow2.f32 %v719_v53  ;;  %v721_v55 = vmul.f32 1.442695, %v690_v54  ;;  %v2010_v56 = vpop.eup %1707 }
 0x1e8   : > { %1594 = vmatpush3.bf16.msra.mxu1 %v1686_v61 }
 0x1e9   : > { %v2012_v57 = vpop.eup %1709  ;;  %1719 = vpow2.f32 %v721_v55  ;;  %1595 = vmatprep.subr.bf16.mxu1 %v1687_v0 }
 0x1ea   : > { %743 = vadd.xlane.f32.xlu0 %v2012_v57  ;;  %741 = vadd.xlane.f32.xlu1 %v2010_v56 }
 0x1eb   : > { %v2017_v58 = vpop.eup %1711 }
 0x1ec   : > { %1596 = vmatpush3.bf16.msra.mxu1 %v1687_v0 }
 0x1ed   : > { %v2019_v60 = vpop.eup %1713  ;;  %1597 = vmatprep.subr.bf16.mxu1 %v1688_v2 }
 0x1ee   : > { %747 = vadd.xlane.f32.xlu0 %v2019_v60  ;;  %745 = vadd.xlane.f32.xlu1 %v2017_v58 }
 0x1ef   : > { %v2024_v62 = vpop.eup %1715 }
 0x1f0   : > { %1598 = vmatpush3.bf16.msra.mxu1 %v1688_v2 }
 0x1f1   : > { %v2026_v63 = vpop.eup %1717 }
 0x1f2   : > { %751 = vadd.xlane.f32.xlu0 %v2026_v63  ;;  %749 = vadd.xlane.f32.xlu1 %v2024_v62 }
 0x1f3   : > { %v2031_v1 = vpop.eup %1719 }
 0x1f6   : > { %753 = vadd.xlane.f32.xlu1 %v2031_v1 }
 0x263   : > { %v724_v3 = vpop.xlane.xlu0 %723 }
 0x264   : > { %1721 = vrcp.f32 %v724_v3 }
 0x267   : > { %v728_v4 = vpop.xlane.xlu0 %727  ;;  %v726_v5 = vpop.xlane.xlu1 %725 }
 0x268   : > { %1723 = vrcp.f32 %v728_v4  ;;  %v797_v4 = vld [vmem:[#allocation2 + $0x50] sm:$0xff] }
 0x269   : > { %1725 = vrcp.f32 %v726_v5 }
 0x26b   : > { %v732_v6 = vpop.xlane.xlu0 %731  ;;  %v730_v7 = vpop.xlane.xlu1 %729 }
 0x26c   : > { %1727 = vrcp.f32 %v732_v6 }
 0x26d   : > { %1729 = vrcp.f32 %v730_v7  ;;  %v796_v7 = vld [vmem:[#allocation2 + $0x48] sm:$0xff] }
 0x26e   : > { %v1722_v8 = vpop.eup %1721 }
 0x26f   : > { %v736_v10 = vpop.xlane.xlu0 %735  ;;  %v734_v11 = vpop.xlane.xlu1 %733  ;;  %v771_v12 = vmul.f32 %v1722_v8, %v1973_v19 }
 0x270   : > { %1731 = vrcp.f32 %v736_v10 }
 0x271   : > { %1733 = vrcp.f32 %v734_v11  ;;  %v803_v13 = vadd.f32 %v787_v9, %v771_v12 }
 0x272   : > { %v1724_v14 = vpop.eup %1723 }
 0x273   : > { %v1726_v16 = vpop.eup %1725  ;;  %v740_v17 = vpop.xlane.xlu0 %739  ;;  %819 = vst [vmem:[#allocation2] sm:$0xff] %v803_v13  ;;  %v773_v21 = vmul.f32 %v1724_v14, %v1978_v25  ;;  %v798_v14 = vld [vmem:[#allocation2 + $0x58] sm:$0xff] }
 0x274   : > { %v738_v18 = vpop.xlane.xlu1 %737  ;;  %1735 = vrcp.f32 %v740_v17  ;;  %v772_v22 = vmul.f32 %v1726_v16, %v1980_v27 }
 0x275   : > { %1737 = vrcp.f32 %v738_v18  ;;  %v805_v23 = vadd.f32 %v789_v15, %v773_v21 }
 0x276   : > { %v1728_v24 = vpop.eup %1727  ;;  %v804_v26 = vadd.f32 %v788_v20, %v772_v22  ;;  %v835_v19 = vpack.c.bf16 %v772_v22, %v771_v12  ;;  %v799_v12 = vld [vmem:[#allocation2 + $0x60] sm:$0xff]  ;;  %v800_v22 = vld [vmem:[#allocation2 + $0x68] sm:$0xff] }
 0x277   : > { %v1730_v29 = vpop.eup %1729  ;;  %v744_v30 = vpop.xlane.xlu0 %743  ;;  %821 = vst [vmem:[#allocation2 + $0x10] sm:$0xff] %v805_v23  ;;  %v775_v34 = vmul.f32 %v1728_v24, %v1988_v35 }
 0x278   : > { %v742_v31 = vpop.xlane.xlu1 %741  ;;  %1739 = vrcp.f32 %v744_v30  ;;  %820 = vst [vmem:[#allocation2 + $0x8] sm:$0xff] %v804_v26  ;;  %1599 = vmatprep.mubr.bf16.mxu1 %v835_v19  ;;  %v774_v25 = vmul.f32 %v1730_v29, %v1986_v33 }
 0x279   : > { %1741 = vrcp.f32 %v742_v31  ;;  %v807_v27 = vadd.f32 %v791_v28, %v775_v34 }
 0x27a   : > { %v1732_v36 = vpop.eup %1731  ;;  %v806_v37 = vadd.f32 %v790_v32, %v774_v25  ;;  %v836_v38 = vpack.c.bf16 %v774_v25, %v773_v21  ;;  %v801_v21 = vld [vmem:[#allocation2 + $0x70] sm:$0xff] }
 0x27b   : > { %v1734_v40 = vpop.eup %1733  ;;  %v748_v42 = vpop.xlane.xlu0 %747  ;;  %823 = vst [vmem:[#allocation2 + $0x20] sm:$0xff] %v807_v27  ;;  %v777_v46 = vmul.f32 %v1732_v36, %v1996_v43 }
 0x27c   : > { %v746_v44 = vpop.xlane.xlu1 %745  ;;  %1743 = vrcp.f32 %v748_v42  ;;  %822 = vst [vmem:[#allocation2 + $0x18] sm:$0xff] %v806_v37  ;;  %1600 = vmatmul.mubr.bf16.vlgmr.msra.gmra.mrb[0].mxu1 %v836_v38  ;;  %v776_v35 = vmul.f32 %v1734_v40, %v1994_v41 }
 0x27d   : > { %1745 = vrcp.f32 %v746_v44  ;;  %v809_v33 = vadd.f32 %v793_v39, %v777_v46 }
 0x27e   : > { %v1736_v47 = vpop.eup %1735  ;;  %v808_v48 = vadd.f32 %v792_v45, %v776_v35  ;;  %v837_v50 = vpack.c.bf16 %v776_v35, %v775_v34 }
 0x27f   : > { %v1738_v53 = vpop.eup %1737  ;;  %v752_v54 = vpop.xlane.xlu0 %751  ;;  %825 = vst [vmem:[#allocation2 + $0x30] sm:$0xff] %v809_v33  ;;  %v779_v61 = vmul.f32 %v1736_v47, %v2005_v52 }
 0x280   : > { %v750_v55 = vpop.xlane.xlu1 %749  ;;  %1747 = vrcp.f32 %v752_v54  ;;  %824 = vst [vmem:[#allocation2 + $0x28] sm:$0xff] %v808_v48  ;;  %1603 = vmatprep.mubr.bf16.mxu1 %v837_v50  ;;  %v778_v43 = vmul.f32 %v1738_v53, %v2002_v49 }
 0x281   : > { %1749 = vrcp.f32 %v750_v55  ;;  %v811_v41 = vadd.f32 %v795_v51, %v779_v61 }
 0x282   : > { %v1740_v0 = vpop.eup %1739  ;;  %v810_v2 = vadd.f32 %v794_v59, %v778_v43  ;;  %v838_v3 = vpack.c.bf16 %v778_v43, %v777_v46 }
 0x283   : > { %v1742_v5 = vpop.eup %1741  ;;  %827 = vst [vmem:[#allocation2 + $0x40] sm:$0xff] %v811_v41  ;;  %v781_v8 = vmul.f32 %v1740_v0, %v2012_v57 }
 0x284   : > { %v754_v6 = vpop.xlane.xlu1 %753  ;;  %826 = vst [vmem:[#allocation2 + $0x38] sm:$0xff] %v810_v2  ;;  %1604 = vmatmul.mubr.bf16.gmra.mrb[4].mxu1 %v838_v3  ;;  %v780_v52 = vmul.f32 %v1742_v5, %v2010_v56  ;;  %v1074_v5 = vld [vmem:[#allocation2 + $0x8] sm:$0xff] (!%p1420_p11) }
 0x285   : > { %1751 = vrcp.f32 %v754_v6  ;;  %v813_v9 = vadd.f32 %v797_v4, %v781_v8  ;;  %v1073_v4 = vld [vmem:[#allocation2] sm:$0xff] (!%p1420_p11)  ;;  %v1075_v6 = vld [vmem:[#allocation2 + $0x10] sm:$0xff] (!%p1420_p11) }
 0x286   : > { %v1744_v10 = vpop.eup %1743  ;;  %v812_v49 = vadd.f32 %v796_v7, %v780_v52  ;;  %v839_v11 = vpack.c.bf16 %v780_v52, %v779_v61  ;;  %v1089_v7 = vmul.f32 (!%p1420_p11), 0.25, %v1073_v4  ;;  %v1076_v52 = vld [vmem:[#allocation2 + $0x18] sm:$0xff] (!%p1420_p11) }
 0x287   : > { %v1746_v13 = vpop.eup %1745  ;;  %829 = vst [vmem:[#allocation2 + $0x50] sm:$0xff] %v813_v9  ;;  %v783_v15 = vmul.f32 %v1744_v10, %v2019_v60  ;;  %v1091_v9 = vmul.f32 (!%p1420_p11), 0.25, %v1075_v6  ;;  %v1077_v10 = vld [vmem:[#allocation2 + $0x20] sm:$0xff] (!%p1420_p11) }
 0x288   : > { %828 = vst [vmem:[#allocation2 + $0x48] sm:$0xff] %v812_v49  ;;  %1607 = vmatprep.mubr.bf16.mxu1 %v839_v11  ;;  %v782_v16 = vmul.f32 %v1746_v13, %v2017_v58  ;;  %v802_v58 = vld [vmem:[#allocation2 + $0x78] sm:$0xff]  ;;  %v1078_v49 = vld [vmem:[#allocation2 + $0x28] sm:$0xff] (!%p1420_p11)  ;;  %v1092_v11 = vmul.f32 (!%p1420_p11), 0.25, %v1076_v52 }
 0x289   : > { %v815_v57 = vadd.f32 %v799_v12, %v783_v15  ;;  %v1093_v12 = vmul.f32 (!%p1420_p11), 0.25, %v1077_v10  ;;  %v1094_v13 = vmul.f32 (!%p1420_p11), 0.25, %v1078_v49 }
 0x28a   : > { %v1748_v17 = vpop.eup %1747  ;;  %v814_v18 = vadd.f32 %v798_v14, %v782_v16  ;;  %v840_v20 = vpack.c.bf16 %v782_v16, %v781_v8  ;;  %v1090_v8 = vmul.f32 (!%p1420_p11), 0.25, %v1074_v5  ;;  %v1079_v14 = vld [vmem:[#allocation2 + $0x30] sm:$0xff] (!%p1420_p11)  ;;  %v1081_v16 = vld [vmem:[#allocation2 + $0x40] sm:$0xff] (!%p1420_p11) }
 0x28b   : > { %v1750_v56 = vpop.eup %1749  ;;  %831 = vst [vmem:[#allocation2 + $0x60] sm:$0xff] %v815_v57  ;;  %v785_v23 = vmul.f32 %v1748_v17, %v2026_v63  ;;  %v1095_v17 = vmul.f32 (!%p1420_p11), 0.25, %v1079_v14 }
 0x28c   : > { %830 = vst [vmem:[#allocation2 + $0x58] sm:$0xff] %v814_v18  ;;  %1608 = vmatmul.mubr.bf16.gmra.mrb[8].mxu1 %v840_v20  ;;  %v784_v24 = vmul.f32 %v1750_v56, %v2024_v62  ;;  %v1475_v57 = vpack.c.bf16 (!%p1420_p11), %v1090_v8, %v1089_v7 }
 0x28d   : > { %v817_v26 = vadd.f32 %v801_v21, %v785_v23  ;;  %v1097_v21 = vmul.f32 (!%p1420_p11), 0.25, %v1081_v16 }
 0x28e   : > { %v816_v19 = vadd.f32 %v800_v22, %v784_v24  ;;  %v841_v28 = vpack.c.bf16 %v784_v24, %v783_v15  ;;  %v1080_v15 = vld [vmem:[#allocation2 + $0x38] sm:$0xff] (!%p1420_p11)  ;;  %v1083_v56 = vld [vmem:[#allocation2 + $0x50] sm:$0xff] (!%p1420_p11)  ;;  %v1485_v24 = vpack.c.bf16 (!%p1420_p11), %v1094_v13, %v1093_v12  ;;  %1476 = vst [vmem:[%s1863_s9] sm:$0xff] (!%p1420_p11), %v1475_v57  }
 0x28f   : > { %v1752_v60 = vpop.eup %1751  ;;  %833 = vst [vmem:[#allocation2 + $0x70] sm:$0xff] %v817_v26  ;;  %v1096_v18 = vmul.f32 (!%p1420_p11), 0.25, %v1080_v15  ;;  %v1082_v20 = vld [vmem:[#allocation2 + $0x48] sm:$0xff] (!%p1420_p11) }
 0x290   : > { %v786_v29 = vmul.f32 %v1752_v60, %v2031_v1  ;;  %832 = vst [vmem:[#allocation2 + $0x68] sm:$0xff] %v816_v19  ;;  %1611 = vmatprep.mubr.bf16.mxu1 %v841_v28  ;;  %v1098_v26 = vmul.f32 (!%p1420_p11), 0.25, %v1082_v20  ;;  %v1099_v60 = vmul.f32 (!%p1420_p11), 0.25, %v1083_v56  ;;  %1513 = vst [vmem:[%s1863_s9 + $0x10] sm:$0xff] (!%p1420_p11), %v1485_v24  }
 0x292   : > { %v818_v30 = vadd.f32 %v802_v58, %v786_v29  ;;  %v842_v63 = vpack.c.bf16 %v786_v29, %v785_v23  ;;  %v1480_v23 = vpack.c.bf16 (!%p1420_p11), %v1092_v11, %v1091_v9  ;;  %v1085_v19 = vld [vmem:[#allocation2 + $0x60] sm:$0xff] (!%p1420_p11)  ;;  %v1490_v29 = vpack.c.bf16 (!%p1420_p11), %v1096_v18, %v1095_v17 }
 0x293   : > { %v1084_v22 = vld [vmem:[#allocation2 + $0x58] sm:$0xff] (!%p1420_p11) }
 0x294   : > { %834 = vst [vmem:[#allocation2 + $0x78] sm:$0xff] %v818_v30  ;;  %1612 = vmatmul.mubr.bf16.gmra.mrb[12].mxu1 %v842_v63  ;;  %v1100_v30 = vmul.f32 (!%p1420_p11), 0.25, %v1084_v22  ;;  %v1101_v63 = vmul.f32 (!%p1420_p11), 0.25, %v1085_v19  ;;  %1512 = vst [vmem:[%s1863_s9 + $0x8] sm:$0xff] (!%p1420_p11), %v1480_v23  }
 0x295   : > { %1514 = vst [vmem:[%s1863_s9 + $0x18] sm:$0xff] (!%p1420_p11), %v1490_v29  }
 0x296   : > { %v1087_v58 = vld [vmem:[#allocation2 + $0x70] sm:$0xff] (!%p1420_p11) }
 0x297   : > { %v1086_v28 = vld [vmem:[#allocation2 + $0x68] sm:$0xff] (!%p1420_p11) }
 0x34f   : > { %v1601_v31 = vpop.f32.mrb[0].mxu1 }
 0x350   : > { %v1442_v62 = vpack.c.bf16 %v1601_v31, %v1601_v31  ;;  %v925_v32 = vpop.f32.mrb[1].mxu1  ;;  %v1102_v31 = vmul.f32 (!%p1420_p11), 0.25, %v1086_v28 }
 0x351   : > { %v1440_v34 = vpack.c.bf16 %v925_v32, %v925_v32  ;;  %v1602_v25 = vpop.f32.mrb[2].mxu1  ;;  %v1495_v32 = vpack.c.bf16 (!%p1420_p11), %v1098_v26, %v1097_v21 }
 0x352   : > { %1055 = vst.msk [vmem:[%s1880_s23 + $0x8] sm:$0xf] %vm1052_vm2, %v1442_v62  ;;  %v1443_v1 = vpack.c.bf16 %v1602_v25, %v1602_v25  ;;  %v928_v27 = vpop.f32.mrb[3].mxu1  ;;  %v1088_v62 = vld [vmem:[#allocation2 + $0x78] sm:$0xff] (!%p1420_p11) }
 0x353   : > { %1053 = vst.msk [vmem:[%s1880_s23] sm:$0xf] %vm1052_vm2, %v1440_v34  ;;  %v1441_v36 = vpack.c.bf16 %v928_v27, %v928_v27  ;;  %v1103_v34 = vmul.f32 (!%p1420_p11), 0.25, %v1087_v58  ;;  %v1104_v25 = vmul.f32 (!%p1420_p11), 0.25, %v1088_v62  ;;  %v1505_v27 = vpack.c.bf16 (!%p1420_p11), %v1102_v31, %v1101_v63  ;;  %1515 = vst [vmem:[%s1863_s9 + $0x20] sm:$0xff] (!%p1420_p11), %v1495_v32  }
 0x354   : > { %1056 = vst.msk [vmem:[%s1880_s23 + $0xc] sm:$0xf] %vm1052_vm2, %v1443_v1  ;;  %v1500_v1 = vpack.c.bf16 (!%p1420_p11), %v1100_v30, %v1099_v60 }
 0x355   : > { %1054 = vst.msk [vmem:[%s1880_s23 + $0x4] sm:$0xf] %vm1052_vm2, %v1441_v36  ;;  %v1510_v36 = vpack.c.bf16 (!%p1420_p11), %v1104_v25, %v1103_v34  ;;  %1517 = vst [vmem:[%s1863_s9 + $0x30] sm:$0xff] (!%p1420_p11), %v1505_v27  }
 0x356   : > { %1516 = vst [vmem:[%s1863_s9 + $0x28] sm:$0xff] (!%p1420_p11), %v1500_v1  }
 0x357   : > { %v1605_v37 = vpop.f32.mrb[4].mxu1  ;;  %1518 = vst [vmem:[%s1863_s9 + $0x38] sm:$0xff] (!%p1420_p11), %v1510_v36  }
 0x358   : > { %v1446_v38 = vpack.c.bf16 %v1605_v37, %v1605_v37  ;;  %v941_v39 = vpop.f32.mrb[5].mxu1 }
 0x359   : > { %v1444_v40 = vpack.c.bf16 %v941_v39, %v941_v39  ;;  %v1606_v42 = vpop.f32.mrb[6].mxu1 }
 0x35a   : > { %1059 = vst.msk [vmem:[%s1880_s23 + $0x18] sm:$0xf] %vm1052_vm2, %v1446_v38  ;;  %v1447_v44 = vpack.c.bf16 %v1606_v42, %v1606_v42  ;;  %v944_v45 = vpop.f32.mrb[7].mxu1 }
 0x35b   : > { %1057 = vst.msk [vmem:[%s1880_s23 + $0x10] sm:$0xf] %vm1052_vm2, %v1444_v40  ;;  %v1445_v46 = vpack.c.bf16 %v944_v45, %v944_v45 }
 0x35c   : > { %1060 = vst.msk [vmem:[%s1880_s23 + $0x1c] sm:$0xf] %vm1052_vm2, %v1447_v44 }
 0x35d   : > { %1058 = vst.msk [vmem:[%s1880_s23 + $0x14] sm:$0xf] %vm1052_vm2, %v1445_v46 }
 0x35f   : > { %v1609_v35 = vpop.f32.mrb[8].mxu1 }
 0x360   : > { %v1450_v33 = vpack.c.bf16 %v1609_v35, %v1609_v35  ;;  %v957_v47 = vpop.f32.mrb[9].mxu1 }
 0x361   : > { %v1448_v48 = vpack.c.bf16 %v957_v47, %v957_v47  ;;  %v1610_v50 = vpop.f32.mrb[10].mxu1 }
 0x362   : > { %1063 = vst.msk [vmem:[%s1880_s23 + $0x28] sm:$0xf] %vm1052_vm2, %v1450_v33  ;;  %v1451_v51 = vpack.c.bf16 %v1610_v50, %v1610_v50  ;;  %v960_v53 = vpop.f32.mrb[11].mxu1 }
 0x363   : > { %1061 = vst.msk [vmem:[%s1880_s23 + $0x20] sm:$0xf] %vm1052_vm2, %v1448_v48  ;;  %v1449_v54 = vpack.c.bf16 %v960_v53, %v960_v53 }
 0x364   : > { %1064 = vst.msk [vmem:[%s1880_s23 + $0x2c] sm:$0xf] %vm1052_vm2, %v1451_v51 }
 0x365   : > { %1062 = vst.msk [vmem:[%s1880_s23 + $0x24] sm:$0xf] %vm1052_vm2, %v1449_v54 }
 0x367   : > { %v1613_v55 = vpop.f32.mrb[12].mxu1  ;;  %1072 = sbr.rel (%p1420_p11) target bundleno = 878 (0x36e), region = 40 }
 0x368   : > { %v1454_v59 = vpack.c.bf16 %v1613_v55, %v1613_v55  ;;  %v973_v61 = vpop.f32.mrb[13].mxu1 }
 0x369   : > { %v1452_v43 = vpack.c.bf16 %v973_v61, %v973_v61  ;;  %v1614_v41 = vpop.f32.mrb[14].mxu1 }
 0x36a   : > { %1067 = vst.msk [vmem:[%s1880_s23 + $0x38] sm:$0xf] %vm1052_vm2, %v1454_v59  ;;  %v1455_v0 = vpack.c.bf16 %v1614_v41, %v1614_v41  ;;  %v976_v2 = vpop.f32.mrb[15].mxu1 }
 0x36b   : > { %1065 = vst.msk [vmem:[%s1880_s23 + $0x30] sm:$0xf] %vm1052_vm2, %v1452_v43  ;;  %v1453_v3 = vpack.c.bf16 %v976_v2, %v976_v2 }
 0x36c   : > { %1068 = vst.msk [vmem:[%s1880_s23 + $0x3c] sm:$0xf] %vm1052_vm2, %v1455_v0 }
 0x36d   : > { %1066 = vst.msk [vmem:[%s1880_s23 + $0x34] sm:$0xf] %vm1052_vm2, %v1453_v3 }
 0x36e PF: > { %s15_s19 = sadd.s32 1, %s1791_s19   ;;  %s2116_s15 = smov %s1783_s17 }
 0x36f   : > { %p12_p12 = scmp.ge.s32.totalorder %s15_s19, 10   ;;  %s2117_s16 = smov %s1787_s18 }
 0x370   : > { %s2118_s17 = smov %s2121_s20  ;;  %s2119_s18 = smov %s2125_s21 }
 0x371   :  { %14 = sbr.rel (!%p12_p12) target bundleno = 4 (0x4), region = 88 }

// kernel: ctran_forward.23
= control target key start
LH: loop header
LB: loop body
LE: loop exit
PB: predicated region body
PF: predicated region fallthrough
CT: control target
= control target key end

     0   :  { %vm19_vm0 = vcmask 261120   ;;  %v933_v1 = vmov 0.0   ;;  %vm720_vm1 = vcmask 257024   ;;  %s1253_s1 = inlined_call_operand.vmem [shape: bf16[32,32], index: 1, kind: input, shape index: {}]   ;;  %s1254_s0 = inlined_call_operand.vmem [shape: bf16[256,32], index: 0, kind: input, shape index: {}]   ;;  %s1255_s2 = inlined_call_operand.vmem [shape: f32[1,32], index: 2, kind: input, shape index: {}]   ;;  %s1256_s3 = inlined_call_operand.vmem [shape: bf16[256,32], index: 3, kind: output, shape index: {}]  }
   0x1   :  { %v915_v0 = vld [vmem:[%s1253_s1] sm:$0xff]   ;;  %22 = vst.msk [vmem:[#allocation2 + $0x10] sm:$0xff] %vm19_vm0, %v933_v1  ;;  %20 = vst.msk [vmem:[#allocation2] sm:$0xff] %vm19_vm0, %v933_v1  ;;  %v916_v2 = vld [vmem:[%s1253_s1 + $0x8] sm:$0xff]  }
   0x2   :  { %21 = vst.msk [vmem:[#allocation2 + $0x8] sm:$0xff] %vm19_vm0, %v933_v1  ;;  %23 = vst.msk [vmem:[#allocation2 + $0x18] sm:$0xff] %vm19_vm0, %v933_v1  ;;  %874 = vmatprep.subr.bf16.mxu0 %v915_v0  ;;  %910 = vmatprep.subr.bf16.mxu1 %v915_v0  ;;  %v917_v3 = vld [vmem:[%s1254_s0] sm:$0xff]   ;;  %v919_v5 = vld [vmem:[%s1254_s0 + $0x8] sm:$0xff]  }
   0x3   :  { %24 = vst.msk [vmem:[#allocation2 + $0x20] sm:$0xff] %vm19_vm0, %v933_v1  ;;  %25 = vst.msk [vmem:[#allocation2 + $0x28] sm:$0xff] %vm19_vm0, %v933_v1  ;;  %875 = vmatpush3.bf16.msra.mxu0 %v915_v0  ;;  %912 = vmatpush3.bf16.msra.mxu1 %v915_v0  ;;  %v918_v4 = vld [vmem:[%s1254_s0 + $0x40] sm:$0xff]   ;;  %v920_v6 = vld [vmem:[%s1254_s0 + $0x48] sm:$0xff]  }
   0x4   :  { %26 = vst.msk [vmem:[#allocation2 + $0x30] sm:$0xff] %vm19_vm0, %v933_v1  ;;  %27 = vst.msk [vmem:[#allocation2 + $0x38] sm:$0xff] %vm19_vm0, %v933_v1  ;;  %876 = vmatprep.subr.bf16.mxu0 %v916_v2  ;;  %911 = vmatprep.subr.bf16.mxu1 %v916_v2  ;;  %v921_v7 = vld [vmem:[%s1254_s0 + $0x10] sm:$0xff]   ;;  %v923_v9 = vld [vmem:[%s1254_s0 + $0x18] sm:$0xff]  }
   0x5   :  { %28 = vst.msk [vmem:[#allocation2 + $0x40] sm:$0xff] %vm19_vm0, %v933_v1  ;;  %29 = vst.msk [vmem:[#allocation2 + $0x48] sm:$0xff] %vm19_vm0, %v933_v1  ;;  %878 = vmatprep.mubr.msk.bf16.mxu0 %vm19_vm0, %v917_v3  ;;  %894 = vmatprep.mubr.msk.bf16.mxu1 %vm19_vm0, %v918_v4  ;;  %v922_v8 = vld [vmem:[%s1254_s0 + $0x50] sm:$0xff]   ;;  %v924_v10 = vld [vmem:[%s1254_s0 + $0x58] sm:$0xff]  }
   0x6   :  { %30 = vst.msk [vmem:[#allocation2 + $0x50] sm:$0xff] %vm19_vm0, %v933_v1  ;;  %31 = vst.msk [vmem:[#allocation2 + $0x58] sm:$0xff] %vm19_vm0, %v933_v1  ;;  %v925_v11 = vld [vmem:[%s1254_s0 + $0x20] sm:$0xff]   ;;  %v927_v13 = vld [vmem:[%s1254_s0 + $0x28] sm:$0xff]  }
   0x7   :  { %32 = vst.msk [vmem:[#allocation2 + $0x60] sm:$0xff] %vm19_vm0, %v933_v1  ;;  %33 = vst.msk [vmem:[#allocation2 + $0x68] sm:$0xff] %vm19_vm0, %v933_v1  ;;  %877 = vmatpush3.bf16.msra.mxu0 %v916_v2  ;;  %913 = vmatpush3.bf16.msra.mxu1 %v916_v2  ;;  %v926_v12 = vld [vmem:[%s1254_s0 + $0x60] sm:$0xff]   ;;  %v928_v14 = vld [vmem:[%s1254_s0 + $0x68] sm:$0xff]  }
   0x8   :  { %34 = vst.msk [vmem:[#allocation2 + $0x70] sm:$0xff] %vm19_vm0, %v933_v1  ;;  %35 = vst.msk [vmem:[#allocation2 + $0x78] sm:$0xff] %vm19_vm0, %v933_v1  ;;  %v929_v15 = vld [vmem:[%s1254_s0 + $0x30] sm:$0xff]   ;;  %v931_v17 = vld [vmem:[%s1254_s0 + $0x38] sm:$0xff]  }
   0x9   :  { %36 = vst.msk [vmem:[#allocation2 + $0x80] sm:$0xff] %vm19_vm0, %v933_v1  ;;  %37 = vst.msk [vmem:[#allocation2 + $0x88] sm:$0xff] %vm19_vm0, %v933_v1  ;;  %v930_v16 = vld [vmem:[%s1254_s0 + $0x70] sm:$0xff]   ;;  %v932_v18 = vld [vmem:[%s1254_s0 + $0x78] sm:$0xff]  }
   0xa   :  { %38 = vst.msk [vmem:[#allocation2 + $0x90] sm:$0xff] %vm19_vm0, %v933_v1  ;;  %39 = vst.msk [vmem:[#allocation2 + $0x98] sm:$0xff] %vm19_vm0, %v933_v1  ;;  %879 = vmatmul.mubr.msk.bf16.vlgmr.msra.gmra.mrb[0].mxu0 %vm19_vm0, %v919_v5  ;;  %895 = vmatmul.mubr.msk.bf16.vlgmr.msra.gmra.mrb[0].mxu1 %vm19_vm0, %v920_v6  ;;  %v54_v19 = vld [vmem:[#allocation2 + $0x10] sm:$0xff]  ;;  %v52_v21 = vld [vmem:[#allocation2] sm:$0xff] }
   0xb   :  { %40 = vst.msk [vmem:[#allocation2 + $0xa0] sm:$0xff] %vm19_vm0, %v933_v1  ;;  %41 = vst.msk [vmem:[#allocation2 + $0xa8] sm:$0xff] %vm19_vm0, %v933_v1  ;;  %882 = vmatprep.mubr.msk.bf16.mxu0 %vm19_vm0, %v921_v7  ;;  %898 = vmatprep.mubr.msk.bf16.mxu1 %vm19_vm0, %v922_v8  ;;  %v55_v25 = vld [vmem:[#allocation2 + $0x18] sm:$0xff]  ;;  %v53_v31 = vld [vmem:[#allocation2 + $0x8] sm:$0xff] }
   0xc   :  { %42 = vst.msk [vmem:[#allocation2 + $0xb0] sm:$0xff] %vm19_vm0, %v933_v1  ;;  %43 = vst.msk [vmem:[#allocation2 + $0xb8] sm:$0xff] %vm19_vm0, %v933_v1  ;;  %v58_v43 = vld [vmem:[#allocation2 + $0x30] sm:$0xff]  ;;  %v56_v45 = vld [vmem:[#allocation2 + $0x20] sm:$0xff] }
   0xd   :  { %44 = vst.msk [vmem:[#allocation2 + $0xc0] sm:$0xff] %vm19_vm0, %v933_v1  ;;  %45 = vst.msk [vmem:[#allocation2 + $0xc8] sm:$0xff] %vm19_vm0, %v933_v1  ;;  %v1067_v47 = vld [vmem:[%s1255_s2] ss:$0 sm:$0xff]  ;;  %v59_v50 = vld [vmem:[#allocation2 + $0x38] sm:$0xff] }
   0xe   :  { %46 = vst.msk [vmem:[#allocation2 + $0xd0] sm:$0xff] %vm19_vm0, %v933_v1  ;;  %47 = vst.msk [vmem:[#allocation2 + $0xd8] sm:$0xff] %vm19_vm0, %v933_v1  ;;  %v57_v56 = vld [vmem:[#allocation2 + $0x28] sm:$0xff] }
   0xf   :  { %48 = vst.msk [vmem:[#allocation2 + $0xe0] sm:$0xff] %vm19_vm0, %v933_v1  ;;  %49 = vst.msk [vmem:[#allocation2 + $0xe8] sm:$0xff] %vm19_vm0, %v933_v1 }
  0x10   :  { %50 = vst.msk [vmem:[#allocation2 + $0xf0] sm:$0xff] %vm19_vm0, %v933_v1  ;;  %51 = vst.msk [vmem:[#allocation2 + $0xf8] sm:$0xff] %vm19_vm0, %v933_v1  ;;  %v68_v22 = vld [vmem:[#allocation2 + $0x80] sm:$0xff]  ;;  %v69_v32 = vld [vmem:[#allocation2 + $0x88] sm:$0xff] }
  0x11   :  { %v70_v20 = vld [vmem:[#allocation2 + $0x90] sm:$0xff]  ;;  %v71_v26 = vld [vmem:[#allocation2 + $0x98] sm:$0xff] }
  0x12   :  { %883 = vmatmul.mubr.msk.bf16.gmra.mrb[4].mxu0 %vm19_vm0, %v923_v9  ;;  %899 = vmatmul.mubr.msk.bf16.gmra.mrb[4].mxu1 %vm19_vm0, %v924_v10  ;;  %v72_v46 = vld [vmem:[#allocation2 + $0xa0] sm:$0xff]  ;;  %v73_v57 = vld [vmem:[#allocation2 + $0xa8] sm:$0xff] }
  0x13   :  { %886 = vmatprep.mubr.msk.bf16.mxu0 %vm19_vm0, %v925_v11  ;;  %902 = vmatprep.mubr.msk.bf16.mxu1 %vm19_vm0, %v926_v12  ;;  %v74_v44 = vld [vmem:[#allocation2 + $0xb0] sm:$0xff]  ;;  %v75_v51 = vld [vmem:[#allocation2 + $0xb8] sm:$0xff] }
  0x1a   :  { %887 = vmatmul.mubr.msk.bf16.gmra.mrb[8].mxu0 %vm19_vm0, %v927_v13  ;;  %903 = vmatmul.mubr.msk.bf16.gmra.mrb[8].mxu1 %vm19_vm0, %v928_v14 }
  0x1b   :  { %890 = vmatprep.mubr.msk.bf16.mxu0 %vm19_vm0, %v929_v15  ;;  %906 = vmatprep.mubr.msk.bf16.mxu1 %vm19_vm0, %v930_v16 }
  0x22   :  { %891 = vmatmul.mubr.msk.bf16.gmra.mrb[12].mxu0 %vm19_vm0, %v931_v17  ;;  %907 = vmatmul.mubr.msk.bf16.gmra.mrb[12].mxu1 %vm19_vm0, %v932_v18 }
  0xdd   :  { %v880_v23 = vpop.f32.mrb[0].mxu0  ;;  %v896_v24 = vpop.f32.mrb[0].mxu1 }
  0xde   :  { %v424_v27 = vadd.f32 %v880_v23, %v54_v19  ;;  %v440_v28 = vadd.f32 %v896_v24, %v70_v20  ;;  %v295_v29 = vpop.f32.mrb[1].mxu0  ;;  %v359_v30 = vpop.f32.mrb[1].mxu1  ;;  %v62_v24 = vld [vmem:[#allocation2 + $0x50] sm:$0xff] }
  0xdf   :  { %v422_v33 = vadd.f32 %v295_v29, %v52_v21  ;;  %v438_v34 = vadd.f32 %v359_v30, %v68_v22  ;;  %v881_v35 = vpop.f32.mrb[2].mxu0  ;;  %v897_v36 = vpop.f32.mrb[2].mxu1  ;;  %v60_v30 = vld [vmem:[#allocation2 + $0x40] sm:$0xff] }
  0xe0   :  { %456 = vst.msk [vmem:[#allocation2 + $0x10] sm:$0xff] %vm19_vm0, %v424_v27  ;;  %472 = vst.msk [vmem:[#allocation2 + $0x90] sm:$0xff] %vm19_vm0, %v440_v28  ;;  %v425_v37 = vadd.f32 %v881_v35, %v55_v25  ;;  %v441_v38 = vadd.f32 %v897_v36, %v71_v26  ;;  %v298_v39 = vpop.f32.mrb[3].mxu0  ;;  %v362_v40 = vpop.f32.mrb[3].mxu1  ;;  %v78_v25 = vld [vmem:[#allocation2 + $0xd0] sm:$0xff] }
  0xe1   :  { %454 = vst.msk [vmem:[#allocation2] sm:$0xff] %vm19_vm0, %v422_v33  ;;  %470 = vst.msk [vmem:[#allocation2 + $0x80] sm:$0xff] %vm19_vm0, %v438_v34  ;;  %v423_v41 = vadd.f32 %v298_v39, %v53_v31  ;;  %v439_v42 = vadd.f32 %v362_v40, %v69_v32  ;;  %v76_v31 = vld [vmem:[#allocation2 + $0xc0] sm:$0xff]  ;;  %v79_v39 = vld [vmem:[#allocation2 + $0xd8] sm:$0xff] }
  0xe2   :  { %457 = vst.msk [vmem:[#allocation2 + $0x18] sm:$0xff] %vm19_vm0, %v425_v37  ;;  %473 = vst.msk [vmem:[#allocation2 + $0x98] sm:$0xff] %vm19_vm0, %v441_v38  ;;  %v63_v38 = vld [vmem:[#allocation2 + $0x58] sm:$0xff] }
  0xe3   :  { %455 = vst.msk [vmem:[#allocation2 + $0x8] sm:$0xff] %vm19_vm0, %v423_v41  ;;  %471 = vst.msk [vmem:[#allocation2 + $0x88] sm:$0xff] %vm19_vm0, %v439_v42 }
  0xe5   :  { %v884_v48 = vpop.f32.mrb[4].mxu0  ;;  %v900_v49 = vpop.f32.mrb[4].mxu1 }
  0xe6   :  { %v428_v52 = vadd.f32 %v884_v48, %v58_v43  ;;  %v444_v53 = vadd.f32 %v900_v49, %v74_v44  ;;  %v311_v54 = vpop.f32.mrb[5].mxu0  ;;  %v375_v55 = vpop.f32.mrb[5].mxu1  ;;  %v77_v48 = vld [vmem:[#allocation2 + $0xc8] sm:$0xff] }
  0xe7   :  { %v491_v58 = vld [vmem:[#allocation2 + $0x10] sm:$0xff]  ;;  %v426_v60 = vadd.f32 %v311_v54, %v56_v45  ;;  %v442_v61 = vadd.f32 %v375_v55, %v72_v46  ;;  %v885_v62 = vpop.f32.mrb[6].mxu0  ;;  %v901_v63 = vpop.f32.mrb[6].mxu1  ;;  %v61_v46 = vld [vmem:[#allocation2 + $0x48] sm:$0xff] }
  0xe8   :  { %v507_v59 = vld [vmem:[#allocation2 + $0x90] sm:$0xff]  ;;  %v530_v0 = vadd.f32 %v1067_v47, %v491_v58  ;;  %v489_v2 = vld [vmem:[#allocation2] sm:$0xff]  ;;  %460 = vst.msk [vmem:[#allocation2 + $0x30] sm:$0xff] %vm19_vm0, %v428_v52  ;;  %476 = vst.msk [vmem:[#allocation2 + $0xb0] sm:$0xff] %vm19_vm0, %v444_v53  ;;  %v429_v4 = vadd.f32 %v885_v62, %v59_v50  ;;  %v445_v5 = vadd.f32 %v901_v63, %v75_v51  ;;  %v314_v6 = vpop.f32.mrb[7].mxu0  ;;  %v378_v7 = vpop.f32.mrb[7].mxu1 }
  0xe9   :  { %v546_v1 = vadd.f32 %v1067_v47, %v507_v59  ;;  %v505_v3 = vld [vmem:[#allocation2 + $0x80] sm:$0xff]  ;;  %v528_v8 = vadd.f32 %v1067_v47, %v489_v2  ;;  %v492_v10 = vld [vmem:[#allocation2 + $0x18] sm:$0xff]  ;;  %458 = vst.msk [vmem:[#allocation2 + $0x20] sm:$0xff] %vm19_vm0, %v426_v60  ;;  %474 = vst.msk [vmem:[#allocation2 + $0xa0] sm:$0xff] %vm19_vm0, %v442_v61  ;;  %v427_v12 = vadd.f32 %v314_v6, %v57_v56 }
  0xea   :  { %v544_v9 = vadd.f32 %v1067_v47, %v505_v3  ;;  %v508_v11 = vld [vmem:[#allocation2 + $0x98] sm:$0xff]  ;;  %v443_v13 = vadd.f32 %v378_v7, %v73_v57  ;;  %v562_v14 = vmax.f32 %v530_v0, 0.0  ;;  %v531_v16 = vadd.f32 %v1067_v47, %v492_v10  ;;  %v490_v18 = vld [vmem:[#allocation2 + $0x8] sm:$0xff]  ;;  %461 = vst.msk [vmem:[#allocation2 + $0x38] sm:$0xff] %vm19_vm0, %v429_v4  ;;  %477 = vst.msk [vmem:[#allocation2 + $0xb8] sm:$0xff] %vm19_vm0, %v445_v5 }
  0xeb   :  { %v578_v15 = vmax.f32 %v546_v1, 0.0  ;;  %v547_v17 = vadd.f32 %v1067_v47, %v508_v11  ;;  %v506_v19 = vld [vmem:[#allocation2 + $0x88] sm:$0xff]  ;;  %v560_v20 = vmax.f32 %v528_v8, 0.0  ;;  %v529_v22 = vadd.f32 %v1067_v47, %v490_v18  ;;  %459 = vst.msk [vmem:[#allocation2 + $0x28] sm:$0xff] %vm19_vm0, %v427_v12  ;;  %v82_v18 = vld [vmem:[#allocation2 + $0xf0] sm:$0xff] }
  0xec   :  { %v576_v21 = vmax.f32 %v544_v9, 0.0  ;;  %v545_v23 = vadd.f32 %v1067_v47, %v506_v19  ;;  %475 = vst.msk [vmem:[#allocation2 + $0xa8] sm:$0xff] %vm19_vm0, %v443_v13  ;;  %v826_v26 = vpack.c.bf16 %v562_v14, %v562_v14  ;;  %v563_v28 = vmax.f32 %v531_v16, 0.0 }
  0xed   :  { %v842_v27 = vpack.c.bf16 %v578_v15, %v578_v15  ;;  %v579_v29 = vmax.f32 %v547_v17, 0.0  ;;  %v824_v32 = vpack.c.bf16 %v560_v20, %v560_v20  ;;  %v561_v34 = vmax.f32 %v529_v22, 0.0  ;;  %v888_v36 = vpop.f32.mrb[8].mxu0  ;;  %v904_v37 = vpop.f32.mrb[8].mxu1  ;;  %v66_v17 = vld [vmem:[#allocation2 + $0x70] sm:$0xff] }
  0xee   :  { %v840_v33 = vpack.c.bf16 %v576_v21, %v576_v21  ;;  %v577_v35 = vmax.f32 %v545_v23, 0.0  ;;  %723 = vst.msk [vmem:[%s1256_s3 + $0x8] sm:$0xf] %vm720_vm1, %v826_v26  ;;  %v827_v40 = vpack.c.bf16 %v563_v28, %v563_v28  ;;  %v432_v42 = vadd.f32 %v888_v36, %v62_v24  ;;  %v327_v44 = vpop.f32.mrb[9].mxu0  ;;  %v391_v45 = vpop.f32.mrb[9].mxu1  ;;  %v64_v23 = vld [vmem:[#allocation2 + $0x60] sm:$0xff] }
  0xef   :  { %739 = vst.msk [vmem:[%s1256_s3 + $0x48] sm:$0xf] %vm720_vm1, %v842_v27  ;;  %v843_v41 = vpack.c.bf16 %v579_v29, %v579_v29  ;;  %v448_v43 = vadd.f32 %v904_v37, %v78_v25  ;;  %721 = vst.msk [vmem:[%s1256_s3] sm:$0xf] %vm720_vm1, %v824_v32  ;;  %v825_v49 = vpack.c.bf16 %v561_v34, %v561_v34  ;;  %v495_v51 = vld [vmem:[#allocation2 + $0x30] sm:$0xff]  ;;  %v889_v55 = vpop.f32.mrb[10].mxu0 }
  0xf0   :  { %737 = vst.msk [vmem:[%s1256_s3 + $0x40] sm:$0xf] %vm720_vm1, %v840_v33  ;;  %v841_v50 = vpack.c.bf16 %v577_v35, %v577_v35  ;;  %v511_v52 = vld [vmem:[#allocation2 + $0xb0] sm:$0xff]  ;;  %v430_v53 = vadd.f32 %v327_v44, %v60_v30  ;;  %v446_v54 = vadd.f32 %v391_v45, %v76_v31  ;;  %v905_v56 = vpop.f32.mrb[10].mxu1  ;;  %724 = vst.msk [vmem:[%s1256_s3 + $0xc] sm:$0xf] %vm720_vm1, %v827_v40 }
  0xf1   :  { %740 = vst.msk [vmem:[%s1256_s3 + $0x4c] sm:$0xf] %vm720_vm1, %v843_v41  ;;  %v534_v57 = vadd.f32 %v1067_v47, %v495_v51  ;;  %v550_v58 = vadd.f32 %v1067_v47, %v511_v52  ;;  %v493_v59 = vld [vmem:[#allocation2 + $0x20] sm:$0xff]  ;;  %v433_v61 = vadd.f32 %v889_v55, %v63_v38  ;;  %v449_v62 = vadd.f32 %v905_v56, %v79_v39  ;;  %v330_v63 = vpop.f32.mrb[11].mxu0  ;;  %v394_v0 = vpop.f32.mrb[11].mxu1  ;;  %v496_v3 = vld [vmem:[#allocation2 + $0x38] sm:$0xff] }
  0xf2   :  { %v509_v60 = vld [vmem:[#allocation2 + $0xa0] sm:$0xff]  ;;  %464 = vst.msk [vmem:[#allocation2 + $0x50] sm:$0xff] %vm19_vm0, %v432_v42  ;;  %480 = vst.msk [vmem:[#allocation2 + $0xd0] sm:$0xff] %vm19_vm0, %v448_v43  ;;  %v532_v1 = vadd.f32 %v1067_v47, %v493_v59  ;;  %v512_v4 = vld [vmem:[#allocation2 + $0xb8] sm:$0xff]  ;;  %v431_v5 = vadd.f32 %v330_v63, %v61_v46  ;;  %v447_v6 = vadd.f32 %v394_v0, %v77_v48 }
  0xf3   :  { %722 = vst.msk [vmem:[%s1256_s3 + $0x4] sm:$0xf] %vm720_vm1, %v825_v49  ;;  %738 = vst.msk [vmem:[%s1256_s3 + $0x44] sm:$0xf] %vm720_vm1, %v841_v50  ;;  %v548_v2 = vadd.f32 %v1067_v47, %v509_v60  ;;  %v566_v7 = vmax.f32 %v534_v57, 0.0  ;;  %v582_v8 = vmax.f32 %v550_v58, 0.0  ;;  %v535_v9 = vadd.f32 %v1067_v47, %v496_v3 }
  0xf4   :  { %462 = vst.msk [vmem:[#allocation2 + $0x40] sm:$0xff] %vm19_vm0, %v430_v53  ;;  %478 = vst.msk [vmem:[#allocation2 + $0xc0] sm:$0xff] %vm19_vm0, %v446_v54  ;;  %v551_v10 = vadd.f32 %v1067_v47, %v512_v4  ;;  %v494_v11 = vld [vmem:[#allocation2 + $0x28] sm:$0xff]  ;;  %v564_v13 = vmax.f32 %v532_v1, 0.0  ;;  %v80_v24 = vld [vmem:[#allocation2 + $0xe0] sm:$0xff] }
  0xf5   :  { %v510_v12 = vld [vmem:[#allocation2 + $0xa8] sm:$0xff]  ;;  %465 = vst.msk [vmem:[#allocation2 + $0x58] sm:$0xff] %vm19_vm0, %v433_v61  ;;  %481 = vst.msk [vmem:[#allocation2 + $0xd8] sm:$0xff] %vm19_vm0, %v449_v62  ;;  %v580_v14 = vmax.f32 %v548_v2, 0.0  ;;  %v533_v15 = vadd.f32 %v1067_v47, %v494_v11  ;;  %v830_v19 = vpack.c.bf16 %v566_v7, %v566_v7  ;;  %v846_v20 = vpack.c.bf16 %v582_v8, %v582_v8  ;;  %v892_v29 = vpop.f32.mrb[12].mxu0  ;;  %v908_v30 = vpop.f32.mrb[12].mxu1 }
  0xf6   :  { %v549_v16 = vadd.f32 %v1067_v47, %v510_v12  ;;  %463 = vst.msk [vmem:[#allocation2 + $0x48] sm:$0xff] %vm19_vm0, %v431_v5  ;;  %479 = vst.msk [vmem:[#allocation2 + $0xc8] sm:$0xff] %vm19_vm0, %v447_v6  ;;  %v567_v21 = vmax.f32 %v535_v9, 0.0  ;;  %v583_v22 = vmax.f32 %v551_v10, 0.0  ;;  %v828_v25 = vpack.c.bf16 %v564_v13, %v564_v13  ;;  %v67_v31 = vld [vmem:[#allocation2 + $0x78] sm:$0xff]  ;;  %v343_v37 = vpop.f32.mrb[13].mxu0 }
  0xf7   :  { %v844_v26 = vpack.c.bf16 %v580_v14, %v580_v14  ;;  %v565_v27 = vmax.f32 %v533_v15, 0.0  ;;  %v83_v32 = vld [vmem:[#allocation2 + $0xf8] sm:$0xff]  ;;  %727 = vst.msk [vmem:[%s1256_s3 + $0x18] sm:$0xf] %vm720_vm1, %v830_v19  ;;  %743 = vst.msk [vmem:[%s1256_s3 + $0x58] sm:$0xf] %vm720_vm1, %v846_v20  ;;  %v436_v35 = vadd.f32 %v892_v29, %v66_v17  ;;  %v452_v36 = vadd.f32 %v908_v30, %v82_v18 }
  0xf8   :  { %v581_v28 = vmax.f32 %v549_v16, 0.0  ;;  %v831_v33 = vpack.c.bf16 %v567_v21, %v567_v21  ;;  %v847_v34 = vpack.c.bf16 %v583_v22, %v583_v22  ;;  %v407_v38 = vpop.f32.mrb[13].mxu1  ;;  %v65_v39 = vld [vmem:[#allocation2 + $0x68] sm:$0xff]  ;;  %725 = vst.msk [vmem:[%s1256_s3 + $0x10] sm:$0xf] %vm720_vm1, %v828_v25  ;;  %v434_v45 = vadd.f32 %v343_v37, %v64_v23  ;;  %v893_v48 = vpop.f32.mrb[14].mxu0 }
  0xf9   :  { %v81_v40 = vld [vmem:[#allocation2 + $0xe8] sm:$0xff]  ;;  %741 = vst.msk [vmem:[%s1256_s3 + $0x50] sm:$0xf] %vm720_vm1, %v844_v26  ;;  %v829_v41 = vpack.c.bf16 %v565_v27, %v565_v27  ;;  %v499_v43 = vld [vmem:[#allocation2 + $0x50] sm:$0xff]  ;;  %v450_v46 = vadd.f32 %v407_v38, %v80_v24  ;;  %v909_v49 = vpop.f32.mrb[14].mxu1  ;;  %v437_v54 = vadd.f32 %v893_v48, %v67_v31  ;;  %v346_v56 = vpop.f32.mrb[15].mxu0 }
  0xfa   :  { %v845_v42 = vpack.c.bf16 %v581_v28, %v581_v28  ;;  %v515_v44 = vld [vmem:[#allocation2 + $0xd0] sm:$0xff]  ;;  %728 = vst.msk [vmem:[%s1256_s3 + $0x1c] sm:$0xf] %vm720_vm1, %v831_v33  ;;  %744 = vst.msk [vmem:[%s1256_s3 + $0x5c] sm:$0xf] %vm720_vm1, %v847_v34  ;;  %v538_v50 = vadd.f32 %v1067_v47, %v499_v43  ;;  %v453_v55 = vadd.f32 %v909_v49, %v83_v32  ;;  %v410_v57 = vpop.f32.mrb[15].mxu1 }
  0xfb   :  { %v554_v51 = vadd.f32 %v1067_v47, %v515_v44  ;;  %v497_v52 = vld [vmem:[#allocation2 + $0x40] sm:$0xff]  ;;  %468 = vst.msk [vmem:[#allocation2 + $0x70] sm:$0xff] %vm19_vm0, %v436_v35  ;;  %484 = vst.msk [vmem:[#allocation2 + $0xf0] sm:$0xff] %vm19_vm0, %v452_v36  ;;  %v435_v62 = vadd.f32 %v346_v56, %v65_v39  ;;  %v451_v63 = vadd.f32 %v410_v57, %v81_v40 }
  0xfc   :  { %v513_v53 = vld [vmem:[#allocation2 + $0xc0] sm:$0xff]  ;;  %726 = vst.msk [vmem:[%s1256_s3 + $0x14] sm:$0xf] %vm720_vm1, %v829_v41  ;;  %742 = vst.msk [vmem:[%s1256_s3 + $0x54] sm:$0xf] %vm720_vm1, %v845_v42  ;;  %v536_v58 = vadd.f32 %v1067_v47, %v497_v52  ;;  %v500_v60 = vld [vmem:[#allocation2 + $0x58] sm:$0xff] }
  0xfd   :  { %v552_v59 = vadd.f32 %v1067_v47, %v513_v53  ;;  %v516_v61 = vld [vmem:[#allocation2 + $0xd8] sm:$0xff]  ;;  %466 = vst.msk [vmem:[#allocation2 + $0x60] sm:$0xff] %vm19_vm0, %v434_v45  ;;  %482 = vst.msk [vmem:[#allocation2 + $0xe0] sm:$0xff] %vm19_vm0, %v450_v46  ;;  %v570_v0 = vmax.f32 %v538_v50, 0.0  ;;  %v586_v1 = vmax.f32 %v554_v51, 0.0  ;;  %v539_v2 = vadd.f32 %v1067_v47, %v500_v60  ;;  %v498_v4 = vld [vmem:[#allocation2 + $0x48] sm:$0xff] }
  0xfe   :  { %v555_v3 = vadd.f32 %v1067_v47, %v516_v61  ;;  %v514_v5 = vld [vmem:[#allocation2 + $0xc8] sm:$0xff]  ;;  %469 = vst.msk [vmem:[#allocation2 + $0x78] sm:$0xff] %vm19_vm0, %v437_v54  ;;  %485 = vst.msk [vmem:[#allocation2 + $0xf8] sm:$0xff] %vm19_vm0, %v453_v55  ;;  %v568_v6 = vmax.f32 %v536_v58, 0.0  ;;  %v537_v8 = vadd.f32 %v1067_v47, %v498_v4 }
  0xff   :  { %v584_v7 = vmax.f32 %v552_v59, 0.0  ;;  %v553_v9 = vadd.f32 %v1067_v47, %v514_v5  ;;  %467 = vst.msk [vmem:[#allocation2 + $0x68] sm:$0xff] %vm19_vm0, %v435_v62  ;;  %483 = vst.msk [vmem:[#allocation2 + $0xe8] sm:$0xff] %vm19_vm0, %v451_v63  ;;  %v834_v10 = vpack.c.bf16 %v570_v0, %v570_v0  ;;  %v850_v11 = vpack.c.bf16 %v586_v1, %v586_v1 }
 0x100   :  { %v571_v12 = vmax.f32 %v539_v2, 0.0  ;;  %v587_v13 = vmax.f32 %v555_v3, 0.0  ;;  %v832_v14 = vpack.c.bf16 %v568_v6, %v568_v6  ;;  %v569_v16 = vmax.f32 %v537_v8, 0.0 }
 0x101   :  { %v848_v15 = vpack.c.bf16 %v584_v7, %v584_v7  ;;  %v585_v17 = vmax.f32 %v553_v9, 0.0  ;;  %731 = vst.msk [vmem:[%s1256_s3 + $0x28] sm:$0xf] %vm720_vm1, %v834_v10  ;;  %747 = vst.msk [vmem:[%s1256_s3 + $0x68] sm:$0xf] %vm720_vm1, %v850_v11 }
 0x102   :  { %v835_v18 = vpack.c.bf16 %v571_v12, %v571_v12  ;;  %v851_v19 = vpack.c.bf16 %v587_v13, %v587_v13  ;;  %729 = vst.msk [vmem:[%s1256_s3 + $0x20] sm:$0xf] %vm720_vm1, %v832_v14  ;;  %v833_v20 = vpack.c.bf16 %v569_v16, %v569_v16  ;;  %v503_v22 = vld [vmem:[#allocation2 + $0x70] sm:$0xff] }
 0x103   :  { %745 = vst.msk [vmem:[%s1256_s3 + $0x60] sm:$0xf] %vm720_vm1, %v848_v15  ;;  %v849_v21 = vpack.c.bf16 %v585_v17, %v585_v17  ;;  %v519_v23 = vld [vmem:[#allocation2 + $0xf0] sm:$0xff]  ;;  %v542_v24 = vadd.f32 %v1067_v47, %v503_v22 }
 0x104   :  { %732 = vst.msk [vmem:[%s1256_s3 + $0x2c] sm:$0xf] %vm720_vm1, %v835_v18  ;;  %748 = vst.msk [vmem:[%s1256_s3 + $0x6c] sm:$0xf] %vm720_vm1, %v851_v19  ;;  %v558_v25 = vadd.f32 %v1067_v47, %v519_v23  ;;  %v501_v26 = vld [vmem:[#allocation2 + $0x60] sm:$0xff] }
 0x105   :  { %v517_v27 = vld [vmem:[#allocation2 + $0xe0] sm:$0xff]  ;;  %730 = vst.msk [vmem:[%s1256_s3 + $0x24] sm:$0xf] %vm720_vm1, %v833_v20  ;;  %746 = vst.msk [vmem:[%s1256_s3 + $0x64] sm:$0xf] %vm720_vm1, %v849_v21  ;;  %v540_v28 = vadd.f32 %v1067_v47, %v501_v26  ;;  %v504_v30 = vld [vmem:[#allocation2 + $0x78] sm:$0xff] }
 0x106   :  { %v556_v29 = vadd.f32 %v1067_v47, %v517_v27  ;;  %v520_v31 = vld [vmem:[#allocation2 + $0xf8] sm:$0xff]  ;;  %v574_v32 = vmax.f32 %v542_v24, 0.0  ;;  %v590_v33 = vmax.f32 %v558_v25, 0.0  ;;  %v543_v34 = vadd.f32 %v1067_v47, %v504_v30  ;;  %v502_v36 = vld [vmem:[#allocation2 + $0x68] sm:$0xff] }
 0x107   :  { %v559_v35 = vadd.f32 %v1067_v47, %v520_v31  ;;  %v518_v37 = vld [vmem:[#allocation2 + $0xe8] sm:$0xff]  ;;  %v572_v38 = vmax.f32 %v540_v28, 0.0  ;;  %v541_v40 = vadd.f32 %v1067_v47, %v502_v36 }
 0x108   :  { %v588_v39 = vmax.f32 %v556_v29, 0.0  ;;  %v557_v41 = vadd.f32 %v1067_v47, %v518_v37  ;;  %v838_v42 = vpack.c.bf16 %v574_v32, %v574_v32  ;;  %v854_v43 = vpack.c.bf16 %v590_v33, %v590_v33 }
 0x109   :  { %v575_v44 = vmax.f32 %v543_v34, 0.0  ;;  %v591_v45 = vmax.f32 %v559_v35, 0.0  ;;  %v836_v46 = vpack.c.bf16 %v572_v38, %v572_v38  ;;  %v573_v49 = vmax.f32 %v541_v40, 0.0 }
 0x10a   :  { %v852_v48 = vpack.c.bf16 %v588_v39, %v588_v39  ;;  %v589_v50 = vmax.f32 %v557_v41, 0.0  ;;  %735 = vst.msk [vmem:[%s1256_s3 + $0x38] sm:$0xf] %vm720_vm1, %v838_v42  ;;  %751 = vst.msk [vmem:[%s1256_s3 + $0x78] sm:$0xf] %vm720_vm1, %v854_v43 }
 0x10b   :  { %v839_v51 = vpack.c.bf16 %v575_v44, %v575_v44  ;;  %v855_v47 = vpack.c.bf16 %v591_v45, %v591_v45  ;;  %733 = vst.msk [vmem:[%s1256_s3 + $0x30] sm:$0xf] %vm720_vm1, %v836_v46  ;;  %v837_v52 = vpack.c.bf16 %v573_v49, %v573_v49 }
 0x10c   :  { %749 = vst.msk [vmem:[%s1256_s3 + $0x70] sm:$0xf] %vm720_vm1, %v852_v48  ;;  %v853_v53 = vpack.c.bf16 %v589_v50, %v589_v50 }
 0x10d   :  { %736 = vst.msk [vmem:[%s1256_s3 + $0x3c] sm:$0xf] %vm720_vm1, %v839_v51  ;;  %752 = vst.msk [vmem:[%s1256_s3 + $0x7c] sm:$0xf] %vm720_vm1, %v855_v47 }
 0x10e   :  { %734 = vst.msk [vmem:[%s1256_s3 + $0x34] sm:$0xf] %vm720_vm1, %v837_v52  ;;  %750 = vst.msk [vmem:[%s1256_s3 + $0x74] sm:$0xf] %vm720_vm1, %v853_v53 }

// kernel: ctran_forward.35
= control target key start
LH: loop header
LB: loop body
LE: loop exit
PB: predicated region body
PF: predicated region fallthrough
CT: control target
= control target key end

     0   :  { %8 = vsyncpa [#allocation3], 0  ;;  %s508_s0 = inlined_call_operand.vmem [shape: bf16[2,8,32], index: 0, kind: input, shape index: {}]   ;;  %s509_s1 = inlined_call_operand.vmem [shape: f32[8,32], index: 1, kind: input, shape index: {}]   ;;  %s510_s2 = inlined_call_operand.vmem [shape: f32[1,8], index: 2, kind: input, shape index: {}]   ;;  %s511_s3 = inlined_call_operand.hbm [shape: f32[2,1,8], index: 3, kind: output, shape index: {}]  }
   0x1   :  { %10 = vsyncpa [#allocation3 + $0x1], 0  ;;  %s402_s12 = smov 0   ;;  %s404_s13 = smov 0  }
   0x2   :  { %s406_s14 = smov 0   ;;  %s408_s15 = smov 0  }
   0x3 LB: > { %s423_s16 = sadd.s32 4294967295, %s378_s15   ;;  %s265_s17 = sadd.s32 4294967294, %s378_s15   ;;  %s378_s15 = sphi %s408_s15, %s517_s15   ;;  %s374_s14 = sphi %s406_s14, %s516_s14   ;;  %s370_s13 = sphi %s404_s13, %s515_s13   ;;  %s366_s12 = sphi %s402_s12, %s514_s12  }
   0x4   : > { %s427_s18 = sadd.s32 1, %s378_s15   ;;  %s91_s19 = sadd.s32 1, %s374_s14 }
   0x5   : > { %s88_s20 = ssub.s32 %s378_s15, %s427_s18  ;;  %p101_p0 = scmp.ne.s32.totalorder %s374_s14, %s370_s13 }
   0x6   : > { %p89_p1 = scmp.eq.s32.totalorder %s88_s20, 0  ;;  %p102_p2 = scmp.eq.s32.totalorder %s423_s16, 1 }
   0x7   : > { %p107_p3 = scmp.ne.s32.totalorder %s370_s13, %s366_s12  ;;  %p108_p4 = scmp.eq.s32.totalorder %s265_s17, 1 }
   0x8   : > { %s438_s21 = scalar_select %p89_p1, %s374_s14, %s91_s19  }
   0x9   : > { %p440_p5 = por %p102_p2, %p101_p0  ;;  %p444_p6 = por %p108_p4, %p107_p3 }
   0xa   : > { %p268_p7 = scmp.ge.s32.totalorder %s378_s15, 1  ;;  %p139_p8 = scmp.lt.s32.totalorder %s378_s15, 3 }
   0xc   : > { %p140_p9 = pnand %p268_p7, %p139_p8 }
   0xd   : > { %p161_p10 = scmp.lt.s32.totalorder (!%p140_p9), %s423_s16, 1  ;;  %v167_v1 = vld [vmem:[%s509_s1] sm:$0xff] (!%p140_p9)  ;;  %vm169_vm0 = vcmask (!%p140_p9), 261120   ;;  %v380_v6 = vmov (!%p140_p9), 0   ;;  %v188_v10 = vlaneseq (!%p140_p9)  ;;  %s159_s6 = sand.u32 (!%p140_p9), 1, %s370_s13   ;;  %vm195_vm1 = vcmask (!%p140_p9), 57344  }
   0xe   : > { %143 = sbr.rel (%p140_p9) target bundleno = 323 (0x143), region = 32  ;;  %v270_v5 = vld [vmem:[%s510_s2] ss:$0 sm:$0xff] (!%p140_p9)  ;;  %314 = vset.pattern.permute.xlu1 (!%p140_p9), %v380_v6  ;;  %315 = vset.pattern.permute.xlu0 (!%p140_p9), %v380_v6  ;;  %s271_s7 = sshll.u32 (!%p140_p9), %s423_s16, 4 }
   0xf   : > { %v189_v11 = vand.u32 (!%p140_p9), 127, %v188_v10  ;;  %v191_v12 = vshrl.u32 (!%p140_p9), %v188_v10, 7  ;;  %s160_s8 = scalar_lea.vmem (!%p140_p9), [#allocation2], %s159_s6  ;;  %s466_s17 = scalar_lea.hbm (!%p140_p9), %s511_s3, %s271_s7 }
  0x10   : > { %s210_s9 = sshll.u32 (!%p140_p9), %s160_s8, 4  ;;  %s198_s19 = scalar_lea.sflag (!%p140_p9), [#allocation3], %s159_s6  ;;  %s468_s9 = int_to_ptr.vmem [resolvable:$true] %s210_s9 }
  0x11   : > { %v192_v13 = vsub.s32 (!%p140_p9), %v189_v11, %v191_v12  ;;  %s316_s20 = scalar_lea.vmem (!%p140_p9), %s468_s9, 16 }
  0x12   : > { %p317_p11 = scmp.ne.s32.totalorder (!%p140_p9), %s468_s9, %s316_s20 }
  0x14   : > { %p318_p12 = pnand (!%p140_p9), %p317_p11, %p440_p5 }
  0x15   : > { %s162_s24 = scalar_select %p161_p10, %s423_s16, 1 }
  0x16   : > { %p319_p13 = pneg %p318_p12  ;;  %s381_s16 = smov [#allocation2]  }
  0x17   : > { %s269_s25 = sshll.u32 %s162_s24, 2  ;;  %s320_s24 = sshll.u32 %s381_s16, 4  ;;  %s321_s24 = int_to_ptr.vmem [resolvable:$false] %s320_s24 }
  0x18   : > { %s164_s28 = scalar_lea.vmem %s508_s0, %s269_s25  ;;  %s322_s25 = scalar_lea.vmem %s321_s24, 32 }
  0x19   : > { %v165_v0 = vld [vmem:[%s164_s28] sm:$0xf]  ;;  %p323_p0 = scmp.lt.s32.totalorder %s468_s9, %s321_s24  ;;  %p324_p1 = scmp.lt.s32.totalorder %s322_s25, %s316_s20 }
  0x1a   : > { %v166_v2 = vunpack.c.l.bf16 %v165_v0 }
  0x1b   : > { %p325_p2 = por %p324_p1, %p323_p0 }
  0x1c   : > { %v168_v3 = vmul.f32 %v167_v1, %v166_v2 }
  0x1d   : > { %p326_p3 = pnand %p325_p2, %p319_p13 }
  0x1e   : > { %v170_v4 = vsel %vm169_vm0, %v168_v3, 0.0 }
  0x1f   : > { %171 = vadd.xlane.f32.xlu0 %v170_v4 }
  0x35   : > { %180 = vbcast.lane.b32.xlu0 %v270_v5, 256 }
  0xac   : > { %v172_v7 = vpop.xlane.xlu0 %171 }
  0xb0   : > { %v181_v8 = vpop.permute.xlu0 %180 }
  0xb1   : > { %v183_v9 = vadd.f32 %v181_v8, %v172_v7 }
  0xb3   : > { %186 = vperm.xlu1 %314, %v183_v9  }
 0x132   : > { %v187_v14 = vpop.permute.xlu1 %186 }
 0x133   : > { %v193_v15 = vrot.slane %v187_v14, %v192_v13 }
 0x135   : > { %196 = vst.msk [vmem:[%s160_s8] sm:$0x1] %vm195_vm1, %v193_v15 }
 0x136   : > { %329 = shalt.err (!%p326_p3)
}
 0x137   : > { %s330_s26 = scalar_lea.hbm %s466_s17, 16  ;;  %s334_s29 = scalar_lea.hbm %s511_s3, 32 }
 0x138   : > { %p331_p4 = scmp.ne.s32.totalorder %s466_s17, %s330_s26  ;;  %p335_p9 = scmp.lt.u32.totalorder %s466_s17, %s511_s3 }
 0x139   : > { %p336_p10 = scmp.lt.u32.totalorder %s334_s29, %s330_s26  ;;  %p338_p12 = scmp.lt.u32.totalorder %s330_s26, %s466_s17 }
 0x13a   : > { %p332_p7 = pnand %p331_p4, %p440_p5 }
 0x13b   : > { %p337_p11 = por %p336_p10, %p335_p9 }
 0x13c   : > { %p333_p8 = pneg %p332_p7 }
 0x13d   : > { %p339_p13 = por %p338_p12, %p337_p11 }
 0x13f   : > { %p340_p0 = pnand %p339_p13, %p333_p8 }
 0x141   : > { %343 = shalt.err (!%p340_p0)
}
 0x142   : > { %274 = dma.vmem_to_hbm [thread:$0]  (%p440_p5), %s468_s9, 16, %s466_s17, %s198_s19  }
 0x143 PF: > { %p280_p1 = scmp.ge.s32.totalorder %s378_s15, 2  ;;  %s222_s5 = sand.u32 1, %s366_s12  }
 0x144   : > { %s223_s6 = scalar_lea.sflag [#allocation3], %s222_s5 }
 0x145   : > { %p277_p2 = pnand %p280_p1, %p444_p6 }
 0x147   : > { %361 = dma.done.wait (!%p277_p2), %s223_s6, 16  }
 0x148   : > { %363 = vsyncadd (!%p277_p2), %s223_s6, 4294967280  ;;  %p13_p3 = scmp.ge.s32.totalorder %s427_s18, 4   ;;  %s514_s12 = smov %s370_s13 }
 0x149   : > { %s515_s13 = smov %s374_s14  ;;  %s516_s14 = smov %s438_s21 }
 0x14a   : > { %s517_s15 = smov %s427_s18  ;;  %15 = sbr.rel (!%p13_p3) target bundleno = 3 (0x3), region = 67 }
 0x151   :  { %227 = vsyncpa [#allocation3], 1 }
 0x152   :  { %229 = vsyncpa [#allocation3 + $0x1], 1 }

// kernel: ctran_forward.22
= control target key start
LH: loop header
LB: loop body
LE: loop exit
PB: predicated region body
PF: predicated region fallthrough
CT: control target
= control target key end

     0   :  { %s1392_s21 = smov 0   ;;  %s1394_s22 = smov 0   ;;  %s1788_s0 = inlined_call_operand.vmem [shape: bf16[2,4,128,8], index: 0, kind: input, shape index: {}]   ;;  %s1789_s1 = inlined_call_operand.vmem [shape: bf16[4,8,32], index: 1, kind: input, shape index: {}]   ;;  %s1790_s2 = inlined_call_operand.vmem [shape: f32[1,32], index: 2, kind: input, shape index: {}]   ;;  %s1791_s3 = inlined_call_operand.vmem [shape: bf16[2,128,32], index: 3, kind: input, shape index: {}]   ;;  %s1792_s4 = inlined_call_operand.vmem [shape: f32[1,32], index: 4, kind: input, shape index: {}]   ;;  %s1793_s5 = inlined_call_operand.vmem [shape: f32[1,32], index: 5, kind: input, shape index: {}]   ;;  %s1794_s6 = inlined_call_operand.vmem [shape: bf16[2,128,32], index: 6, kind: output, shape index: {}]  }
   0x1   :  { %s1396_s23 = smov 0   ;;  %s1398_s24 = smov 0  }
   0x2   :  { %s1400_s25 = smov 0  }
   0x3 LB: > { %s25_s26 = sadd.s32 1, %s1346_s23  ;;  %s28_s27 = sadd.s32 1, %s1350_s24  ;;  %s1354_s25 = sphi %s1400_s25, %s16_s25   ;;  %s1350_s24 = sphi %s1398_s24, %s1798_s24   ;;  %s1346_s23 = sphi %s1396_s23, %s1797_s23   ;;  %s1342_s22 = sphi %s1394_s22, %s1796_s22   ;;  %s1338_s21 = sphi %s1392_s21, %s1795_s21  }
   0x4   : > { %p26_p0 = scmp.ge.s32.totalorder %s25_s26, 4  ;;  %p1099_p1 = scmp.ge.s32.totalorder %s1354_s25, 1 }
   0x5   : > { %p249_p2 = scmp.lt.s32.totalorder %s1354_s25, 9 }
   0x6   : > { %s1800_s26 = smov (%p26_p0, %s25_s26), 0  ;;  %s1802_s27 = smov (!%p26_p0, %s28_s27), %s1350_s24 }
   0x7   : > { %p250_p3 = pnand %p1099_p1, %p249_p2  ;;  %p30_p4 = scmp.ge.s32.totalorder %s1802_s27, 2 }
   0x8   : > { %p292_p5 = scmp.lt.s32.totalorder (!%p250_p3), %s1342_s22, 1  ;;  %p294_p6 = scmp.lt.s32.totalorder (!%p250_p3), %s1338_s21, 3 }
   0x9   : > { %s1804_s27 = smov (%p30_p4, %s1802_s27), 0  ;;  %253 = sbr.rel (%p250_p3) target bundleno = 607 (0x25f), region = 44 }
   0xa   : > { %p1108_p7 = scmp.ne.s32.totalorder (!%p250_p3), %s1338_s21, 0 }
  0x10   : > { %s1806_s22 = smov (!%p292_p5, %s1342_s22), 1  ;;  %319 = sbr.rel (%p1108_p7) target bundleno = 27 (0x1b), region = 48 }
  0x11   : > { %s295_s28 = scalar_select %p294_p6, %s1338_s21, 3 }
  0x12   : > { %s1101_s29 = sshll.u32 %s1806_s22, 6  ;;  %vm320_vm0 = vcmask (!%p1108_p7), 261120   ;;  %v1356_v0 = vmov (!%p1108_p7), 0.0  }
  0x13   : > { %s1100_s30 = sshll.u32 %s295_s28, 4  ;;  %s1103_s7 = sshll.u32 %s295_s28, 2  ;;  %321 = vst.msk [vmem:[#allocation2] sm:$0xff] (!%p1108_p7), %vm320_vm0, %v1356_v0  ;;  %322 = vst.msk [vmem:[#allocation2 + $0x8] sm:$0xff] (!%p1108_p7), %vm320_vm0, %v1356_v0 }
  0x14   : > { %s298_s8 = sadd.s32 %s1101_s29, %s1100_s30  ;;  %s304_s11 = scalar_lea.vmem %s1789_s1, %s1103_s7  ;;  %323 = vst.msk [vmem:[#allocation2 + $0x10] sm:$0xff] (!%p1108_p7), %vm320_vm0, %v1356_v0  ;;  %324 = vst.msk [vmem:[#allocation2 + $0x18] sm:$0xff] (!%p1108_p7), %vm320_vm0, %v1356_v0 }
  0x15   : > { %s1102_s12 = sshll.u32 %s298_s8, 2  ;;  %s1432_s15 = scalar_lea.vmem %s1791_s3, %s1101_s29  ;;  %325 = vst.msk [vmem:[#allocation2 + $0x20] sm:$0xff] (!%p1108_p7), %vm320_vm0, %v1356_v0  ;;  %326 = vst.msk [vmem:[#allocation2 + $0x28] sm:$0xff] (!%p1108_p7), %vm320_vm0, %v1356_v0 }
  0x16   : > { %s1437_s18 = scalar_lea.vmem %s1788_s0, %s1102_s12  ;;  %s1442_s22 = scalar_lea.vmem %s1794_s6, %s1101_s29  ;;  %327 = vst.msk [vmem:[#allocation2 + $0x30] sm:$0xff] (!%p1108_p7), %vm320_vm0, %v1356_v0  ;;  %328 = vst.msk [vmem:[#allocation2 + $0x38] sm:$0xff] (!%p1108_p7), %vm320_vm0, %v1356_v0 }
  0x17   : > { %329 = vst.msk [vmem:[#allocation2 + $0x40] sm:$0xff] %vm320_vm0, %v1356_v0  ;;  %330 = vst.msk [vmem:[#allocation2 + $0x48] sm:$0xff] %vm320_vm0, %v1356_v0 }
  0x18   : > { %331 = vst.msk [vmem:[#allocation2 + $0x50] sm:$0xff] %vm320_vm0, %v1356_v0  ;;  %332 = vst.msk [vmem:[#allocation2 + $0x58] sm:$0xff] %vm320_vm0, %v1356_v0 }
  0x19   : > { %333 = vst.msk [vmem:[#allocation2 + $0x60] sm:$0xff] %vm320_vm0, %v1356_v0  ;;  %334 = vst.msk [vmem:[#allocation2 + $0x68] sm:$0xff] %vm320_vm0, %v1356_v0 }
  0x1a   : > { %335 = vst.msk [vmem:[#allocation2 + $0x70] sm:$0xff] %vm320_vm0, %v1356_v0  ;;  %336 = vst.msk [vmem:[#allocation2 + $0x78] sm:$0xff] %vm320_vm0, %v1356_v0 }
  0x1b PF: > { %v369_v1 = vld [vmem:[%s304_s11] sm:$0xf]  ;;  %vm435_vm1 = vcmask 1043456   ;;  %vm410_vm2 = vcmask 64512   ;;  %v1278_v5 = vld [vmem:[%s1437_s18 + $0x8] sm:$0xff]   ;;  %v1280_v7 = vld [vmem:[%s1437_s18 + $0x10] sm:$0xff]  }
  0x1c   : > { %v1276_v2 = vld [vmem:[%s1437_s18] sm:$0xff]   ;;  %1233 = vmatprep.subr.msk.bf16.mxu0 %vm435_vm1, %v369_v1  ;;  %1234 = vmatprep.subr.msk.bf16.mxu1 %vm435_vm1, %v369_v1  ;;  %v437_v3 = vsel %vm435_vm1, %v369_v1, 0  ;;  %v1279_v6 = vld [vmem:[%s1437_s18 + $0x28] sm:$0xff]   ;;  %v1281_v8 = vld [vmem:[%s1437_s18 + $0x30] sm:$0xff]   ;;  %vm552_vm3 = vcmask 261120   ;;  %p1125_p8 = scmp.ne.s32.totalorder %s1338_s21, 3 }
  0x1d   : > { %1214 = vmatpush3.bf16.msra.mxu0 %v437_v3  ;;  %1232 = vmatpush3.bf16.msra.mxu1 %v437_v3  ;;  %v1277_v4 = vld [vmem:[%s1437_s18 + $0x20] sm:$0xff]   ;;  %v1282_v9 = vld [vmem:[%s1437_s18 + $0x18] sm:$0xff]   ;;  %v1197_v1 = vld [vmem:[%s1432_s15 + $0x8] sm:$0xff] (!%p1125_p8)   ;;  %vm979_vm4 = vcmask (!%p1125_p8), 257024  }
  0x1e   : > { %1215 = vmatprep.mubr.msk.bf16.mxu0 %vm410_vm2, %v1276_v2  ;;  %1223 = vmatprep.mubr.msk.bf16.mxu1 %vm410_vm2, %v1277_v4  ;;  %v1283_v10 = vld [vmem:[%s1437_s18 + $0x38] sm:$0xff]   ;;  %v337_v13 = vld [vmem:[#allocation2] sm:$0xff]  ;;  %v338_v21 = vld [vmem:[#allocation2 + $0x8] sm:$0xff] }
  0x1f   : > { %v339_v11 = vld [vmem:[#allocation2 + $0x10] sm:$0xff]  ;;  %v340_v16 = vld [vmem:[#allocation2 + $0x18] sm:$0xff]  ;;  %v1497_v60 = vld [vmem:[%s1790_s2] ss:$0 sm:$0xff] (!%p1125_p8) }
  0x20   : > { %1216 = vmatmul.mubr.msk.bf16.vlgmr.msra.gmra.mrb[0].mxu0 %vm410_vm2, %v1278_v5  ;;  %1224 = vmatmul.mubr.msk.bf16.vlgmr.msra.gmra.mrb[0].mxu1 %vm410_vm2, %v1279_v6  ;;  %v347_v12 = vld [vmem:[#allocation2 + $0x50] sm:$0xff]  ;;  %v348_v20 = vld [vmem:[#allocation2 + $0x58] sm:$0xff]  ;;  %v341_v37 = vld [vmem:[#allocation2 + $0x20] sm:$0xff]  ;;  %v1171_v5 = vunpack.c.l.bf16 (!%p1125_p8), %v1197_v1 }
  0x21   : > { %1219 = vmatprep.mubr.msk.bf16.mxu0 %vm410_vm2, %v1280_v7  ;;  %1227 = vmatprep.mubr.msk.bf16.mxu1 %vm410_vm2, %v1281_v8  ;;  %v343_v35 = vld [vmem:[#allocation2 + $0x30] sm:$0xff]  ;;  %v349_v39 = vld [vmem:[#allocation2 + $0x60] sm:$0xff]  ;;  %v344_v40 = vld [vmem:[#allocation2 + $0x38] sm:$0xff]  ;;  %v1172_v8 = vunpack.c.h.bf16 (!%p1125_p8), %v1197_v1 }
  0x22   : > { %v345_v15 = vld [vmem:[#allocation2 + $0x40] sm:$0xff]  ;;  %v346_v26 = vld [vmem:[#allocation2 + $0x48] sm:$0xff]  ;;  %v351_v36 = vld [vmem:[#allocation2 + $0x70] sm:$0xff] }
  0x23   : > { %v352_v44 = vld [vmem:[#allocation2 + $0x78] sm:$0xff]  ;;  %v342_v45 = vld [vmem:[#allocation2 + $0x28] sm:$0xff]  ;;  %v1166_v61 = vld [vmem:[%s1432_s15] sm:$0xff] (!%p1125_p8)  }
  0x24   : > { %v350_v50 = vld [vmem:[#allocation2 + $0x68] sm:$0xff]  ;;  %v1167_v63 = vunpack.c.l.bf16 (!%p1125_p8), %v1166_v61  ;;  %v1168_v3 = vunpack.c.h.bf16 (!%p1125_p8), %v1166_v61 }
  0x28   : > { %1220 = vmatmul.mubr.msk.bf16.gmra.mrb[4].mxu0 %vm410_vm2, %v1282_v9  ;;  %1228 = vmatmul.mubr.msk.bf16.gmra.mrb[4].mxu1 %vm410_vm2, %v1283_v10  ;;  %v1198_v10 = vld [vmem:[%s1432_s15 + $0x10] sm:$0xff] (!%p1125_p8)  }
  0xf3   : > { %v1217_v14 = vpop.f32.mrb[0].mxu0  ;;  %v1225_v18 = vpop.f32.mrb[0].mxu1 }
  0xf4   : > { %v538_v17 = vadd.f32 %v1217_v14, %v339_v11  ;;  %v473_v19 = vpop.f32.mrb[1].mxu0  ;;  %v546_v22 = vadd.f32 %v1225_v18, %v347_v12  ;;  %v505_v24 = vpop.f32.mrb[1].mxu1  ;;  %v1175_v14 = vunpack.c.l.bf16 (!%p1125_p8), %v1198_v10 }
  0xf5   : > { %v536_v23 = vadd.f32 %v473_v19, %v337_v13  ;;  %v1218_v25 = vpop.f32.mrb[2].mxu0  ;;  %v544_v27 = vadd.f32 %v505_v24, %v345_v15  ;;  %v1226_v29 = vpop.f32.mrb[2].mxu1  ;;  %v1176_v19 = vunpack.c.h.bf16 (!%p1125_p8), %v1198_v10 }
  0xf6   : > { %555 = vst.msk [vmem:[#allocation2 + $0x10] sm:$0xff] %vm552_vm3, %v538_v17  ;;  %v539_v28 = vadd.f32 %v1218_v25, %v340_v16  ;;  %v476_v30 = vpop.f32.mrb[3].mxu0  ;;  %563 = vst.msk [vmem:[#allocation2 + $0x50] sm:$0xff] %vm552_vm3, %v546_v22  ;;  %v547_v31 = vadd.f32 %v1226_v29, %v348_v20  ;;  %v508_v33 = vpop.f32.mrb[3].mxu1 }
  0xf7   : > { %553 = vst.msk [vmem:[#allocation2] sm:$0xff] %vm552_vm3, %v536_v23  ;;  %v537_v32 = vadd.f32 %v476_v30, %v338_v21  ;;  %561 = vst.msk [vmem:[#allocation2 + $0x40] sm:$0xff] %vm552_vm3, %v544_v27  ;;  %v545_v34 = vadd.f32 %v508_v33, %v346_v26  ;;  %v1199_v21 = vld [vmem:[%s1432_s15 + $0x18] sm:$0xff] (!%p1125_p8)  }
  0xf8   : > { %556 = vst.msk [vmem:[#allocation2 + $0x18] sm:$0xff] %vm552_vm3, %v539_v28  ;;  %564 = vst.msk [vmem:[#allocation2 + $0x58] sm:$0xff] %vm552_vm3, %v547_v31  ;;  %v1179_v29 = vunpack.c.l.bf16 (!%p1125_p8), %v1199_v21  ;;  %v1180_v33 = vunpack.c.h.bf16 (!%p1125_p8), %v1199_v21 }
  0xf9   : > { %554 = vst.msk [vmem:[#allocation2 + $0x8] sm:$0xff] %vm552_vm3, %v537_v32  ;;  %562 = vst.msk [vmem:[#allocation2 + $0x48] sm:$0xff] %vm552_vm3, %v545_v34 }
  0xfb   : > { %v1221_v38 = vpop.f32.mrb[4].mxu0  ;;  %v1229_v42 = vpop.f32.mrb[4].mxu1  ;;  %572 = sbr.rel (%p1125_p8) target bundleno = 607 (0x25f), region = 52 }
  0xfc   : > { %v542_v41 = vadd.f32 %v1221_v38, %v343_v35  ;;  %v489_v43 = vpop.f32.mrb[5].mxu0  ;;  %v550_v46 = vadd.f32 %v1229_v42, %v351_v36  ;;  %v521_v48 = vpop.f32.mrb[5].mxu1  ;;  %v1200_v35 = vld [vmem:[%s1432_s15 + $0x20] sm:$0xff] (!%p1125_p8)  }
  0xfd   : > { %v540_v47 = vadd.f32 %v489_v43, %v341_v37  ;;  %v1222_v49 = vpop.f32.mrb[6].mxu0  ;;  %v548_v51 = vadd.f32 %v521_v48, %v349_v39  ;;  %v1230_v53 = vpop.f32.mrb[6].mxu1  ;;  %v575_v0 = vld [vmem:[#allocation2 + $0x10] sm:$0xff] (!%p1125_p8) }
  0xfe   : > { %559 = vst.msk [vmem:[#allocation2 + $0x30] sm:$0xff] %vm552_vm3, %v542_v41  ;;  %v543_v52 = vadd.f32 %v1222_v49, %v344_v40  ;;  %v492_v54 = vpop.f32.mrb[7].mxu0  ;;  %567 = vst.msk [vmem:[#allocation2 + $0x70] sm:$0xff] %vm552_vm3, %v550_v46  ;;  %v551_v55 = vadd.f32 %v1230_v53, %v352_v44  ;;  %v524_v57 = vpop.f32.mrb[7].mxu1  ;;  %v573_v59 = vld [vmem:[#allocation2] sm:$0xff] (!%p1125_p8)  ;;  %v598_v4 = vadd.f32 (!%p1125_p8), %v1497_v60, %v575_v0  ;;  %v1183_v40 = vunpack.c.l.bf16 (!%p1125_p8), %v1200_v35  ;;  %v1201_v46 = vld [vmem:[%s1432_s15 + $0x28] sm:$0xff] (!%p1125_p8)  }
  0xff   : > { %557 = vst.msk [vmem:[#allocation2 + $0x20] sm:$0xff] %vm552_vm3, %v540_v47  ;;  %v541_v56 = vadd.f32 %v492_v54, %v342_v45  ;;  %565 = vst.msk [vmem:[#allocation2 + $0x60] sm:$0xff] %vm552_vm3, %v548_v51  ;;  %v549_v58 = vadd.f32 %v524_v57, %v350_v50  ;;  %v596_v62 = vadd.f32 (!%p1125_p8), %v1497_v60, %v573_v59  ;;  %v576_v7 = vld [vmem:[#allocation2 + $0x18] sm:$0xff] (!%p1125_p8)  ;;  %v581_v34 = vld [vmem:[#allocation2 + $0x40] sm:$0xff] (!%p1125_p8)  ;;  %v1184_v44 = vunpack.c.h.bf16 (!%p1125_p8), %v1200_v35 }
 0x100   : > { %560 = vst.msk [vmem:[#allocation2 + $0x38] sm:$0xff] %vm552_vm3, %v543_v52  ;;  %568 = vst.msk [vmem:[#allocation2 + $0x78] sm:$0xff] %vm552_vm3, %v551_v55  ;;  %v574_v2 = vld [vmem:[#allocation2 + $0x8] sm:$0xff] (!%p1125_p8)  ;;  %v599_v12 = vadd.f32 (!%p1125_p8), %v1497_v60, %v576_v7  ;;  %v1509_v16 = vadd.f32 (!%p1125_p8), %v1171_v5, %v598_v4  ;;  %v604_v39 = vadd.f32 (!%p1125_p8), %v1497_v60, %v581_v34  ;;  %v583_v45 = vld [vmem:[#allocation2 + $0x50] sm:$0xff] (!%p1125_p8)  ;;  %v1187_v51 = vunpack.c.l.bf16 (!%p1125_p8), %v1201_v46 }
 0x101   : > { %558 = vst.msk [vmem:[#allocation2 + $0x28] sm:$0xff] %vm552_vm3, %v541_v56  ;;  %566 = vst.msk [vmem:[#allocation2 + $0x68] sm:$0xff] %vm552_vm3, %v549_v58  ;;  %v597_v6 = vadd.f32 (!%p1125_p8), %v1497_v60, %v574_v2  ;;  %v1505_v11 = vadd.f32 (!%p1125_p8), %v1167_v63, %v596_v62  ;;  %v582_v36 = vld [vmem:[#allocation2 + $0x48] sm:$0xff] (!%p1125_p8)  ;;  %v584_v47 = vld [vmem:[#allocation2 + $0x58] sm:$0xff] (!%p1125_p8)  ;;  %v606_v50 = vadd.f32 (!%p1125_p8), %v1497_v60, %v583_v45  ;;  %v1188_v55 = vunpack.c.h.bf16 (!%p1125_p8), %v1201_v46 }
 0x102   : > { %v1517_v23 = vadd.f32 %v1172_v8, %v599_v12  ;;  %v666_v25 = vsel %vm552_vm3, %v1509_v16, 0.0  ;;  %v605_v43 = vadd.f32 %v1497_v60, %v582_v36  ;;  %v1545_v49 = vadd.f32 %v1183_v40, %v604_v39  ;;  %v1202_v57 = vld [vmem:[%s1432_s15 + $0x30] sm:$0xff]   ;;  %v1203_v5 = vld [vmem:[%s1432_s15 + $0x38] sm:$0xff]  }
 0x103   : > { %v1511_v17 = vadd.f32 %v1168_v3, %v597_v6  ;;  %v660_v22 = vsel %vm552_vm3, %v1505_v11, 0.0  ;;  %667 = vadd.xlane.f32.xlu1 %v666_v25  ;;  %v607_v54 = vadd.f32 %v1497_v60, %v584_v47  ;;  %v1556_v61 = vadd.f32 %v1187_v51, %v606_v50 }
 0x104   : > { %661 = vadd.xlane.f32.xlu0 %v660_v22  ;;  %v669_v30 = vsel %vm552_vm3, %v1517_v23, 0.0  ;;  %v1550_v53 = vadd.f32 %v1184_v44, %v605_v43  ;;  %v684_v59 = vsel %vm552_vm3, %v1545_v49, 0.0  ;;  %v1191_v63 = vunpack.c.l.bf16 %v1202_v57 }
 0x105   : > { %v579_v20 = vld [vmem:[#allocation2 + $0x30] sm:$0xff]  ;;  %v663_v26 = vsel %vm552_vm3, %v1511_v17, 0.0  ;;  %v1561_v1 = vadd.f32 %v1188_v55, %v607_v54  ;;  %v1192_v3 = vunpack.c.h.bf16 %v1202_v57  ;;  %v690_v7 = vsel %vm552_vm3, %v1556_v61, 0.0 }
 0x106   : > { %v577_v9 = vld [vmem:[#allocation2 + $0x20] sm:$0xff]  ;;  %v602_v28 = vadd.f32 %v1497_v60, %v579_v20  ;;  %v687_v0 = vsel %vm552_vm3, %v1550_v53, 0.0  ;;  %v587_v4 = vld [vmem:[#allocation2 + $0x70] sm:$0xff]  ;;  %v1195_v10 = vunpack.c.l.bf16 %v1203_v5 }
 0x107   : > { %v600_v13 = vadd.f32 %v1497_v60, %v577_v9  ;;  %v580_v24 = vld [vmem:[#allocation2 + $0x38] sm:$0xff]  ;;  %670 = vadd.xlane.f32.xlu1 %v669_v30  ;;  %v585_v56 = vld [vmem:[#allocation2 + $0x60] sm:$0xff]  ;;  %v610_v9 = vadd.f32 %v1497_v60, %v587_v4  ;;  %v693_v12 = vsel %vm552_vm3, %v1561_v1, 0.0 }
 0x108   : > { %v578_v15 = vld [vmem:[#allocation2 + $0x28] sm:$0xff]  ;;  %v603_v32 = vadd.f32 %v1497_v60, %v580_v24  ;;  %664 = vadd.xlane.f32.xlu0 %v663_v26  ;;  %v1534_v38 = vadd.f32 %v1179_v29, %v602_v28  ;;  %v608_v62 = vadd.f32 %v1497_v60, %v585_v56  ;;  %v588_v6 = vld [vmem:[#allocation2 + $0x78] sm:$0xff] }
 0x109   : > { %v601_v18 = vadd.f32 %v1497_v60, %v578_v15  ;;  %v1523_v27 = vadd.f32 %v1175_v14, %v600_v13  ;;  %v586_v58 = vld [vmem:[#allocation2 + $0x68] sm:$0xff]  ;;  %v611_v14 = vadd.f32 %v1497_v60, %v588_v6  ;;  %v1196_v15 = vunpack.c.h.bf16 %v1203_v5 }
 0x10a   : > { %v1539_v42 = vadd.f32 %v1180_v33, %v603_v32  ;;  %v678_v48 = vsel %vm552_vm3, %v1534_v38, 0.0  ;;  %v609_v2 = vadd.f32 %v1497_v60, %v586_v58  ;;  %v1567_v8 = vadd.f32 %v1191_v63, %v608_v62 }
 0x10b   : > { %v1528_v31 = vadd.f32 %v1176_v19, %v601_v18  ;;  %v672_v37 = vsel %vm552_vm3, %v1523_v27, 0.0  ;;  %v1577_v19 = vadd.f32 %v1195_v10, %v610_v9  ;;  %v1581_v21 = vadd.f32 %v1196_v15, %v611_v14 }
 0x10c   : > { %673 = vadd.xlane.f32.xlu0 %v672_v37  ;;  %v681_v52 = vsel %vm552_vm3, %v1539_v42, 0.0  ;;  %v1572_v13 = vadd.f32 %v1192_v3, %v609_v2  ;;  %v696_v18 = vsel %vm552_vm3, %v1567_v8, 0.0 }
 0x10d   : > { %v675_v41 = vsel %vm552_vm3, %v1528_v31, 0.0  ;;  %v702_v22 = vsel %vm552_vm3, %v1577_v19, 0.0  ;;  %v705_v60 = vsel %vm552_vm3, %v1581_v21, 0.0 }
 0x10e   : > { %676 = vadd.xlane.f32.xlu1 %v675_v41  ;;  %v699_v20 = vsel %vm552_vm3, %v1572_v13, 0.0 }
 0x110   : > { %679 = vadd.xlane.f32.xlu0 %v678_v48 }
 0x112   : > { %682 = vadd.xlane.f32.xlu1 %v681_v52 }
 0x114   : > { %685 = vadd.xlane.f32.xlu0 %v684_v59 }
 0x116   : > { %688 = vadd.xlane.f32.xlu1 %v687_v0 }
 0x118   : > { %691 = vadd.xlane.f32.xlu0 %v690_v7 }
 0x11a   : > { %694 = vadd.xlane.f32.xlu1 %v693_v12 }
 0x11c   : > { %697 = vadd.xlane.f32.xlu0 %v696_v18 }
 0x11e   : > { %700 = vadd.xlane.f32.xlu1 %v699_v20 }
 0x120   : > { %703 = vadd.xlane.f32.xlu0 %v702_v22 }
 0x122   : > { %706 = vadd.xlane.f32.xlu1 %v705_v60 }
 0x190   : > { %v668_v26 = vpop.xlane.xlu1 %667 }
 0x191   : > { %v662_v24 = vpop.xlane.xlu0 %661  ;;  %v711_v28 = vmul.f32 0.03125, %v668_v26 }
 0x192   : > { %v709_v25 = vmul.f32 0.03125, %v662_v24 }
 0x193   : > { %v1591_v30 = vsub.f32 %v1509_v16, %v711_v28 }
 0x194   : > { %v1588_v29 = vsub.f32 %v1505_v11, %v709_v25  ;;  %v671_v34 = vpop.xlane.xlu1 %670 }
 0x195   : > { %v665_v32 = vpop.xlane.xlu0 %664  ;;  %v712_v36 = vmul.f32 0.03125, %v671_v34  ;;  %v743_v37 = vmul.f32 %v1591_v30, %v1591_v30 }
 0x196   : > { %v710_v33 = vmul.f32 0.03125, %v665_v32  ;;  %v741_v35 = vmul.f32 %v1588_v29, %v1588_v29 }
 0x197   : > { %v1602_v11 = vsub.f32 %v1517_v23, %v712_v36  ;;  %v763_v44 = vsel %vm552_vm3, %v743_v37, 0.0 }
 0x198   : > { %v1598_v39 = vsub.f32 %v1511_v17, %v710_v33  ;;  %v757_v40 = vsel %vm552_vm3, %v741_v35, 0.0 }
 0x199   : > { %758 = vadd.xlane.f32.xlu0 %v757_v40  ;;  %v674_v16 = vpop.xlane.xlu0 %673  ;;  %v744_v47 = vmul.f32 %v1602_v11, %v1602_v11 }
 0x19a   : > { %v713_v41 = vmul.f32 0.03125, %v674_v16  ;;  %v742_v45 = vmul.f32 %v1598_v39, %v1598_v39 }
 0x19b   : > { %v677_v43 = vpop.xlane.xlu1 %676  ;;  %v766_v54 = vsel %vm552_vm3, %v744_v47, 0.0 }
 0x19c   : > { %v714_v46 = vmul.f32 0.03125, %v677_v43  ;;  %v1610_v17 = vsub.f32 %v1523_v27, %v713_v41  ;;  %v760_v48 = vsel %vm552_vm3, %v742_v45, 0.0 }
 0x19d   : > { %764 = vadd.xlane.f32.xlu0 %v763_v44  ;;  %761 = vadd.xlane.f32.xlu1 %v760_v48  ;;  %v680_v50 = vpop.xlane.xlu0 %679 }
 0x19e   : > { %v1614_v23 = vsub.f32 %v1528_v31, %v714_v46  ;;  %v715_v51 = vmul.f32 0.03125, %v680_v50  ;;  %v745_v55 = vmul.f32 %v1610_v17, %v1610_v17 }
 0x19f   : > { %v683_v52 = vpop.xlane.xlu1 %682 }
 0x1a0   : > { %v716_v56 = vmul.f32 0.03125, %v683_v52  ;;  %v746_v27 = vmul.f32 %v1614_v23, %v1614_v23  ;;  %v1622_v57 = vsub.f32 %v1534_v38, %v715_v51  ;;  %v769_v31 = vsel %vm552_vm3, %v745_v55, 0.0 }
 0x1a1   : > { %767 = vadd.xlane.f32.xlu1 %v766_v54  ;;  %770 = vadd.xlane.f32.xlu0 %v769_v31  ;;  %v686_v59 = vpop.xlane.xlu0 %685 }
 0x1a2   : > { %v1626_v58 = vsub.f32 %v1539_v42, %v716_v56  ;;  %v717_v62 = vmul.f32 0.03125, %v686_v59  ;;  %v772_v0 = vsel %vm552_vm3, %v746_v27, 0.0  ;;  %v747_v2 = vmul.f32 %v1622_v57, %v1622_v57 }
 0x1a3   : > { %v689_v63 = vpop.xlane.xlu1 %688 }
 0x1a4   : > { %v718_v3 = vmul.f32 0.03125, %v689_v63  ;;  %v748_v38 = vmul.f32 %v1626_v58, %v1626_v58  ;;  %v1634_v4 = vsub.f32 %v1545_v49, %v717_v62  ;;  %v775_v42 = vsel %vm552_vm3, %v747_v2, 0.0 }
 0x1a5   : > { %773 = vadd.xlane.f32.xlu1 %v772_v0  ;;  %776 = vadd.xlane.f32.xlu0 %v775_v42  ;;  %v692_v6 = vpop.xlane.xlu0 %691 }
 0x1a6   : > { %v1638_v5 = vsub.f32 %v1550_v53, %v718_v3  ;;  %v719_v7 = vmul.f32 0.03125, %v692_v6  ;;  %v778_v10 = vsel %vm552_vm3, %v748_v38, 0.0  ;;  %v749_v12 = vmul.f32 %v1634_v4, %v1634_v4 }
 0x1a7   : > { %v695_v9 = vpop.xlane.xlu1 %694 }
 0x1a8   : > { %v720_v14 = vmul.f32 0.03125, %v695_v9  ;;  %v750_v49 = vmul.f32 %v1638_v5, %v1638_v5  ;;  %v1646_v15 = vsub.f32 %v1556_v61, %v719_v7  ;;  %v781_v53 = vsel %vm552_vm3, %v749_v12, 0.0  ;;  %v1686_v7 = vld [vmem:[%s1792_s4] ss:$0 sm:$0xff] }
 0x1a9   : > { %779 = vadd.xlane.f32.xlu1 %v778_v10  ;;  %782 = vadd.xlane.f32.xlu0 %v781_v53  ;;  %v698_v20 = vpop.xlane.xlu0 %697  ;;  %v1692_v53 = vld [vmem:[%s1793_s5] ss:$0 sm:$0xff] }
 0x1aa   : > { %v1650_v18 = vsub.f32 %v1561_v1, %v720_v14  ;;  %v721_v22 = vmul.f32 0.03125, %v698_v20  ;;  %v784_v24 = vsel %vm552_vm3, %v750_v49, 0.0  ;;  %v751_v25 = vmul.f32 %v1646_v15, %v1646_v15 }
 0x1ab   : > { %v701_v60 = vpop.xlane.xlu1 %700 }
 0x1ac   : > { %v722_v26 = vmul.f32 0.03125, %v701_v60  ;;  %v752_v61 = vmul.f32 %v1650_v18, %v1650_v18  ;;  %v1658_v28 = vsub.f32 %v1567_v8, %v721_v22  ;;  %v787_v1 = vsel %vm552_vm3, %v751_v25, 0.0 }
 0x1ad   : > { %785 = vadd.xlane.f32.xlu1 %v784_v24  ;;  %788 = vadd.xlane.f32.xlu0 %v787_v1  ;;  %v704_v33 = vpop.xlane.xlu0 %703 }
 0x1ae   : > { %v1662_v32 = vsub.f32 %v1572_v13, %v722_v26  ;;  %v723_v34 = vmul.f32 0.03125, %v704_v33  ;;  %v790_v36 = vsel %vm552_vm3, %v752_v61, 0.0  ;;  %v753_v37 = vmul.f32 %v1658_v28, %v1658_v28 }
 0x1af   : > { %v707_v35 = vpop.xlane.xlu1 %706 }
 0x1b0   : > { %v724_v40 = vmul.f32 0.03125, %v707_v35  ;;  %v754_v8 = vmul.f32 %v1662_v32, %v1662_v32  ;;  %v1670_v16 = vsub.f32 %v1577_v19, %v723_v34  ;;  %v793_v13 = vsel %vm552_vm3, %v753_v37, 0.0 }
 0x1b1   : > { %791 = vadd.xlane.f32.xlu1 %v790_v36  ;;  %794 = vadd.xlane.f32.xlu0 %v793_v13 }
 0x1b2   : > { %v1674_v41 = vsub.f32 %v1581_v21, %v724_v40  ;;  %v796_v43 = vsel %vm552_vm3, %v754_v8, 0.0  ;;  %v755_v44 = vmul.f32 %v1670_v16, %v1670_v16 }
 0x1b4   : > { %v756_v45 = vmul.f32 %v1674_v41, %v1674_v41  ;;  %v799_v46 = vsel %vm552_vm3, %v755_v44, 0.0 }
 0x1b5   : > { %797 = vadd.xlane.f32.xlu1 %v796_v43  ;;  %800 = vadd.xlane.f32.xlu0 %v799_v46 }
 0x1b6   : > { %v802_v19 = vsel %vm552_vm3, %v756_v45, 0.0 }
 0x1b9   : > { %803 = vadd.xlane.f32.xlu1 %v802_v19 }
 0x226   : > { %v759_v47 = vpop.xlane.xlu0 %758 }
 0x227   : > { %v805_v21 = vmul.f32 0.03125, %v759_v47 }
 0x229   : > { %v821_v48 = vadd.f32 1e-05, %v805_v21 }
 0x22a   : > { %v762_v50 = vpop.xlane.xlu1 %761  ;;  %v765_v51 = vpop.xlane.xlu0 %764 }
 0x22b   : > { %1284 = vrsqrt.f32 %v821_v48  ;;  %v806_v52 = vmul.f32 0.03125, %v762_v50  ;;  %v807_v54 = vmul.f32 0.03125, %v765_v51 }
 0x22d   : > { %v822_v55 = vadd.f32 1e-05, %v806_v52  ;;  %v823_v56 = vadd.f32 1e-05, %v807_v54 }
 0x22e   : > { %v768_v27 = vpop.xlane.xlu1 %767  ;;  %v771_v31 = vpop.xlane.xlu0 %770 }
 0x22f   : > { %1286 = vrsqrt.f32 %v822_v55  ;;  %v808_v59 = vmul.f32 0.03125, %v768_v27  ;;  %v809_v62 = vmul.f32 0.03125, %v771_v31 }
 0x230   : > { %1288 = vrsqrt.f32 %v823_v56 }
 0x231   : > { %v824_v63 = vadd.f32 1e-05, %v808_v59  ;;  %v825_v0 = vadd.f32 1e-05, %v809_v62 }
 0x232   : > { %v774_v2 = vpop.xlane.xlu1 %773  ;;  %v777_v3 = vpop.xlane.xlu0 %776 }
 0x233   : > { %1290 = vrsqrt.f32 %v824_v63  ;;  %v810_v38 = vmul.f32 0.03125, %v774_v2  ;;  %v811_v42 = vmul.f32 0.03125, %v777_v3 }
 0x234   : > { %1292 = vrsqrt.f32 %v825_v0 }
 0x235   : > { %v1285_v6 = vpop.eup %1284  ;;  %v826_v9 = vadd.f32 1e-05, %v810_v38  ;;  %v827_v10 = vadd.f32 1e-05, %v811_v42 }
 0x236   : > { %v853_v12 = vmul.f32 %v1285_v6, %v1588_v29  ;;  %v780_v14 = vpop.xlane.xlu1 %779  ;;  %v783_v49 = vpop.xlane.xlu0 %782 }
 0x237   : > { %1294 = vrsqrt.f32 %v826_v9  ;;  %v812_v20 = vmul.f32 0.03125, %v780_v14  ;;  %v813_v22 = vmul.f32 0.03125, %v783_v49 }
 0x238   : > { %v876_v60 = vmul.f32 %v1686_v7, %v853_v12  ;;  %1296 = vrsqrt.f32 %v827_v10 }
 0x239   : > { %v1287_v24 = vpop.eup %1286  ;;  %v828_v25 = vadd.f32 1e-05, %v812_v20  ;;  %v829_v26 = vadd.f32 1e-05, %v813_v22 }
 0x23a   : > { %v1289_v61 = vpop.eup %1288  ;;  %v899_v29 = vadd.f32 %v1692_v53, %v876_v60  ;;  %v854_v1 = vmul.f32 %v1287_v24, %v1598_v39  ;;  %v786_v33 = vpop.xlane.xlu1 %785 }
 0x23b   : > { %v789_v34 = vpop.xlane.xlu0 %788  ;;  %v855_v35 = vmul.f32 %v1289_v61, %v1591_v30  ;;  %1298 = vrsqrt.f32 %v828_v25  ;;  %v814_v36 = vmul.f32 0.03125, %v786_v33 }
 0x23c   : > { %v815_v37 = vmul.f32 0.03125, %v789_v34  ;;  %v1149_v40 = vpack.c.bf16 %v899_v29, %v899_v29  ;;  %v877_v8 = vmul.f32 %v1686_v7, %v854_v1  ;;  %1300 = vrsqrt.f32 %v829_v26 }
 0x23d   : > { %v1291_v13 = vpop.eup %1290  ;;  %v878_v43 = vmul.f32 %v1686_v7, %v855_v35  ;;  %v830_v44 = vadd.f32 1e-05, %v814_v36 }
 0x23e   : > { %v831_v45 = vadd.f32 1e-05, %v815_v37  ;;  %v1293_v46 = vpop.eup %1292  ;;  %980 = vst.msk [vmem:[%s1442_s22] sm:$0xf] %vm979_vm4, %v1149_v40  ;;  %v900_v39 = vadd.f32 %v1692_v53, %v877_v8  ;;  %v856_v19 = vmul.f32 %v1291_v13, %v1602_v11  ;;  %v792_v30 = vpop.xlane.xlu1 %791 }
 0x23f   : > { %v795_v47 = vpop.xlane.xlu0 %794  ;;  %v901_v21 = vadd.f32 %v1692_v53, %v878_v43  ;;  %v857_v48 = vmul.f32 %v1293_v46, %v1610_v17  ;;  %1302 = vrsqrt.f32 %v830_v44  ;;  %v816_v50 = vmul.f32 0.03125, %v792_v30 }
 0x240   : > { %v1150_v51 = vpack.c.bf16 %v900_v39, %v900_v39  ;;  %v879_v52 = vmul.f32 %v1686_v7, %v856_v19  ;;  %1304 = vrsqrt.f32 %v831_v45  ;;  %v817_v54 = vmul.f32 0.03125, %v795_v47 }
 0x241   : > { %v1295_v55 = vpop.eup %1294  ;;  %v1151_v56 = vpack.c.bf16 %v901_v21, %v901_v21  ;;  %v880_v27 = vmul.f32 %v1686_v7, %v857_v48  ;;  %v832_v11 = vadd.f32 1e-05, %v816_v50 }
 0x242   : > { %v1297_v31 = vpop.eup %1296  ;;  %981 = vst.msk [vmem:[%s1442_s22 + $0x4] sm:$0xf] %vm979_vm4, %v1150_v51  ;;  %v902_v59 = vadd.f32 %v1692_v53, %v879_v52  ;;  %v858_v17 = vmul.f32 %v1295_v55, %v1614_v23  ;;  %v833_v62 = vadd.f32 1e-05, %v817_v54  ;;  %v798_v63 = vpop.xlane.xlu1 %797 }
 0x243   : > { %v801_v0 = vpop.xlane.xlu0 %800  ;;  %982 = vst.msk [vmem:[%s1442_s22 + $0x8] sm:$0xf] %vm979_vm4, %v1151_v56  ;;  %v903_v2 = vadd.f32 %v1692_v53, %v880_v27  ;;  %v859_v3 = vmul.f32 %v1297_v31, %v1622_v57  ;;  %1306 = vrsqrt.f32 %v832_v11  ;;  %v818_v38 = vmul.f32 0.03125, %v798_v63 }
 0x244   : > { %v1152_v42 = vpack.c.bf16 %v902_v59, %v902_v59  ;;  %v881_v6 = vmul.f32 %v1686_v7, %v858_v17  ;;  %1308 = vrsqrt.f32 %v833_v62  ;;  %v819_v9 = vmul.f32 0.03125, %v801_v0 }
 0x245   : > { %v1299_v10 = vpop.eup %1298  ;;  %v1153_v23 = vpack.c.bf16 %v903_v2, %v903_v2  ;;  %v882_v12 = vmul.f32 %v1686_v7, %v859_v3  ;;  %v834_v14 = vadd.f32 1e-05, %v818_v38 }
 0x246   : > { %v1301_v49 = vpop.eup %1300  ;;  %983 = vst.msk [vmem:[%s1442_s22 + $0xc] sm:$0xf] %vm979_vm4, %v1152_v42  ;;  %v904_v20 = vadd.f32 %v1692_v53, %v881_v6  ;;  %v860_v57 = vmul.f32 %v1299_v10, %v1626_v58  ;;  %v835_v22 = vadd.f32 1e-05, %v819_v9  ;;  %v804_v60 = vpop.xlane.xlu1 %803 }
 0x247   : > { %984 = vst.msk [vmem:[%s1442_s22 + $0x10] sm:$0xf] %vm979_vm4, %v1153_v23  ;;  %v905_v24 = vadd.f32 %v1692_v53, %v882_v12  ;;  %v861_v25 = vmul.f32 %v1301_v49, %v1634_v4  ;;  %1310 = vrsqrt.f32 %v834_v14  ;;  %v820_v26 = vmul.f32 0.03125, %v804_v60 }
 0x248   : > { %v1154_v61 = vpack.c.bf16 %v904_v20, %v904_v20  ;;  %v883_v29 = vmul.f32 %v1686_v7, %v860_v57  ;;  %1312 = vrsqrt.f32 %v835_v22 }
 0x249   : > { %v1303_v1 = vpop.eup %1302  ;;  %v1155_v33 = vpack.c.bf16 %v905_v24, %v905_v24  ;;  %v884_v58 = vmul.f32 %v1686_v7, %v861_v25  ;;  %v836_v34 = vadd.f32 1e-05, %v820_v26 }
 0x24a   : > { %v1305_v35 = vpop.eup %1304  ;;  %985 = vst.msk [vmem:[%s1442_s22 + $0x14] sm:$0xf] %vm979_vm4, %v1154_v61  ;;  %v906_v36 = vadd.f32 %v1692_v53, %v883_v29  ;;  %v862_v4 = vmul.f32 %v1303_v1, %v1638_v5 }
 0x24b   : > { %986 = vst.msk [vmem:[%s1442_s22 + $0x18] sm:$0xf] %vm979_vm4, %v1155_v33  ;;  %v907_v37 = vadd.f32 %v1692_v53, %v884_v58  ;;  %v863_v40 = vmul.f32 %v1305_v35, %v1646_v15  ;;  %1314 = vrsqrt.f32 %v836_v34 }
 0x24c   : > { %v1156_v8 = vpack.c.bf16 %v906_v36, %v906_v36  ;;  %v885_v13 = vmul.f32 %v1686_v7, %v862_v4 }
 0x24d   : > { %v1307_v43 = vpop.eup %1306  ;;  %v1157_v44 = vpack.c.bf16 %v907_v37, %v907_v37  ;;  %v886_v45 = vmul.f32 %v1686_v7, %v863_v40 }
 0x24e   : > { %v1309_v46 = vpop.eup %1308  ;;  %987 = vst.msk [vmem:[%s1442_s22 + $0x1c] sm:$0xf] %vm979_vm4, %v1156_v8  ;;  %v908_v5 = vadd.f32 %v1692_v53, %v885_v13  ;;  %v864_v39 = vmul.f32 %v1307_v43, %v1650_v18 }
 0x24f   : > { %988 = vst.msk [vmem:[%s1442_s22 + $0x20] sm:$0xf] %vm979_vm4, %v1157_v44  ;;  %v909_v15 = vadd.f32 %v1692_v53, %v886_v45  ;;  %v865_v19 = vmul.f32 %v1309_v46, %v1658_v28 }
 0x250   : > { %v1158_v30 = vpack.c.bf16 %v908_v5, %v908_v5  ;;  %v887_v47 = vmul.f32 %v1686_v7, %v864_v39 }
 0x251   : > { %v1311_v21 = vpop.eup %1310  ;;  %v1159_v48 = vpack.c.bf16 %v909_v15, %v909_v15  ;;  %v888_v50 = vmul.f32 %v1686_v7, %v865_v19 }
 0x252   : > { %v1313_v51 = vpop.eup %1312  ;;  %989 = vst.msk [vmem:[%s1442_s22 + $0x24] sm:$0xf] %vm979_vm4, %v1158_v30  ;;  %v910_v18 = vadd.f32 %v1692_v53, %v887_v47  ;;  %v866_v52 = vmul.f32 %v1311_v21, %v1662_v32 }
 0x253   : > { %990 = vst.msk [vmem:[%s1442_s22 + $0x28] sm:$0xf] %vm979_vm4, %v1159_v48  ;;  %v911_v28 = vadd.f32 %v1692_v53, %v888_v50  ;;  %v867_v54 = vmul.f32 %v1313_v51, %v1670_v16 }
 0x254   : > { %v1160_v55 = vpack.c.bf16 %v910_v18, %v910_v18  ;;  %v889_v56 = vmul.f32 %v1686_v7, %v866_v52 }
 0x255   : > { %v1315_v27 = vpop.eup %1314  ;;  %v1161_v11 = vpack.c.bf16 %v911_v28, %v911_v28  ;;  %v890_v31 = vmul.f32 %v1686_v7, %v867_v54 }
 0x256   : > { %991 = vst.msk [vmem:[%s1442_s22 + $0x2c] sm:$0xf] %vm979_vm4, %v1160_v55  ;;  %v912_v32 = vadd.f32 %v1692_v53, %v889_v56  ;;  %v868_v59 = vmul.f32 %v1315_v27, %v1674_v41 }
 0x257   : > { %992 = vst.msk [vmem:[%s1442_s22 + $0x30] sm:$0xf] %vm979_vm4, %v1161_v11  ;;  %v913_v17 = vadd.f32 %v1692_v53, %v890_v31 }
 0x258   : > { %v1162_v16 = vpack.c.bf16 %v912_v32, %v912_v32  ;;  %v891_v62 = vmul.f32 %v1686_v7, %v868_v59 }
 0x259   : > { %v1163_v63 = vpack.c.bf16 %v913_v17, %v913_v17 }
 0x25a   : > { %993 = vst.msk [vmem:[%s1442_s22 + $0x34] sm:$0xf] %vm979_vm4, %v1162_v16  ;;  %v914_v0 = vadd.f32 %v1692_v53, %v891_v62 }
 0x25b   : > { %994 = vst.msk [vmem:[%s1442_s22 + $0x38] sm:$0xf] %vm979_vm4, %v1163_v63 }
 0x25c   : > { %v1164_v2 = vpack.c.bf16 %v914_v0, %v914_v0 }
 0x25e   : > { %995 = vst.msk [vmem:[%s1442_s22 + $0x3c] sm:$0xf] %vm979_vm4, %v1164_v2 }
 0x25f PF: > { %s16_s25 = sadd.s32 1, %s1354_s25   ;;  %s1795_s21 = smov %s1346_s23 }
 0x260   : > { %p13_p9 = scmp.ge.s32.totalorder %s16_s25, 10   ;;  %s1796_s22 = smov %s1350_s24 }
 0x261   : > { %s1797_s23 = smov %s1800_s26  ;;  %s1798_s24 = smov %s1804_s27 }
 0x262   :  { %15 = sbr.rel (!%p13_p9) target bundleno = 3 (0x3), region = 88 }

// kernel: ctran_forward.24
= control target key start
LH: loop header
LB: loop body
LE: loop exit
PB: predicated region body
PF: predicated region fallthrough
CT: control target
= control target key end

     0   :  { %vm28_vm0 = vcmask 261120   ;;  %v1646_v1 = vmov 0.0   ;;  %vm1288_vm1 = vcmask 257024   ;;  %s2467_s1 = inlined_call_operand.vmem [shape: bf16[32,32], index: 1, kind: input, shape index: {}]   ;;  %s2468_s0 = inlined_call_operand.vmem [shape: bf16[256,32], index: 0, kind: input, shape index: {}]   ;;  %s2469_s3 = inlined_call_operand.vmem [shape: bf16[256,32], index: 3, kind: input, shape index: {}]   ;;  %s2470_s2 = inlined_call_operand.vmem [shape: f32[1,32], index: 2, kind: input, shape index: {}]   ;;  %s2471_s4 = inlined_call_operand.vmem [shape: f32[1,32], index: 4, kind: input, shape index: {}]   ;;  %s2472_s5 = inlined_call_operand.vmem [shape: f32[1,32], index: 5, kind: input, shape index: {}]   ;;  %s2473_s6 = inlined_call_operand.vmem [shape: bf16[256,32], index: 6, kind: output, shape index: {}]  }
   0x1   :  { %v1564_v0 = vld [vmem:[%s2467_s1] sm:$0xff]   ;;  %31 = vst.msk [vmem:[#allocation2 + $0x10] sm:$0xff] %vm28_vm0, %v1646_v1  ;;  %29 = vst.msk [vmem:[#allocation2] sm:$0xff] %vm28_vm0, %v1646_v1  ;;  %v1565_v2 = vld [vmem:[%s2467_s1 + $0x8] sm:$0xff]  }
   0x2   :  { %30 = vst.msk [vmem:[#allocation2 + $0x8] sm:$0xff] %vm28_vm0, %v1646_v1  ;;  %32 = vst.msk [vmem:[#allocation2 + $0x18] sm:$0xff] %vm28_vm0, %v1646_v1  ;;  %1523 = vmatprep.subr.bf16.mxu0 %v1564_v0  ;;  %1559 = vmatprep.subr.bf16.mxu1 %v1564_v0  ;;  %v1566_v3 = vld [vmem:[%s2468_s0] sm:$0xff]   ;;  %v1568_v5 = vld [vmem:[%s2468_s0 + $0x8] sm:$0xff]  }
   0x3   :  { %33 = vst.msk [vmem:[#allocation2 + $0x20] sm:$0xff] %vm28_vm0, %v1646_v1  ;;  %34 = vst.msk [vmem:[#allocation2 + $0x28] sm:$0xff] %vm28_vm0, %v1646_v1  ;;  %1524 = vmatpush3.bf16.msra.mxu0 %v1564_v0  ;;  %1561 = vmatpush3.bf16.msra.mxu1 %v1564_v0  ;;  %v1567_v4 = vld [vmem:[%s2468_s0 + $0x40] sm:$0xff]   ;;  %v1569_v6 = vld [vmem:[%s2468_s0 + $0x48] sm:$0xff]  }
   0x4   :  { %35 = vst.msk [vmem:[#allocation2 + $0x30] sm:$0xff] %vm28_vm0, %v1646_v1  ;;  %36 = vst.msk [vmem:[#allocation2 + $0x38] sm:$0xff] %vm28_vm0, %v1646_v1  ;;  %1525 = vmatprep.subr.bf16.mxu0 %v1565_v2  ;;  %1560 = vmatprep.subr.bf16.mxu1 %v1565_v2  ;;  %v1570_v7 = vld [vmem:[%s2468_s0 + $0x10] sm:$0xff]   ;;  %v1571_v9 = vld [vmem:[%s2468_s0 + $0x18] sm:$0xff]  }
   0x5   :  { %37 = vst.msk [vmem:[#allocation2 + $0x40] sm:$0xff] %vm28_vm0, %v1646_v1  ;;  %38 = vst.msk [vmem:[#allocation2 + $0x48] sm:$0xff] %vm28_vm0, %v1646_v1  ;;  %1527 = vmatprep.mubr.msk.bf16.mxu0 %vm28_vm0, %v1566_v3  ;;  %1543 = vmatprep.mubr.msk.bf16.mxu1 %vm28_vm0, %v1567_v4  ;;  %v1572_v8 = vld [vmem:[%s2468_s0 + $0x50] sm:$0xff]   ;;  %v1573_v10 = vld [vmem:[%s2468_s0 + $0x58] sm:$0xff]  }
   0x6   :  { %39 = vst.msk [vmem:[#allocation2 + $0x50] sm:$0xff] %vm28_vm0, %v1646_v1  ;;  %40 = vst.msk [vmem:[#allocation2 + $0x58] sm:$0xff] %vm28_vm0, %v1646_v1  ;;  %v1574_v11 = vld [vmem:[%s2468_s0 + $0x20] sm:$0xff]   ;;  %v1575_v13 = vld [vmem:[%s2468_s0 + $0x28] sm:$0xff]  }
   0x7   :  { %41 = vst.msk [vmem:[#allocation2 + $0x60] sm:$0xff] %vm28_vm0, %v1646_v1  ;;  %42 = vst.msk [vmem:[#allocation2 + $0x68] sm:$0xff] %vm28_vm0, %v1646_v1  ;;  %1526 = vmatpush3.bf16.msra.mxu0 %v1565_v2  ;;  %1562 = vmatpush3.bf16.msra.mxu1 %v1565_v2  ;;  %v1576_v12 = vld [vmem:[%s2468_s0 + $0x60] sm:$0xff]   ;;  %v1577_v14 = vld [vmem:[%s2468_s0 + $0x68] sm:$0xff]  }
   0x8   :  { %43 = vst.msk [vmem:[#allocation2 + $0x70] sm:$0xff] %vm28_vm0, %v1646_v1  ;;  %44 = vst.msk [vmem:[#allocation2 + $0x78] sm:$0xff] %vm28_vm0, %v1646_v1  ;;  %v1578_v15 = vld [vmem:[%s2468_s0 + $0x30] sm:$0xff]   ;;  %v1579_v17 = vld [vmem:[%s2468_s0 + $0x38] sm:$0xff]  }
   0x9   :  { %45 = vst.msk [vmem:[#allocation2 + $0x80] sm:$0xff] %vm28_vm0, %v1646_v1  ;;  %46 = vst.msk [vmem:[#allocation2 + $0x88] sm:$0xff] %vm28_vm0, %v1646_v1  ;;  %v1580_v16 = vld [vmem:[%s2468_s0 + $0x70] sm:$0xff]   ;;  %v1581_v18 = vld [vmem:[%s2468_s0 + $0x78] sm:$0xff]  }
   0xa   :  { %47 = vst.msk [vmem:[#allocation2 + $0x90] sm:$0xff] %vm28_vm0, %v1646_v1  ;;  %48 = vst.msk [vmem:[#allocation2 + $0x98] sm:$0xff] %vm28_vm0, %v1646_v1  ;;  %1528 = vmatmul.mubr.msk.bf16.vlgmr.msra.gmra.mrb[0].mxu0 %vm28_vm0, %v1568_v5  ;;  %1544 = vmatmul.mubr.msk.bf16.vlgmr.msra.gmra.mrb[0].mxu1 %vm28_vm0, %v1569_v6  ;;  %v63_v19 = vld [vmem:[#allocation2 + $0x10] sm:$0xff]  ;;  %v61_v21 = vld [vmem:[#allocation2] sm:$0xff] }
   0xb   :  { %49 = vst.msk [vmem:[#allocation2 + $0xa0] sm:$0xff] %vm28_vm0, %v1646_v1  ;;  %50 = vst.msk [vmem:[#allocation2 + $0xa8] sm:$0xff] %vm28_vm0, %v1646_v1  ;;  %1531 = vmatprep.mubr.msk.bf16.mxu0 %vm28_vm0, %v1570_v7  ;;  %1547 = vmatprep.mubr.msk.bf16.mxu1 %vm28_vm0, %v1572_v8  ;;  %v64_v25 = vld [vmem:[#allocation2 + $0x18] sm:$0xff]  ;;  %v62_v31 = vld [vmem:[#allocation2 + $0x8] sm:$0xff] }
   0xc   :  { %51 = vst.msk [vmem:[#allocation2 + $0xb0] sm:$0xff] %vm28_vm0, %v1646_v1  ;;  %52 = vst.msk [vmem:[#allocation2 + $0xb8] sm:$0xff] %vm28_vm0, %v1646_v1  ;;  %v67_v43 = vld [vmem:[#allocation2 + $0x30] sm:$0xff]  ;;  %v1795_v44 = vld [vmem:[%s2469_s3 + $0x48] sm:$0xff]  }
   0xd   :  { %53 = vst.msk [vmem:[#allocation2 + $0xc0] sm:$0xff] %vm28_vm0, %v1646_v1  ;;  %54 = vst.msk [vmem:[#allocation2 + $0xc8] sm:$0xff] %vm28_vm0, %v1646_v1  ;;  %v1490_v45 = vld [vmem:[%s2469_s3 + $0x8] sm:$0xff]   ;;  %v65_v47 = vld [vmem:[#allocation2 + $0x20] sm:$0xff]  ;;  %v1464_v57 = vunpack.c.l.bf16 %v1795_v44 }
   0xe   :  { %55 = vst.msk [vmem:[#allocation2 + $0xd0] sm:$0xff] %vm28_vm0, %v1646_v1  ;;  %56 = vst.msk [vmem:[#allocation2 + $0xd8] sm:$0xff] %vm28_vm0, %v1646_v1  ;;  %v1803_v49 = vld [vmem:[%s2469_s3] sm:$0xff]   ;;  %v68_v52 = vld [vmem:[#allocation2 + $0x38] sm:$0xff]  ;;  %v1432_v58 = vunpack.c.l.bf16 %v1490_v45  ;;  %v1433_v7 = vunpack.c.h.bf16 %v1490_v45 }
   0xf   :  { %57 = vst.msk [vmem:[#allocation2 + $0xe0] sm:$0xff] %vm28_vm0, %v1646_v1  ;;  %58 = vst.msk [vmem:[#allocation2 + $0xe8] sm:$0xff] %vm28_vm0, %v1646_v1  ;;  %v1808_v51 = vld [vmem:[%s2470_s2] ss:$0 sm:$0xff]  ;;  %v66_v59 = vld [vmem:[#allocation2 + $0x28] sm:$0xff]  ;;  %v1428_v6 = vunpack.c.l.bf16 %v1803_v49 }
  0x10   :  { %59 = vst.msk [vmem:[#allocation2 + $0xf0] sm:$0xff] %vm28_vm0, %v1646_v1  ;;  %60 = vst.msk [vmem:[#allocation2 + $0xf8] sm:$0xff] %vm28_vm0, %v1646_v1  ;;  %v77_v22 = vld [vmem:[#allocation2 + $0x80] sm:$0xff]  ;;  %v78_v32 = vld [vmem:[#allocation2 + $0x88] sm:$0xff] }
  0x11   :  { %v79_v20 = vld [vmem:[#allocation2 + $0x90] sm:$0xff]  ;;  %v80_v26 = vld [vmem:[#allocation2 + $0x98] sm:$0xff]  ;;  %v1814_v63 = vld [vmem:[%s2469_s3 + $0x40] sm:$0xff]  }
  0x12   :  { %1532 = vmatmul.mubr.msk.bf16.gmra.mrb[4].mxu0 %vm28_vm0, %v1571_v9  ;;  %1548 = vmatmul.mubr.msk.bf16.gmra.mrb[4].mxu1 %vm28_vm0, %v1573_v10  ;;  %v81_v48 = vld [vmem:[#allocation2 + $0xa0] sm:$0xff]  ;;  %v82_v62 = vld [vmem:[#allocation2 + $0xa8] sm:$0xff] }
  0x13   :  { %1535 = vmatprep.mubr.msk.bf16.mxu0 %vm28_vm0, %v1574_v11  ;;  %1551 = vmatprep.mubr.msk.bf16.mxu1 %vm28_vm0, %v1576_v12  ;;  %v83_v46 = vld [vmem:[#allocation2 + $0xb0] sm:$0xff]  ;;  %v84_v54 = vld [vmem:[#allocation2 + $0xb8] sm:$0xff] }
  0x1a   :  { %1536 = vmatmul.mubr.msk.bf16.gmra.mrb[8].mxu0 %vm28_vm0, %v1575_v13  ;;  %1552 = vmatmul.mubr.msk.bf16.gmra.mrb[8].mxu1 %vm28_vm0, %v1577_v14 }
  0x1b   :  { %1539 = vmatprep.mubr.msk.bf16.mxu0 %vm28_vm0, %v1578_v15  ;;  %1555 = vmatprep.mubr.msk.bf16.mxu1 %vm28_vm0, %v1580_v16 }
  0x22   :  { %1540 = vmatmul.mubr.msk.bf16.gmra.mrb[12].mxu0 %vm28_vm0, %v1579_v17  ;;  %1556 = vmatmul.mubr.msk.bf16.gmra.mrb[12].mxu1 %vm28_vm0, %v1581_v18 }
  0xdd   :  { %v1529_v23 = vpop.f32.mrb[0].mxu0  ;;  %v1545_v24 = vpop.f32.mrb[0].mxu1 }
  0xde   :  { %v433_v27 = vadd.f32 %v1529_v23, %v63_v19  ;;  %v449_v28 = vadd.f32 %v1545_v24, %v79_v20  ;;  %v304_v29 = vpop.f32.mrb[1].mxu0  ;;  %v368_v30 = vpop.f32.mrb[1].mxu1  ;;  %v1460_v20 = vunpack.c.l.bf16 %v1814_v63 }
  0xdf   :  { %v431_v33 = vadd.f32 %v304_v29, %v61_v21  ;;  %v447_v34 = vadd.f32 %v368_v30, %v77_v22  ;;  %v1530_v35 = vpop.f32.mrb[2].mxu0  ;;  %v1546_v36 = vpop.f32.mrb[2].mxu1  ;;  %v71_v29 = vld [vmem:[#allocation2 + $0x50] sm:$0xff] }
  0xe0   :  { %465 = vst.msk [vmem:[#allocation2 + $0x10] sm:$0xff] %vm28_vm0, %v433_v27  ;;  %481 = vst.msk [vmem:[#allocation2 + $0x90] sm:$0xff] %vm28_vm0, %v449_v28  ;;  %v434_v37 = vadd.f32 %v1530_v35, %v64_v25  ;;  %v450_v38 = vadd.f32 %v1546_v36, %v80_v26  ;;  %v307_v39 = vpop.f32.mrb[3].mxu0  ;;  %v371_v40 = vpop.f32.mrb[3].mxu1  ;;  %v1465_v27 = vunpack.c.h.bf16 %v1795_v44  ;;  %v87_v30 = vld [vmem:[#allocation2 + $0xd0] sm:$0xff]  ;;  %v69_v36 = vld [vmem:[#allocation2 + $0x40] sm:$0xff] }
  0xe1   :  { %463 = vst.msk [vmem:[#allocation2] sm:$0xff] %vm28_vm0, %v431_v33  ;;  %479 = vst.msk [vmem:[#allocation2 + $0x80] sm:$0xff] %vm28_vm0, %v447_v34  ;;  %v432_v41 = vadd.f32 %v307_v39, %v62_v31  ;;  %v448_v42 = vadd.f32 %v371_v40, %v78_v32  ;;  %v1429_v39 = vunpack.c.h.bf16 %v1803_v49 }
  0xe2   :  { %466 = vst.msk [vmem:[#allocation2 + $0x18] sm:$0xff] %vm28_vm0, %v434_v37  ;;  %482 = vst.msk [vmem:[#allocation2 + $0x98] sm:$0xff] %vm28_vm0, %v450_v38  ;;  %v85_v37 = vld [vmem:[#allocation2 + $0xc0] sm:$0xff]  ;;  %v1461_v38 = vunpack.c.h.bf16 %v1814_v63 }
  0xe3   :  { %464 = vst.msk [vmem:[#allocation2 + $0x8] sm:$0xff] %vm28_vm0, %v432_v41  ;;  %480 = vst.msk [vmem:[#allocation2 + $0x88] sm:$0xff] %vm28_vm0, %v448_v42  ;;  %v72_v41 = vld [vmem:[#allocation2 + $0x58] sm:$0xff] }
  0xe5   :  { %v1533_v50 = vpop.f32.mrb[4].mxu0  ;;  %v1549_v53 = vpop.f32.mrb[4].mxu1 }
  0xe6   :  { %v437_v55 = vadd.f32 %v1533_v50, %v67_v43  ;;  %v320_v56 = vpop.f32.mrb[5].mxu0  ;;  %v453_v60 = vadd.f32 %v1549_v53, %v83_v46  ;;  %v384_v61 = vpop.f32.mrb[5].mxu1  ;;  %v88_v43 = vld [vmem:[#allocation2 + $0xd8] sm:$0xff]  ;;  %v70_v50 = vld [vmem:[#allocation2 + $0x48] sm:$0xff] }
  0xe7   :  { %v435_v0 = vadd.f32 %v320_v56, %v65_v47  ;;  %v516_v1 = vld [vmem:[#allocation2 + $0x90] sm:$0xff]  ;;  %v1534_v3 = vpop.f32.mrb[6].mxu0  ;;  %v451_v4 = vadd.f32 %v384_v61, %v81_v48  ;;  %v1550_v5 = vpop.f32.mrb[6].mxu1  ;;  %v1492_v48 = vld [vmem:[%s2469_s3 + $0x18] sm:$0xff]  }
  0xe8   :  { %v500_v2 = vld [vmem:[#allocation2 + $0x10] sm:$0xff]  ;;  %469 = vst.msk [vmem:[#allocation2 + $0x30] sm:$0xff] %vm28_vm0, %v437_v55  ;;  %v555_v8 = vadd.f32 %v1808_v51, %v516_v1  ;;  %v438_v10 = vadd.f32 %v1534_v3, %v68_v52  ;;  %v323_v11 = vpop.f32.mrb[7].mxu0  ;;  %485 = vst.msk [vmem:[#allocation2 + $0xb0] sm:$0xff] %vm28_vm0, %v453_v60  ;;  %v454_v12 = vadd.f32 %v1550_v5, %v84_v54  ;;  %v498_v13 = vld [vmem:[#allocation2] sm:$0xff]  ;;  %v387_v14 = vpop.f32.mrb[7].mxu1 }
  0xe9   :  { %v539_v9 = vadd.f32 %v1808_v51, %v500_v2  ;;  %v514_v15 = vld [vmem:[#allocation2 + $0x80] sm:$0xff]  ;;  %467 = vst.msk [vmem:[#allocation2 + $0x20] sm:$0xff] %vm28_vm0, %v435_v0  ;;  %v436_v16 = vadd.f32 %v323_v11, %v66_v59  ;;  %483 = vst.msk [vmem:[#allocation2 + $0xa0] sm:$0xff] %vm28_vm0, %v451_v4  ;;  %v537_v17 = vadd.f32 %v1808_v51, %v498_v13  ;;  %v501_v18 = vld [vmem:[#allocation2 + $0x18] sm:$0xff]  ;;  %v1440_v4 = vunpack.c.l.bf16 %v1492_v48 }
  0xea   :  { %v452_v19 = vadd.f32 %v387_v14, %v82_v62  ;;  %v517_v21 = vld [vmem:[#allocation2 + $0x98] sm:$0xff]  ;;  %v1825_v22 = vadd.f32 %v1464_v57, %v555_v8  ;;  %470 = vst.msk [vmem:[#allocation2 + $0x38] sm:$0xff] %vm28_vm0, %v438_v10  ;;  %486 = vst.msk [vmem:[#allocation2 + $0xb8] sm:$0xff] %vm28_vm0, %v454_v12  ;;  %v540_v24 = vadd.f32 %v1808_v51, %v501_v18  ;;  %v515_v28 = vld [vmem:[#allocation2 + $0x88] sm:$0xff] }
  0xeb   :  { %v1827_v23 = vadd.f32 %v1432_v58, %v539_v9  ;;  %v553_v25 = vadd.f32 %v1808_v51, %v514_v15  ;;  %468 = vst.msk [vmem:[#allocation2 + $0x28] sm:$0xff] %vm28_vm0, %v436_v16  ;;  %v556_v26 = vadd.f32 %v1808_v51, %v517_v21  ;;  %v1841_v33 = vadd.f32 %v1428_v6, %v537_v17  ;;  %v499_v35 = vld [vmem:[#allocation2 + $0x8] sm:$0xff]  ;;  %v1500_v11 = vld [vmem:[%s2469_s3 + $0x58] sm:$0xff]   ;;  %v75_v13 = vld [vmem:[#allocation2 + $0x70] sm:$0xff] }
  0xec   :  { %484 = vst.msk [vmem:[#allocation2 + $0xa8] sm:$0xff] %vm28_vm0, %v452_v19  ;;  %v719_v31 = vsel %vm28_vm0, %v1825_v22, 0.0  ;;  %v1843_v34 = vadd.f32 %v1433_v7, %v540_v24  ;;  %v554_v45 = vadd.f32 %v1808_v51, %v515_v28  ;;  %v86_v54 = vld [vmem:[#allocation2 + $0xc8] sm:$0xff]  ;;  %v538_v49 = vadd.f32 %v1808_v51, %v499_v35  ;;  %v91_v14 = vld [vmem:[#allocation2 + $0xf0] sm:$0xff]  ;;  %v73_v19 = vld [vmem:[#allocation2 + $0x60] sm:$0xff] }
  0xed   :  { %v671_v32 = vsel %vm28_vm0, %v1827_v23, 0.0  ;;  %720 = vadd.xlane.f32.xlu0 %v719_v31  ;;  %v1537_v40 = vpop.f32.mrb[8].mxu0  ;;  %v1553_v42 = vpop.f32.mrb[8].mxu1  ;;  %v1847_v44 = vadd.f32 %v1460_v20, %v553_v25  ;;  %v1853_v55 = vadd.f32 %v1465_v27, %v556_v26  ;;  %v665_v61 = vsel %vm28_vm0, %v1841_v33, 0.0  ;;  %v76_v27 = vld [vmem:[#allocation2 + $0x78] sm:$0xff] }
  0xee   :  { %672 = vadd.xlane.f32.xlu1 %v671_v32  ;;  %v441_v46 = vadd.f32 %v1537_v40, %v71_v29  ;;  %v336_v47 = vpop.f32.mrb[9].mxu0  ;;  %v457_v52 = vadd.f32 %v1553_v42, %v87_v30  ;;  %v400_v53 = vpop.f32.mrb[9].mxu1  ;;  %v674_v62 = vsel %vm28_vm0, %v1843_v34, 0.0  ;;  %v1441_v9 = vunpack.c.h.bf16 %v1492_v48  ;;  %v89_v29 = vld [vmem:[#allocation2 + $0xe0] sm:$0xff] }
  0xef   :  { %v439_v56 = vadd.f32 %v336_v47, %v69_v36  ;;  %v504_v57 = vld [vmem:[#allocation2 + $0x30] sm:$0xff]  ;;  %v1538_v58 = vpop.f32.mrb[10].mxu0  ;;  %v455_v59 = vadd.f32 %v400_v53, %v85_v37  ;;  %v1554_v60 = vpop.f32.mrb[10].mxu1  ;;  %v713_v15 = vsel %vm28_vm0, %v1847_v44, 0.0  ;;  %v722_v16 = vsel %vm28_vm0, %v1853_v55, 0.0  ;;  %v74_v36 = vld [vmem:[#allocation2 + $0x68] sm:$0xff] }
  0xf0   :  { %473 = vst.msk [vmem:[#allocation2 + $0x50] sm:$0xff] %vm28_vm0, %v441_v46  ;;  %v442_v63 = vadd.f32 %v1538_v58, %v72_v41  ;;  %v339_v0 = vpop.f32.mrb[11].mxu0  ;;  %489 = vst.msk [vmem:[#allocation2 + $0xd0] sm:$0xff] %vm28_vm0, %v457_v52  ;;  %v458_v1 = vadd.f32 %v1554_v60, %v88_v43  ;;  %v403_v2 = vpop.f32.mrb[11].mxu1  ;;  %v543_v3 = vadd.f32 %v1808_v51, %v504_v57  ;;  %v520_v10 = vld [vmem:[#allocation2 + $0xb0] sm:$0xff]  ;;  %v1472_v24 = vunpack.c.l.bf16 %v1500_v11  ;;  %v502_v52 = vld [vmem:[#allocation2 + $0x20] sm:$0xff] }
  0xf1   :  { %666 = vadd.xlane.f32.xlu0 %v665_v61  ;;  %471 = vst.msk [vmem:[#allocation2 + $0x40] sm:$0xff] %vm28_vm0, %v439_v56  ;;  %v505_v5 = vld [vmem:[#allocation2 + $0x38] sm:$0xff]  ;;  %v440_v6 = vadd.f32 %v339_v0, %v70_v50  ;;  %487 = vst.msk [vmem:[#allocation2 + $0xc0] sm:$0xff] %vm28_vm0, %v455_v59  ;;  %v456_v7 = vadd.f32 %v403_v2, %v86_v54  ;;  %v1877_v17 = vadd.f32 %v1461_v38, %v554_v45  ;;  %v90_v50 = vld [vmem:[#allocation2 + $0xe8] sm:$0xff] }
  0xf2   :  { %675 = vadd.xlane.f32.xlu1 %v674_v62  ;;  %v544_v8 = vadd.f32 %v1808_v51, %v505_v5  ;;  %474 = vst.msk [vmem:[#allocation2 + $0x58] sm:$0xff] %vm28_vm0, %v442_v63  ;;  %490 = vst.msk [vmem:[#allocation2 + $0xd8] sm:$0xff] %vm28_vm0, %v458_v1  ;;  %v521_v12 = vld [vmem:[#allocation2 + $0xb8] sm:$0xff]  ;;  %v1879_v18 = vadd.f32 %v1429_v39, %v538_v49  ;;  %v1881_v20 = vadd.f32 %v1440_v4, %v543_v3  ;;  %v1491_v53 = vld [vmem:[%s2469_s3 + $0x10] sm:$0xff]  }
  0xf3   :  { %472 = vst.msk [vmem:[#allocation2 + $0x48] sm:$0xff] %vm28_vm0, %v440_v6  ;;  %488 = vst.msk [vmem:[#allocation2 + $0xc8] sm:$0xff] %vm28_vm0, %v456_v7  ;;  %v559_v21 = vadd.f32 %v1808_v51, %v520_v10  ;;  %v1473_v25 = vunpack.c.h.bf16 %v1500_v11  ;;  %v560_v31 = vadd.f32 %v1808_v51, %v521_v12  ;;  %v92_v39 = vld [vmem:[#allocation2 + $0xf8] sm:$0xff]  ;;  %v716_v42 = vsel %vm28_vm0, %v1877_v17, 0.0  ;;  %v503_v54 = vld [vmem:[#allocation2 + $0x28] sm:$0xff] }
  0xf4   :  { %v1884_v30 = vadd.f32 %v1441_v9, %v544_v8  ;;  %v668_v43 = vsel %vm28_vm0, %v1879_v18, 0.0  ;;  %v683_v58 = vsel %vm28_vm0, %v1881_v20, 0.0  ;;  %v541_v63 = vadd.f32 %v1808_v51, %v502_v52  ;;  %v1499_v3 = vld [vmem:[%s2469_s3 + $0x50] sm:$0xff]   ;;  %v518_v4 = vld [vmem:[#allocation2 + $0xa0] sm:$0xff]  ;;  %v519_v5 = vld [vmem:[#allocation2 + $0xa8] sm:$0xff] }
  0xf5   :  { %714 = vadd.xlane.f32.xlu0 %v713_v15  ;;  %v1541_v26 = vpop.f32.mrb[12].mxu0  ;;  %v1557_v28 = vpop.f32.mrb[12].mxu1  ;;  %v1901_v60 = vadd.f32 %v1472_v24, %v559_v21  ;;  %v1903_v61 = vadd.f32 %v1473_v25, %v560_v31  ;;  %v1436_v0 = vunpack.c.l.bf16 %v1491_v53  ;;  %v542_v1 = vadd.f32 %v1808_v51, %v503_v54  ;;  %v1494_v11 = vld [vmem:[%s2469_s3 + $0x28] sm:$0xff]  }
  0xf6   :  { %723 = vadd.xlane.f32.xlu1 %v722_v16  ;;  %v445_v32 = vadd.f32 %v1541_v26, %v75_v13  ;;  %v352_v35 = vpop.f32.mrb[13].mxu0  ;;  %v461_v37 = vadd.f32 %v1557_v28, %v91_v14  ;;  %v416_v38 = vpop.f32.mrb[13].mxu1  ;;  %v686_v59 = vsel %vm28_vm0, %v1884_v30, 0.0  ;;  %v1437_v2 = vunpack.c.h.bf16 %v1491_v53  ;;  %v1502_v26 = vld [vmem:[%s2469_s3 + $0x68] sm:$0xff]  }
  0xf7   :  { %v443_v40 = vadd.f32 %v352_v35, %v73_v19  ;;  %v1542_v41 = vpop.f32.mrb[14].mxu0  ;;  %v459_v47 = vadd.f32 %v416_v38, %v89_v29  ;;  %v1558_v48 = vpop.f32.mrb[14].mxu1  ;;  %v731_v6 = vsel %vm28_vm0, %v1901_v60, 0.0  ;;  %v734_v7 = vsel %vm28_vm0, %v1903_v61, 0.0  ;;  %v508_v10 = vld [vmem:[#allocation2 + $0x50] sm:$0xff] }
  0xf8   :  { %477 = vst.msk [vmem:[#allocation2 + $0x70] sm:$0xff] %vm28_vm0, %v445_v32  ;;  %v446_v45 = vadd.f32 %v1542_v41, %v76_v27  ;;  %v355_v46 = vpop.f32.mrb[15].mxu0  ;;  %493 = vst.msk [vmem:[#allocation2 + $0xf0] sm:$0xff] %vm28_vm0, %v461_v37  ;;  %v462_v56 = vadd.f32 %v1558_v48, %v92_v39  ;;  %v419_v57 = vpop.f32.mrb[15].mxu1  ;;  %v1468_v8 = vunpack.c.l.bf16 %v1499_v3  ;;  %v1469_v9 = vunpack.c.h.bf16 %v1499_v3  ;;  %v524_v27 = vld [vmem:[#allocation2 + $0xd0] sm:$0xff] }
  0xf9   :  { %669 = vadd.xlane.f32.xlu0 %v668_v43  ;;  %475 = vst.msk [vmem:[#allocation2 + $0x60] sm:$0xff] %vm28_vm0, %v443_v40  ;;  %v444_v49 = vadd.f32 %v355_v46, %v74_v36  ;;  %491 = vst.msk [vmem:[#allocation2 + $0xe0] sm:$0xff] %vm28_vm0, %v459_v47  ;;  %v460_v62 = vadd.f32 %v419_v57, %v90_v50  ;;  %v509_v12 = vld [vmem:[#allocation2 + $0x58] sm:$0xff]  ;;  %v1922_v13 = vadd.f32 %v1436_v0, %v541_v63  ;;  %v1493_v46 = vld [vmem:[%s2469_s3 + $0x20] sm:$0xff]  }
  0xfa   :  { %717 = vadd.xlane.f32.xlu1 %v716_v42  ;;  %478 = vst.msk [vmem:[#allocation2 + $0x78] sm:$0xff] %vm28_vm0, %v446_v45  ;;  %494 = vst.msk [vmem:[#allocation2 + $0xf8] sm:$0xff] %vm28_vm0, %v462_v56  ;;  %v1924_v14 = vadd.f32 %v1437_v2, %v542_v1  ;;  %v557_v15 = vadd.f32 %v1808_v51, %v518_v4  ;;  %v558_v16 = vadd.f32 %v1808_v51, %v519_v5  ;;  %v525_v28 = vld [vmem:[#allocation2 + $0xd8] sm:$0xff]  ;;  %v506_v45 = vld [vmem:[#allocation2 + $0x40] sm:$0xff] }
  0xfb   :  { %476 = vst.msk [vmem:[#allocation2 + $0x68] sm:$0xff] %vm28_vm0, %v444_v49  ;;  %492 = vst.msk [vmem:[#allocation2 + $0xe8] sm:$0xff] %vm28_vm0, %v460_v62  ;;  %v547_v19 = vadd.f32 %v1808_v51, %v508_v10  ;;  %v1448_v21 = vunpack.c.l.bf16 %v1494_v11  ;;  %v548_v24 = vadd.f32 %v1808_v51, %v509_v12  ;;  %v1449_v25 = vunpack.c.h.bf16 %v1494_v11  ;;  %v507_v47 = vld [vmem:[#allocation2 + $0x48] sm:$0xff]  ;;  %v1496_v4 = vld [vmem:[%s2469_s3 + $0x38] sm:$0xff]  }
  0xfc   :  { %v677_v29 = vsel %vm28_vm0, %v1922_v13, 0.0  ;;  %v680_v31 = vsel %vm28_vm0, %v1924_v14, 0.0  ;;  %v1937_v32 = vadd.f32 %v1468_v8, %v557_v15  ;;  %v1939_v35 = vadd.f32 %v1469_v9, %v558_v16  ;;  %v523_v62 = vld [vmem:[#allocation2 + $0xc8] sm:$0xff] }
  0xfd   :  { %684 = vadd.xlane.f32.xlu0 %v683_v58  ;;  %v1480_v36 = vunpack.c.l.bf16 %v1502_v26  ;;  %v1481_v37 = vunpack.c.h.bf16 %v1502_v26  ;;  %v1941_v38 = vadd.f32 %v1448_v21, %v547_v19  ;;  %v1943_v39 = vadd.f32 %v1449_v25, %v548_v24  ;;  %v1501_v58 = vld [vmem:[%s2469_s3 + $0x60] sm:$0xff]   ;;  %v1495_v25 = vld [vmem:[%s2469_s3 + $0x30] sm:$0xff]  }
  0xfe   :  { %687 = vadd.xlane.f32.xlu1 %v686_v59  ;;  %v563_v40 = vadd.f32 %v1808_v51, %v524_v27  ;;  %v564_v41 = vadd.f32 %v1808_v51, %v525_v28  ;;  %v725_v42 = vsel %vm28_vm0, %v1937_v32, 0.0  ;;  %v728_v43 = vsel %vm28_vm0, %v1939_v35, 0.0  ;;  %v522_v59 = vld [vmem:[#allocation2 + $0xc0] sm:$0xff] }
  0xff   :  { %v695_v48 = vsel %vm28_vm0, %v1941_v38, 0.0  ;;  %v698_v50 = vsel %vm28_vm0, %v1943_v39, 0.0  ;;  %v545_v54 = vadd.f32 %v1808_v51, %v506_v45  ;;  %v1444_v49 = vunpack.c.l.bf16 %v1493_v46  ;;  %v512_v3 = vld [vmem:[#allocation2 + $0x70] sm:$0xff] }
 0x100   :  { %v1958_v52 = vadd.f32 %v1480_v36, %v563_v40  ;;  %v1960_v53 = vadd.f32 %v1481_v37, %v564_v41  ;;  %v546_v56 = vadd.f32 %v1808_v51, %v507_v47  ;;  %v1445_v57 = vunpack.c.h.bf16 %v1493_v46  ;;  %v510_v26 = vld [vmem:[#allocation2 + $0x60] sm:$0xff] }
 0x101   :  { %732 = vadd.xlane.f32.xlu0 %v731_v6  ;;  %v1476_v1 = vunpack.c.l.bf16 %v1501_v58  ;;  %v1477_v2 = vunpack.c.h.bf16 %v1501_v58  ;;  %v513_v5 = vld [vmem:[#allocation2 + $0x78] sm:$0xff]  ;;  %v1974_v6 = vadd.f32 %v1444_v49, %v545_v54  ;;  %v561_v8 = vadd.f32 %v1808_v51, %v522_v59  ;;  %v526_v40 = vld [vmem:[#allocation2 + $0xe0] sm:$0xff] }
 0x102   :  { %735 = vadd.xlane.f32.xlu1 %v734_v7  ;;  %v743_v63 = vsel %vm28_vm0, %v1958_v52, 0.0  ;;  %v746_v0 = vsel %vm28_vm0, %v1960_v53, 0.0  ;;  %v1976_v7 = vadd.f32 %v1445_v57, %v546_v56  ;;  %v562_v9 = vadd.f32 %v1808_v51, %v523_v62  ;;  %v511_v27 = vld [vmem:[#allocation2 + $0x68] sm:$0xff]  ;;  %v1504_v59 = vld [vmem:[%s2469_s3 + $0x78] sm:$0xff]   ;;  %v528_v62 = vld [vmem:[#allocation2 + $0xf0] sm:$0xff] }
 0x103   :  { %v551_v10 = vadd.f32 %v1808_v51, %v512_v3  ;;  %v1456_v11 = vunpack.c.l.bf16 %v1496_v4  ;;  %v552_v12 = vadd.f32 %v1808_v51, %v513_v5  ;;  %v1457_v15 = vunpack.c.h.bf16 %v1496_v4  ;;  %v527_v41 = vld [vmem:[#allocation2 + $0xe8] sm:$0xff] }
 0x104   :  { %v689_v16 = vsel %vm28_vm0, %v1974_v6, 0.0  ;;  %v692_v19 = vsel %vm28_vm0, %v1976_v7, 0.0  ;;  %v1986_v21 = vadd.f32 %v1476_v1, %v561_v8  ;;  %v1988_v24 = vadd.f32 %v1477_v2, %v562_v9 }
 0x105   :  { %678 = vadd.xlane.f32.xlu0 %v677_v29  ;;  %v1993_v28 = vadd.f32 %v1456_v11, %v551_v10  ;;  %v1995_v29 = vadd.f32 %v1457_v15, %v552_v12  ;;  %v1452_v36 = vunpack.c.l.bf16 %v1495_v25  ;;  %v1453_v37 = vunpack.c.h.bf16 %v1495_v25 }
 0x106   :  { %681 = vadd.xlane.f32.xlu1 %v680_v31  ;;  %v1503_v31 = vld [vmem:[%s2469_s3 + $0x70] sm:$0xff]   ;;  %v549_v45 = vadd.f32 %v1808_v51, %v510_v26  ;;  %v550_v46 = vadd.f32 %v1808_v51, %v511_v27  ;;  %v565_v49 = vadd.f32 %v1808_v51, %v526_v40  ;;  %v566_v56 = vadd.f32 %v1808_v51, %v527_v41 }
 0x107   :  { %v1484_v47 = vunpack.c.l.bf16 %v1503_v31  ;;  %v710_v54 = vsel %vm28_vm0, %v1995_v29, 0.0  ;;  %v1488_v2 = vunpack.c.l.bf16 %v1504_v59  ;;  %v1489_v3 = vunpack.c.h.bf16 %v1504_v59 }
 0x108   :  { %v2012_v57 = vadd.f32 %v1452_v36, %v549_v45  ;;  %v2014_v58 = vadd.f32 %v1453_v37, %v550_v46  ;;  %v567_v8 = vadd.f32 %v1808_v51, %v528_v62 }
 0x109   :  { %726 = vadd.xlane.f32.xlu0 %v725_v42  ;;  %v737_v42 = vsel %vm28_vm0, %v1986_v21, 0.0 }
 0x10a   :  { %729 = vadd.xlane.f32.xlu1 %v728_v43  ;;  %v740_v43 = vsel %vm28_vm0, %v1988_v24, 0.0  ;;  %v701_v4 = vsel %vm28_vm0, %v2012_v57, 0.0  ;;  %v704_v5 = vsel %vm28_vm0, %v2014_v58, 0.0  ;;  %v2033_v12 = vadd.f32 %v1488_v2, %v567_v8 }
 0x10d   :  { %696 = vadd.xlane.f32.xlu0 %v695_v48  ;;  %v1485_v48 = vunpack.c.h.bf16 %v1503_v31 }
 0x10e   :  { %699 = vadd.xlane.f32.xlu1 %v698_v50  ;;  %v707_v50 = vsel %vm28_vm0, %v1993_v28, 0.0 }
 0x10f   :  { %v2021_v1 = vadd.f32 %v1485_v48, %v566_v56 }
 0x111   :  { %744 = vadd.xlane.f32.xlu0 %v743_v63  ;;  %v529_v63 = vld [vmem:[#allocation2 + $0xf8] sm:$0xff]  ;;  %v752_v11 = vsel %vm28_vm0, %v2021_v1, 0.0 }
 0x112   :  { %747 = vadd.xlane.f32.xlu1 %v746_v0  ;;  %v2019_v0 = vadd.f32 %v1484_v47, %v565_v49  ;;  %v568_v9 = vadd.f32 %v1808_v51, %v529_v63 }
 0x114   :  { %v749_v10 = vsel %vm28_vm0, %v2019_v0, 0.0  ;;  %v2035_v15 = vadd.f32 %v1489_v3, %v568_v9 }
 0x115   :  { %690 = vadd.xlane.f32.xlu0 %v689_v16  ;;  %v755_v16 = vsel %vm28_vm0, %v2033_v12, 0.0 }
 0x116   :  { %693 = vadd.xlane.f32.xlu1 %v692_v19  ;;  %v758_v51 = vsel %vm28_vm0, %v2035_v15, 0.0 }
 0x119   :  { %738 = vadd.xlane.f32.xlu0 %v737_v42 }
 0x11a   :  { %741 = vadd.xlane.f32.xlu1 %v740_v43 }
 0x11d   :  { %708 = vadd.xlane.f32.xlu0 %v707_v50 }
 0x11e   :  { %711 = vadd.xlane.f32.xlu1 %v710_v54 }
 0x121   :  { %702 = vadd.xlane.f32.xlu0 %v701_v4 }
 0x122   :  { %705 = vadd.xlane.f32.xlu1 %v704_v5 }
 0x125   :  { %750 = vadd.xlane.f32.xlu0 %v749_v10 }
 0x126   :  { %753 = vadd.xlane.f32.xlu1 %v752_v11 }
 0x129   :  { %756 = vadd.xlane.f32.xlu0 %v755_v16 }
 0x12a   :  { %759 = vadd.xlane.f32.xlu1 %v758_v51 }
 0x17a   :  { %v721_v19 = vpop.xlane.xlu0 %720 }
 0x17b   :  { %v673_v25 = vpop.xlane.xlu1 %672  ;;  %v780_v26 = vmul.f32 0.03125, %v721_v19 }
 0x17c   :  { %v764_v27 = vmul.f32 0.03125, %v673_v25 }
 0x17d   :  { %v2042_v31 = vsub.f32 %v1825_v22, %v780_v26 }
 0x17e   :  { %v2045_v36 = vsub.f32 %v1827_v23, %v764_v27  ;;  %v667_v37 = vpop.xlane.xlu0 %666 }
 0x17f   :  { %v676_v40 = vpop.xlane.xlu1 %675  ;;  %v762_v41 = vmul.f32 0.03125, %v667_v37  ;;  %v844_v22 = vmul.f32 %v2042_v31, %v2042_v31 }
 0x180   :  { %v765_v42 = vmul.f32 0.03125, %v676_v40  ;;  %v828_v43 = vmul.f32 %v2045_v36, %v2045_v36 }
 0x181   :  { %v2050_v45 = vsub.f32 %v1841_v33, %v762_v41  ;;  %v912_v59 = vsel %vm28_vm0, %v844_v22, 0.0 }
 0x182   :  { %v2053_v46 = vsub.f32 %v1843_v34, %v765_v42  ;;  %v864_v47 = vsel %vm28_vm0, %v828_v43, 0.0  ;;  %v715_v23 = vpop.xlane.xlu0 %714 }
 0x183   :  { %v724_v48 = vpop.xlane.xlu1 %723  ;;  %865 = vadd.xlane.f32.xlu0 %v864_v47  ;;  %v778_v50 = vmul.f32 0.03125, %v715_v23  ;;  %v826_v33 = vmul.f32 %v2050_v45, %v2050_v45 }
 0x184   :  { %v781_v54 = vmul.f32 0.03125, %v724_v48  ;;  %v829_v49 = vmul.f32 %v2053_v46, %v2053_v46 }
 0x185   :  { %v2063_v56 = vsub.f32 %v1847_v44, %v778_v50  ;;  %v858_v8 = vsel %vm28_vm0, %v826_v33, 0.0 }
 0x186   :  { %v2066_v34 = vsub.f32 %v1853_v55, %v781_v54  ;;  %v867_v62 = vsel %vm28_vm0, %v829_v49, 0.0  ;;  %v670_v2 = vpop.xlane.xlu0 %669 }
 0x187   :  { %v718_v63 = vpop.xlane.xlu1 %717  ;;  %913 = vadd.xlane.f32.xlu0 %v912_v59  ;;  %868 = vadd.xlane.f32.xlu1 %v867_v62  ;;  %v763_v4 = vmul.f32 0.03125, %v670_v2  ;;  %v842_v10 = vmul.f32 %v2063_v56, %v2063_v56 }
 0x188   :  { %v779_v3 = vmul.f32 0.03125, %v718_v63  ;;  %v845_v5 = vmul.f32 %v2066_v34, %v2066_v34 }
 0x189   :  { %v2077_v55 = vsub.f32 %v1879_v18, %v763_v4  ;;  %v906_v27 = vsel %vm28_vm0, %v842_v10, 0.0 }
 0x18a   :  { %v2074_v44 = vsub.f32 %v1877_v17, %v779_v3  ;;  %v915_v9 = vsel %vm28_vm0, %v845_v5, 0.0  ;;  %v685_v11 = vpop.xlane.xlu0 %684 }
 0x18b   :  { %v688_v16 = vpop.xlane.xlu1 %687  ;;  %859 = vadd.xlane.f32.xlu0 %v858_v8  ;;  %916 = vadd.xlane.f32.xlu1 %v915_v9  ;;  %v768_v51 = vmul.f32 0.03125, %v685_v11  ;;  %v827_v25 = vmul.f32 %v2077_v55, %v2077_v55 }
 0x18c   :  { %v769_v19 = vmul.f32 0.03125, %v688_v16  ;;  %v843_v17 = vmul.f32 %v2074_v44, %v2074_v44 }
 0x18d   :  { %v2087_v18 = vsub.f32 %v1881_v20, %v768_v51  ;;  %v861_v37 = vsel %vm28_vm0, %v827_v25, 0.0 }
 0x18e   :  { %v2090_v26 = vsub.f32 %v1884_v30, %v769_v19  ;;  %v733_v40 = vpop.xlane.xlu0 %732  ;;  %v909_v22 = vsel %vm28_vm0, %v843_v17, 0.0 }
 0x18f   :  { %v736_v41 = vpop.xlane.xlu1 %735  ;;  %907 = vadd.xlane.f32.xlu0 %v906_v27  ;;  %862 = vadd.xlane.f32.xlu1 %v861_v37  ;;  %v784_v42 = vmul.f32 0.03125, %v733_v40  ;;  %v832_v47 = vmul.f32 %v2087_v18, %v2087_v18 }
 0x190   :  { %v785_v43 = vmul.f32 0.03125, %v736_v41  ;;  %v833_v48 = vmul.f32 %v2090_v26, %v2090_v26 }
 0x191   :  { %v2098_v20 = vsub.f32 %v1901_v60, %v784_v42  ;;  %v876_v23 = vsel %vm28_vm0, %v832_v47, 0.0 }
 0x192   :  { %v2101_v30 = vsub.f32 %v1903_v61, %v785_v43  ;;  %v679_v50 = vpop.xlane.xlu0 %678  ;;  %v879_v2 = vsel %vm28_vm0, %v833_v48, 0.0 }
 0x193   :  { %v682_v54 = vpop.xlane.xlu1 %681  ;;  %877 = vadd.xlane.f32.xlu0 %v876_v23  ;;  %910 = vadd.xlane.f32.xlu1 %v909_v22  ;;  %v766_v49 = vmul.f32 0.03125, %v679_v50  ;;  %v848_v59 = vmul.f32 %v2098_v20, %v2098_v20 }
 0x194   :  { %v767_v33 = vmul.f32 0.03125, %v682_v54  ;;  %v849_v60 = vmul.f32 %v2101_v30, %v2101_v30 }
 0x195   :  { %v2111_v61 = vsub.f32 %v1922_v13, %v766_v49  ;;  %v924_v63 = vsel %vm28_vm0, %v848_v59, 0.0 }
 0x196   :  { %v2114_v62 = vsub.f32 %v1924_v14, %v767_v33  ;;  %v727_v3 = vpop.xlane.xlu0 %726  ;;  %v927_v10 = vsel %vm28_vm0, %v849_v60, 0.0 }
 0x197   :  { %v730_v4 = vpop.xlane.xlu1 %729  ;;  %925 = vadd.xlane.f32.xlu0 %v924_v63  ;;  %880 = vadd.xlane.f32.xlu1 %v879_v2  ;;  %v782_v5 = vmul.f32 0.03125, %v727_v3  ;;  %v830_v9 = vmul.f32 %v2111_v61, %v2111_v61 }
 0x198   :  { %v783_v8 = vmul.f32 0.03125, %v730_v4  ;;  %v831_v16 = vmul.f32 %v2114_v62, %v2114_v62 }
 0x199   :  { %v2122_v13 = vsub.f32 %v1937_v32, %v782_v5  ;;  %v870_v11 = vsel %vm28_vm0, %v830_v9, 0.0 }
 0x19a   :  { %v2125_v14 = vsub.f32 %v1939_v35, %v783_v8  ;;  %v697_v51 = vpop.xlane.xlu0 %696  ;;  %v873_v41 = vsel %vm28_vm0, %v831_v16, 0.0 }
 0x19b   :  { %v700_v19 = vpop.xlane.xlu1 %699  ;;  %871 = vadd.xlane.f32.xlu0 %v870_v11  ;;  %928 = vadd.xlane.f32.xlu1 %v927_v10  ;;  %v772_v25 = vmul.f32 0.03125, %v697_v51  ;;  %v846_v27 = vmul.f32 %v2122_v13, %v2122_v13 }
 0x19c   :  { %v773_v17 = vmul.f32 0.03125, %v700_v19  ;;  %v847_v32 = vmul.f32 %v2125_v14, %v2125_v14 }
 0x19d   :  { %v2135_v35 = vsub.f32 %v1941_v38, %v772_v25  ;;  %v918_v40 = vsel %vm28_vm0, %v846_v27, 0.0 }
 0x19e   :  { %v2138_v37 = vsub.f32 %v1943_v39, %v773_v17  ;;  %v745_v42 = vpop.xlane.xlu0 %744  ;;  %v921_v48 = vsel %vm28_vm0, %v847_v32, 0.0 }
 0x19f   :  { %v748_v43 = vpop.xlane.xlu1 %747  ;;  %919 = vadd.xlane.f32.xlu0 %v918_v40  ;;  %874 = vadd.xlane.f32.xlu1 %v873_v41  ;;  %v788_v47 = vmul.f32 0.03125, %v745_v42  ;;  %v836_v23 = vmul.f32 %v2135_v35, %v2135_v35 }
 0x1a0   :  { %v789_v22 = vmul.f32 0.03125, %v748_v43  ;;  %v837_v54 = vmul.f32 %v2138_v37, %v2138_v37 }
 0x1a1   :  { %v2146_v38 = vsub.f32 %v1958_v52, %v788_v47  ;;  %v888_v50 = vsel %vm28_vm0, %v836_v23, 0.0 }
 0x1a2   :  { %v2149_v39 = vsub.f32 %v1960_v53, %v789_v22  ;;  %v691_v49 = vpop.xlane.xlu0 %690  ;;  %v891_v4 = vsel %vm28_vm0, %v837_v54, 0.0 }
 0x1a3   :  { %v694_v33 = vpop.xlane.xlu1 %693  ;;  %889 = vadd.xlane.f32.xlu0 %v888_v50  ;;  %922 = vadd.xlane.f32.xlu1 %v921_v48  ;;  %v770_v59 = vmul.f32 0.03125, %v691_v49  ;;  %v852_v63 = vmul.f32 %v2146_v38, %v2146_v38 }
 0x1a4   :  { %v771_v60 = vmul.f32 0.03125, %v694_v33  ;;  %v853_v52 = vmul.f32 %v2149_v39, %v2149_v39 }
 0x1a5   :  { %v2159_v53 = vsub.f32 %v1974_v6, %v770_v59  ;;  %v936_v3 = vsel %vm28_vm0, %v852_v63, 0.0 }
 0x1a6   :  { %v2162_v2 = vsub.f32 %v1976_v7, %v771_v60  ;;  %v739_v5 = vpop.xlane.xlu0 %738  ;;  %v939_v16 = vsel %vm28_vm0, %v853_v52, 0.0 }
 0x1a7   :  { %v742_v8 = vpop.xlane.xlu1 %741  ;;  %937 = vadd.xlane.f32.xlu0 %v936_v3  ;;  %892 = vadd.xlane.f32.xlu1 %v891_v4  ;;  %v786_v9 = vmul.f32 0.03125, %v739_v5  ;;  %v834_v11 = vmul.f32 %v2159_v53, %v2159_v53 }
 0x1a8   :  { %v787_v10 = vmul.f32 0.03125, %v742_v8  ;;  %v835_v19 = vmul.f32 %v2162_v2, %v2162_v2 }
 0x1a9   :  { %v2170_v6 = vsub.f32 %v1986_v21, %v786_v9  ;;  %v882_v51 = vsel %vm28_vm0, %v834_v11, 0.0 }
 0x1aa   :  { %v2173_v7 = vsub.f32 %v1988_v24, %v787_v10  ;;  %v709_v25 = vpop.xlane.xlu0 %708  ;;  %v885_v43 = vsel %vm28_vm0, %v835_v19, 0.0 }
 0x1ab   :  { %883 = vadd.xlane.f32.xlu0 %v882_v51  ;;  %v712_v17 = vpop.xlane.xlu1 %711  ;;  %940 = vadd.xlane.f32.xlu1 %v939_v16  ;;  %v776_v27 = vmul.f32 0.03125, %v709_v25  ;;  %v850_v40 = vmul.f32 %v2170_v6, %v2170_v6 }
 0x1ac   :  { %v777_v32 = vmul.f32 0.03125, %v712_v17  ;;  %v851_v21 = vmul.f32 %v2173_v7, %v2173_v7 }
 0x1ad   :  { %v2183_v24 = vsub.f32 %v1993_v28, %v776_v27  ;;  %v930_v42 = vsel %vm28_vm0, %v850_v40, 0.0 }
 0x1ae   :  { %v2186_v41 = vsub.f32 %v1995_v29, %v777_v32  ;;  %v703_v47 = vpop.xlane.xlu0 %702  ;;  %v933_v54 = vsel %vm28_vm0, %v851_v21, 0.0 }
 0x1af   :  { %931 = vadd.xlane.f32.xlu0 %v930_v42  ;;  %886 = vadd.xlane.f32.xlu1 %v885_v43  ;;  %v706_v22 = vpop.xlane.xlu1 %705  ;;  %v774_v23 = vmul.f32 0.03125, %v703_v47  ;;  %v840_v50 = vmul.f32 %v2183_v24, %v2183_v24 }
 0x1b0   :  { %v775_v48 = vmul.f32 0.03125, %v706_v22  ;;  %v841_v33 = vmul.f32 %v2186_v41, %v2186_v41 }
 0x1b1   :  { %v2194_v28 = vsub.f32 %v2012_v57, %v774_v23  ;;  %v900_v49 = vsel %vm28_vm0, %v840_v50, 0.0 }
 0x1b2   :  { %v2197_v29 = vsub.f32 %v2014_v58, %v775_v48  ;;  %v751_v59 = vpop.xlane.xlu0 %750  ;;  %v903_v8 = vsel %vm28_vm0, %v841_v33, 0.0 }
 0x1b3   :  { %901 = vadd.xlane.f32.xlu0 %v900_v49  ;;  %934 = vadd.xlane.f32.xlu1 %v933_v54  ;;  %v754_v60 = vpop.xlane.xlu1 %753  ;;  %v790_v63 = vmul.f32 0.03125, %v751_v59  ;;  %v838_v3 = vmul.f32 %v2194_v28, %v2194_v28 }
 0x1b4   :  { %v791_v52 = vmul.f32 0.03125, %v754_v60  ;;  %v839_v57 = vmul.f32 %v2197_v29, %v2197_v29 }
 0x1b5   :  { %v2207_v58 = vsub.f32 %v2019_v0, %v790_v63  ;;  %v894_v5 = vsel %vm28_vm0, %v838_v3, 0.0 }
 0x1b6   :  { %v2210_v4 = vsub.f32 %v2021_v1, %v791_v52  ;;  %v757_v9 = vpop.xlane.xlu0 %756  ;;  %v897_v19 = vsel %vm28_vm0, %v839_v57, 0.0 }
 0x1b7   :  { %895 = vadd.xlane.f32.xlu0 %v894_v5  ;;  %904 = vadd.xlane.f32.xlu1 %v903_v8  ;;  %v760_v10 = vpop.xlane.xlu1 %759  ;;  %v792_v11 = vmul.f32 0.03125, %v757_v9  ;;  %v854_v51 = vmul.f32 %v2207_v58, %v2207_v58 }
 0x1b8   :  { %v793_v16 = vmul.f32 0.03125, %v760_v10  ;;  %v855_v17 = vmul.f32 %v2210_v4, %v2210_v4  ;;  %v2236_v10 = vld [vmem:[%s2471_s4] ss:$0 sm:$0xff] }
 0x1b9   :  { %v2218_v0 = vsub.f32 %v2033_v12, %v792_v11  ;;  %v942_v25 = vsel %vm28_vm0, %v854_v51, 0.0 }
 0x1ba   :  { %v2221_v1 = vsub.f32 %v2035_v15, %v793_v16  ;;  %v945_v40 = vsel %vm28_vm0, %v855_v17, 0.0  ;;  %v2242_v17 = vld [vmem:[%s2472_s5] ss:$0 sm:$0xff] }
 0x1bb   :  { %943 = vadd.xlane.f32.xlu0 %v942_v25  ;;  %898 = vadd.xlane.f32.xlu1 %v897_v19  ;;  %v856_v27 = vmul.f32 %v2218_v0, %v2218_v0 }
 0x1bc   :  { %v857_v12 = vmul.f32 %v2221_v1, %v2221_v1 }
 0x1bd   :  { %v948_v32 = vsel %vm28_vm0, %v856_v27, 0.0 }
 0x1be   :  { %v951_v15 = vsel %vm28_vm0, %v857_v12, 0.0 }
 0x1bf   :  { %949 = vadd.xlane.f32.xlu0 %v948_v32  ;;  %946 = vadd.xlane.f32.xlu1 %v945_v40 }
 0x1c3   :  { %952 = vadd.xlane.f32.xlu1 %v951_v15 }
 0x210   :  { %v866_v21 = vpop.xlane.xlu0 %865 }
 0x211   :  { %v956_v42 = vmul.f32 0.03125, %v866_v21 }
 0x213   :  { %v988_v43 = vadd.f32 1e-05, %v956_v42 }
 0x214   :  { %v914_v47 = vpop.xlane.xlu0 %913  ;;  %v869_v22 = vpop.xlane.xlu1 %868 }
 0x215   :  { %1582 = vrsqrt.f32 %v988_v43  ;;  %v972_v23 = vmul.f32 0.03125, %v914_v47  ;;  %v957_v48 = vmul.f32 0.03125, %v869_v22 }
 0x217   :  { %v1004_v50 = vadd.f32 1e-05, %v972_v23  ;;  %v989_v54 = vadd.f32 1e-05, %v957_v48 }
 0x218   :  { %v860_v49 = vpop.xlane.xlu0 %859  ;;  %v917_v33 = vpop.xlane.xlu1 %916 }
 0x219   :  { %1584 = vrsqrt.f32 %v1004_v50  ;;  %v954_v59 = vmul.f32 0.03125, %v860_v49  ;;  %v973_v60 = vmul.f32 0.03125, %v917_v33 }
 0x21a   :  { %1586 = vrsqrt.f32 %v989_v54 }
 0x21b   :  { %v986_v63 = vadd.f32 1e-05, %v954_v59  ;;  %v1005_v52 = vadd.f32 1e-05, %v973_v60 }
 0x21c   :  { %v908_v3 = vpop.xlane.xlu0 %907  ;;  %v863_v57 = vpop.xlane.xlu1 %862 }
 0x21d   :  { %1588 = vrsqrt.f32 %v986_v63  ;;  %v970_v5 = vmul.f32 0.03125, %v908_v3  ;;  %v955_v8 = vmul.f32 0.03125, %v863_v57 }
 0x21e   :  { %1590 = vrsqrt.f32 %v1005_v52 }
 0x21f   :  { %v1583_v9 = vpop.eup %1582  ;;  %v1002_v11 = vadd.f32 1e-05, %v970_v5  ;;  %v987_v16 = vadd.f32 1e-05, %v955_v8 }
 0x220   :  { %v1052_v51 = vmul.f32 %v1583_v9, %v2045_v36  ;;  %v878_v19 = vpop.xlane.xlu0 %877  ;;  %v911_v25 = vpop.xlane.xlu1 %910 }
 0x221   :  { %1592 = vrsqrt.f32 %v1002_v11  ;;  %v960_v27 = vmul.f32 0.03125, %v878_v19  ;;  %v971_v32 = vmul.f32 0.03125, %v911_v25 }
 0x222   :  { %v1091_v40 = vmul.f32 %v2236_v10, %v1052_v51  ;;  %1594 = vrsqrt.f32 %v987_v16 }
 0x223   :  { %v1585_v12 = vpop.eup %1584  ;;  %v992_v15 = vadd.f32 1e-05, %v960_v27  ;;  %v1003_v21 = vadd.f32 1e-05, %v971_v32 }
 0x224   :  { %v1587_v42 = vpop.eup %1586  ;;  %v1130_v36 = vadd.f32 %v2242_v17, %v1091_v40  ;;  %v1068_v43 = vmul.f32 %v1585_v12, %v2042_v31  ;;  %v926_v47 = vpop.xlane.xlu0 %925 }
 0x225   :  { %v881_v22 = vpop.xlane.xlu1 %880  ;;  %v1053_v23 = vmul.f32 %v1587_v42, %v2053_v46  ;;  %1596 = vrsqrt.f32 %v992_v15  ;;  %v976_v48 = vmul.f32 0.03125, %v926_v47 }
 0x226   :  { %v961_v50 = vmul.f32 0.03125, %v881_v22  ;;  %v1396_v54 = vpack.c.bf16 %v1130_v36, %v1130_v36  ;;  %v1107_v49 = vmul.f32 %v2236_v10, %v1068_v43  ;;  %1598 = vrsqrt.f32 %v1003_v21 }
 0x227   :  { %v1589_v33 = vpop.eup %1588  ;;  %v1092_v59 = vmul.f32 %v2236_v10, %v1053_v23  ;;  %v1008_v60 = vadd.f32 1e-05, %v976_v48 }
 0x228   :  { %v993_v63 = vadd.f32 1e-05, %v961_v50  ;;  %v1591_v52 = vpop.eup %1590  ;;  %1291 = vst.msk [vmem:[%s2473_s6 + $0x8] sm:$0xf] %vm1288_vm1, %v1396_v54  ;;  %v1146_v31 = vadd.f32 %v2242_v17, %v1107_v49  ;;  %v1050_v46 = vmul.f32 %v1589_v33, %v2050_v45  ;;  %v872_v3 = vpop.xlane.xlu0 %871 }
 0x229   :  { %v929_v57 = vpop.xlane.xlu1 %928  ;;  %v1131_v5 = vadd.f32 %v2242_v17, %v1092_v59  ;;  %v1069_v8 = vmul.f32 %v1591_v52, %v2066_v34  ;;  %1600 = vrsqrt.f32 %v1008_v60  ;;  %v958_v9 = vmul.f32 0.03125, %v872_v3 }
 0x22a   :  { %v1412_v11 = vpack.c.bf16 %v1146_v31, %v1146_v31  ;;  %v1089_v16 = vmul.f32 %v2236_v10, %v1050_v46  ;;  %1602 = vrsqrt.f32 %v993_v63  ;;  %v977_v51 = vmul.f32 0.03125, %v929_v57 }
 0x22b   :  { %v1593_v19 = vpop.eup %1592  ;;  %v1397_v25 = vpack.c.bf16 %v1131_v5, %v1131_v5  ;;  %v1108_v27 = vmul.f32 %v2236_v10, %v1069_v8  ;;  %v990_v32 = vadd.f32 1e-05, %v958_v9 }
 0x22c   :  { %v1595_v40 = vpop.eup %1594  ;;  %1307 = vst.msk [vmem:[%s2473_s6 + $0x48] sm:$0xf] %vm1288_vm1, %v1412_v11  ;;  %v1128_v45 = vadd.f32 %v2242_v17, %v1089_v16  ;;  %v1066_v34 = vmul.f32 %v1593_v19, %v2063_v56  ;;  %v1009_v12 = vadd.f32 1e-05, %v977_v51  ;;  %v920_v15 = vpop.xlane.xlu0 %919 }
 0x22d   :  { %v875_v21 = vpop.xlane.xlu1 %874  ;;  %1292 = vst.msk [vmem:[%s2473_s6 + $0xc] sm:$0xf] %vm1288_vm1, %v1397_v25  ;;  %v1147_v42 = vadd.f32 %v2242_v17, %v1108_v27  ;;  %v1051_v36 = vmul.f32 %v1595_v40, %v2077_v55  ;;  %1604 = vrsqrt.f32 %v990_v32  ;;  %v974_v43 = vmul.f32 0.03125, %v920_v15 }
 0x22e   :  { %v1394_v47 = vpack.c.bf16 %v1128_v45, %v1128_v45  ;;  %v1105_v22 = vmul.f32 %v2236_v10, %v1066_v34  ;;  %1606 = vrsqrt.f32 %v1009_v12  ;;  %v959_v23 = vmul.f32 0.03125, %v875_v21 }
 0x22f   :  { %v1597_v56 = vpop.eup %1596  ;;  %v1413_v48 = vpack.c.bf16 %v1147_v42, %v1147_v42  ;;  %v1090_v50 = vmul.f32 %v2236_v10, %v1051_v36  ;;  %v1006_v54 = vadd.f32 1e-05, %v974_v43 }
 0x230   :  { %v1599_v49 = vpop.eup %1598  ;;  %1289 = vst.msk [vmem:[%s2473_s6] sm:$0xf] %vm1288_vm1, %v1394_v47  ;;  %v1144_v55 = vadd.f32 %v2242_v17, %v1105_v22  ;;  %v1056_v33 = vmul.f32 %v1597_v56, %v2087_v18  ;;  %v991_v59 = vadd.f32 1e-05, %v959_v23  ;;  %v890_v60 = vpop.xlane.xlu0 %889 }
 0x231   :  { %v923_v63 = vpop.xlane.xlu1 %922  ;;  %1308 = vst.msk [vmem:[%s2473_s6 + $0x4c] sm:$0xf] %vm1288_vm1, %v1413_v48  ;;  %v1129_v52 = vadd.f32 %v2242_v17, %v1090_v50  ;;  %v1067_v31 = vmul.f32 %v1599_v49, %v2074_v44  ;;  %1608 = vrsqrt.f32 %v1006_v54  ;;  %v964_v46 = vmul.f32 0.03125, %v890_v60 }
 0x232   :  { %v1410_v3 = vpack.c.bf16 %v1144_v55, %v1144_v55  ;;  %v1095_v57 = vmul.f32 %v2236_v10, %v1056_v33  ;;  %1610 = vrsqrt.f32 %v991_v59  ;;  %v975_v5 = vmul.f32 0.03125, %v923_v63 }
 0x233   :  { %v1601_v18 = vpop.eup %1600  ;;  %v1395_v8 = vpack.c.bf16 %v1129_v52, %v1129_v52  ;;  %v1106_v9 = vmul.f32 %v2236_v10, %v1067_v31  ;;  %v996_v11 = vadd.f32 1e-05, %v964_v46 }
 0x234   :  { %v1603_v16 = vpop.eup %1602  ;;  %1305 = vst.msk [vmem:[%s2473_s6 + $0x40] sm:$0xf] %vm1288_vm1, %v1410_v3  ;;  %v1134_v44 = vadd.f32 %v2242_v17, %v1095_v57  ;;  %v1072_v51 = vmul.f32 %v1601_v18, %v2098_v20  ;;  %v1007_v19 = vadd.f32 1e-05, %v975_v5  ;;  %v938_v25 = vpop.xlane.xlu0 %937 }
 0x235   :  { %v893_v27 = vpop.xlane.xlu1 %892  ;;  %1290 = vst.msk [vmem:[%s2473_s6 + $0x4] sm:$0xf] %vm1288_vm1, %v1395_v8  ;;  %v1145_v32 = vadd.f32 %v2242_v17, %v1106_v9  ;;  %v1057_v40 = vmul.f32 %v1603_v16, %v2090_v26  ;;  %1612 = vrsqrt.f32 %v996_v11  ;;  %v980_v45 = vmul.f32 0.03125, %v938_v25 }
 0x236   :  { %v1400_v34 = vpack.c.bf16 %v1134_v44, %v1134_v44  ;;  %v1111_v12 = vmul.f32 %v2236_v10, %v1072_v51  ;;  %1614 = vrsqrt.f32 %v1007_v19  ;;  %v965_v15 = vmul.f32 0.03125, %v893_v27 }
 0x237   :  { %v1605_v20 = vpop.eup %1604  ;;  %v1411_v21 = vpack.c.bf16 %v1145_v32, %v1145_v32  ;;  %v1096_v42 = vmul.f32 %v2236_v10, %v1057_v40  ;;  %v1012_v36 = vadd.f32 1e-05, %v980_v45 }
 0x238   :  { %v1607_v43 = vpop.eup %1606  ;;  %1295 = vst.msk [vmem:[%s2473_s6 + $0x18] sm:$0xf] %vm1288_vm1, %v1400_v34  ;;  %v1150_v26 = vadd.f32 %v2242_v17, %v1111_v12  ;;  %v1054_v47 = vmul.f32 %v1605_v20, %v2111_v61  ;;  %v997_v22 = vadd.f32 1e-05, %v965_v15  ;;  %v884_v23 = vpop.xlane.xlu0 %883 }
 0x239   :  { %v941_v56 = vpop.xlane.xlu1 %940  ;;  %1306 = vst.msk [vmem:[%s2473_s6 + $0x44] sm:$0xf] %vm1288_vm1, %v1411_v21  ;;  %v1135_v48 = vadd.f32 %v2242_v17, %v1096_v42  ;;  %v1073_v50 = vmul.f32 %v1607_v43, %v2101_v30  ;;  %1616 = vrsqrt.f32 %v1012_v36  ;;  %v962_v54 = vmul.f32 0.03125, %v884_v23 }
 0x23a   :  { %v1416_v49 = vpack.c.bf16 %v1150_v26, %v1150_v26  ;;  %v1093_v55 = vmul.f32 %v2236_v10, %v1054_v47  ;;  %1618 = vrsqrt.f32 %v997_v22  ;;  %v981_v33 = vmul.f32 0.03125, %v941_v56 }
 0x23b   :  { %v1609_v61 = vpop.eup %1608  ;;  %v1401_v59 = vpack.c.bf16 %v1135_v48, %v1135_v48  ;;  %v1112_v60 = vmul.f32 %v2236_v10, %v1073_v50  ;;  %v994_v63 = vadd.f32 1e-05, %v962_v54 }
 0x23c   :  { %v1611_v52 = vpop.eup %1610  ;;  %1311 = vst.msk [vmem:[%s2473_s6 + $0x58] sm:$0xf] %vm1288_vm1, %v1416_v49  ;;  %v1132_v30 = vadd.f32 %v2242_v17, %v1093_v55  ;;  %v1070_v31 = vmul.f32 %v1609_v61, %v2122_v13  ;;  %v1013_v46 = vadd.f32 1e-05, %v981_v33  ;;  %v932_v3 = vpop.xlane.xlu0 %931 }
 0x23d   :  { %v887_v57 = vpop.xlane.xlu1 %886  ;;  %1296 = vst.msk [vmem:[%s2473_s6 + $0x1c] sm:$0xf] %vm1288_vm1, %v1401_v59  ;;  %v1151_v5 = vadd.f32 %v2242_v17, %v1112_v60  ;;  %v1055_v18 = vmul.f32 %v1611_v52, %v2114_v62  ;;  %1620 = vrsqrt.f32 %v994_v63  ;;  %v978_v8 = vmul.f32 0.03125, %v932_v3 }
 0x23e   :  { %v1398_v9 = vpack.c.bf16 %v1132_v30, %v1132_v30  ;;  %v1109_v11 = vmul.f32 %v2236_v10, %v1070_v31  ;;  %1622 = vrsqrt.f32 %v1013_v46  ;;  %v963_v16 = vmul.f32 0.03125, %v887_v57 }
 0x23f   :  { %v1613_v13 = vpop.eup %1612  ;;  %v1417_v44 = vpack.c.bf16 %v1151_v5, %v1151_v5  ;;  %v1094_v51 = vmul.f32 %v2236_v10, %v1055_v18  ;;  %v1010_v19 = vadd.f32 1e-05, %v978_v8 }
 0x240   :  { %v1615_v25 = vpop.eup %1614  ;;  %1293 = vst.msk [vmem:[%s2473_s6 + $0x10] sm:$0xf] %vm1288_vm1, %v1398_v9  ;;  %v1148_v62 = vadd.f32 %v2242_v17, %v1109_v11  ;;  %v1060_v27 = vmul.f32 %v1613_v13, %v2135_v35  ;;  %v995_v32 = vadd.f32 1e-05, %v963_v16  ;;  %v902_v40 = vpop.xlane.xlu0 %901 }
 0x241   :  { %v935_v45 = vpop.xlane.xlu1 %934  ;;  %1312 = vst.msk [vmem:[%s2473_s6 + $0x5c] sm:$0xf] %vm1288_vm1, %v1417_v44  ;;  %v1133_v34 = vadd.f32 %v2242_v17, %v1094_v51  ;;  %v1071_v12 = vmul.f32 %v1615_v25, %v2125_v14  ;;  %1624 = vrsqrt.f32 %v1010_v19  ;;  %v968_v15 = vmul.f32 0.03125, %v902_v40 }
 0x242   :  { %v1414_v20 = vpack.c.bf16 %v1148_v62, %v1148_v62  ;;  %v1099_v21 = vmul.f32 %v2236_v10, %v1060_v27  ;;  %1626 = vrsqrt.f32 %v995_v32  ;;  %v979_v42 = vmul.f32 0.03125, %v935_v45 }
 0x243   :  { %v1617_v35 = vpop.eup %1616  ;;  %v1399_v36 = vpack.c.bf16 %v1133_v34, %v1133_v34  ;;  %v1110_v43 = vmul.f32 %v2236_v10, %v1071_v12  ;;  %v1000_v26 = vadd.f32 1e-05, %v968_v15 }
 0x244   :  { %v1619_v47 = vpop.eup %1618  ;;  %1309 = vst.msk [vmem:[%s2473_s6 + $0x50] sm:$0xf] %vm1288_vm1, %v1414_v20  ;;  %v1138_v14 = vadd.f32 %v2242_v17, %v1099_v21  ;;  %v1076_v22 = vmul.f32 %v1617_v35, %v2146_v38  ;;  %v1011_v23 = vadd.f32 1e-05, %v979_v42  ;;  %v896_v56 = vpop.xlane.xlu0 %895 }
 0x245   :  { %v905_v48 = vpop.xlane.xlu1 %904  ;;  %1294 = vst.msk [vmem:[%s2473_s6 + $0x14] sm:$0xf] %vm1288_vm1, %v1399_v36  ;;  %v1149_v50 = vadd.f32 %v2242_v17, %v1110_v43  ;;  %v1061_v54 = vmul.f32 %v1619_v47, %v2138_v37  ;;  %1628 = vrsqrt.f32 %v1000_v26  ;;  %v966_v49 = vmul.f32 0.03125, %v896_v56 }
 0x246   :  { %v1404_v55 = vpack.c.bf16 %v1138_v14, %v1138_v14  ;;  %v1115_v33 = vmul.f32 %v2236_v10, %v1076_v22  ;;  %1630 = vrsqrt.f32 %v1011_v23  ;;  %v969_v61 = vmul.f32 0.03125, %v905_v48 }
 0x247   :  { %v1621_v38 = vpop.eup %1620  ;;  %v1415_v59 = vpack.c.bf16 %v1149_v50, %v1149_v50  ;;  %v1100_v60 = vmul.f32 %v2236_v10, %v1061_v54  ;;  %v998_v63 = vadd.f32 1e-05, %v966_v49 }
 0x248   :  { %v1623_v52 = vpop.eup %1622  ;;  %1299 = vst.msk [vmem:[%s2473_s6 + $0x28] sm:$0xf] %vm1288_vm1, %v1404_v55  ;;  %v1154_v37 = vadd.f32 %v2242_v17, %v1115_v33  ;;  %v1058_v30 = vmul.f32 %v1621_v38, %v2159_v53  ;;  %v1001_v31 = vadd.f32 1e-05, %v969_v61  ;;  %v944_v46 = vpop.xlane.xlu0 %943 }
 0x249   :  { %v899_v3 = vpop.xlane.xlu1 %898  ;;  %1310 = vst.msk [vmem:[%s2473_s6 + $0x54] sm:$0xf] %vm1288_vm1, %v1415_v59  ;;  %v1139_v57 = vadd.f32 %v2242_v17, %v1100_v60  ;;  %v1077_v5 = vmul.f32 %v1623_v52, %v2149_v39  ;;  %1632 = vrsqrt.f32 %v998_v63  ;;  %v982_v18 = vmul.f32 0.03125, %v944_v46 }
 0x24a   :  { %v1420_v8 = vpack.c.bf16 %v1154_v37, %v1154_v37  ;;  %v1097_v9 = vmul.f32 %v2236_v10, %v1058_v30  ;;  %1634 = vrsqrt.f32 %v1001_v31  ;;  %v967_v11 = vmul.f32 0.03125, %v899_v3 }
 0x24b   :  { %v1625_v53 = vpop.eup %1624  ;;  %v1405_v16 = vpack.c.bf16 %v1139_v57, %v1139_v57  ;;  %v1116_v13 = vmul.f32 %v2236_v10, %v1077_v5  ;;  %v1014_v44 = vadd.f32 1e-05, %v982_v18 }
 0x24c   :  { %v1627_v51 = vpop.eup %1626  ;;  %1315 = vst.msk [vmem:[%s2473_s6 + $0x68] sm:$0xf] %vm1288_vm1, %v1420_v8  ;;  %v1136_v39 = vadd.f32 %v2242_v17, %v1097_v9  ;;  %v1074_v19 = vmul.f32 %v1625_v53, %v2170_v6  ;;  %v999_v25 = vadd.f32 1e-05, %v967_v11  ;;  %v950_v62 = vpop.xlane.xlu0 %949 }
 0x24d   :  { %v947_v27 = vpop.xlane.xlu1 %946  ;;  %1300 = vst.msk [vmem:[%s2473_s6 + $0x2c] sm:$0xf] %vm1288_vm1, %v1405_v16  ;;  %v1155_v32 = vadd.f32 %v2242_v17, %v1116_v13  ;;  %v1059_v40 = vmul.f32 %v1627_v51, %v2162_v2  ;;  %1636 = vrsqrt.f32 %v1014_v44  ;;  %v984_v45 = vmul.f32 0.03125, %v950_v62 }
 0x24e   :  { %v1402_v34 = vpack.c.bf16 %v1136_v39, %v1136_v39  ;;  %v1113_v12 = vmul.f32 %v2236_v10, %v1074_v19  ;;  %1638 = vrsqrt.f32 %v999_v25  ;;  %v983_v15 = vmul.f32 0.03125, %v947_v27 }
 0x24f   :  { %v1629_v6 = vpop.eup %1628  ;;  %v1421_v20 = vpack.c.bf16 %v1155_v32, %v1155_v32  ;;  %v1098_v21 = vmul.f32 %v2236_v10, %v1059_v40  ;;  %v1016_v42 = vadd.f32 1e-05, %v984_v45 }
 0x250   :  { %v1631_v35 = vpop.eup %1630  ;;  %1297 = vst.msk [vmem:[%s2473_s6 + $0x20] sm:$0xf] %vm1288_vm1, %v1402_v34  ;;  %v1152_v2 = vadd.f32 %v2242_v17, %v1113_v12  ;;  %v1064_v36 = vmul.f32 %v1629_v6, %v2183_v24  ;;  %v1015_v43 = vadd.f32 1e-05, %v983_v15 }
 0x251   :  { %v953_v26 = vpop.xlane.xlu1 %952  ;;  %1316 = vst.msk [vmem:[%s2473_s6 + $0x6c] sm:$0xf] %vm1288_vm1, %v1421_v20  ;;  %v1137_v47 = vadd.f32 %v2242_v17, %v1098_v21  ;;  %v1075_v14 = vmul.f32 %v1631_v35, %v2173_v7  ;;  %1640 = vrsqrt.f32 %v1016_v42 }
 0x252   :  { %v985_v22 = vmul.f32 0.03125, %v953_v26  ;;  %v1418_v23 = vpack.c.bf16 %v1152_v2, %v1152_v2  ;;  %v1103_v56 = vmul.f32 %v2236_v10, %v1064_v36  ;;  %1642 = vrsqrt.f32 %v1015_v43 }
 0x253   :  { %v1633_v48 = vpop.eup %1632  ;;  %v1403_v50 = vpack.c.bf16 %v1137_v47, %v1137_v47  ;;  %v1114_v24 = vmul.f32 %v2236_v10, %v1075_v14 }
 0x254   :  { %v1017_v54 = vadd.f32 1e-05, %v985_v22  ;;  %v1635_v49 = vpop.eup %1634  ;;  %1313 = vst.msk [vmem:[%s2473_s6 + $0x60] sm:$0xf] %vm1288_vm1, %v1418_v23  ;;  %v1142_v55 = vadd.f32 %v2242_v17, %v1103_v56  ;;  %v1062_v7 = vmul.f32 %v1633_v48, %v2194_v28 }
 0x255   :  { %1298 = vst.msk [vmem:[%s2473_s6 + $0x24] sm:$0xf] %vm1288_vm1, %v1403_v50  ;;  %v1153_v33 = vadd.f32 %v2242_v17, %v1114_v24  ;;  %v1065_v61 = vmul.f32 %v1635_v49, %v2186_v41 }
 0x256   :  { %1644 = vrsqrt.f32 %v1017_v54  ;;  %v1408_v38 = vpack.c.bf16 %v1142_v55, %v1142_v55  ;;  %v1101_v59 = vmul.f32 %v2236_v10, %v1062_v7 }
 0x257   :  { %v1637_v60 = vpop.eup %1636  ;;  %v1419_v63 = vpack.c.bf16 %v1153_v33, %v1153_v33  ;;  %v1104_v52 = vmul.f32 %v2236_v10, %v1065_v61 }
 0x258   :  { %v1639_v37 = vpop.eup %1638  ;;  %1303 = vst.msk [vmem:[%s2473_s6 + $0x38] sm:$0xf] %vm1288_vm1, %v1408_v38  ;;  %v1140_v28 = vadd.f32 %v2242_v17, %v1101_v59  ;;  %v1078_v30 = vmul.f32 %v1637_v60, %v2207_v58 }
 0x259   :  { %1314 = vst.msk [vmem:[%s2473_s6 + $0x64] sm:$0xf] %vm1288_vm1, %v1419_v63  ;;  %v1143_v41 = vadd.f32 %v2242_v17, %v1104_v52  ;;  %v1063_v31 = vmul.f32 %v1639_v37, %v2197_v29 }
 0x25a   :  { %v1406_v46 = vpack.c.bf16 %v1140_v28, %v1140_v28  ;;  %v1117_v3 = vmul.f32 %v2236_v10, %v1078_v30 }
 0x25b   :  { %v1641_v57 = vpop.eup %1640  ;;  %v1409_v5 = vpack.c.bf16 %v1143_v41, %v1143_v41  ;;  %v1102_v18 = vmul.f32 %v2236_v10, %v1063_v31 }
 0x25c   :  { %v1643_v8 = vpop.eup %1642  ;;  %1301 = vst.msk [vmem:[%s2473_s6 + $0x30] sm:$0xf] %vm1288_vm1, %v1406_v46  ;;  %v1156_v58 = vadd.f32 %v2242_v17, %v1117_v3  ;;  %v1080_v9 = vmul.f32 %v1641_v57, %v2218_v0 }
 0x25d   :  { %1304 = vst.msk [vmem:[%s2473_s6 + $0x3c] sm:$0xf] %vm1288_vm1, %v1409_v5  ;;  %v1141_v29 = vadd.f32 %v2242_v17, %v1102_v18  ;;  %v1079_v11 = vmul.f32 %v1643_v8, %v2210_v4 }
 0x25e   :  { %v1422_v53 = vpack.c.bf16 %v1156_v58, %v1156_v58  ;;  %v1119_v16 = vmul.f32 %v2236_v10, %v1080_v9 }
 0x25f   :  { %v1407_v44 = vpack.c.bf16 %v1141_v29, %v1141_v29  ;;  %v1118_v51 = vmul.f32 %v2236_v10, %v1079_v11 }
 0x260   :  { %v1645_v13 = vpop.eup %1644  ;;  %1317 = vst.msk [vmem:[%s2473_s6 + $0x70] sm:$0xf] %vm1288_vm1, %v1422_v53  ;;  %v1158_v0 = vadd.f32 %v2242_v17, %v1119_v16 }
 0x261   :  { %v1081_v39 = vmul.f32 %v1645_v13, %v2221_v1  ;;  %1302 = vst.msk [vmem:[%s2473_s6 + $0x34] sm:$0xf] %vm1288_vm1, %v1407_v44  ;;  %v1157_v4 = vadd.f32 %v2242_v17, %v1118_v51 }
 0x262   :  { %v1424_v19 = vpack.c.bf16 %v1158_v0, %v1158_v0 }
 0x263   :  { %v1120_v25 = vmul.f32 %v2236_v10, %v1081_v39  ;;  %v1423_v62 = vpack.c.bf16 %v1157_v4, %v1157_v4 }
 0x264   :  { %1319 = vst.msk [vmem:[%s2473_s6 + $0x78] sm:$0xf] %vm1288_vm1, %v1424_v19 }
 0x265   :  { %v1159_v27 = vadd.f32 %v2242_v17, %v1120_v25  ;;  %1318 = vst.msk [vmem:[%s2473_s6 + $0x74] sm:$0xf] %vm1288_vm1, %v1423_v62 }
 0x267   :  { %v1425_v1 = vpack.c.bf16 %v1159_v27, %v1159_v27 }
 0x269   :  { %1320 = vst.msk [vmem:[%s2473_s6 + $0x7c] sm:$0xf] %vm1288_vm1, %v1425_v1 }

</bundles_post_ra>
